<compile_context>
chip_gen: v7x
topology: tpu7x:2x2x1
jax: 0.10.0
libtpu: 0.0.40
codegen_flags: <defaults>
</compile_context>

<pallas_src>
import functools
import math

import jax
import jax.numpy as jnp
from jax.experimental import pallas as pl
from jax.experimental.pallas import tpu as pltpu

CFG = dict(vocab=100, hidden=32, heads=2, layers=2, inter=64,
           max_pos=32, types=2, labels=9)


# ----------------------------- fused Pallas kernel ----------------------------

def _bert_crf_kernel(x_ref, bias_ref, mask_ref, embln_ref,
                     wqkv_ref, bqkv_ref, wo_ref, lvec_ref,
                     wi_ref, bi_ref, wo2_ref, wc_ref, cvec_ref, trans_ref,
                     tags_ref, *, n_heads, scale, eps):
    """One grid step == whole batch: BERT encoder + classifier + batched Viterbi."""
    R, H = x_ref.shape                  # R = S*B rows, t-major (row = t*B + b)
    B, S = mask_ref.shape
    L = trans_ref.shape[0]
    n_layers = wqkv_ref.shape[0]
    Dh = H // n_heads

    def ln(v, g, b):
        mu = jnp.mean(v, axis=-1, keepdims=True)
        var = jnp.mean(jnp.square(v - mu), axis=-1, keepdims=True)
        return (v - mu) * jax.lax.rsqrt(var + eps) * g + b

    # ---------------- BERT encoder on the folded (S*B, H) row block -----------
    embln = embln_ref[...]
    x = ln(x_ref[...], embln[0:1, :], embln[1:2, :])    # embedding LN, no residual
    bias = bias_ref[...]            # (R, R): key-padding + cross-sequence -10000

    for l in range(n_layers):                           # static unroll
        lv = lvec_ref[l]                                # (6,H): bo,ln1g,ln1b,bo2,ln2g,ln2b
        # fused QKV projection: one (R,H) @ (H,3H) matmul for the whole batch
        qkv = jnp.dot(x, wqkv_ref[l],
                      preferred_element_type=jnp.float32) + bqkv_ref[l]   # (R, 3H)
        wo_l = wo_ref[l]                                                  # (H, H)

        # per-head attention on static lane slices; head-concat folded into the
        # output projection: concat(ctx_h) @ Wo == sum_h ctx_h @ Wo[h*Dh:(h+1)*Dh]
        attn = jnp.zeros((R, H), jnp.float32)
        for h in range(n_heads):
            q_h = qkv[:, h * Dh:(h + 1) * Dh]
            k_h = qkv[:, H + h * Dh: H + (h + 1) * Dh]
            v_h = qkv[:, 2 * H + h * Dh: 2 * H + (h + 1) * Dh]
            s = jax.lax.dot_general(q_h, k_h, (((1,), (1,)), ((), ())),
                                    preferred_element_type=jnp.float32) * scale
            s = s + bias                                # (R, R) masked scores
            m = jnp.max(s, axis=-1, keepdims=True)
            p = jnp.exp(s - m)
            p = p * pl.reciprocal(jnp.sum(p, axis=-1, keepdims=True), approx=True)
            ctx = jnp.dot(p, v_h, preferred_element_type=jnp.float32)     # (R, Dh)
            attn = attn + jnp.dot(ctx, wo_l[h * Dh:(h + 1) * Dh, :],
                                  preferred_element_type=jnp.float32)
        x = ln(attn + lv[0:1, :] + x, lv[1:2, :], lv[2:3, :])

        # feed-forward
        hmid = jnp.dot(x, wi_ref[l], preferred_element_type=jnp.float32) + bi_ref[l]
        # TODO(synk): HF BERT default is erf-GELU; tanh approximation used (TPU-safe).
        hmid = jax.nn.gelu(hmid, approximate=True)
        out = jnp.dot(hmid, wo2_ref[l], preferred_element_type=jnp.float32) + lv[3:4, :]
        x = ln(out + x, lv[4:5, :], lv[5:6, :])

    # ------------- classifier (dropout = identity at inference), fused --------
    cvec = cvec_ref[...]                                # (3,L): bc, crf_start, crf_end
    em = jnp.dot(x, wc_ref[...],
                 preferred_element_type=jnp.float32) + cvec[0:1, :]       # (R, L)

    # ------------- CRF Viterbi decode (torchcrf semantics), batched over B ----
    trans = trans_ref[...]                              # (L, L): trans[p, c]
    mask_v = mask_ref[...]                              # (B, S) int32, prefix of 1s
    diag = (jax.lax.broadcasted_iota(jnp.int32, (L, L), 0) ==
            jax.lax.broadcasted_iota(jnp.int32, (L, L), 1))
    iota_p3 = jax.lax.broadcasted_iota(jnp.int32, (B, L, L), 1)   # prev-tag index
    iota_l = jax.lax.broadcasted_iota(jnp.int32, (B, L), 1)
    iota_s = jax.lax.broadcasted_iota(jnp.int32, (B, S), 1)

    # t = 0: score = start_transitions + emissions[0]
    score = cvec[1:2, :] + em[0:B, :]                   # (B, L), carried in vregs

    history = []                                        # backpointers stay in vregs
    for t in range(1, S):                               # static unroll (S is static)
        em_t = em[t * B:(t + 1) * B, :]                 # (B, L)
        # running score row -> column orientation (prev tag on sublanes)
        score_col = jnp.sum(jnp.where(diag[None, :, :], score[:, None, :], 0.0),
                            axis=-1, keepdims=True)     # (B, L, 1)
        # ns[b, p, c] = score[b, p] + trans[p, c]
        ns = score_col + trans[None, :, :]              # (B, L, L)
        best = jnp.max(ns, axis=1, keepdims=True)       # (B, 1, L)
        bp = jnp.min(jnp.where(ns == best, iota_p3, L),
                     axis=1).astype(jnp.int32)          # (B, L) first-max prev tag
        history.append(bp)
        active = mask_v[:, t:t + 1] != 0                # (B, 1)
        score = jnp.where(active, best[:, 0, :] + em_t, score)

    final = score + cvec[2:3, :]                        # + end_transitions, (B, L)
    fbest = jnp.max(final, axis=-1, keepdims=True)
    cur = jnp.min(jnp.where(final == fbest, iota_l, L),
                  axis=-1, keepdims=True).astype(jnp.int32)   # (B, 1) last tag

    # backtrack: static unrolled, vectorized over batch; padded positions stay 0
    tags = jnp.zeros((B, S), jnp.int32)
    for t in range(S - 1, 0, -1):
        active = mask_v[:, t:t + 1] != 0                # (B, 1)
        tags = jnp.where(jnp.logical_and(iota_s == t, active), cur, tags)
        bp_t = history[t - 1]                           # (B, L) int32
        prev = jnp.sum(jnp.where(iota_l == cur, bp_t, 0),
                       axis=-1, keepdims=True).astype(jnp.int32)   # (B, 1)
        cur = jnp.where(active, prev, cur)
    # position 0 (mask[:, 0] == 1 required, same assumption as torchcrf.decode)
    tags = jnp.where(iota_s == 0, cur, tags)
    tags_ref[...] = tags


def _const_spec(shape):
    zeros = (0,) * len(shape)
    return pl.BlockSpec(shape, lambda i: zeros)


# ----------------------------- parameters & forward ---------------------------

def init_params(key, cfg):
    H, I, L, nL = cfg["hidden"], cfg["inter"], cfg["labels"], cfg["layers"]
    keys = iter(jax.random.split(key, 64))

    def nrm(shape, std=0.02):
        return jax.random.normal(next(keys), shape, jnp.float32) * std

    def uni(shape):
        return jax.random.uniform(next(keys), shape, jnp.float32, -0.1, 0.1)

    return {
        "word_emb": nrm((cfg["vocab"], H)),
        "pos_emb": nrm((cfg["max_pos"], H)),
        "type_emb": nrm((cfg["types"], H)),
        "emb_ln_g": jnp.ones((1, H), jnp.float32),
        "emb_ln_b": jnp.zeros((1, H), jnp.float32),
        # per-layer weights stacked along a leading layer axis; Wq/Wk/Wv fused
        "wqkv": nrm((nL, H, 3 * H)), "bqkv": jnp.zeros((nL, 1, 3 * H), jnp.float32),
        "wo": nrm((nL, H, H)), "bo": jnp.zeros((nL, 1, H), jnp.float32),
        "ln1_g": jnp.ones((nL, 1, H), jnp.float32),
        "ln1_b": jnp.zeros((nL, 1, H), jnp.float32),
        "wi": nrm((nL, H, I)), "bi": jnp.zeros((nL, 1, I), jnp.float32),
        "wo2": nrm((nL, I, H)), "bo2": jnp.zeros((nL, 1, H), jnp.float32),
        "ln2_g": jnp.ones((nL, 1, H), jnp.float32),
        "ln2_b": jnp.zeros((nL, 1, H), jnp.float32),
        "wc": nrm((H, L)), "bc": jnp.zeros((1, L), jnp.float32),
        "crf_start": uni((1, L)), "crf_end": uni((1, L)), "crf_trans": uni((L, L)),
    }


def bert_crf_forward(params, input_ids, attention_mask):
    """Equivalent of BERT_CRF.forward(input_ids, attention_mask, labels=None)."""
    B, S = input_ids.shape
    H, nH, L, nL, I = (CFG["hidden"], CFG["heads"], CFG["labels"],
                       CFG["layers"], CFG["inter"])
    Dh = H // nH
    scale = 1.0 / math.sqrt(Dh)

    # --- embedding gathers stay at JAX level (glue); LN happens in the kernel ---
    we = jnp.take(params["word_emb"], input_ids, axis=0)          # (B, S, H)
    pe = params["pos_emb"][:S][None, :, :]                        # (1, S, H)
    te = params["type_emb"][0][None, None, :]                     # (1, 1, H)
    x_emb = (we + pe + te).astype(jnp.float32)                    # (B, S, H)
    # fold the batch into matmul rows, t-major: row = t*B + b
    x_rows = jnp.transpose(x_emb, (1, 0, 2)).reshape(S * B, H)    # (S*B, H)

    mask = attention_mask.astype(jnp.int32)                       # (B, S)
    # combined additive attention bias over folded rows: HF-style -10000 on padded
    # keys plus -10000 on cross-sequence pairs (block-diagonal attention)
    key_ok = (jnp.transpose(mask).reshape(S * B) == 1)            # validity per key row
    row_b = jnp.arange(S * B, dtype=jnp.int32) % B                # sequence id per row
    same_seq = row_b[:, None] == row_b[None, :]
    bias_full = jnp.where(same_seq & key_ok[None, :], 0.0, -10000.0).astype(jnp.float32)

    # pack the many tiny per-layer / classifier / CRF vectors into a few inputs
    layer_vecs = jnp.concatenate([params["bo"], params["ln1_g"], params["ln1_b"],
                                  params["bo2"], params["ln2_g"], params["ln2_b"]],
                                 axis=1)                          # (nL, 6, H)
    emb_ln = jnp.concatenate([params["emb_ln_g"], params["emb_ln_b"]], axis=0)  # (2, H)
    cls_crf = jnp.concatenate([params["bc"], params["crf_start"], params["crf_end"]],
                              axis=0)                             # (3, L)

    kernel = functools.partial(_bert_crf_kernel, n_heads=nH, scale=scale, eps=1e-12)

    tags = pl.pallas_call(
        kernel,
        out_shape=jax.ShapeDtypeStruct((B, S), jnp.int32),
        grid=(1,),               # whole forward (all sequences folded) in one step
        in_specs=[
            _const_spec((S * B, H)),            # folded embeddings
            _const_spec((S * B, S * B)),        # additive attention bias
            _const_spec((B, S)),                # attention mask (int32)
            _const_spec((2, H)),                # embedding LN gamma/beta
            _const_spec((nL, H, 3 * H)),        # fused QKV weights
            _const_spec((nL, 1, 3 * H)),        # fused QKV bias
            _const_spec((nL, H, H)),            # attention output projection
            _const_spec((nL, 6, H)),            # packed per-layer bias/LN vectors
            _const_spec((nL, H, I)),            # FFN in weight
            _const_spec((nL, 1, I)),            # FFN in bias
            _const_spec((nL, I, H)),            # FFN out weight
            _const_spec((H, L)),                # classifier weight
            _const_spec((3, L)),                # classifier bias + CRF start/end
            _const_spec((L, L)),                # CRF transitions
        ],
        out_specs=_const_spec((B, S)),
        compiler_params=pltpu.CompilerParams(
            dimension_semantics=("arbitrary",),
            # Everything (weights + activations) is resident in VMEM: <1 MiB at this
            # toy config.  Real BERT sizes need a streamed per-layer grid (bf16).
            vmem_limit_bytes=32 * 1024 * 1024),
    )(x_rows, bias_full, mask, emb_ln,
      params["wqkv"], params["bqkv"], params["wo"], layer_vecs,
      params["wi"], params["bi"], params["wo2"],
      params["wc"], cls_crf, params["crf_trans"])

    return tags


# ----------------------------- main -------------------------------------------

if __name__ == "__main__":
    key = jax.random.PRNGKey(0)
    pkey, ikey = jax.random.split(key)
    params = init_params(pkey, CFG)

    B, S = 2, 16
    input_ids = jax.random.randint(ikey, (B, S), 0, CFG["vocab"], dtype=jnp.int32)
    # CRF decode requires mask[:, 0] == 1 and a contiguous prefix of 1s (as torchcrf)
    attention_mask = jnp.array([[1] * 16,
                                [1] * 10 + [0] * 6], dtype=jnp.int32)

    tags = jax.jit(bert_crf_forward)(params, input_ids, attention_mask)
    jax.block_until_ready(tags)
    print("KERNEL_OK")
</pallas_src>

<mosaic_0001>
module attributes {stable_mosaic.version = 11 : i64} {
  func.func @_bert_crf_kernel(%arg0: i32, %arg1: memref<32x32xf32, #tpu.memory_space<vmem>>, %arg2: memref<32x32xf32, #tpu.memory_space<vmem>>, %arg3: memref<2x16xi32, #tpu.memory_space<vmem>>, %arg4: memref<2x32xf32, #tpu.memory_space<vmem>>, %arg5: memref<2x32x96xf32, #tpu.memory_space<vmem>>, %arg6: memref<2x1x96xf32, #tpu.memory_space<vmem>>, %arg7: memref<2x32x32xf32, #tpu.memory_space<vmem>>, %arg8: memref<2x6x32xf32, #tpu.memory_space<vmem>>, %arg9: memref<2x32x64xf32, #tpu.memory_space<vmem>>, %arg10: memref<2x1x64xf32, #tpu.memory_space<vmem>>, %arg11: memref<2x64x32xf32, #tpu.memory_space<vmem>>, %arg12: memref<32x9xf32, #tpu.memory_space<vmem>>, %arg13: memref<3x9xf32, #tpu.memory_space<vmem>>, %arg14: memref<9x9xf32, #tpu.memory_space<vmem>>, %arg15: memref<2x16xi32, #tpu.memory_space<vmem>>) attributes {dimension_semantics = [#tpu.dimension_semantics<arbitrary>], iteration_bounds = array<i64: 1>, scalar_prefetch = 0 : i64, scratch_operands = 0 : i64, tpu.core_type = #tpu.core_type<tc>, window_params = [{pipeline_mode = #tpu.pipeline_mode<synchronous>, transform_indices = @transform_0, window_bounds = array<i64: 32, 32>}, {pipeline_mode = #tpu.pipeline_mode<synchronous>, transform_indices = @transform_1, window_bounds = array<i64: 32, 32>}, {pipeline_mode = #tpu.pipeline_mode<synchronous>, transform_indices = @transform_2, window_bounds = array<i64: 2, 16>}, {pipeline_mode = #tpu.pipeline_mode<synchronous>, transform_indices = @transform_3, window_bounds = array<i64: 2, 32>}, {pipeline_mode = #tpu.pipeline_mode<synchronous>, transform_indices = @transform_4, window_bounds = array<i64: 2, 32, 96>}, {pipeline_mode = #tpu.pipeline_mode<synchronous>, transform_indices = @transform_5, window_bounds = array<i64: 2, 1, 96>}, {pipeline_mode = #tpu.pipeline_mode<synchronous>, transform_indices = @transform_6, window_bounds = array<i64: 2, 32, 32>}, {pipeline_mode = #tpu.pipeline_mode<synchronous>, transform_indices = @transform_7, window_bounds = array<i64: 2, 6, 32>}, {pipeline_mode = #tpu.pipeline_mode<synchronous>, transform_indices = @transform_8, window_bounds = array<i64: 2, 32, 64>}, {pipeline_mode = #tpu.pipeline_mode<synchronous>, transform_indices = @transform_9, window_bounds = array<i64: 2, 1, 64>}, {pipeline_mode = #tpu.pipeline_mode<synchronous>, transform_indices = @transform_10, window_bounds = array<i64: 2, 64, 32>}, {pipeline_mode = #tpu.pipeline_mode<synchronous>, transform_indices = @transform_11, window_bounds = array<i64: 32, 9>}, {pipeline_mode = #tpu.pipeline_mode<synchronous>, transform_indices = @transform_12, window_bounds = array<i64: 3, 9>}, {pipeline_mode = #tpu.pipeline_mode<synchronous>, transform_indices = @transform_13, window_bounds = array<i64: 9, 9>}, {pipeline_mode = #tpu.pipeline_mode<synchronous>, transform_indices = @transform_14, window_bounds = array<i64: 2, 16>}]} {
    %c0 = arith.constant 0 : index
    %c0_0 = arith.constant 0 : index
    %0 = vector.load %arg4[%c0, %c0_0] : memref<2x32xf32, #tpu.memory_space<vmem>>, vector<2x32xf32>
    %c0_1 = arith.constant 0 : index
    %c0_2 = arith.constant 0 : index
    %1 = vector.load %arg1[%c0_1, %c0_2] : memref<32x32xf32, #tpu.memory_space<vmem>>, vector<32x32xf32>
    %2 = vector.extract_strided_slice %0 {offsets = [0, 0], sizes = [1, 32], strides = [1, 1]} : vector<2x32xf32> to vector<1x32xf32>
    %3 = vector.extract_strided_slice %0 {offsets = [1, 0], sizes = [1, 32], strides = [1, 1]} : vector<2x32xf32> to vector<1x32xf32>
    %cst = arith.constant dense<0.000000e+00> : vector<32xf32>
    %4 = vector.multi_reduction <add>, %1, %cst [1] : vector<32x32xf32> to vector<32xf32>
    %5 = vector.shape_cast %4 : vector<32xf32> to vector<32x1xf32>
    %cst_3 = arith.constant 3.200000e+01 : f32
    %6 = vector.broadcast %cst_3 : f32 to vector<32x1xf32>
    %7 = arith.divf %5, %6 : vector<32x1xf32>
    %8 = vector.broadcast %7 : vector<32x1xf32> to vector<32x32xf32>
    %9 = arith.subf %1, %8 : vector<32x32xf32>
    %10 = arith.mulf %9, %9 : vector<32x32xf32>
    %cst_4 = arith.constant dense<0.000000e+00> : vector<32xf32>
    %11 = vector.multi_reduction <add>, %10, %cst_4 [1] : vector<32x32xf32> to vector<32xf32>
    %12 = vector.shape_cast %11 : vector<32xf32> to vector<32x1xf32>
    %cst_5 = arith.constant 3.200000e+01 : f32
    %13 = vector.broadcast %cst_5 : f32 to vector<32x1xf32>
    %14 = arith.divf %12, %13 : vector<32x1xf32>
    %15 = vector.broadcast %7 : vector<32x1xf32> to vector<32x32xf32>
    %16 = arith.subf %1, %15 : vector<32x32xf32>
    %cst_6 = arith.constant 9.99999996E-13 : f32
    %17 = vector.broadcast %cst_6 : f32 to vector<32x1xf32>
    %18 = arith.addf %14, %17 : vector<32x1xf32>
    %19 = math.rsqrt %18 : vector<32x1xf32>
    %20 = vector.broadcast %19 : vector<32x1xf32> to vector<32x32xf32>
    %21 = arith.mulf %16, %20 : vector<32x32xf32>
    %22 = vector.broadcast %2 : vector<1x32xf32> to vector<32x32xf32>
    %23 = arith.mulf %21, %22 : vector<32x32xf32>
    %24 = vector.broadcast %3 : vector<1x32xf32> to vector<32x32xf32>
    %25 = arith.addf %23, %24 : vector<32x32xf32>
    %c0_7 = arith.constant 0 : index
    %c0_8 = arith.constant 0 : index
    %26 = vector.load %arg2[%c0_7, %c0_8] : memref<32x32xf32, #tpu.memory_space<vmem>>, vector<32x32xf32>
    %c0_9 = arith.constant 0 : index
    %c0_10 = arith.constant 0 : index
    %c0_11 = arith.constant 0 : index
    %27 = vector.load %arg8[%c0_9, %c0_10, %c0_11] : memref<2x6x32xf32, #tpu.memory_space<vmem>>, vector<1x6x32xf32>
    %28 = vector.shape_cast %27 : vector<1x6x32xf32> to vector<6x32xf32>
    %c0_12 = arith.constant 0 : index
    %c0_13 = arith.constant 0 : index
    %c0_14 = arith.constant 0 : index
    %29 = vector.load %arg5[%c0_12, %c0_13, %c0_14] : memref<2x32x96xf32, #tpu.memory_space<vmem>>, vector<1x32x96xf32>
    %30 = vector.shape_cast %29 : vector<1x32x96xf32> to vector<32x96xf32>
    %cst_15 = arith.constant dense<0.000000e+00> : vector<32x96xf32>
    %31 = tpu.matmul %25, %30, %cst_15 {dimension_numbers = #tpu.dot_dimension_numbers<[1], [0], [0], [1], [0, 0, 1, 1], [], []>} : vector<32x32xf32>, vector<32x96xf32>, vector<32x96xf32> -> vector<32x96xf32>
    %c0_16 = arith.constant 0 : index
    %c0_17 = arith.constant 0 : index
    %c0_18 = arith.constant 0 : index
    %32 = vector.load %arg6[%c0_16, %c0_17, %c0_18] : memref<2x1x96xf32, #tpu.memory_space<vmem>>, vector<1x1x96xf32>
    %33 = vector.shape_cast %32 : vector<1x1x96xf32> to vector<1x96xf32>
    %34 = vector.broadcast %33 : vector<1x96xf32> to vector<32x96xf32>
    %35 = arith.addf %31, %34 : vector<32x96xf32>
    %c0_19 = arith.constant 0 : index
    %c0_20 = arith.constant 0 : index
    %c0_21 = arith.constant 0 : index
    %36 = vector.load %arg7[%c0_19, %c0_20, %c0_21] : memref<2x32x32xf32, #tpu.memory_space<vmem>>, vector<1x32x32xf32>
    %37 = vector.shape_cast %36 : vector<1x32x32xf32> to vector<32x32xf32>
    %cst_22 = arith.constant 0.000000e+00 : f32
    %38 = vector.broadcast %cst_22 : f32 to vector<32x32xf32>
    %39 = vector.extract_strided_slice %35 {offsets = [0, 0], sizes = [32, 16], strides = [1, 1]} : vector<32x96xf32> to vector<32x16xf32>
    %40 = vector.extract_strided_slice %35 {offsets = [0, 32], sizes = [32, 16], strides = [1, 1]} : vector<32x96xf32> to vector<32x16xf32>
    %41 = vector.extract_strided_slice %35 {offsets = [0, 64], sizes = [32, 16], strides = [1, 1]} : vector<32x96xf32> to vector<32x16xf32>
    %cst_23 = arith.constant dense<0.000000e+00> : vector<32x32xf32>
    %42 = tpu.matmul %39, %40, %cst_23 {dimension_numbers = #tpu.dot_dimension_numbers<[1], [1], [0], [0], [0, 0, 1, 0], [], []>} : vector<32x16xf32>, vector<32x16xf32>, vector<32x32xf32> -> vector<32x32xf32>
    %cst_24 = arith.constant 2.500000e-01 : f32
    %43 = vector.broadcast %cst_24 : f32 to vector<32x32xf32>
    %44 = arith.mulf %42, %43 : vector<32x32xf32>
    %45 = arith.addf %44, %26 : vector<32x32xf32>
    %cst_25 = arith.constant dense<0xFF800000> : vector<32xf32>
    %46 = vector.multi_reduction <maximumf>, %45, %cst_25 [1] : vector<32x32xf32> to vector<32xf32>
    %47 = vector.shape_cast %46 : vector<32xf32> to vector<32x1xf32>
    %48 = vector.broadcast %47 : vector<32x1xf32> to vector<32x32xf32>
    %49 = arith.subf %45, %48 : vector<32x32xf32>
    %50 = math.exp %49 : vector<32x32xf32>
    %cst_26 = arith.constant dense<0.000000e+00> : vector<32xf32>
    %51 = vector.multi_reduction <add>, %50, %cst_26 [1] : vector<32x32xf32> to vector<32xf32>
    %52 = vector.shape_cast %51 : vector<32xf32> to vector<32x1xf32>
    %53 = tpu.reciprocal %52 {approx = true} : vector<32x1xf32> -> vector<32x1xf32>
    %54 = vector.broadcast %53 : vector<32x1xf32> to vector<32x32xf32>
    %55 = arith.mulf %50, %54 : vector<32x32xf32>
    %cst_27 = arith.constant dense<0.000000e+00> : vector<32x16xf32>
    %56 = tpu.matmul %55, %41, %cst_27 {dimension_numbers = #tpu.dot_dimension_numbers<[1], [0], [0], [1], [0, 0, 1, 1], [], []>} : vector<32x32xf32>, vector<32x16xf32>, vector<32x16xf32> -> vector<32x16xf32>
    %57 = vector.extract_strided_slice %37 {offsets = [0, 0], sizes = [16, 32], strides = [1, 1]} : vector<32x32xf32> to vector<16x32xf32>
    %cst_28 = arith.constant dense<0.000000e+00> : vector<32x32xf32>
    %58 = tpu.matmul %56, %57, %cst_28 {dimension_numbers = #tpu.dot_dimension_numbers<[1], [0], [0], [1], [0, 0, 1, 1], [], []>} : vector<32x16xf32>, vector<16x32xf32>, vector<32x32xf32> -> vector<32x32xf32>
    %59 = arith.addf %38, %58 : vector<32x32xf32>
    %60 = vector.extract_strided_slice %35 {offsets = [0, 16], sizes = [32, 16], strides = [1, 1]} : vector<32x96xf32> to vector<32x16xf32>
    %61 = vector.extract_strided_slice %35 {offsets = [0, 48], sizes = [32, 16], strides = [1, 1]} : vector<32x96xf32> to vector<32x16xf32>
    %62 = vector.extract_strided_slice %35 {offsets = [0, 80], sizes = [32, 16], strides = [1, 1]} : vector<32x96xf32> to vector<32x16xf32>
    %cst_29 = arith.constant dense<0.000000e+00> : vector<32x32xf32>
    %63 = tpu.matmul %60, %61, %cst_29 {dimension_numbers = #tpu.dot_dimension_numbers<[1], [1], [0], [0], [0, 0, 1, 0], [], []>} : vector<32x16xf32>, vector<32x16xf32>, vector<32x32xf32> -> vector<32x32xf32>
    %cst_30 = arith.constant 2.500000e-01 : f32
    %64 = vector.broadcast %cst_30 : f32 to vector<32x32xf32>
    %65 = arith.mulf %63, %64 : vector<32x32xf32>
    %66 = arith.addf %65, %26 : vector<32x32xf32>
    %cst_31 = arith.constant dense<0xFF800000> : vector<32xf32>
    %67 = vector.multi_reduction <maximumf>, %66, %cst_31 [1] : vector<32x32xf32> to vector<32xf32>
    %68 = vector.shape_cast %67 : vector<32xf32> to vector<32x1xf32>
    %69 = vector.broadcast %68 : vector<32x1xf32> to vector<32x32xf32>
    %70 = arith.subf %66, %69 : vector<32x32xf32>
    %71 = math.exp %70 : vector<32x32xf32>
    %cst_32 = arith.constant dense<0.000000e+00> : vector<32xf32>
    %72 = vector.multi_reduction <add>, %71, %cst_32 [1] : vector<32x32xf32> to vector<32xf32>
    %73 = vector.shape_cast %72 : vector<32xf32> to vector<32x1xf32>
    %74 = tpu.reciprocal %73 {approx = true} : vector<32x1xf32> -> vector<32x1xf32>
    %75 = vector.broadcast %74 : vector<32x1xf32> to vector<32x32xf32>
    %76 = arith.mulf %71, %75 : vector<32x32xf32>
    %cst_33 = arith.constant dense<0.000000e+00> : vector<32x16xf32>
    %77 = tpu.matmul %76, %62, %cst_33 {dimension_numbers = #tpu.dot_dimension_numbers<[1], [0], [0], [1], [0, 0, 1, 1], [], []>} : vector<32x32xf32>, vector<32x16xf32>, vector<32x16xf32> -> vector<32x16xf32>
    %78 = vector.extract_strided_slice %37 {offsets = [16, 0], sizes = [16, 32], strides = [1, 1]} : vector<32x32xf32> to vector<16x32xf32>
    %cst_34 = arith.constant dense<0.000000e+00> : vector<32x32xf32>
    %79 = tpu.matmul %77, %78, %cst_34 {dimension_numbers = #tpu.dot_dimension_numbers<[1], [0], [0], [1], [0, 0, 1, 1], [], []>} : vector<32x16xf32>, vector<16x32xf32>, vector<32x32xf32> -> vector<32x32xf32>
    %80 = arith.addf %59, %79 : vector<32x32xf32>
    %81 = vector.extract_strided_slice %28 {offsets = [0, 0], sizes = [1, 32], strides = [1, 1]} : vector<6x32xf32> to vector<1x32xf32>
    %82 = vector.broadcast %81 : vector<1x32xf32> to vector<32x32xf32>
    %83 = arith.addf %80, %82 : vector<32x32xf32>
    %84 = arith.addf %83, %25 : vector<32x32xf32>
    %85 = vector.extract_strided_slice %28 {offsets = [1, 0], sizes = [1, 32], strides = [1, 1]} : vector<6x32xf32> to vector<1x32xf32>
    %86 = vector.extract_strided_slice %28 {offsets = [2, 0], sizes = [1, 32], strides = [1, 1]} : vector<6x32xf32> to vector<1x32xf32>
    %cst_35 = arith.constant dense<0.000000e+00> : vector<32xf32>
    %87 = vector.multi_reduction <add>, %84, %cst_35 [1] : vector<32x32xf32> to vector<32xf32>
    %88 = vector.shape_cast %87 : vector<32xf32> to vector<32x1xf32>
    %cst_36 = arith.constant 3.200000e+01 : f32
    %89 = vector.broadcast %cst_36 : f32 to vector<32x1xf32>
    %90 = arith.divf %88, %89 : vector<32x1xf32>
    %91 = vector.broadcast %90 : vector<32x1xf32> to vector<32x32xf32>
    %92 = arith.subf %84, %91 : vector<32x32xf32>
    %93 = arith.mulf %92, %92 : vector<32x32xf32>
    %cst_37 = arith.constant dense<0.000000e+00> : vector<32xf32>
    %94 = vector.multi_reduction <add>, %93, %cst_37 [1] : vector<32x32xf32> to vector<32xf32>
    %95 = vector.shape_cast %94 : vector<32xf32> to vector<32x1xf32>
    %cst_38 = arith.constant 3.200000e+01 : f32
    %96 = vector.broadcast %cst_38 : f32 to vector<32x1xf32>
    %97 = arith.divf %95, %96 : vector<32x1xf32>
    %98 = vector.broadcast %90 : vector<32x1xf32> to vector<32x32xf32>
    %99 = arith.subf %84, %98 : vector<32x32xf32>
    %cst_39 = arith.constant 9.99999996E-13 : f32
    %100 = vector.broadcast %cst_39 : f32 to vector<32x1xf32>
    %101 = arith.addf %97, %100 : vector<32x1xf32>
    %102 = math.rsqrt %101 : vector<32x1xf32>
    %103 = vector.broadcast %102 : vector<32x1xf32> to vector<32x32xf32>
    %104 = arith.mulf %99, %103 : vector<32x32xf32>
    %105 = vector.broadcast %85 : vector<1x32xf32> to vector<32x32xf32>
    %106 = arith.mulf %104, %105 : vector<32x32xf32>
    %107 = vector.broadcast %86 : vector<1x32xf32> to vector<32x32xf32>
    %108 = arith.addf %106, %107 : vector<32x32xf32>
    %c0_40 = arith.constant 0 : index
    %c0_41 = arith.constant 0 : index
    %c0_42 = arith.constant 0 : index
    %109 = vector.load %arg9[%c0_40, %c0_41, %c0_42] : memref<2x32x64xf32, #tpu.memory_space<vmem>>, vector<1x32x64xf32>
    %110 = vector.shape_cast %109 : vector<1x32x64xf32> to vector<32x64xf32>
    %cst_43 = arith.constant dense<0.000000e+00> : vector<32x64xf32>
    %111 = tpu.matmul %108, %110, %cst_43 {dimension_numbers = #tpu.dot_dimension_numbers<[1], [0], [0], [1], [0, 0, 1, 1], [], []>} : vector<32x32xf32>, vector<32x64xf32>, vector<32x64xf32> -> vector<32x64xf32>
    %c0_44 = arith.constant 0 : index
    %c0_45 = arith.constant 0 : index
    %c0_46 = arith.constant 0 : index
    %112 = vector.load %arg10[%c0_44, %c0_45, %c0_46] : memref<2x1x64xf32, #tpu.memory_space<vmem>>, vector<1x1x64xf32>
    %113 = vector.shape_cast %112 : vector<1x1x64xf32> to vector<1x64xf32>
    %114 = vector.broadcast %113 : vector<1x64xf32> to vector<32x64xf32>
    %115 = arith.addf %111, %114 : vector<32x64xf32>
    %116 = arith.mulf %115, %115 : vector<32x64xf32>
    %117 = arith.mulf %115, %116 : vector<32x64xf32>
    %cst_47 = arith.constant 4.471500e-02 : f32
    %118 = vector.broadcast %cst_47 : f32 to vector<32x64xf32>
    %119 = arith.mulf %118, %117 : vector<32x64xf32>
    %120 = arith.addf %115, %119 : vector<32x64xf32>
    %cst_48 = arith.constant 0.797884583 : f32
    %121 = vector.broadcast %cst_48 : f32 to vector<32x64xf32>
    %122 = arith.mulf %121, %120 : vector<32x64xf32>
    %123 = math.tanh %122 : vector<32x64xf32>
    %cst_49 = arith.constant 1.000000e+00 : f32
    %124 = vector.broadcast %cst_49 : f32 to vector<32x64xf32>
    %125 = arith.addf %124, %123 : vector<32x64xf32>
    %cst_50 = arith.constant 5.000000e-01 : f32
    %126 = vector.broadcast %cst_50 : f32 to vector<32x64xf32>
    %127 = arith.mulf %126, %125 : vector<32x64xf32>
    %128 = arith.mulf %115, %127 : vector<32x64xf32>
    %c0_51 = arith.constant 0 : index
    %c0_52 = arith.constant 0 : index
    %c0_53 = arith.constant 0 : index
    %129 = vector.load %arg11[%c0_51, %c0_52, %c0_53] : memref<2x64x32xf32, #tpu.memory_space<vmem>>, vector<1x64x32xf32>
    %130 = vector.shape_cast %129 : vector<1x64x32xf32> to vector<64x32xf32>
    %cst_54 = arith.constant dense<0.000000e+00> : vector<32x32xf32>
    %131 = tpu.matmul %128, %130, %cst_54 {dimension_numbers = #tpu.dot_dimension_numbers<[1], [0], [0], [1], [0, 0, 1, 1], [], []>} : vector<32x64xf32>, vector<64x32xf32>, vector<32x32xf32> -> vector<32x32xf32>
    %132 = vector.extract_strided_slice %28 {offsets = [3, 0], sizes = [1, 32], strides = [1, 1]} : vector<6x32xf32> to vector<1x32xf32>
    %133 = vector.broadcast %132 : vector<1x32xf32> to vector<32x32xf32>
    %134 = arith.addf %131, %133 : vector<32x32xf32>
    %135 = arith.addf %134, %108 : vector<32x32xf32>
    %136 = vector.extract_strided_slice %28 {offsets = [4, 0], sizes = [1, 32], strides = [1, 1]} : vector<6x32xf32> to vector<1x32xf32>
    %137 = vector.extract_strided_slice %28 {offsets = [5, 0], sizes = [1, 32], strides = [1, 1]} : vector<6x32xf32> to vector<1x32xf32>
    %cst_55 = arith.constant dense<0.000000e+00> : vector<32xf32>
    %138 = vector.multi_reduction <add>, %135, %cst_55 [1] : vector<32x32xf32> to vector<32xf32>
    %139 = vector.shape_cast %138 : vector<32xf32> to vector<32x1xf32>
    %cst_56 = arith.constant 3.200000e+01 : f32
    %140 = vector.broadcast %cst_56 : f32 to vector<32x1xf32>
    %141 = arith.divf %139, %140 : vector<32x1xf32>
    %142 = vector.broadcast %141 : vector<32x1xf32> to vector<32x32xf32>
    %143 = arith.subf %135, %142 : vector<32x32xf32>
    %144 = arith.mulf %143, %143 : vector<32x32xf32>
    %cst_57 = arith.constant dense<0.000000e+00> : vector<32xf32>
    %145 = vector.multi_reduction <add>, %144, %cst_57 [1] : vector<32x32xf32> to vector<32xf32>
    %146 = vector.shape_cast %145 : vector<32xf32> to vector<32x1xf32>
    %cst_58 = arith.constant 3.200000e+01 : f32
    %147 = vector.broadcast %cst_58 : f32 to vector<32x1xf32>
    %148 = arith.divf %146, %147 : vector<32x1xf32>
    %149 = vector.broadcast %141 : vector<32x1xf32> to vector<32x32xf32>
    %150 = arith.subf %135, %149 : vector<32x32xf32>
    %cst_59 = arith.constant 9.99999996E-13 : f32
    %151 = vector.broadcast %cst_59 : f32 to vector<32x1xf32>
    %152 = arith.addf %148, %151 : vector<32x1xf32>
    %153 = math.rsqrt %152 : vector<32x1xf32>
    %154 = vector.broadcast %153 : vector<32x1xf32> to vector<32x32xf32>
    %155 = arith.mulf %150, %154 : vector<32x32xf32>
    %156 = vector.broadcast %136 : vector<1x32xf32> to vector<32x32xf32>
    %157 = arith.mulf %155, %156 : vector<32x32xf32>
    %158 = vector.broadcast %137 : vector<1x32xf32> to vector<32x32xf32>
    %159 = arith.addf %157, %158 : vector<32x32xf32>
    %c1 = arith.constant 1 : index
    %c0_60 = arith.constant 0 : index
    %c0_61 = arith.constant 0 : index
    %160 = vector.load %arg8[%c1, %c0_60, %c0_61] : memref<2x6x32xf32, #tpu.memory_space<vmem>>, vector<1x6x32xf32>
    %161 = vector.shape_cast %160 : vector<1x6x32xf32> to vector<6x32xf32>
    %c1_62 = arith.constant 1 : index
    %c0_63 = arith.constant 0 : index
    %c0_64 = arith.constant 0 : index
    %162 = vector.load %arg5[%c1_62, %c0_63, %c0_64] : memref<2x32x96xf32, #tpu.memory_space<vmem>>, vector<1x32x96xf32>
    %163 = vector.shape_cast %162 : vector<1x32x96xf32> to vector<32x96xf32>
    %cst_65 = arith.constant dense<0.000000e+00> : vector<32x96xf32>
    %164 = tpu.matmul %159, %163, %cst_65 {dimension_numbers = #tpu.dot_dimension_numbers<[1], [0], [0], [1], [0, 0, 1, 1], [], []>} : vector<32x32xf32>, vector<32x96xf32>, vector<32x96xf32> -> vector<32x96xf32>
    %c1_66 = arith.constant 1 : index
    %c0_67 = arith.constant 0 : index
    %c0_68 = arith.constant 0 : index
    %165 = vector.load %arg6[%c1_66, %c0_67, %c0_68] : memref<2x1x96xf32, #tpu.memory_space<vmem>>, vector<1x1x96xf32>
    %166 = vector.shape_cast %165 : vector<1x1x96xf32> to vector<1x96xf32>
    %167 = vector.broadcast %166 : vector<1x96xf32> to vector<32x96xf32>
    %168 = arith.addf %164, %167 : vector<32x96xf32>
    %c1_69 = arith.constant 1 : index
    %c0_70 = arith.constant 0 : index
    %c0_71 = arith.constant 0 : index
    %169 = vector.load %arg7[%c1_69, %c0_70, %c0_71] : memref<2x32x32xf32, #tpu.memory_space<vmem>>, vector<1x32x32xf32>
    %170 = vector.shape_cast %169 : vector<1x32x32xf32> to vector<32x32xf32>
    %cst_72 = arith.constant 0.000000e+00 : f32
    %171 = vector.broadcast %cst_72 : f32 to vector<32x32xf32>
    %172 = vector.extract_strided_slice %168 {offsets = [0, 0], sizes = [32, 16], strides = [1, 1]} : vector<32x96xf32> to vector<32x16xf32>
    %173 = vector.extract_strided_slice %168 {offsets = [0, 32], sizes = [32, 16], strides = [1, 1]} : vector<32x96xf32> to vector<32x16xf32>
    %174 = vector.extract_strided_slice %168 {offsets = [0, 64], sizes = [32, 16], strides = [1, 1]} : vector<32x96xf32> to vector<32x16xf32>
    %cst_73 = arith.constant dense<0.000000e+00> : vector<32x32xf32>
    %175 = tpu.matmul %172, %173, %cst_73 {dimension_numbers = #tpu.dot_dimension_numbers<[1], [1], [0], [0], [0, 0, 1, 0], [], []>} : vector<32x16xf32>, vector<32x16xf32>, vector<32x32xf32> -> vector<32x32xf32>
    %cst_74 = arith.constant 2.500000e-01 : f32
    %176 = vector.broadcast %cst_74 : f32 to vector<32x32xf32>
    %177 = arith.mulf %175, %176 : vector<32x32xf32>
    %178 = arith.addf %177, %26 : vector<32x32xf32>
    %cst_75 = arith.constant dense<0xFF800000> : vector<32xf32>
    %179 = vector.multi_reduction <maximumf>, %178, %cst_75 [1] : vector<32x32xf32> to vector<32xf32>
    %180 = vector.shape_cast %179 : vector<32xf32> to vector<32x1xf32>
    %181 = vector.broadcast %180 : vector<32x1xf32> to vector<32x32xf32>
    %182 = arith.subf %178, %181 : vector<32x32xf32>
    %183 = math.exp %182 : vector<32x32xf32>
    %cst_76 = arith.constant dense<0.000000e+00> : vector<32xf32>
    %184 = vector.multi_reduction <add>, %183, %cst_76 [1] : vector<32x32xf32> to vector<32xf32>
    %185 = vector.shape_cast %184 : vector<32xf32> to vector<32x1xf32>
    %186 = tpu.reciprocal %185 {approx = true} : vector<32x1xf32> -> vector<32x1xf32>
    %187 = vector.broadcast %186 : vector<32x1xf32> to vector<32x32xf32>
    %188 = arith.mulf %183, %187 : vector<32x32xf32>
    %cst_77 = arith.constant dense<0.000000e+00> : vector<32x16xf32>
    %189 = tpu.matmul %188, %174, %cst_77 {dimension_numbers = #tpu.dot_dimension_numbers<[1], [0], [0], [1], [0, 0, 1, 1], [], []>} : vector<32x32xf32>, vector<32x16xf32>, vector<32x16xf32> -> vector<32x16xf32>
    %190 = vector.extract_strided_slice %170 {offsets = [0, 0], sizes = [16, 32], strides = [1, 1]} : vector<32x32xf32> to vector<16x32xf32>
    %cst_78 = arith.constant dense<0.000000e+00> : vector<32x32xf32>
    %191 = tpu.matmul %189, %190, %cst_78 {dimension_numbers = #tpu.dot_dimension_numbers<[1], [0], [0], [1], [0, 0, 1, 1], [], []>} : vector<32x16xf32>, vector<16x32xf32>, vector<32x32xf32> -> vector<32x32xf32>
    %192 = arith.addf %171, %191 : vector<32x32xf32>
    %193 = vector.extract_strided_slice %168 {offsets = [0, 16], sizes = [32, 16], strides = [1, 1]} : vector<32x96xf32> to vector<32x16xf32>
    %194 = vector.extract_strided_slice %168 {offsets = [0, 48], sizes = [32, 16], strides = [1, 1]} : vector<32x96xf32> to vector<32x16xf32>
    %195 = vector.extract_strided_slice %168 {offsets = [0, 80], sizes = [32, 16], strides = [1, 1]} : vector<32x96xf32> to vector<32x16xf32>
    %cst_79 = arith.constant dense<0.000000e+00> : vector<32x32xf32>
    %196 = tpu.matmul %193, %194, %cst_79 {dimension_numbers = #tpu.dot_dimension_numbers<[1], [1], [0], [0], [0, 0, 1, 0], [], []>} : vector<32x16xf32>, vector<32x16xf32>, vector<32x32xf32> -> vector<32x32xf32>
    %cst_80 = arith.constant 2.500000e-01 : f32
    %197 = vector.broadcast %cst_80 : f32 to vector<32x32xf32>
    %198 = arith.mulf %196, %197 : vector<32x32xf32>
    %199 = arith.addf %198, %26 : vector<32x32xf32>
    %cst_81 = arith.constant dense<0xFF800000> : vector<32xf32>
    %200 = vector.multi_reduction <maximumf>, %199, %cst_81 [1] : vector<32x32xf32> to vector<32xf32>
    %201 = vector.shape_cast %200 : vector<32xf32> to vector<32x1xf32>
    %202 = vector.broadcast %201 : vector<32x1xf32> to vector<32x32xf32>
    %203 = arith.subf %199, %202 : vector<32x32xf32>
    %204 = math.exp %203 : vector<32x32xf32>
    %cst_82 = arith.constant dense<0.000000e+00> : vector<32xf32>
    %205 = vector.multi_reduction <add>, %204, %cst_82 [1] : vector<32x32xf32> to vector<32xf32>
    %206 = vector.shape_cast %205 : vector<32xf32> to vector<32x1xf32>
    %207 = tpu.reciprocal %206 {approx = true} : vector<32x1xf32> -> vector<32x1xf32>
    %208 = vector.broadcast %207 : vector<32x1xf32> to vector<32x32xf32>
    %209 = arith.mulf %204, %208 : vector<32x32xf32>
    %cst_83 = arith.constant dense<0.000000e+00> : vector<32x16xf32>
    %210 = tpu.matmul %209, %195, %cst_83 {dimension_numbers = #tpu.dot_dimension_numbers<[1], [0], [0], [1], [0, 0, 1, 1], [], []>} : vector<32x32xf32>, vector<32x16xf32>, vector<32x16xf32> -> vector<32x16xf32>
    %211 = vector.extract_strided_slice %170 {offsets = [16, 0], sizes = [16, 32], strides = [1, 1]} : vector<32x32xf32> to vector<16x32xf32>
    %cst_84 = arith.constant dense<0.000000e+00> : vector<32x32xf32>
    %212 = tpu.matmul %210, %211, %cst_84 {dimension_numbers = #tpu.dot_dimension_numbers<[1], [0], [0], [1], [0, 0, 1, 1], [], []>} : vector<32x16xf32>, vector<16x32xf32>, vector<32x32xf32> -> vector<32x32xf32>
    %213 = arith.addf %192, %212 : vector<32x32xf32>
    %214 = vector.extract_strided_slice %161 {offsets = [0, 0], sizes = [1, 32], strides = [1, 1]} : vector<6x32xf32> to vector<1x32xf32>
    %215 = vector.broadcast %214 : vector<1x32xf32> to vector<32x32xf32>
    %216 = arith.addf %213, %215 : vector<32x32xf32>
    %217 = arith.addf %216, %159 : vector<32x32xf32>
    %218 = vector.extract_strided_slice %161 {offsets = [1, 0], sizes = [1, 32], strides = [1, 1]} : vector<6x32xf32> to vector<1x32xf32>
    %219 = vector.extract_strided_slice %161 {offsets = [2, 0], sizes = [1, 32], strides = [1, 1]} : vector<6x32xf32> to vector<1x32xf32>
    %cst_85 = arith.constant dense<0.000000e+00> : vector<32xf32>
    %220 = vector.multi_reduction <add>, %217, %cst_85 [1] : vector<32x32xf32> to vector<32xf32>
    %221 = vector.shape_cast %220 : vector<32xf32> to vector<32x1xf32>
    %cst_86 = arith.constant 3.200000e+01 : f32
    %222 = vector.broadcast %cst_86 : f32 to vector<32x1xf32>
    %223 = arith.divf %221, %222 : vector<32x1xf32>
    %224 = vector.broadcast %223 : vector<32x1xf32> to vector<32x32xf32>
    %225 = arith.subf %217, %224 : vector<32x32xf32>
    %226 = arith.mulf %225, %225 : vector<32x32xf32>
    %cst_87 = arith.constant dense<0.000000e+00> : vector<32xf32>
    %227 = vector.multi_reduction <add>, %226, %cst_87 [1] : vector<32x32xf32> to vector<32xf32>
    %228 = vector.shape_cast %227 : vector<32xf32> to vector<32x1xf32>
    %cst_88 = arith.constant 3.200000e+01 : f32
    %229 = vector.broadcast %cst_88 : f32 to vector<32x1xf32>
    %230 = arith.divf %228, %229 : vector<32x1xf32>
    %231 = vector.broadcast %223 : vector<32x1xf32> to vector<32x32xf32>
    %232 = arith.subf %217, %231 : vector<32x32xf32>
    %cst_89 = arith.constant 9.99999996E-13 : f32
    %233 = vector.broadcast %cst_89 : f32 to vector<32x1xf32>
    %234 = arith.addf %230, %233 : vector<32x1xf32>
    %235 = math.rsqrt %234 : vector<32x1xf32>
    %236 = vector.broadcast %235 : vector<32x1xf32> to vector<32x32xf32>
    %237 = arith.mulf %232, %236 : vector<32x32xf32>
    %238 = vector.broadcast %218 : vector<1x32xf32> to vector<32x32xf32>
    %239 = arith.mulf %237, %238 : vector<32x32xf32>
    %240 = vector.broadcast %219 : vector<1x32xf32> to vector<32x32xf32>
    %241 = arith.addf %239, %240 : vector<32x32xf32>
    %c1_90 = arith.constant 1 : index
    %c0_91 = arith.constant 0 : index
    %c0_92 = arith.constant 0 : index
    %242 = vector.load %arg9[%c1_90, %c0_91, %c0_92] : memref<2x32x64xf32, #tpu.memory_space<vmem>>, vector<1x32x64xf32>
    %243 = vector.shape_cast %242 : vector<1x32x64xf32> to vector<32x64xf32>
    %cst_93 = arith.constant dense<0.000000e+00> : vector<32x64xf32>
    %244 = tpu.matmul %241, %243, %cst_93 {dimension_numbers = #tpu.dot_dimension_numbers<[1], [0], [0], [1], [0, 0, 1, 1], [], []>} : vector<32x32xf32>, vector<32x64xf32>, vector<32x64xf32> -> vector<32x64xf32>
    %c1_94 = arith.constant 1 : index
    %c0_95 = arith.constant 0 : index
    %c0_96 = arith.constant 0 : index
    %245 = vector.load %arg10[%c1_94, %c0_95, %c0_96] : memref<2x1x64xf32, #tpu.memory_space<vmem>>, vector<1x1x64xf32>
    %246 = vector.shape_cast %245 : vector<1x1x64xf32> to vector<1x64xf32>
    %247 = vector.broadcast %246 : vector<1x64xf32> to vector<32x64xf32>
    %248 = arith.addf %244, %247 : vector<32x64xf32>
    %249 = arith.mulf %248, %248 : vector<32x64xf32>
    %250 = arith.mulf %248, %249 : vector<32x64xf32>
    %cst_97 = arith.constant 4.471500e-02 : f32
    %251 = vector.broadcast %cst_97 : f32 to vector<32x64xf32>
    %252 = arith.mulf %251, %250 : vector<32x64xf32>
    %253 = arith.addf %248, %252 : vector<32x64xf32>
    %cst_98 = arith.constant 0.797884583 : f32
    %254 = vector.broadcast %cst_98 : f32 to vector<32x64xf32>
    %255 = arith.mulf %254, %253 : vector<32x64xf32>
    %256 = math.tanh %255 : vector<32x64xf32>
    %cst_99 = arith.constant 1.000000e+00 : f32
    %257 = vector.broadcast %cst_99 : f32 to vector<32x64xf32>
    %258 = arith.addf %257, %256 : vector<32x64xf32>
    %cst_100 = arith.constant 5.000000e-01 : f32
    %259 = vector.broadcast %cst_100 : f32 to vector<32x64xf32>
    %260 = arith.mulf %259, %258 : vector<32x64xf32>
    %261 = arith.mulf %248, %260 : vector<32x64xf32>
    %c1_101 = arith.constant 1 : index
    %c0_102 = arith.constant 0 : index
    %c0_103 = arith.constant 0 : index
    %262 = vector.load %arg11[%c1_101, %c0_102, %c0_103] : memref<2x64x32xf32, #tpu.memory_space<vmem>>, vector<1x64x32xf32>
    %263 = vector.shape_cast %262 : vector<1x64x32xf32> to vector<64x32xf32>
    %cst_104 = arith.constant dense<0.000000e+00> : vector<32x32xf32>
    %264 = tpu.matmul %261, %263, %cst_104 {dimension_numbers = #tpu.dot_dimension_numbers<[1], [0], [0], [1], [0, 0, 1, 1], [], []>} : vector<32x64xf32>, vector<64x32xf32>, vector<32x32xf32> -> vector<32x32xf32>
    %265 = vector.extract_strided_slice %161 {offsets = [3, 0], sizes = [1, 32], strides = [1, 1]} : vector<6x32xf32> to vector<1x32xf32>
    %266 = vector.broadcast %265 : vector<1x32xf32> to vector<32x32xf32>
    %267 = arith.addf %264, %266 : vector<32x32xf32>
    %268 = arith.addf %267, %241 : vector<32x32xf32>
    %269 = vector.extract_strided_slice %161 {offsets = [4, 0], sizes = [1, 32], strides = [1, 1]} : vector<6x32xf32> to vector<1x32xf32>
    %270 = vector.extract_strided_slice %161 {offsets = [5, 0], sizes = [1, 32], strides = [1, 1]} : vector<6x32xf32> to vector<1x32xf32>
    %cst_105 = arith.constant dense<0.000000e+00> : vector<32xf32>
    %271 = vector.multi_reduction <add>, %268, %cst_105 [1] : vector<32x32xf32> to vector<32xf32>
    %272 = vector.shape_cast %271 : vector<32xf32> to vector<32x1xf32>
    %cst_106 = arith.constant 3.200000e+01 : f32
    %273 = vector.broadcast %cst_106 : f32 to vector<32x1xf32>
    %274 = arith.divf %272, %273 : vector<32x1xf32>
    %275 = vector.broadcast %274 : vector<32x1xf32> to vector<32x32xf32>
    %276 = arith.subf %268, %275 : vector<32x32xf32>
    %277 = arith.mulf %276, %276 : vector<32x32xf32>
    %cst_107 = arith.constant dense<0.000000e+00> : vector<32xf32>
    %278 = vector.multi_reduction <add>, %277, %cst_107 [1] : vector<32x32xf32> to vector<32xf32>
    %279 = vector.shape_cast %278 : vector<32xf32> to vector<32x1xf32>
    %cst_108 = arith.constant 3.200000e+01 : f32
    %280 = vector.broadcast %cst_108 : f32 to vector<32x1xf32>
    %281 = arith.divf %279, %280 : vector<32x1xf32>
    %282 = vector.broadcast %274 : vector<32x1xf32> to vector<32x32xf32>
    %283 = arith.subf %268, %282 : vector<32x32xf32>
    %cst_109 = arith.constant 9.99999996E-13 : f32
    %284 = vector.broadcast %cst_109 : f32 to vector<32x1xf32>
    %285 = arith.addf %281, %284 : vector<32x1xf32>
    %286 = math.rsqrt %285 : vector<32x1xf32>
    %287 = vector.broadcast %286 : vector<32x1xf32> to vector<32x32xf32>
    %288 = arith.mulf %283, %287 : vector<32x32xf32>
    %289 = vector.broadcast %269 : vector<1x32xf32> to vector<32x32xf32>
    %290 = arith.mulf %288, %289 : vector<32x32xf32>
    %291 = vector.broadcast %270 : vector<1x32xf32> to vector<32x32xf32>
    %292 = arith.addf %290, %291 : vector<32x32xf32>
    %c0_110 = arith.constant 0 : index
    %c0_111 = arith.constant 0 : index
    %293 = vector.load %arg13[%c0_110, %c0_111] : memref<3x9xf32, #tpu.memory_space<vmem>>, vector<3x9xf32>
    %c0_112 = arith.constant 0 : index
    %c0_113 = arith.constant 0 : index
    %294 = vector.load %arg12[%c0_112, %c0_113] : memref<32x9xf32, #tpu.memory_space<vmem>>, vector<32x9xf32>
    %cst_114 = arith.constant dense<0.000000e+00> : vector<32x9xf32>
    %295 = tpu.matmul %292, %294, %cst_114 {dimension_numbers = #tpu.dot_dimension_numbers<[1], [0], [0], [1], [0, 0, 1, 1], [], []>} : vector<32x32xf32>, vector<32x9xf32>, vector<32x9xf32> -> vector<32x9xf32>
    %296 = vector.extract_strided_slice %293 {offsets = [0, 0], sizes = [1, 9], strides = [1, 1]} : vector<3x9xf32> to vector<1x9xf32>
    %297 = vector.broadcast %296 : vector<1x9xf32> to vector<32x9xf32>
    %298 = arith.addf %295, %297 : vector<32x9xf32>
    %c0_115 = arith.constant 0 : index
    %c0_116 = arith.constant 0 : index
    %299 = vector.load %arg14[%c0_115, %c0_116] : memref<9x9xf32, #tpu.memory_space<vmem>>, vector<9x9xf32>
    %c0_117 = arith.constant 0 : index
    %c0_118 = arith.constant 0 : index
    %300 = vector.load %arg3[%c0_117, %c0_118] : memref<2x16xi32, #tpu.memory_space<vmem>>, vector<2x16xi32>
    %301 = tpu.iota {dimensions = array<i32: 0>} : vector<9x9xi32>
    %302 = tpu.iota {dimensions = array<i32: 1>} : vector<9x9xi32>
    %303 = arith.cmpi eq, %301, %302 : vector<9x9xi32>
    %304 = tpu.iota {dimensions = array<i32: 1>} : vector<2x9x9xi32>
    %305 = tpu.iota {dimensions = array<i32: 1>} : vector<2x9xi32>
    %306 = tpu.iota {dimensions = array<i32: 1>} : vector<2x16xi32>
    %307 = vector.extract_strided_slice %293 {offsets = [1, 0], sizes = [1, 9], strides = [1, 1]} : vector<3x9xf32> to vector<1x9xf32>
    %308 = vector.extract_strided_slice %298 {offsets = [0, 0], sizes = [2, 9], strides = [1, 1]} : vector<32x9xf32> to vector<2x9xf32>
    %309 = vector.broadcast %307 : vector<1x9xf32> to vector<2x9xf32>
    %310 = arith.addf %309, %308 : vector<2x9xf32>
    %311 = vector.extract_strided_slice %298 {offsets = [2, 0], sizes = [2, 9], strides = [1, 1]} : vector<32x9xf32> to vector<2x9xf32>
    %312 = vector.shape_cast %303 : vector<9x9xi1> to vector<1x9x9xi1>
    %313 = vector.shape_cast %310 : vector<2x9xf32> to vector<2x1x9xf32>
    %cst_119 = arith.constant 0.000000e+00 : f32
    %314 = vector.shape_cast %312 : vector<1x9x9xi1> to vector<1x9x9xi1>
    %315 = vector.broadcast %314 : vector<1x9x9xi1> to vector<2x9x9xi1>
    %316 = vector.shape_cast %313 : vector<2x1x9xf32> to vector<2x1x9xf32>
    %317 = vector.broadcast %316 : vector<2x1x9xf32> to vector<2x9x9xf32>
    %318 = vector.broadcast %cst_119 : f32 to vector<2x9x9xf32>
    %319 = arith.select %315, %317, %318 : vector<2x9x9xi1>, vector<2x9x9xf32>
    %cst_120 = arith.constant dense<0.000000e+00> : vector<2x9xf32>
    %320 = vector.multi_reduction <add>, %319, %cst_120 [2] : vector<2x9x9xf32> to vector<2x9xf32>
    %321 = vector.shape_cast %320 : vector<2x9xf32> to vector<2x9x1xf32>
    %322 = vector.shape_cast %299 : vector<9x9xf32> to vector<1x9x9xf32>
    %323 = vector.broadcast %321 : vector<2x9x1xf32> to vector<2x9x9xf32>
    %324 = vector.broadcast %322 : vector<1x9x9xf32> to vector<2x9x9xf32>
    %325 = arith.addf %323, %324 : vector<2x9x9xf32>
    %cst_121 = arith.constant dense<0xFF800000> : vector<2x9xf32>
    %326 = vector.multi_reduction <maximumf>, %325, %cst_121 [1] : vector<2x9x9xf32> to vector<2x9xf32>
    %327 = vector.shape_cast %326 : vector<2x9xf32> to vector<2x1x9xf32>
    %328 = vector.broadcast %327 : vector<2x1x9xf32> to vector<2x9x9xf32>
    %329 = arith.cmpf oeq, %325, %328 : vector<2x9x9xf32>
    %c9_i32 = arith.constant 9 : i32
    %330 = vector.broadcast %c9_i32 : i32 to vector<2x9x9xi32>
    %331 = arith.select %329, %304, %330 : vector<2x9x9xi1>, vector<2x9x9xi32>
    %cst_122 = arith.constant dense<2147483647> : vector<2x9xi32>
    %332 = vector.multi_reduction <minsi>, %331, %cst_122 [1] : vector<2x9x9xi32> to vector<2x9xi32>
    %333 = vector.extract_strided_slice %300 {offsets = [0, 1], sizes = [2, 1], strides = [1, 1]} : vector<2x16xi32> to vector<2x1xi32>
    %c0_i32 = arith.constant 0 : i32
    %334 = vector.broadcast %c0_i32 : i32 to vector<2x1xi32>
    %335 = arith.cmpi ne, %333, %334 : vector<2x1xi32>
    %336 = vector.shape_cast %327 : vector<2x1x9xf32> to vector<2x9xf32>
    %337 = arith.addf %336, %311 : vector<2x9xf32>
    %338 = vector.shape_cast %335 : vector<2x1xi1> to vector<2x1xi1>
    %339 = vector.broadcast %338 : vector<2x1xi1> to vector<2x9xi1>
    %340 = arith.select %339, %337, %310 : vector<2x9xi1>, vector<2x9xf32>
    %341 = vector.extract_strided_slice %298 {offsets = [4, 0], sizes = [2, 9], strides = [1, 1]} : vector<32x9xf32> to vector<2x9xf32>
    %342 = vector.shape_cast %303 : vector<9x9xi1> to vector<1x9x9xi1>
    %343 = vector.shape_cast %340 : vector<2x9xf32> to vector<2x1x9xf32>
    %cst_123 = arith.constant 0.000000e+00 : f32
    %344 = vector.shape_cast %342 : vector<1x9x9xi1> to vector<1x9x9xi1>
    %345 = vector.broadcast %344 : vector<1x9x9xi1> to vector<2x9x9xi1>
    %346 = vector.shape_cast %343 : vector<2x1x9xf32> to vector<2x1x9xf32>
    %347 = vector.broadcast %346 : vector<2x1x9xf32> to vector<2x9x9xf32>
    %348 = vector.broadcast %cst_123 : f32 to vector<2x9x9xf32>
    %349 = arith.select %345, %347, %348 : vector<2x9x9xi1>, vector<2x9x9xf32>
    %cst_124 = arith.constant dense<0.000000e+00> : vector<2x9xf32>
    %350 = vector.multi_reduction <add>, %349, %cst_124 [2] : vector<2x9x9xf32> to vector<2x9xf32>
    %351 = vector.shape_cast %350 : vector<2x9xf32> to vector<2x9x1xf32>
    %352 = vector.shape_cast %299 : vector<9x9xf32> to vector<1x9x9xf32>
    %353 = vector.broadcast %351 : vector<2x9x1xf32> to vector<2x9x9xf32>
    %354 = vector.broadcast %352 : vector<1x9x9xf32> to vector<2x9x9xf32>
    %355 = arith.addf %353, %354 : vector<2x9x9xf32>
    %cst_125 = arith.constant dense<0xFF800000> : vector<2x9xf32>
    %356 = vector.multi_reduction <maximumf>, %355, %cst_125 [1] : vector<2x9x9xf32> to vector<2x9xf32>
    %357 = vector.shape_cast %356 : vector<2x9xf32> to vector<2x1x9xf32>
    %358 = vector.broadcast %357 : vector<2x1x9xf32> to vector<2x9x9xf32>
    %359 = arith.cmpf oeq, %355, %358 : vector<2x9x9xf32>
    %c9_i32_126 = arith.constant 9 : i32
    %360 = vector.broadcast %c9_i32_126 : i32 to vector<2x9x9xi32>
    %361 = arith.select %359, %304, %360 : vector<2x9x9xi1>, vector<2x9x9xi32>
    %cst_127 = arith.constant dense<2147483647> : vector<2x9xi32>
    %362 = vector.multi_reduction <minsi>, %361, %cst_127 [1] : vector<2x9x9xi32> to vector<2x9xi32>
    %363 = vector.extract_strided_slice %300 {offsets = [0, 2], sizes = [2, 1], strides = [1, 1]} : vector<2x16xi32> to vector<2x1xi32>
    %c0_i32_128 = arith.constant 0 : i32
    %364 = vector.broadcast %c0_i32_128 : i32 to vector<2x1xi32>
    %365 = arith.cmpi ne, %363, %364 : vector<2x1xi32>
    %366 = vector.shape_cast %357 : vector<2x1x9xf32> to vector<2x9xf32>
    %367 = arith.addf %366, %341 : vector<2x9xf32>
    %368 = vector.shape_cast %365 : vector<2x1xi1> to vector<2x1xi1>
    %369 = vector.broadcast %368 : vector<2x1xi1> to vector<2x9xi1>
    %370 = arith.select %369, %367, %340 : vector<2x9xi1>, vector<2x9xf32>
    %371 = vector.extract_strided_slice %298 {offsets = [6, 0], sizes = [2, 9], strides = [1, 1]} : vector<32x9xf32> to vector<2x9xf32>
    %372 = vector.shape_cast %303 : vector<9x9xi1> to vector<1x9x9xi1>
    %373 = vector.shape_cast %370 : vector<2x9xf32> to vector<2x1x9xf32>
    %cst_129 = arith.constant 0.000000e+00 : f32
    %374 = vector.shape_cast %372 : vector<1x9x9xi1> to vector<1x9x9xi1>
    %375 = vector.broadcast %374 : vector<1x9x9xi1> to vector<2x9x9xi1>
    %376 = vector.shape_cast %373 : vector<2x1x9xf32> to vector<2x1x9xf32>
    %377 = vector.broadcast %376 : vector<2x1x9xf32> to vector<2x9x9xf32>
    %378 = vector.broadcast %cst_129 : f32 to vector<2x9x9xf32>
    %379 = arith.select %375, %377, %378 : vector<2x9x9xi1>, vector<2x9x9xf32>
    %cst_130 = arith.constant dense<0.000000e+00> : vector<2x9xf32>
    %380 = vector.multi_reduction <add>, %379, %cst_130 [2] : vector<2x9x9xf32> to vector<2x9xf32>
    %381 = vector.shape_cast %380 : vector<2x9xf32> to vector<2x9x1xf32>
    %382 = vector.shape_cast %299 : vector<9x9xf32> to vector<1x9x9xf32>
    %383 = vector.broadcast %381 : vector<2x9x1xf32> to vector<2x9x9xf32>
    %384 = vector.broadcast %382 : vector<1x9x9xf32> to vector<2x9x9xf32>
    %385 = arith.addf %383, %384 : vector<2x9x9xf32>
    %cst_131 = arith.constant dense<0xFF800000> : vector<2x9xf32>
    %386 = vector.multi_reduction <maximumf>, %385, %cst_131 [1] : vector<2x9x9xf32> to vector<2x9xf32>
    %387 = vector.shape_cast %386 : vector<2x9xf32> to vector<2x1x9xf32>
    %388 = vector.broadcast %387 : vector<2x1x9xf32> to vector<2x9x9xf32>
    %389 = arith.cmpf oeq, %385, %388 : vector<2x9x9xf32>
    %c9_i32_132 = arith.constant 9 : i32
    %390 = vector.broadcast %c9_i32_132 : i32 to vector<2x9x9xi32>
    %391 = arith.select %389, %304, %390 : vector<2x9x9xi1>, vector<2x9x9xi32>
    %cst_133 = arith.constant dense<2147483647> : vector<2x9xi32>
    %392 = vector.multi_reduction <minsi>, %391, %cst_133 [1] : vector<2x9x9xi32> to vector<2x9xi32>
    %393 = vector.extract_strided_slice %300 {offsets = [0, 3], sizes = [2, 1], strides = [1, 1]} : vector<2x16xi32> to vector<2x1xi32>
    %c0_i32_134 = arith.constant 0 : i32
    %394 = vector.broadcast %c0_i32_134 : i32 to vector<2x1xi32>
    %395 = arith.cmpi ne, %393, %394 : vector<2x1xi32>
    %396 = vector.shape_cast %387 : vector<2x1x9xf32> to vector<2x9xf32>
    %397 = arith.addf %396, %371 : vector<2x9xf32>
    %398 = vector.shape_cast %395 : vector<2x1xi1> to vector<2x1xi1>
    %399 = vector.broadcast %398 : vector<2x1xi1> to vector<2x9xi1>
    %400 = arith.select %399, %397, %370 : vector<2x9xi1>, vector<2x9xf32>
    %401 = vector.extract_strided_slice %298 {offsets = [8, 0], sizes = [2, 9], strides = [1, 1]} : vector<32x9xf32> to vector<2x9xf32>
    %402 = vector.shape_cast %303 : vector<9x9xi1> to vector<1x9x9xi1>
    %403 = vector.shape_cast %400 : vector<2x9xf32> to vector<2x1x9xf32>
    %cst_135 = arith.constant 0.000000e+00 : f32
    %404 = vector.shape_cast %402 : vector<1x9x9xi1> to vector<1x9x9xi1>
    %405 = vector.broadcast %404 : vector<1x9x9xi1> to vector<2x9x9xi1>
    %406 = vector.shape_cast %403 : vector<2x1x9xf32> to vector<2x1x9xf32>
    %407 = vector.broadcast %406 : vector<2x1x9xf32> to vector<2x9x9xf32>
    %408 = vector.broadcast %cst_135 : f32 to vector<2x9x9xf32>
    %409 = arith.select %405, %407, %408 : vector<2x9x9xi1>, vector<2x9x9xf32>
    %cst_136 = arith.constant dense<0.000000e+00> : vector<2x9xf32>
    %410 = vector.multi_reduction <add>, %409, %cst_136 [2] : vector<2x9x9xf32> to vector<2x9xf32>
    %411 = vector.shape_cast %410 : vector<2x9xf32> to vector<2x9x1xf32>
    %412 = vector.shape_cast %299 : vector<9x9xf32> to vector<1x9x9xf32>
    %413 = vector.broadcast %411 : vector<2x9x1xf32> to vector<2x9x9xf32>
    %414 = vector.broadcast %412 : vector<1x9x9xf32> to vector<2x9x9xf32>
    %415 = arith.addf %413, %414 : vector<2x9x9xf32>
    %cst_137 = arith.constant dense<0xFF800000> : vector<2x9xf32>
    %416 = vector.multi_reduction <maximumf>, %415, %cst_137 [1] : vector<2x9x9xf32> to vector<2x9xf32>
    %417 = vector.shape_cast %416 : vector<2x9xf32> to vector<2x1x9xf32>
    %418 = vector.broadcast %417 : vector<2x1x9xf32> to vector<2x9x9xf32>
    %419 = arith.cmpf oeq, %415, %418 : vector<2x9x9xf32>
    %c9_i32_138 = arith.constant 9 : i32
    %420 = vector.broadcast %c9_i32_138 : i32 to vector<2x9x9xi32>
    %421 = arith.select %419, %304, %420 : vector<2x9x9xi1>, vector<2x9x9xi32>
    %cst_139 = arith.constant dense<2147483647> : vector<2x9xi32>
    %422 = vector.multi_reduction <minsi>, %421, %cst_139 [1] : vector<2x9x9xi32> to vector<2x9xi32>
    %423 = vector.extract_strided_slice %300 {offsets = [0, 4], sizes = [2, 1], strides = [1, 1]} : vector<2x16xi32> to vector<2x1xi32>
    %c0_i32_140 = arith.constant 0 : i32
    %424 = vector.broadcast %c0_i32_140 : i32 to vector<2x1xi32>
    %425 = arith.cmpi ne, %423, %424 : vector<2x1xi32>
    %426 = vector.shape_cast %417 : vector<2x1x9xf32> to vector<2x9xf32>
    %427 = arith.addf %426, %401 : vector<2x9xf32>
    %428 = vector.shape_cast %425 : vector<2x1xi1> to vector<2x1xi1>
    %429 = vector.broadcast %428 : vector<2x1xi1> to vector<2x9xi1>
    %430 = arith.select %429, %427, %400 : vector<2x9xi1>, vector<2x9xf32>
    %431 = vector.extract_strided_slice %298 {offsets = [10, 0], sizes = [2, 9], strides = [1, 1]} : vector<32x9xf32> to vector<2x9xf32>
    %432 = vector.shape_cast %303 : vector<9x9xi1> to vector<1x9x9xi1>
    %433 = vector.shape_cast %430 : vector<2x9xf32> to vector<2x1x9xf32>
    %cst_141 = arith.constant 0.000000e+00 : f32
    %434 = vector.shape_cast %432 : vector<1x9x9xi1> to vector<1x9x9xi1>
    %435 = vector.broadcast %434 : vector<1x9x9xi1> to vector<2x9x9xi1>
    %436 = vector.shape_cast %433 : vector<2x1x9xf32> to vector<2x1x9xf32>
    %437 = vector.broadcast %436 : vector<2x1x9xf32> to vector<2x9x9xf32>
    %438 = vector.broadcast %cst_141 : f32 to vector<2x9x9xf32>
    %439 = arith.select %435, %437, %438 : vector<2x9x9xi1>, vector<2x9x9xf32>
    %cst_142 = arith.constant dense<0.000000e+00> : vector<2x9xf32>
    %440 = vector.multi_reduction <add>, %439, %cst_142 [2] : vector<2x9x9xf32> to vector<2x9xf32>
    %441 = vector.shape_cast %440 : vector<2x9xf32> to vector<2x9x1xf32>
    %442 = vector.shape_cast %299 : vector<9x9xf32> to vector<1x9x9xf32>
    %443 = vector.broadcast %441 : vector<2x9x1xf32> to vector<2x9x9xf32>
    %444 = vector.broadcast %442 : vector<1x9x9xf32> to vector<2x9x9xf32>
    %445 = arith.addf %443, %444 : vector<2x9x9xf32>
    %cst_143 = arith.constant dense<0xFF800000> : vector<2x9xf32>
    %446 = vector.multi_reduction <maximumf>, %445, %cst_143 [1] : vector<2x9x9xf32> to vector<2x9xf32>
    %447 = vector.shape_cast %446 : vector<2x9xf32> to vector<2x1x9xf32>
    %448 = vector.broadcast %447 : vector<2x1x9xf32> to vector<2x9x9xf32>
    %449 = arith.cmpf oeq, %445, %448 : vector<2x9x9xf32>
    %c9_i32_144 = arith.constant 9 : i32
    %450 = vector.broadcast %c9_i32_144 : i32 to vector<2x9x9xi32>
    %451 = arith.select %449, %304, %450 : vector<2x9x9xi1>, vector<2x9x9xi32>
    %cst_145 = arith.constant dense<2147483647> : vector<2x9xi32>
    %452 = vector.multi_reduction <minsi>, %451, %cst_145 [1] : vector<2x9x9xi32> to vector<2x9xi32>
    %453 = vector.extract_strided_slice %300 {offsets = [0, 5], sizes = [2, 1], strides = [1, 1]} : vector<2x16xi32> to vector<2x1xi32>
    %c0_i32_146 = arith.constant 0 : i32
    %454 = vector.broadcast %c0_i32_146 : i32 to vector<2x1xi32>
    %455 = arith.cmpi ne, %453, %454 : vector<2x1xi32>
    %456 = vector.shape_cast %447 : vector<2x1x9xf32> to vector<2x9xf32>
    %457 = arith.addf %456, %431 : vector<2x9xf32>
    %458 = vector.shape_cast %455 : vector<2x1xi1> to vector<2x1xi1>
    %459 = vector.broadcast %458 : vector<2x1xi1> to vector<2x9xi1>
    %460 = arith.select %459, %457, %430 : vector<2x9xi1>, vector<2x9xf32>
    %461 = vector.extract_strided_slice %298 {offsets = [12, 0], sizes = [2, 9], strides = [1, 1]} : vector<32x9xf32> to vector<2x9xf32>
    %462 = vector.shape_cast %303 : vector<9x9xi1> to vector<1x9x9xi1>
    %463 = vector.shape_cast %460 : vector<2x9xf32> to vector<2x1x9xf32>
    %cst_147 = arith.constant 0.000000e+00 : f32
    %464 = vector.shape_cast %462 : vector<1x9x9xi1> to vector<1x9x9xi1>
    %465 = vector.broadcast %464 : vector<1x9x9xi1> to vector<2x9x9xi1>
    %466 = vector.shape_cast %463 : vector<2x1x9xf32> to vector<2x1x9xf32>
    %467 = vector.broadcast %466 : vector<2x1x9xf32> to vector<2x9x9xf32>
    %468 = vector.broadcast %cst_147 : f32 to vector<2x9x9xf32>
    %469 = arith.select %465, %467, %468 : vector<2x9x9xi1>, vector<2x9x9xf32>
    %cst_148 = arith.constant dense<0.000000e+00> : vector<2x9xf32>
    %470 = vector.multi_reduction <add>, %469, %cst_148 [2] : vector<2x9x9xf32> to vector<2x9xf32>
    %471 = vector.shape_cast %470 : vector<2x9xf32> to vector<2x9x1xf32>
    %472 = vector.shape_cast %299 : vector<9x9xf32> to vector<1x9x9xf32>
    %473 = vector.broadcast %471 : vector<2x9x1xf32> to vector<2x9x9xf32>
    %474 = vector.broadcast %472 : vector<1x9x9xf32> to vector<2x9x9xf32>
    %475 = arith.addf %473, %474 : vector<2x9x9xf32>
    %cst_149 = arith.constant dense<0xFF800000> : vector<2x9xf32>
    %476 = vector.multi_reduction <maximumf>, %475, %cst_149 [1] : vector<2x9x9xf32> to vector<2x9xf32>
    %477 = vector.shape_cast %476 : vector<2x9xf32> to vector<2x1x9xf32>
    %478 = vector.broadcast %477 : vector<2x1x9xf32> to vector<2x9x9xf32>
    %479 = arith.cmpf oeq, %475, %478 : vector<2x9x9xf32>
    %c9_i32_150 = arith.constant 9 : i32
    %480 = vector.broadcast %c9_i32_150 : i32 to vector<2x9x9xi32>
    %481 = arith.select %479, %304, %480 : vector<2x9x9xi1>, vector<2x9x9xi32>
    %cst_151 = arith.constant dense<2147483647> : vector<2x9xi32>
    %482 = vector.multi_reduction <minsi>, %481, %cst_151 [1] : vector<2x9x9xi32> to vector<2x9xi32>
    %483 = vector.extract_strided_slice %300 {offsets = [0, 6], sizes = [2, 1], strides = [1, 1]} : vector<2x16xi32> to vector<2x1xi32>
    %c0_i32_152 = arith.constant 0 : i32
    %484 = vector.broadcast %c0_i32_152 : i32 to vector<2x1xi32>
    %485 = arith.cmpi ne, %483, %484 : vector<2x1xi32>
    %486 = vector.shape_cast %477 : vector<2x1x9xf32> to vector<2x9xf32>
    %487 = arith.addf %486, %461 : vector<2x9xf32>
    %488 = vector.shape_cast %485 : vector<2x1xi1> to vector<2x1xi1>
    %489 = vector.broadcast %488 : vector<2x1xi1> to vector<2x9xi1>
    %490 = arith.select %489, %487, %460 : vector<2x9xi1>, vector<2x9xf32>
    %491 = vector.extract_strided_slice %298 {offsets = [14, 0], sizes = [2, 9], strides = [1, 1]} : vector<32x9xf32> to vector<2x9xf32>
    %492 = vector.shape_cast %303 : vector<9x9xi1> to vector<1x9x9xi1>
    %493 = vector.shape_cast %490 : vector<2x9xf32> to vector<2x1x9xf32>
    %cst_153 = arith.constant 0.000000e+00 : f32
    %494 = vector.shape_cast %492 : vector<1x9x9xi1> to vector<1x9x9xi1>
    %495 = vector.broadcast %494 : vector<1x9x9xi1> to vector<2x9x9xi1>
    %496 = vector.shape_cast %493 : vector<2x1x9xf32> to vector<2x1x9xf32>
    %497 = vector.broadcast %496 : vector<2x1x9xf32> to vector<2x9x9xf32>
    %498 = vector.broadcast %cst_153 : f32 to vector<2x9x9xf32>
    %499 = arith.select %495, %497, %498 : vector<2x9x9xi1>, vector<2x9x9xf32>
    %cst_154 = arith.constant dense<0.000000e+00> : vector<2x9xf32>
    %500 = vector.multi_reduction <add>, %499, %cst_154 [2] : vector<2x9x9xf32> to vector<2x9xf32>
    %501 = vector.shape_cast %500 : vector<2x9xf32> to vector<2x9x1xf32>
    %502 = vector.shape_cast %299 : vector<9x9xf32> to vector<1x9x9xf32>
    %503 = vector.broadcast %501 : vector<2x9x1xf32> to vector<2x9x9xf32>
    %504 = vector.broadcast %502 : vector<1x9x9xf32> to vector<2x9x9xf32>
    %505 = arith.addf %503, %504 : vector<2x9x9xf32>
    %cst_155 = arith.constant dense<0xFF800000> : vector<2x9xf32>
    %506 = vector.multi_reduction <maximumf>, %505, %cst_155 [1] : vector<2x9x9xf32> to vector<2x9xf32>
    %507 = vector.shape_cast %506 : vector<2x9xf32> to vector<2x1x9xf32>
    %508 = vector.broadcast %507 : vector<2x1x9xf32> to vector<2x9x9xf32>
    %509 = arith.cmpf oeq, %505, %508 : vector<2x9x9xf32>
    %c9_i32_156 = arith.constant 9 : i32
    %510 = vector.broadcast %c9_i32_156 : i32 to vector<2x9x9xi32>
    %511 = arith.select %509, %304, %510 : vector<2x9x9xi1>, vector<2x9x9xi32>
    %cst_157 = arith.constant dense<2147483647> : vector<2x9xi32>
    %512 = vector.multi_reduction <minsi>, %511, %cst_157 [1] : vector<2x9x9xi32> to vector<2x9xi32>
    %513 = vector.extract_strided_slice %300 {offsets = [0, 7], sizes = [2, 1], strides = [1, 1]} : vector<2x16xi32> to vector<2x1xi32>
    %c0_i32_158 = arith.constant 0 : i32
    %514 = vector.broadcast %c0_i32_158 : i32 to vector<2x1xi32>
    %515 = arith.cmpi ne, %513, %514 : vector<2x1xi32>
    %516 = vector.shape_cast %507 : vector<2x1x9xf32> to vector<2x9xf32>
    %517 = arith.addf %516, %491 : vector<2x9xf32>
    %518 = vector.shape_cast %515 : vector<2x1xi1> to vector<2x1xi1>
    %519 = vector.broadcast %518 : vector<2x1xi1> to vector<2x9xi1>
    %520 = arith.select %519, %517, %490 : vector<2x9xi1>, vector<2x9xf32>
    %521 = vector.extract_strided_slice %298 {offsets = [16, 0], sizes = [2, 9], strides = [1, 1]} : vector<32x9xf32> to vector<2x9xf32>
    %522 = vector.shape_cast %303 : vector<9x9xi1> to vector<1x9x9xi1>
    %523 = vector.shape_cast %520 : vector<2x9xf32> to vector<2x1x9xf32>
    %cst_159 = arith.constant 0.000000e+00 : f32
    %524 = vector.shape_cast %522 : vector<1x9x9xi1> to vector<1x9x9xi1>
    %525 = vector.broadcast %524 : vector<1x9x9xi1> to vector<2x9x9xi1>
    %526 = vector.shape_cast %523 : vector<2x1x9xf32> to vector<2x1x9xf32>
    %527 = vector.broadcast %526 : vector<2x1x9xf32> to vector<2x9x9xf32>
    %528 = vector.broadcast %cst_159 : f32 to vector<2x9x9xf32>
    %529 = arith.select %525, %527, %528 : vector<2x9x9xi1>, vector<2x9x9xf32>
    %cst_160 = arith.constant dense<0.000000e+00> : vector<2x9xf32>
    %530 = vector.multi_reduction <add>, %529, %cst_160 [2] : vector<2x9x9xf32> to vector<2x9xf32>
    %531 = vector.shape_cast %530 : vector<2x9xf32> to vector<2x9x1xf32>
    %532 = vector.shape_cast %299 : vector<9x9xf32> to vector<1x9x9xf32>
    %533 = vector.broadcast %531 : vector<2x9x1xf32> to vector<2x9x9xf32>
    %534 = vector.broadcast %532 : vector<1x9x9xf32> to vector<2x9x9xf32>
    %535 = arith.addf %533, %534 : vector<2x9x9xf32>
    %cst_161 = arith.constant dense<0xFF800000> : vector<2x9xf32>
    %536 = vector.multi_reduction <maximumf>, %535, %cst_161 [1] : vector<2x9x9xf32> to vector<2x9xf32>
    %537 = vector.shape_cast %536 : vector<2x9xf32> to vector<2x1x9xf32>
    %538 = vector.broadcast %537 : vector<2x1x9xf32> to vector<2x9x9xf32>
    %539 = arith.cmpf oeq, %535, %538 : vector<2x9x9xf32>
    %c9_i32_162 = arith.constant 9 : i32
    %540 = vector.broadcast %c9_i32_162 : i32 to vector<2x9x9xi32>
    %541 = arith.select %539, %304, %540 : vector<2x9x9xi1>, vector<2x9x9xi32>
    %cst_163 = arith.constant dense<2147483647> : vector<2x9xi32>
    %542 = vector.multi_reduction <minsi>, %541, %cst_163 [1] : vector<2x9x9xi32> to vector<2x9xi32>
    %543 = vector.extract_strided_slice %300 {offsets = [0, 8], sizes = [2, 1], strides = [1, 1]} : vector<2x16xi32> to vector<2x1xi32>
    %c0_i32_164 = arith.constant 0 : i32
    %544 = vector.broadcast %c0_i32_164 : i32 to vector<2x1xi32>
    %545 = arith.cmpi ne, %543, %544 : vector<2x1xi32>
    %546 = vector.shape_cast %537 : vector<2x1x9xf32> to vector<2x9xf32>
    %547 = arith.addf %546, %521 : vector<2x9xf32>
    %548 = vector.shape_cast %545 : vector<2x1xi1> to vector<2x1xi1>
    %549 = vector.broadcast %548 : vector<2x1xi1> to vector<2x9xi1>
    %550 = arith.select %549, %547, %520 : vector<2x9xi1>, vector<2x9xf32>
    %551 = vector.extract_strided_slice %298 {offsets = [18, 0], sizes = [2, 9], strides = [1, 1]} : vector<32x9xf32> to vector<2x9xf32>
    %552 = vector.shape_cast %303 : vector<9x9xi1> to vector<1x9x9xi1>
    %553 = vector.shape_cast %550 : vector<2x9xf32> to vector<2x1x9xf32>
    %cst_165 = arith.constant 0.000000e+00 : f32
    %554 = vector.shape_cast %552 : vector<1x9x9xi1> to vector<1x9x9xi1>
    %555 = vector.broadcast %554 : vector<1x9x9xi1> to vector<2x9x9xi1>
    %556 = vector.shape_cast %553 : vector<2x1x9xf32> to vector<2x1x9xf32>
    %557 = vector.broadcast %556 : vector<2x1x9xf32> to vector<2x9x9xf32>
    %558 = vector.broadcast %cst_165 : f32 to vector<2x9x9xf32>
    %559 = arith.select %555, %557, %558 : vector<2x9x9xi1>, vector<2x9x9xf32>
    %cst_166 = arith.constant dense<0.000000e+00> : vector<2x9xf32>
    %560 = vector.multi_reduction <add>, %559, %cst_166 [2] : vector<2x9x9xf32> to vector<2x9xf32>
    %561 = vector.shape_cast %560 : vector<2x9xf32> to vector<2x9x1xf32>
    %562 = vector.shape_cast %299 : vector<9x9xf32> to vector<1x9x9xf32>
    %563 = vector.broadcast %561 : vector<2x9x1xf32> to vector<2x9x9xf32>
    %564 = vector.broadcast %562 : vector<1x9x9xf32> to vector<2x9x9xf32>
    %565 = arith.addf %563, %564 : vector<2x9x9xf32>
    %cst_167 = arith.constant dense<0xFF800000> : vector<2x9xf32>
    %566 = vector.multi_reduction <maximumf>, %565, %cst_167 [1] : vector<2x9x9xf32> to vector<2x9xf32>
    %567 = vector.shape_cast %566 : vector<2x9xf32> to vector<2x1x9xf32>
    %568 = vector.broadcast %567 : vector<2x1x9xf32> to vector<2x9x9xf32>
    %569 = arith.cmpf oeq, %565, %568 : vector<2x9x9xf32>
    %c9_i32_168 = arith.constant 9 : i32
    %570 = vector.broadcast %c9_i32_168 : i32 to vector<2x9x9xi32>
    %571 = arith.select %569, %304, %570 : vector<2x9x9xi1>, vector<2x9x9xi32>
    %cst_169 = arith.constant dense<2147483647> : vector<2x9xi32>
    %572 = vector.multi_reduction <minsi>, %571, %cst_169 [1] : vector<2x9x9xi32> to vector<2x9xi32>
    %573 = vector.extract_strided_slice %300 {offsets = [0, 9], sizes = [2, 1], strides = [1, 1]} : vector<2x16xi32> to vector<2x1xi32>
    %c0_i32_170 = arith.constant 0 : i32
    %574 = vector.broadcast %c0_i32_170 : i32 to vector<2x1xi32>
    %575 = arith.cmpi ne, %573, %574 : vector<2x1xi32>
    %576 = vector.shape_cast %567 : vector<2x1x9xf32> to vector<2x9xf32>
    %577 = arith.addf %576, %551 : vector<2x9xf32>
    %578 = vector.shape_cast %575 : vector<2x1xi1> to vector<2x1xi1>
    %579 = vector.broadcast %578 : vector<2x1xi1> to vector<2x9xi1>
    %580 = arith.select %579, %577, %550 : vector<2x9xi1>, vector<2x9xf32>
    %581 = vector.extract_strided_slice %298 {offsets = [20, 0], sizes = [2, 9], strides = [1, 1]} : vector<32x9xf32> to vector<2x9xf32>
    %582 = vector.shape_cast %303 : vector<9x9xi1> to vector<1x9x9xi1>
    %583 = vector.shape_cast %580 : vector<2x9xf32> to vector<2x1x9xf32>
    %cst_171 = arith.constant 0.000000e+00 : f32
    %584 = vector.shape_cast %582 : vector<1x9x9xi1> to vector<1x9x9xi1>
    %585 = vector.broadcast %584 : vector<1x9x9xi1> to vector<2x9x9xi1>
    %586 = vector.shape_cast %583 : vector<2x1x9xf32> to vector<2x1x9xf32>
    %587 = vector.broadcast %586 : vector<2x1x9xf32> to vector<2x9x9xf32>
    %588 = vector.broadcast %cst_171 : f32 to vector<2x9x9xf32>
    %589 = arith.select %585, %587, %588 : vector<2x9x9xi1>, vector<2x9x9xf32>
    %cst_172 = arith.constant dense<0.000000e+00> : vector<2x9xf32>
    %590 = vector.multi_reduction <add>, %589, %cst_172 [2] : vector<2x9x9xf32> to vector<2x9xf32>
    %591 = vector.shape_cast %590 : vector<2x9xf32> to vector<2x9x1xf32>
    %592 = vector.shape_cast %299 : vector<9x9xf32> to vector<1x9x9xf32>
    %593 = vector.broadcast %591 : vector<2x9x1xf32> to vector<2x9x9xf32>
    %594 = vector.broadcast %592 : vector<1x9x9xf32> to vector<2x9x9xf32>
    %595 = arith.addf %593, %594 : vector<2x9x9xf32>
    %cst_173 = arith.constant dense<0xFF800000> : vector<2x9xf32>
    %596 = vector.multi_reduction <maximumf>, %595, %cst_173 [1] : vector<2x9x9xf32> to vector<2x9xf32>
    %597 = vector.shape_cast %596 : vector<2x9xf32> to vector<2x1x9xf32>
    %598 = vector.broadcast %597 : vector<2x1x9xf32> to vector<2x9x9xf32>
    %599 = arith.cmpf oeq, %595, %598 : vector<2x9x9xf32>
    %c9_i32_174 = arith.constant 9 : i32
    %600 = vector.broadcast %c9_i32_174 : i32 to vector<2x9x9xi32>
    %601 = arith.select %599, %304, %600 : vector<2x9x9xi1>, vector<2x9x9xi32>
    %cst_175 = arith.constant dense<2147483647> : vector<2x9xi32>
    %602 = vector.multi_reduction <minsi>, %601, %cst_175 [1] : vector<2x9x9xi32> to vector<2x9xi32>
    %603 = vector.extract_strided_slice %300 {offsets = [0, 10], sizes = [2, 1], strides = [1, 1]} : vector<2x16xi32> to vector<2x1xi32>
    %c0_i32_176 = arith.constant 0 : i32
    %604 = vector.broadcast %c0_i32_176 : i32 to vector<2x1xi32>
    %605 = arith.cmpi ne, %603, %604 : vector<2x1xi32>
    %606 = vector.shape_cast %597 : vector<2x1x9xf32> to vector<2x9xf32>
    %607 = arith.addf %606, %581 : vector<2x9xf32>
    %608 = vector.shape_cast %605 : vector<2x1xi1> to vector<2x1xi1>
    %609 = vector.broadcast %608 : vector<2x1xi1> to vector<2x9xi1>
    %610 = arith.select %609, %607, %580 : vector<2x9xi1>, vector<2x9xf32>
    %611 = vector.extract_strided_slice %298 {offsets = [22, 0], sizes = [2, 9], strides = [1, 1]} : vector<32x9xf32> to vector<2x9xf32>
    %612 = vector.shape_cast %303 : vector<9x9xi1> to vector<1x9x9xi1>
    %613 = vector.shape_cast %610 : vector<2x9xf32> to vector<2x1x9xf32>
    %cst_177 = arith.constant 0.000000e+00 : f32
    %614 = vector.shape_cast %612 : vector<1x9x9xi1> to vector<1x9x9xi1>
    %615 = vector.broadcast %614 : vector<1x9x9xi1> to vector<2x9x9xi1>
    %616 = vector.shape_cast %613 : vector<2x1x9xf32> to vector<2x1x9xf32>
    %617 = vector.broadcast %616 : vector<2x1x9xf32> to vector<2x9x9xf32>
    %618 = vector.broadcast %cst_177 : f32 to vector<2x9x9xf32>
    %619 = arith.select %615, %617, %618 : vector<2x9x9xi1>, vector<2x9x9xf32>
    %cst_178 = arith.constant dense<0.000000e+00> : vector<2x9xf32>
    %620 = vector.multi_reduction <add>, %619, %cst_178 [2] : vector<2x9x9xf32> to vector<2x9xf32>
    %621 = vector.shape_cast %620 : vector<2x9xf32> to vector<2x9x1xf32>
    %622 = vector.shape_cast %299 : vector<9x9xf32> to vector<1x9x9xf32>
    %623 = vector.broadcast %621 : vector<2x9x1xf32> to vector<2x9x9xf32>
    %624 = vector.broadcast %622 : vector<1x9x9xf32> to vector<2x9x9xf32>
    %625 = arith.addf %623, %624 : vector<2x9x9xf32>
    %cst_179 = arith.constant dense<0xFF800000> : vector<2x9xf32>
    %626 = vector.multi_reduction <maximumf>, %625, %cst_179 [1] : vector<2x9x9xf32> to vector<2x9xf32>
    %627 = vector.shape_cast %626 : vector<2x9xf32> to vector<2x1x9xf32>
    %628 = vector.broadcast %627 : vector<2x1x9xf32> to vector<2x9x9xf32>
    %629 = arith.cmpf oeq, %625, %628 : vector<2x9x9xf32>
    %c9_i32_180 = arith.constant 9 : i32
    %630 = vector.broadcast %c9_i32_180 : i32 to vector<2x9x9xi32>
    %631 = arith.select %629, %304, %630 : vector<2x9x9xi1>, vector<2x9x9xi32>
    %cst_181 = arith.constant dense<2147483647> : vector<2x9xi32>
    %632 = vector.multi_reduction <minsi>, %631, %cst_181 [1] : vector<2x9x9xi32> to vector<2x9xi32>
    %633 = vector.extract_strided_slice %300 {offsets = [0, 11], sizes = [2, 1], strides = [1, 1]} : vector<2x16xi32> to vector<2x1xi32>
    %c0_i32_182 = arith.constant 0 : i32
    %634 = vector.broadcast %c0_i32_182 : i32 to vector<2x1xi32>
    %635 = arith.cmpi ne, %633, %634 : vector<2x1xi32>
    %636 = vector.shape_cast %627 : vector<2x1x9xf32> to vector<2x9xf32>
    %637 = arith.addf %636, %611 : vector<2x9xf32>
    %638 = vector.shape_cast %635 : vector<2x1xi1> to vector<2x1xi1>
    %639 = vector.broadcast %638 : vector<2x1xi1> to vector<2x9xi1>
    %640 = arith.select %639, %637, %610 : vector<2x9xi1>, vector<2x9xf32>
    %641 = vector.extract_strided_slice %298 {offsets = [24, 0], sizes = [2, 9], strides = [1, 1]} : vector<32x9xf32> to vector<2x9xf32>
    %642 = vector.shape_cast %303 : vector<9x9xi1> to vector<1x9x9xi1>
    %643 = vector.shape_cast %640 : vector<2x9xf32> to vector<2x1x9xf32>
    %cst_183 = arith.constant 0.000000e+00 : f32
    %644 = vector.shape_cast %642 : vector<1x9x9xi1> to vector<1x9x9xi1>
    %645 = vector.broadcast %644 : vector<1x9x9xi1> to vector<2x9x9xi1>
    %646 = vector.shape_cast %643 : vector<2x1x9xf32> to vector<2x1x9xf32>
    %647 = vector.broadcast %646 : vector<2x1x9xf32> to vector<2x9x9xf32>
    %648 = vector.broadcast %cst_183 : f32 to vector<2x9x9xf32>
    %649 = arith.select %645, %647, %648 : vector<2x9x9xi1>, vector<2x9x9xf32>
    %cst_184 = arith.constant dense<0.000000e+00> : vector<2x9xf32>
    %650 = vector.multi_reduction <add>, %649, %cst_184 [2] : vector<2x9x9xf32> to vector<2x9xf32>
    %651 = vector.shape_cast %650 : vector<2x9xf32> to vector<2x9x1xf32>
    %652 = vector.shape_cast %299 : vector<9x9xf32> to vector<1x9x9xf32>
    %653 = vector.broadcast %651 : vector<2x9x1xf32> to vector<2x9x9xf32>
    %654 = vector.broadcast %652 : vector<1x9x9xf32> to vector<2x9x9xf32>
    %655 = arith.addf %653, %654 : vector<2x9x9xf32>
    %cst_185 = arith.constant dense<0xFF800000> : vector<2x9xf32>
    %656 = vector.multi_reduction <maximumf>, %655, %cst_185 [1] : vector<2x9x9xf32> to vector<2x9xf32>
    %657 = vector.shape_cast %656 : vector<2x9xf32> to vector<2x1x9xf32>
    %658 = vector.broadcast %657 : vector<2x1x9xf32> to vector<2x9x9xf32>
    %659 = arith.cmpf oeq, %655, %658 : vector<2x9x9xf32>
    %c9_i32_186 = arith.constant 9 : i32
    %660 = vector.broadcast %c9_i32_186 : i32 to vector<2x9x9xi32>
    %661 = arith.select %659, %304, %660 : vector<2x9x9xi1>, vector<2x9x9xi32>
    %cst_187 = arith.constant dense<2147483647> : vector<2x9xi32>
    %662 = vector.multi_reduction <minsi>, %661, %cst_187 [1] : vector<2x9x9xi32> to vector<2x9xi32>
    %663 = vector.extract_strided_slice %300 {offsets = [0, 12], sizes = [2, 1], strides = [1, 1]} : vector<2x16xi32> to vector<2x1xi32>
    %c0_i32_188 = arith.constant 0 : i32
    %664 = vector.broadcast %c0_i32_188 : i32 to vector<2x1xi32>
    %665 = arith.cmpi ne, %663, %664 : vector<2x1xi32>
    %666 = vector.shape_cast %657 : vector<2x1x9xf32> to vector<2x9xf32>
    %667 = arith.addf %666, %641 : vector<2x9xf32>
    %668 = vector.shape_cast %665 : vector<2x1xi1> to vector<2x1xi1>
    %669 = vector.broadcast %668 : vector<2x1xi1> to vector<2x9xi1>
    %670 = arith.select %669, %667, %640 : vector<2x9xi1>, vector<2x9xf32>
    %671 = vector.extract_strided_slice %298 {offsets = [26, 0], sizes = [2, 9], strides = [1, 1]} : vector<32x9xf32> to vector<2x9xf32>
    %672 = vector.shape_cast %303 : vector<9x9xi1> to vector<1x9x9xi1>
    %673 = vector.shape_cast %670 : vector<2x9xf32> to vector<2x1x9xf32>
    %cst_189 = arith.constant 0.000000e+00 : f32
    %674 = vector.shape_cast %672 : vector<1x9x9xi1> to vector<1x9x9xi1>
    %675 = vector.broadcast %674 : vector<1x9x9xi1> to vector<2x9x9xi1>
    %676 = vector.shape_cast %673 : vector<2x1x9xf32> to vector<2x1x9xf32>
    %677 = vector.broadcast %676 : vector<2x1x9xf32> to vector<2x9x9xf32>
    %678 = vector.broadcast %cst_189 : f32 to vector<2x9x9xf32>
    %679 = arith.select %675, %677, %678 : vector<2x9x9xi1>, vector<2x9x9xf32>
    %cst_190 = arith.constant dense<0.000000e+00> : vector<2x9xf32>
    %680 = vector.multi_reduction <add>, %679, %cst_190 [2] : vector<2x9x9xf32> to vector<2x9xf32>
    %681 = vector.shape_cast %680 : vector<2x9xf32> to vector<2x9x1xf32>
    %682 = vector.shape_cast %299 : vector<9x9xf32> to vector<1x9x9xf32>
    %683 = vector.broadcast %681 : vector<2x9x1xf32> to vector<2x9x9xf32>
    %684 = vector.broadcast %682 : vector<1x9x9xf32> to vector<2x9x9xf32>
    %685 = arith.addf %683, %684 : vector<2x9x9xf32>
    %cst_191 = arith.constant dense<0xFF800000> : vector<2x9xf32>
    %686 = vector.multi_reduction <maximumf>, %685, %cst_191 [1] : vector<2x9x9xf32> to vector<2x9xf32>
    %687 = vector.shape_cast %686 : vector<2x9xf32> to vector<2x1x9xf32>
    %688 = vector.broadcast %687 : vector<2x1x9xf32> to vector<2x9x9xf32>
    %689 = arith.cmpf oeq, %685, %688 : vector<2x9x9xf32>
    %c9_i32_192 = arith.constant 9 : i32
    %690 = vector.broadcast %c9_i32_192 : i32 to vector<2x9x9xi32>
    %691 = arith.select %689, %304, %690 : vector<2x9x9xi1>, vector<2x9x9xi32>
    %cst_193 = arith.constant dense<2147483647> : vector<2x9xi32>
    %692 = vector.multi_reduction <minsi>, %691, %cst_193 [1] : vector<2x9x9xi32> to vector<2x9xi32>
    %693 = vector.extract_strided_slice %300 {offsets = [0, 13], sizes = [2, 1], strides = [1, 1]} : vector<2x16xi32> to vector<2x1xi32>
    %c0_i32_194 = arith.constant 0 : i32
    %694 = vector.broadcast %c0_i32_194 : i32 to vector<2x1xi32>
    %695 = arith.cmpi ne, %693, %694 : vector<2x1xi32>
    %696 = vector.shape_cast %687 : vector<2x1x9xf32> to vector<2x9xf32>
    %697 = arith.addf %696, %671 : vector<2x9xf32>
    %698 = vector.shape_cast %695 : vector<2x1xi1> to vector<2x1xi1>
    %699 = vector.broadcast %698 : vector<2x1xi1> to vector<2x9xi1>
    %700 = arith.select %699, %697, %670 : vector<2x9xi1>, vector<2x9xf32>
    %701 = vector.extract_strided_slice %298 {offsets = [28, 0], sizes = [2, 9], strides = [1, 1]} : vector<32x9xf32> to vector<2x9xf32>
    %702 = vector.shape_cast %303 : vector<9x9xi1> to vector<1x9x9xi1>
    %703 = vector.shape_cast %700 : vector<2x9xf32> to vector<2x1x9xf32>
    %cst_195 = arith.constant 0.000000e+00 : f32
    %704 = vector.shape_cast %702 : vector<1x9x9xi1> to vector<1x9x9xi1>
    %705 = vector.broadcast %704 : vector<1x9x9xi1> to vector<2x9x9xi1>
    %706 = vector.shape_cast %703 : vector<2x1x9xf32> to vector<2x1x9xf32>
    %707 = vector.broadcast %706 : vector<2x1x9xf32> to vector<2x9x9xf32>
    %708 = vector.broadcast %cst_195 : f32 to vector<2x9x9xf32>
    %709 = arith.select %705, %707, %708 : vector<2x9x9xi1>, vector<2x9x9xf32>
    %cst_196 = arith.constant dense<0.000000e+00> : vector<2x9xf32>
    %710 = vector.multi_reduction <add>, %709, %cst_196 [2] : vector<2x9x9xf32> to vector<2x9xf32>
    %711 = vector.shape_cast %710 : vector<2x9xf32> to vector<2x9x1xf32>
    %712 = vector.shape_cast %299 : vector<9x9xf32> to vector<1x9x9xf32>
    %713 = vector.broadcast %711 : vector<2x9x1xf32> to vector<2x9x9xf32>
    %714 = vector.broadcast %712 : vector<1x9x9xf32> to vector<2x9x9xf32>
    %715 = arith.addf %713, %714 : vector<2x9x9xf32>
    %cst_197 = arith.constant dense<0xFF800000> : vector<2x9xf32>
    %716 = vector.multi_reduction <maximumf>, %715, %cst_197 [1] : vector<2x9x9xf32> to vector<2x9xf32>
    %717 = vector.shape_cast %716 : vector<2x9xf32> to vector<2x1x9xf32>
    %718 = vector.broadcast %717 : vector<2x1x9xf32> to vector<2x9x9xf32>
    %719 = arith.cmpf oeq, %715, %718 : vector<2x9x9xf32>
    %c9_i32_198 = arith.constant 9 : i32
    %720 = vector.broadcast %c9_i32_198 : i32 to vector<2x9x9xi32>
    %721 = arith.select %719, %304, %720 : vector<2x9x9xi1>, vector<2x9x9xi32>
    %cst_199 = arith.constant dense<2147483647> : vector<2x9xi32>
    %722 = vector.multi_reduction <minsi>, %721, %cst_199 [1] : vector<2x9x9xi32> to vector<2x9xi32>
    %723 = vector.extract_strided_slice %300 {offsets = [0, 14], sizes = [2, 1], strides = [1, 1]} : vector<2x16xi32> to vector<2x1xi32>
    %c0_i32_200 = arith.constant 0 : i32
    %724 = vector.broadcast %c0_i32_200 : i32 to vector<2x1xi32>
    %725 = arith.cmpi ne, %723, %724 : vector<2x1xi32>
    %726 = vector.shape_cast %717 : vector<2x1x9xf32> to vector<2x9xf32>
    %727 = arith.addf %726, %701 : vector<2x9xf32>
    %728 = vector.shape_cast %725 : vector<2x1xi1> to vector<2x1xi1>
    %729 = vector.broadcast %728 : vector<2x1xi1> to vector<2x9xi1>
    %730 = arith.select %729, %727, %700 : vector<2x9xi1>, vector<2x9xf32>
    %731 = vector.extract_strided_slice %298 {offsets = [30, 0], sizes = [2, 9], strides = [1, 1]} : vector<32x9xf32> to vector<2x9xf32>
    %732 = vector.shape_cast %303 : vector<9x9xi1> to vector<1x9x9xi1>
    %733 = vector.shape_cast %730 : vector<2x9xf32> to vector<2x1x9xf32>
    %cst_201 = arith.constant 0.000000e+00 : f32
    %734 = vector.shape_cast %732 : vector<1x9x9xi1> to vector<1x9x9xi1>
    %735 = vector.broadcast %734 : vector<1x9x9xi1> to vector<2x9x9xi1>
    %736 = vector.shape_cast %733 : vector<2x1x9xf32> to vector<2x1x9xf32>
    %737 = vector.broadcast %736 : vector<2x1x9xf32> to vector<2x9x9xf32>
    %738 = vector.broadcast %cst_201 : f32 to vector<2x9x9xf32>
    %739 = arith.select %735, %737, %738 : vector<2x9x9xi1>, vector<2x9x9xf32>
    %cst_202 = arith.constant dense<0.000000e+00> : vector<2x9xf32>
    %740 = vector.multi_reduction <add>, %739, %cst_202 [2] : vector<2x9x9xf32> to vector<2x9xf32>
    %741 = vector.shape_cast %740 : vector<2x9xf32> to vector<2x9x1xf32>
    %742 = vector.shape_cast %299 : vector<9x9xf32> to vector<1x9x9xf32>
    %743 = vector.broadcast %741 : vector<2x9x1xf32> to vector<2x9x9xf32>
    %744 = vector.broadcast %742 : vector<1x9x9xf32> to vector<2x9x9xf32>
    %745 = arith.addf %743, %744 : vector<2x9x9xf32>
    %cst_203 = arith.constant dense<0xFF800000> : vector<2x9xf32>
    %746 = vector.multi_reduction <maximumf>, %745, %cst_203 [1] : vector<2x9x9xf32> to vector<2x9xf32>
    %747 = vector.shape_cast %746 : vector<2x9xf32> to vector<2x1x9xf32>
    %748 = vector.broadcast %747 : vector<2x1x9xf32> to vector<2x9x9xf32>
    %749 = arith.cmpf oeq, %745, %748 : vector<2x9x9xf32>
    %c9_i32_204 = arith.constant 9 : i32
    %750 = vector.broadcast %c9_i32_204 : i32 to vector<2x9x9xi32>
    %751 = arith.select %749, %304, %750 : vector<2x9x9xi1>, vector<2x9x9xi32>
    %cst_205 = arith.constant dense<2147483647> : vector<2x9xi32>
    %752 = vector.multi_reduction <minsi>, %751, %cst_205 [1] : vector<2x9x9xi32> to vector<2x9xi32>
    %753 = vector.extract_strided_slice %300 {offsets = [0, 15], sizes = [2, 1], strides = [1, 1]} : vector<2x16xi32> to vector<2x1xi32>
    %c0_i32_206 = arith.constant 0 : i32
    %754 = vector.broadcast %c0_i32_206 : i32 to vector<2x1xi32>
    %755 = arith.cmpi ne, %753, %754 : vector<2x1xi32>
    %756 = vector.shape_cast %747 : vector<2x1x9xf32> to vector<2x9xf32>
    %757 = arith.addf %756, %731 : vector<2x9xf32>
    %758 = vector.shape_cast %755 : vector<2x1xi1> to vector<2x1xi1>
    %759 = vector.broadcast %758 : vector<2x1xi1> to vector<2x9xi1>
    %760 = arith.select %759, %757, %730 : vector<2x9xi1>, vector<2x9xf32>
    %761 = vector.extract_strided_slice %293 {offsets = [2, 0], sizes = [1, 9], strides = [1, 1]} : vector<3x9xf32> to vector<1x9xf32>
    %762 = vector.broadcast %761 : vector<1x9xf32> to vector<2x9xf32>
    %763 = arith.addf %760, %762 : vector<2x9xf32>
    %cst_207 = arith.constant dense<0xFF800000> : vector<2xf32>
    %764 = vector.multi_reduction <maximumf>, %763, %cst_207 [1] : vector<2x9xf32> to vector<2xf32>
    %765 = vector.shape_cast %764 : vector<2xf32> to vector<2x1xf32>
    %766 = vector.broadcast %765 : vector<2x1xf32> to vector<2x9xf32>
    %767 = arith.cmpf oeq, %763, %766 : vector<2x9xf32>
    %c9_i32_208 = arith.constant 9 : i32
    %768 = vector.broadcast %c9_i32_208 : i32 to vector<2x9xi32>
    %769 = arith.select %767, %305, %768 : vector<2x9xi1>, vector<2x9xi32>
    %cst_209 = arith.constant dense<2147483647> : vector<2xi32>
    %770 = vector.multi_reduction <minsi>, %769, %cst_209 [1] : vector<2x9xi32> to vector<2xi32>
    %771 = vector.shape_cast %770 : vector<2xi32> to vector<2x1xi32>
    %c0_i32_210 = arith.constant 0 : i32
    %772 = vector.broadcast %c0_i32_210 : i32 to vector<2x16xi32>
    %773 = vector.extract_strided_slice %300 {offsets = [0, 15], sizes = [2, 1], strides = [1, 1]} : vector<2x16xi32> to vector<2x1xi32>
    %c0_i32_211 = arith.constant 0 : i32
    %774 = vector.broadcast %c0_i32_211 : i32 to vector<2x1xi32>
    %775 = arith.cmpi ne, %773, %774 : vector<2x1xi32>
    %c15_i32 = arith.constant 15 : i32
    %776 = vector.broadcast %c15_i32 : i32 to vector<2x16xi32>
    %777 = arith.cmpi eq, %306, %776 : vector<2x16xi32>
    %778 = vector.broadcast %775 : vector<2x1xi1> to vector<2x16xi1>
    %779 = arith.andi %777, %778 : vector<2x16xi1>
    %780 = vector.shape_cast %771 : vector<2x1xi32> to vector<2x1xi32>
    %781 = vector.broadcast %780 : vector<2x1xi32> to vector<2x16xi32>
    %782 = arith.select %779, %781, %772 : vector<2x16xi1>, vector<2x16xi32>
    %783 = vector.broadcast %771 : vector<2x1xi32> to vector<2x9xi32>
    %784 = arith.cmpi eq, %305, %783 : vector<2x9xi32>
    %c0_i32_212 = arith.constant 0 : i32
    %785 = vector.broadcast %c0_i32_212 : i32 to vector<2x9xi32>
    %786 = arith.select %784, %752, %785 : vector<2x9xi1>, vector<2x9xi32>
    %cst_213 = arith.constant dense<0> : vector<2xi32>
    %787 = vector.multi_reduction <add>, %786, %cst_213 [1] : vector<2x9xi32> to vector<2xi32>
    %788 = vector.shape_cast %787 : vector<2xi32> to vector<2x1xi32>
    %789 = arith.select %775, %788, %771 : vector<2x1xi1>, vector<2x1xi32>
    %790 = vector.extract_strided_slice %300 {offsets = [0, 14], sizes = [2, 1], strides = [1, 1]} : vector<2x16xi32> to vector<2x1xi32>
    %c0_i32_214 = arith.constant 0 : i32
    %791 = vector.broadcast %c0_i32_214 : i32 to vector<2x1xi32>
    %792 = arith.cmpi ne, %790, %791 : vector<2x1xi32>
    %c14_i32 = arith.constant 14 : i32
    %793 = vector.broadcast %c14_i32 : i32 to vector<2x16xi32>
    %794 = arith.cmpi eq, %306, %793 : vector<2x16xi32>
    %795 = vector.broadcast %792 : vector<2x1xi1> to vector<2x16xi1>
    %796 = arith.andi %794, %795 : vector<2x16xi1>
    %797 = vector.shape_cast %789 : vector<2x1xi32> to vector<2x1xi32>
    %798 = vector.broadcast %797 : vector<2x1xi32> to vector<2x16xi32>
    %799 = arith.select %796, %798, %782 : vector<2x16xi1>, vector<2x16xi32>
    %800 = vector.broadcast %789 : vector<2x1xi32> to vector<2x9xi32>
    %801 = arith.cmpi eq, %305, %800 : vector<2x9xi32>
    %c0_i32_215 = arith.constant 0 : i32
    %802 = vector.broadcast %c0_i32_215 : i32 to vector<2x9xi32>
    %803 = arith.select %801, %722, %802 : vector<2x9xi1>, vector<2x9xi32>
    %cst_216 = arith.constant dense<0> : vector<2xi32>
    %804 = vector.multi_reduction <add>, %803, %cst_216 [1] : vector<2x9xi32> to vector<2xi32>
    %805 = vector.shape_cast %804 : vector<2xi32> to vector<2x1xi32>
    %806 = arith.select %792, %805, %789 : vector<2x1xi1>, vector<2x1xi32>
    %807 = vector.extract_strided_slice %300 {offsets = [0, 13], sizes = [2, 1], strides = [1, 1]} : vector<2x16xi32> to vector<2x1xi32>
    %c0_i32_217 = arith.constant 0 : i32
    %808 = vector.broadcast %c0_i32_217 : i32 to vector<2x1xi32>
    %809 = arith.cmpi ne, %807, %808 : vector<2x1xi32>
    %c13_i32 = arith.constant 13 : i32
    %810 = vector.broadcast %c13_i32 : i32 to vector<2x16xi32>
    %811 = arith.cmpi eq, %306, %810 : vector<2x16xi32>
    %812 = vector.broadcast %809 : vector<2x1xi1> to vector<2x16xi1>
    %813 = arith.andi %811, %812 : vector<2x16xi1>
    %814 = vector.shape_cast %806 : vector<2x1xi32> to vector<2x1xi32>
    %815 = vector.broadcast %814 : vector<2x1xi32> to vector<2x16xi32>
    %816 = arith.select %813, %815, %799 : vector<2x16xi1>, vector<2x16xi32>
    %817 = vector.broadcast %806 : vector<2x1xi32> to vector<2x9xi32>
    %818 = arith.cmpi eq, %305, %817 : vector<2x9xi32>
    %c0_i32_218 = arith.constant 0 : i32
    %819 = vector.broadcast %c0_i32_218 : i32 to vector<2x9xi32>
    %820 = arith.select %818, %692, %819 : vector<2x9xi1>, vector<2x9xi32>
    %cst_219 = arith.constant dense<0> : vector<2xi32>
    %821 = vector.multi_reduction <add>, %820, %cst_219 [1] : vector<2x9xi32> to vector<2xi32>
    %822 = vector.shape_cast %821 : vector<2xi32> to vector<2x1xi32>
    %823 = arith.select %809, %822, %806 : vector<2x1xi1>, vector<2x1xi32>
    %824 = vector.extract_strided_slice %300 {offsets = [0, 12], sizes = [2, 1], strides = [1, 1]} : vector<2x16xi32> to vector<2x1xi32>
    %c0_i32_220 = arith.constant 0 : i32
    %825 = vector.broadcast %c0_i32_220 : i32 to vector<2x1xi32>
    %826 = arith.cmpi ne, %824, %825 : vector<2x1xi32>
    %c12_i32 = arith.constant 12 : i32
    %827 = vector.broadcast %c12_i32 : i32 to vector<2x16xi32>
    %828 = arith.cmpi eq, %306, %827 : vector<2x16xi32>
    %829 = vector.broadcast %826 : vector<2x1xi1> to vector<2x16xi1>
    %830 = arith.andi %828, %829 : vector<2x16xi1>
    %831 = vector.shape_cast %823 : vector<2x1xi32> to vector<2x1xi32>
    %832 = vector.broadcast %831 : vector<2x1xi32> to vector<2x16xi32>
    %833 = arith.select %830, %832, %816 : vector<2x16xi1>, vector<2x16xi32>
    %834 = vector.broadcast %823 : vector<2x1xi32> to vector<2x9xi32>
    %835 = arith.cmpi eq, %305, %834 : vector<2x9xi32>
    %c0_i32_221 = arith.constant 0 : i32
    %836 = vector.broadcast %c0_i32_221 : i32 to vector<2x9xi32>
    %837 = arith.select %835, %662, %836 : vector<2x9xi1>, vector<2x9xi32>
    %cst_222 = arith.constant dense<0> : vector<2xi32>
    %838 = vector.multi_reduction <add>, %837, %cst_222 [1] : vector<2x9xi32> to vector<2xi32>
    %839 = vector.shape_cast %838 : vector<2xi32> to vector<2x1xi32>
    %840 = arith.select %826, %839, %823 : vector<2x1xi1>, vector<2x1xi32>
    %841 = vector.extract_strided_slice %300 {offsets = [0, 11], sizes = [2, 1], strides = [1, 1]} : vector<2x16xi32> to vector<2x1xi32>
    %c0_i32_223 = arith.constant 0 : i32
    %842 = vector.broadcast %c0_i32_223 : i32 to vector<2x1xi32>
    %843 = arith.cmpi ne, %841, %842 : vector<2x1xi32>
    %c11_i32 = arith.constant 11 : i32
    %844 = vector.broadcast %c11_i32 : i32 to vector<2x16xi32>
    %845 = arith.cmpi eq, %306, %844 : vector<2x16xi32>
    %846 = vector.broadcast %843 : vector<2x1xi1> to vector<2x16xi1>
    %847 = arith.andi %845, %846 : vector<2x16xi1>
    %848 = vector.shape_cast %840 : vector<2x1xi32> to vector<2x1xi32>
    %849 = vector.broadcast %848 : vector<2x1xi32> to vector<2x16xi32>
    %850 = arith.select %847, %849, %833 : vector<2x16xi1>, vector<2x16xi32>
    %851 = vector.broadcast %840 : vector<2x1xi32> to vector<2x9xi32>
    %852 = arith.cmpi eq, %305, %851 : vector<2x9xi32>
    %c0_i32_224 = arith.constant 0 : i32
    %853 = vector.broadcast %c0_i32_224 : i32 to vector<2x9xi32>
    %854 = arith.select %852, %632, %853 : vector<2x9xi1>, vector<2x9xi32>
    %cst_225 = arith.constant dense<0> : vector<2xi32>
    %855 = vector.multi_reduction <add>, %854, %cst_225 [1] : vector<2x9xi32> to vector<2xi32>
    %856 = vector.shape_cast %855 : vector<2xi32> to vector<2x1xi32>
    %857 = arith.select %843, %856, %840 : vector<2x1xi1>, vector<2x1xi32>
    %858 = vector.extract_strided_slice %300 {offsets = [0, 10], sizes = [2, 1], strides = [1, 1]} : vector<2x16xi32> to vector<2x1xi32>
    %c0_i32_226 = arith.constant 0 : i32
    %859 = vector.broadcast %c0_i32_226 : i32 to vector<2x1xi32>
    %860 = arith.cmpi ne, %858, %859 : vector<2x1xi32>
    %c10_i32 = arith.constant 10 : i32
    %861 = vector.broadcast %c10_i32 : i32 to vector<2x16xi32>
    %862 = arith.cmpi eq, %306, %861 : vector<2x16xi32>
    %863 = vector.broadcast %860 : vector<2x1xi1> to vector<2x16xi1>
    %864 = arith.andi %862, %863 : vector<2x16xi1>
    %865 = vector.shape_cast %857 : vector<2x1xi32> to vector<2x1xi32>
    %866 = vector.broadcast %865 : vector<2x1xi32> to vector<2x16xi32>
    %867 = arith.select %864, %866, %850 : vector<2x16xi1>, vector<2x16xi32>
    %868 = vector.broadcast %857 : vector<2x1xi32> to vector<2x9xi32>
    %869 = arith.cmpi eq, %305, %868 : vector<2x9xi32>
    %c0_i32_227 = arith.constant 0 : i32
    %870 = vector.broadcast %c0_i32_227 : i32 to vector<2x9xi32>
    %871 = arith.select %869, %602, %870 : vector<2x9xi1>, vector<2x9xi32>
    %cst_228 = arith.constant dense<0> : vector<2xi32>
    %872 = vector.multi_reduction <add>, %871, %cst_228 [1] : vector<2x9xi32> to vector<2xi32>
    %873 = vector.shape_cast %872 : vector<2xi32> to vector<2x1xi32>
    %874 = arith.select %860, %873, %857 : vector<2x1xi1>, vector<2x1xi32>
    %875 = vector.extract_strided_slice %300 {offsets = [0, 9], sizes = [2, 1], strides = [1, 1]} : vector<2x16xi32> to vector<2x1xi32>
    %c0_i32_229 = arith.constant 0 : i32
    %876 = vector.broadcast %c0_i32_229 : i32 to vector<2x1xi32>
    %877 = arith.cmpi ne, %875, %876 : vector<2x1xi32>
    %c9_i32_230 = arith.constant 9 : i32
    %878 = vector.broadcast %c9_i32_230 : i32 to vector<2x16xi32>
    %879 = arith.cmpi eq, %306, %878 : vector<2x16xi32>
    %880 = vector.broadcast %877 : vector<2x1xi1> to vector<2x16xi1>
    %881 = arith.andi %879, %880 : vector<2x16xi1>
    %882 = vector.shape_cast %874 : vector<2x1xi32> to vector<2x1xi32>
    %883 = vector.broadcast %882 : vector<2x1xi32> to vector<2x16xi32>
    %884 = arith.select %881, %883, %867 : vector<2x16xi1>, vector<2x16xi32>
    %885 = vector.broadcast %874 : vector<2x1xi32> to vector<2x9xi32>
    %886 = arith.cmpi eq, %305, %885 : vector<2x9xi32>
    %c0_i32_231 = arith.constant 0 : i32
    %887 = vector.broadcast %c0_i32_231 : i32 to vector<2x9xi32>
    %888 = arith.select %886, %572, %887 : vector<2x9xi1>, vector<2x9xi32>
    %cst_232 = arith.constant dense<0> : vector<2xi32>
    %889 = vector.multi_reduction <add>, %888, %cst_232 [1] : vector<2x9xi32> to vector<2xi32>
    %890 = vector.shape_cast %889 : vector<2xi32> to vector<2x1xi32>
    %891 = arith.select %877, %890, %874 : vector<2x1xi1>, vector<2x1xi32>
    %892 = vector.extract_strided_slice %300 {offsets = [0, 8], sizes = [2, 1], strides = [1, 1]} : vector<2x16xi32> to vector<2x1xi32>
    %c0_i32_233 = arith.constant 0 : i32
    %893 = vector.broadcast %c0_i32_233 : i32 to vector<2x1xi32>
    %894 = arith.cmpi ne, %892, %893 : vector<2x1xi32>
    %c8_i32 = arith.constant 8 : i32
    %895 = vector.broadcast %c8_i32 : i32 to vector<2x16xi32>
    %896 = arith.cmpi eq, %306, %895 : vector<2x16xi32>
    %897 = vector.broadcast %894 : vector<2x1xi1> to vector<2x16xi1>
    %898 = arith.andi %896, %897 : vector<2x16xi1>
    %899 = vector.shape_cast %891 : vector<2x1xi32> to vector<2x1xi32>
    %900 = vector.broadcast %899 : vector<2x1xi32> to vector<2x16xi32>
    %901 = arith.select %898, %900, %884 : vector<2x16xi1>, vector<2x16xi32>
    %902 = vector.broadcast %891 : vector<2x1xi32> to vector<2x9xi32>
    %903 = arith.cmpi eq, %305, %902 : vector<2x9xi32>
    %c0_i32_234 = arith.constant 0 : i32
    %904 = vector.broadcast %c0_i32_234 : i32 to vector<2x9xi32>
    %905 = arith.select %903, %542, %904 : vector<2x9xi1>, vector<2x9xi32>
    %cst_235 = arith.constant dense<0> : vector<2xi32>
    %906 = vector.multi_reduction <add>, %905, %cst_235 [1] : vector<2x9xi32> to vector<2xi32>
    %907 = vector.shape_cast %906 : vector<2xi32> to vector<2x1xi32>
    %908 = arith.select %894, %907, %891 : vector<2x1xi1>, vector<2x1xi32>
    %909 = vector.extract_strided_slice %300 {offsets = [0, 7], sizes = [2, 1], strides = [1, 1]} : vector<2x16xi32> to vector<2x1xi32>
    %c0_i32_236 = arith.constant 0 : i32
    %910 = vector.broadcast %c0_i32_236 : i32 to vector<2x1xi32>
    %911 = arith.cmpi ne, %909, %910 : vector<2x1xi32>
    %c7_i32 = arith.constant 7 : i32
    %912 = vector.broadcast %c7_i32 : i32 to vector<2x16xi32>
    %913 = arith.cmpi eq, %306, %912 : vector<2x16xi32>
    %914 = vector.broadcast %911 : vector<2x1xi1> to vector<2x16xi1>
    %915 = arith.andi %913, %914 : vector<2x16xi1>
    %916 = vector.shape_cast %908 : vector<2x1xi32> to vector<2x1xi32>
    %917 = vector.broadcast %916 : vector<2x1xi32> to vector<2x16xi32>
    %918 = arith.select %915, %917, %901 : vector<2x16xi1>, vector<2x16xi32>
    %919 = vector.broadcast %908 : vector<2x1xi32> to vector<2x9xi32>
    %920 = arith.cmpi eq, %305, %919 : vector<2x9xi32>
    %c0_i32_237 = arith.constant 0 : i32
    %921 = vector.broadcast %c0_i32_237 : i32 to vector<2x9xi32>
    %922 = arith.select %920, %512, %921 : vector<2x9xi1>, vector<2x9xi32>
    %cst_238 = arith.constant dense<0> : vector<2xi32>
    %923 = vector.multi_reduction <add>, %922, %cst_238 [1] : vector<2x9xi32> to vector<2xi32>
    %924 = vector.shape_cast %923 : vector<2xi32> to vector<2x1xi32>
    %925 = arith.select %911, %924, %908 : vector<2x1xi1>, vector<2x1xi32>
    %926 = vector.extract_strided_slice %300 {offsets = [0, 6], sizes = [2, 1], strides = [1, 1]} : vector<2x16xi32> to vector<2x1xi32>
    %c0_i32_239 = arith.constant 0 : i32
    %927 = vector.broadcast %c0_i32_239 : i32 to vector<2x1xi32>
    %928 = arith.cmpi ne, %926, %927 : vector<2x1xi32>
    %c6_i32 = arith.constant 6 : i32
    %929 = vector.broadcast %c6_i32 : i32 to vector<2x16xi32>
    %930 = arith.cmpi eq, %306, %929 : vector<2x16xi32>
    %931 = vector.broadcast %928 : vector<2x1xi1> to vector<2x16xi1>
    %932 = arith.andi %930, %931 : vector<2x16xi1>
    %933 = vector.shape_cast %925 : vector<2x1xi32> to vector<2x1xi32>
    %934 = vector.broadcast %933 : vector<2x1xi32> to vector<2x16xi32>
    %935 = arith.select %932, %934, %918 : vector<2x16xi1>, vector<2x16xi32>
    %936 = vector.broadcast %925 : vector<2x1xi32> to vector<2x9xi32>
    %937 = arith.cmpi eq, %305, %936 : vector<2x9xi32>
    %c0_i32_240 = arith.constant 0 : i32
    %938 = vector.broadcast %c0_i32_240 : i32 to vector<2x9xi32>
    %939 = arith.select %937, %482, %938 : vector<2x9xi1>, vector<2x9xi32>
    %cst_241 = arith.constant dense<0> : vector<2xi32>
    %940 = vector.multi_reduction <add>, %939, %cst_241 [1] : vector<2x9xi32> to vector<2xi32>
    %941 = vector.shape_cast %940 : vector<2xi32> to vector<2x1xi32>
    %942 = arith.select %928, %941, %925 : vector<2x1xi1>, vector<2x1xi32>
    %943 = vector.extract_strided_slice %300 {offsets = [0, 5], sizes = [2, 1], strides = [1, 1]} : vector<2x16xi32> to vector<2x1xi32>
    %c0_i32_242 = arith.constant 0 : i32
    %944 = vector.broadcast %c0_i32_242 : i32 to vector<2x1xi32>
    %945 = arith.cmpi ne, %943, %944 : vector<2x1xi32>
    %c5_i32 = arith.constant 5 : i32
    %946 = vector.broadcast %c5_i32 : i32 to vector<2x16xi32>
    %947 = arith.cmpi eq, %306, %946 : vector<2x16xi32>
    %948 = vector.broadcast %945 : vector<2x1xi1> to vector<2x16xi1>
    %949 = arith.andi %947, %948 : vector<2x16xi1>
    %950 = vector.shape_cast %942 : vector<2x1xi32> to vector<2x1xi32>
    %951 = vector.broadcast %950 : vector<2x1xi32> to vector<2x16xi32>
    %952 = arith.select %949, %951, %935 : vector<2x16xi1>, vector<2x16xi32>
    %953 = vector.broadcast %942 : vector<2x1xi32> to vector<2x9xi32>
    %954 = arith.cmpi eq, %305, %953 : vector<2x9xi32>
    %c0_i32_243 = arith.constant 0 : i32
    %955 = vector.broadcast %c0_i32_243 : i32 to vector<2x9xi32>
    %956 = arith.select %954, %452, %955 : vector<2x9xi1>, vector<2x9xi32>
    %cst_244 = arith.constant dense<0> : vector<2xi32>
    %957 = vector.multi_reduction <add>, %956, %cst_244 [1] : vector<2x9xi32> to vector<2xi32>
    %958 = vector.shape_cast %957 : vector<2xi32> to vector<2x1xi32>
    %959 = arith.select %945, %958, %942 : vector<2x1xi1>, vector<2x1xi32>
    %960 = vector.extract_strided_slice %300 {offsets = [0, 4], sizes = [2, 1], strides = [1, 1]} : vector<2x16xi32> to vector<2x1xi32>
    %c0_i32_245 = arith.constant 0 : i32
    %961 = vector.broadcast %c0_i32_245 : i32 to vector<2x1xi32>
    %962 = arith.cmpi ne, %960, %961 : vector<2x1xi32>
    %c4_i32 = arith.constant 4 : i32
    %963 = vector.broadcast %c4_i32 : i32 to vector<2x16xi32>
    %964 = arith.cmpi eq, %306, %963 : vector<2x16xi32>
    %965 = vector.broadcast %962 : vector<2x1xi1> to vector<2x16xi1>
    %966 = arith.andi %964, %965 : vector<2x16xi1>
    %967 = vector.shape_cast %959 : vector<2x1xi32> to vector<2x1xi32>
    %968 = vector.broadcast %967 : vector<2x1xi32> to vector<2x16xi32>
    %969 = arith.select %966, %968, %952 : vector<2x16xi1>, vector<2x16xi32>
    %970 = vector.broadcast %959 : vector<2x1xi32> to vector<2x9xi32>
    %971 = arith.cmpi eq, %305, %970 : vector<2x9xi32>
    %c0_i32_246 = arith.constant 0 : i32
    %972 = vector.broadcast %c0_i32_246 : i32 to vector<2x9xi32>
    %973 = arith.select %971, %422, %972 : vector<2x9xi1>, vector<2x9xi32>
    %cst_247 = arith.constant dense<0> : vector<2xi32>
    %974 = vector.multi_reduction <add>, %973, %cst_247 [1] : vector<2x9xi32> to vector<2xi32>
    %975 = vector.shape_cast %974 : vector<2xi32> to vector<2x1xi32>
    %976 = arith.select %962, %975, %959 : vector<2x1xi1>, vector<2x1xi32>
    %977 = vector.extract_strided_slice %300 {offsets = [0, 3], sizes = [2, 1], strides = [1, 1]} : vector<2x16xi32> to vector<2x1xi32>
    %c0_i32_248 = arith.constant 0 : i32
    %978 = vector.broadcast %c0_i32_248 : i32 to vector<2x1xi32>
    %979 = arith.cmpi ne, %977, %978 : vector<2x1xi32>
    %c3_i32 = arith.constant 3 : i32
    %980 = vector.broadcast %c3_i32 : i32 to vector<2x16xi32>
    %981 = arith.cmpi eq, %306, %980 : vector<2x16xi32>
    %982 = vector.broadcast %979 : vector<2x1xi1> to vector<2x16xi1>
    %983 = arith.andi %981, %982 : vector<2x16xi1>
    %984 = vector.shape_cast %976 : vector<2x1xi32> to vector<2x1xi32>
    %985 = vector.broadcast %984 : vector<2x1xi32> to vector<2x16xi32>
    %986 = arith.select %983, %985, %969 : vector<2x16xi1>, vector<2x16xi32>
    %987 = vector.broadcast %976 : vector<2x1xi32> to vector<2x9xi32>
    %988 = arith.cmpi eq, %305, %987 : vector<2x9xi32>
    %c0_i32_249 = arith.constant 0 : i32
    %989 = vector.broadcast %c0_i32_249 : i32 to vector<2x9xi32>
    %990 = arith.select %988, %392, %989 : vector<2x9xi1>, vector<2x9xi32>
    %cst_250 = arith.constant dense<0> : vector<2xi32>
    %991 = vector.multi_reduction <add>, %990, %cst_250 [1] : vector<2x9xi32> to vector<2xi32>
    %992 = vector.shape_cast %991 : vector<2xi32> to vector<2x1xi32>
    %993 = arith.select %979, %992, %976 : vector<2x1xi1>, vector<2x1xi32>
    %994 = vector.extract_strided_slice %300 {offsets = [0, 2], sizes = [2, 1], strides = [1, 1]} : vector<2x16xi32> to vector<2x1xi32>
    %c0_i32_251 = arith.constant 0 : i32
    %995 = vector.broadcast %c0_i32_251 : i32 to vector<2x1xi32>
    %996 = arith.cmpi ne, %994, %995 : vector<2x1xi32>
    %c2_i32 = arith.constant 2 : i32
    %997 = vector.broadcast %c2_i32 : i32 to vector<2x16xi32>
    %998 = arith.cmpi eq, %306, %997 : vector<2x16xi32>
    %999 = vector.broadcast %996 : vector<2x1xi1> to vector<2x16xi1>
    %1000 = arith.andi %998, %999 : vector<2x16xi1>
    %1001 = vector.shape_cast %993 : vector<2x1xi32> to vector<2x1xi32>
    %1002 = vector.broadcast %1001 : vector<2x1xi32> to vector<2x16xi32>
    %1003 = arith.select %1000, %1002, %986 : vector<2x16xi1>, vector<2x16xi32>
    %1004 = vector.broadcast %993 : vector<2x1xi32> to vector<2x9xi32>
    %1005 = arith.cmpi eq, %305, %1004 : vector<2x9xi32>
    %c0_i32_252 = arith.constant 0 : i32
    %1006 = vector.broadcast %c0_i32_252 : i32 to vector<2x9xi32>
    %1007 = arith.select %1005, %362, %1006 : vector<2x9xi1>, vector<2x9xi32>
    %cst_253 = arith.constant dense<0> : vector<2xi32>
    %1008 = vector.multi_reduction <add>, %1007, %cst_253 [1] : vector<2x9xi32> to vector<2xi32>
    %1009 = vector.shape_cast %1008 : vector<2xi32> to vector<2x1xi32>
    %1010 = arith.select %996, %1009, %993 : vector<2x1xi1>, vector<2x1xi32>
    %1011 = vector.extract_strided_slice %300 {offsets = [0, 1], sizes = [2, 1], strides = [1, 1]} : vector<2x16xi32> to vector<2x1xi32>
    %c0_i32_254 = arith.constant 0 : i32
    %1012 = vector.broadcast %c0_i32_254 : i32 to vector<2x1xi32>
    %1013 = arith.cmpi ne, %1011, %1012 : vector<2x1xi32>
    %c1_i32 = arith.constant 1 : i32
    %1014 = vector.broadcast %c1_i32 : i32 to vector<2x16xi32>
    %1015 = arith.cmpi eq, %306, %1014 : vector<2x16xi32>
    %1016 = vector.broadcast %1013 : vector<2x1xi1> to vector<2x16xi1>
    %1017 = arith.andi %1015, %1016 : vector<2x16xi1>
    %1018 = vector.shape_cast %1010 : vector<2x1xi32> to vector<2x1xi32>
    %1019 = vector.broadcast %1018 : vector<2x1xi32> to vector<2x16xi32>
    %1020 = arith.select %1017, %1019, %1003 : vector<2x16xi1>, vector<2x16xi32>
    %1021 = vector.broadcast %1010 : vector<2x1xi32> to vector<2x9xi32>
    %1022 = arith.cmpi eq, %305, %1021 : vector<2x9xi32>
    %c0_i32_255 = arith.constant 0 : i32
    %1023 = vector.broadcast %c0_i32_255 : i32 to vector<2x9xi32>
    %1024 = arith.select %1022, %332, %1023 : vector<2x9xi1>, vector<2x9xi32>
    %cst_256 = arith.constant dense<0> : vector<2xi32>
    %1025 = vector.multi_reduction <add>, %1024, %cst_256 [1] : vector<2x9xi32> to vector<2xi32>
    %1026 = vector.shape_cast %1025 : vector<2xi32> to vector<2x1xi32>
    %1027 = arith.select %1013, %1026, %1010 : vector<2x1xi1>, vector<2x1xi32>
    %c0_i32_257 = arith.constant 0 : i32
    %1028 = vector.broadcast %c0_i32_257 : i32 to vector<2x16xi32>
    %1029 = arith.cmpi eq, %306, %1028 : vector<2x16xi32>
    %1030 = vector.shape_cast %1027 : vector<2x1xi32> to vector<2x1xi32>
    %1031 = vector.broadcast %1030 : vector<2x1xi32> to vector<2x16xi32>
    %1032 = arith.select %1029, %1031, %1020 : vector<2x16xi1>, vector<2x16xi32>
    %c0_258 = arith.constant 0 : index
    %c0_259 = arith.constant 0 : index
    %1033 = vector.load %arg15[%c0_258, %c0_259] : memref<2x16xi32, #tpu.memory_space<vmem>>, vector<2x16xi32>
    tpu.vector_store %arg15[%c0_258, %c0_259], %1032 {strides = array<i32>} : memref<2x16xi32, #tpu.memory_space<vmem>>, vector<2x16xi32>,
    return
  }
  func.func @transform_0(%arg0: i32) -> (i32, i32) {
    %c0_i32 = arith.constant 0 : i32
    %c0_i32_0 = arith.constant 0 : i32
    %c0_i32_1 = arith.constant 0 : i32
    return %c0_i32, %c0_i32_0 : i32, i32
  }
  func.func @transform_1(%arg0: i32) -> (i32, i32) {
    %c0_i32 = arith.constant 0 : i32
    %c0_i32_0 = arith.constant 0 : i32
    %c0_i32_1 = arith.constant 0 : i32
    return %c0_i32, %c0_i32_0 : i32, i32
  }
  func.func @transform_2(%arg0: i32) -> (i32, i32) {
    %c0_i32 = arith.constant 0 : i32
    %c0_i32_0 = arith.constant 0 : i32
    %c0_i32_1 = arith.constant 0 : i32
    return %c0_i32, %c0_i32_0 : i32, i32
  }
  func.func @transform_3(%arg0: i32) -> (i32, i32) {
    %c0_i32 = arith.constant 0 : i32
    %c0_i32_0 = arith.constant 0 : i32
    %c0_i32_1 = arith.constant 0 : i32
    return %c0_i32, %c0_i32_0 : i32, i32
  }
  func.func @transform_4(%arg0: i32) -> (i32, i32, i32) {
    %c0_i32 = arith.constant 0 : i32
    %c0_i32_0 = arith.constant 0 : i32
    %c0_i32_1 = arith.constant 0 : i32
    %c0_i32_2 = arith.constant 0 : i32
    return %c0_i32, %c0_i32_0, %c0_i32_1 : i32, i32, i32
  }
  func.func @transform_5(%arg0: i32) -> (i32, i32, i32) {
    %c0_i32 = arith.constant 0 : i32
    %c0_i32_0 = arith.constant 0 : i32
    %c0_i32_1 = arith.constant 0 : i32
    %c0_i32_2 = arith.constant 0 : i32
    return %c0_i32, %c0_i32_0, %c0_i32_1 : i32, i32, i32
  }
  func.func @transform_6(%arg0: i32) -> (i32, i32, i32) {
    %c0_i32 = arith.constant 0 : i32
    %c0_i32_0 = arith.constant 0 : i32
    %c0_i32_1 = arith.constant 0 : i32
    %c0_i32_2 = arith.constant 0 : i32
    return %c0_i32, %c0_i32_0, %c0_i32_1 : i32, i32, i32
  }
  func.func @transform_7(%arg0: i32) -> (i32, i32, i32) {
    %c0_i32 = arith.constant 0 : i32
    %c0_i32_0 = arith.constant 0 : i32
    %c0_i32_1 = arith.constant 0 : i32
    %c0_i32_2 = arith.constant 0 : i32
    return %c0_i32, %c0_i32_0, %c0_i32_1 : i32, i32, i32
  }
  func.func @transform_8(%arg0: i32) -> (i32, i32, i32) {
    %c0_i32 = arith.constant 0 : i32
    %c0_i32_0 = arith.constant 0 : i32
    %c0_i32_1 = arith.constant 0 : i32
    %c0_i32_2 = arith.constant 0 : i32
    return %c0_i32, %c0_i32_0, %c0_i32_1 : i32, i32, i32
  }
  func.func @transform_9(%arg0: i32) -> (i32, i32, i32) {
    %c0_i32 = arith.constant 0 : i32
    %c0_i32_0 = arith.constant 0 : i32
    %c0_i32_1 = arith.constant 0 : i32
    %c0_i32_2 = arith.constant 0 : i32
    return %c0_i32, %c0_i32_0, %c0_i32_1 : i32, i32, i32
  }
  func.func @transform_10(%arg0: i32) -> (i32, i32, i32) {
    %c0_i32 = arith.constant 0 : i32
    %c0_i32_0 = arith.constant 0 : i32
    %c0_i32_1 = arith.constant 0 : i32
    %c0_i32_2 = arith.constant 0 : i32
    return %c0_i32, %c0_i32_0, %c0_i32_1 : i32, i32, i32
  }
  func.func @transform_11(%arg0: i32) -> (i32, i32) {
    %c0_i32 = arith.constant 0 : i32
    %c0_i32_0 = arith.constant 0 : i32
    %c0_i32_1 = arith.constant 0 : i32
    return %c0_i32, %c0_i32_0 : i32, i32
  }
  func.func @transform_12(%arg0: i32) -> (i32, i32) {
    %c0_i32 = arith.constant 0 : i32
    %c0_i32_0 = arith.constant 0 : i32
    %c0_i32_1 = arith.constant 0 : i32
    return %c0_i32, %c0_i32_0 : i32, i32
  }
  func.func @transform_13(%arg0: i32) -> (i32, i32) {
    %c0_i32 = arith.constant 0 : i32
    %c0_i32_0 = arith.constant 0 : i32
    %c0_i32_1 = arith.constant 0 : i32
    return %c0_i32, %c0_i32_0 : i32, i32
  }
  func.func @transform_14(%arg0: i32) -> (i32, i32) {
    %c0_i32 = arith.constant 0 : i32
    %c0_i32_0 = arith.constant 0 : i32
    %c0_i32_1 = arith.constant 0 : i32
    return %c0_i32, %c0_i32_0 : i32, i32
  }
}

</mosaic_0001>

<bundles_post_ra>
// kernel: bert_crf_forward.1
= control target key start
LH: loop header
LB: loop body
LE: loop exit
PB: predicated region body
PF: predicated region fallthrough
CT: control target
= control target key end

     0   :  { %vm53_vm0 = vcmask 261120   ;;  %s7836_s0 = inlined_call_operand.vmem [shape: f32[32,32], index: 0, kind: input, shape index: {}]   ;;  %s7837_s1 = inlined_call_operand.vmem [shape: f32[32,32], index: 1, kind: input, shape index: {}]   ;;  %s7838_s2 = inlined_call_operand.vmem [shape: s32[2,16], index: 2, kind: input, shape index: {}]   ;;  %s7839_s3 = inlined_call_operand.vmem [shape: f32[2,32], index: 3, kind: input, shape index: {}]   ;;  %s7840_s4 = inlined_call_operand.vmem [shape: f32[2,32,96], index: 4, kind: input, shape index: {}]   ;;  %s7841_s5 = inlined_call_operand.vmem [shape: f32[2,1,96], index: 5, kind: input, shape index: {}]   ;;  %s7842_s6 = inlined_call_operand.vmem [shape: f32[2,32,32], index: 6, kind: input, shape index: {}]   ;;  %s7843_s7 = inlined_call_operand.vmem [shape: f32[2,6,32], index: 7, kind: input, shape index: {}]   ;;  %s7844_s8 = inlined_call_operand.vmem [shape: f32[2,32,64], index: 8, kind: input, shape index: {}]   ;;  %s7845_s9 = inlined_call_operand.vmem [shape: f32[2,1,64], index: 9, kind: input, shape index: {}]   ;;  %s7846_s10 = inlined_call_operand.vmem [shape: f32[2,64,32], index: 10, kind: input, shape index: {}]   ;;  %s7847_s11 = inlined_call_operand.vmem [shape: f32[32,9], index: 11, kind: input, shape index: {}]   ;;  %s7848_s12 = inlined_call_operand.vmem [shape: f32[3,9], index: 12, kind: input, shape index: {}]   ;;  %s7849_s13 = inlined_call_operand.vmem [shape: f32[9,9], index: 13, kind: input, shape index: {}]   ;;  %s7850_s14 = inlined_call_operand.hbm [shape: s32[2,16], index: 14, kind: output, shape index: {}]  }
   0x1   :  { %v49_v0 = vld [vmem:[%s7836_s0] sm:$0xff]  ;;  %v51_v1 = vld [vmem:[%s7836_s0 + $0x10] sm:$0xff]  ;;  %v50_v2 = vld [vmem:[%s7836_s0 + $0x8] sm:$0xff] }
   0x2   :  { %v54_v3 = vsel %vm53_vm0, %v49_v0, 0.0  ;;  %v60_v4 = vsel %vm53_vm0, %v51_v1, 0.0  ;;  %v52_v5 = vld [vmem:[%s7836_s0 + $0x18] sm:$0xff] }
   0x3   :  { %19 = vsyncpa [#allocation3], 0  ;;  %55 = vadd.xlane.f32.xlu0 %v54_v3  ;;  %61 = vadd.xlane.f32.xlu1 %v60_v4  ;;  %v57_v6 = vsel %vm53_vm0, %v50_v2, 0.0  ;;  %v63_v7 = vsel %vm53_vm0, %v52_v5, 0.0  ;;  %v128_v28 = vld [vmem:[%s7840_s4] sm:$0xff]  ;;  %v129_v29 = vld [vmem:[%s7840_s4 + $0x8] sm:$0xff]  ;;  %v107_v36 = vlaneseq }
   0x4   :  { %v130_v30 = vld [vmem:[%s7840_s4 + $0x10] sm:$0xff]  ;;  %v5564_v31 = vpack.c.bf16 %v129_v29, %v128_v28  ;;  %v131_v32 = vld [vmem:[%s7840_s4 + $0x18] sm:$0xff]  ;;  %v48_v49 = vld [vmem:[%s7839_s3] sm:$0x3]  ;;  %vm252_vm1 = vcmask 130048   ;;  %s6028_s15 = smov 96  }
   0x5   :  { %v5568_v33 = vpack.c.bf16 %v131_v32, %v130_v30  ;;  %v6160_v42 = vshrl.u32 %v107_v36, 7  ;;  %vm6216_vm2 = vmpackc.low %vm252_vm1, %vm252_vm1  ;;  %v6242_v29 = vld [vmem:[%s7837_s1] sm:$0xff]  ;;  %s6029_s23 = smov 64   ;;  %s6030_s24 = smov 80   ;;  %vm1223_vm3 = vcmask 523264   ;;  %vm2826_vm5 = vcmask 72704  }
   0x6   :  { %5565 = vmatprep.subr.bf16.mxu0 %v5564_v31  ;;  %s6031_s25 = smov 112   ;;  %s6032_s26 = smov 48   ;;  %vm2830_vm7 = vcmask 65536   ;;  %vm2912_vm11 = vcmask 1041409  }
   0x7   :  { %58 = vadd.xlane.f32.xlu0 %v57_v6  ;;  %64 = vadd.xlane.f32.xlu1 %v63_v7  ;;  %v6163_v47 = vsub.s32 0, %v6160_v42  ;;  %v6169_v50 = vsub.s32 1, %v6160_v42  ;;  %s6051_s29 = smov [#allocation2]  }
   0x8   :  { %5567 = vmatpush3.bf16.msra.mxu0 %v5564_v31 }
   0x9   :  { %5569 = vmatprep.subr.bf16.mxu0 %v5568_v33  ;;  %v110_v51 = vrot.slane %v48_v49, %v6163_v47  ;;  %v118_v54 = vrot.slane %v48_v49, %v6169_v50 }
   0xc   :  { %5571 = vmatpush3.bf16.msra.mxu0 %v5568_v33 }
  0x90   :  { %v56_v8 = vpop.xlane.xlu0 %55  ;;  %v62_v9 = vpop.xlane.xlu1 %61 }
  0x91   :  { %v67_v10 = vmul.f32 0.03125, %v56_v8  ;;  %v69_v11 = vmul.f32 0.03125, %v62_v9 }
  0x93   :  { %v71_v12 = vsub.f32 %v49_v0, %v67_v10  ;;  %v73_v13 = vsub.f32 %v51_v1, %v69_v11 }
  0x94   :  { %v59_v14 = vpop.xlane.xlu0 %58  ;;  %v65_v15 = vpop.xlane.xlu1 %64 }
  0x95   :  { %v68_v16 = vmul.f32 0.03125, %v59_v14  ;;  %v70_v17 = vmul.f32 0.03125, %v65_v15  ;;  %v75_v18 = vmul.f32 %v71_v12, %v71_v12  ;;  %v77_v19 = vmul.f32 %v73_v13, %v73_v13 }
  0x97   :  { %v72_v20 = vsub.f32 %v50_v2, %v68_v16  ;;  %v74_v21 = vsub.f32 %v52_v5, %v70_v17  ;;  %v79_v22 = vsel %vm53_vm0, %v75_v18, 0.0  ;;  %v85_v23 = vsel %vm53_vm0, %v77_v19, 0.0  ;;  %v5027_v5 = vld [vmem:[%s7841_s5] ss:$0 sm:$0xff] }
  0x98   :  { %80 = vadd.xlane.f32.xlu0 %v79_v22 }
  0x99   :  { %v76_v24 = vmul.f32 %v72_v20, %v72_v20  ;;  %v78_v25 = vmul.f32 %v74_v21, %v74_v21 }
  0x9b   :  { %v82_v26 = vsel %vm53_vm0, %v76_v24, 0.0  ;;  %v88_v27 = vsel %vm53_vm0, %v78_v25, 0.0 }
  0x9c   :  { %86 = vadd.xlane.f32.xlu0 %v85_v23  ;;  %83 = vadd.xlane.f32.xlu1 %v82_v26  ;;  %v6237_v26 = vld [vmem:[%s7837_s1 + $0x8] sm:$0xff] }
  0xa0   :  { %89 = vadd.xlane.f32.xlu1 %v88_v27 }
 0x125   :  { %v81_v34 = vpop.xlane.xlu0 %80 }
 0x126   :  { %v91_v35 = vmul.f32 0.03125, %v81_v34  ;;  %v6249_v34 = vld [vmem:[%s7837_s1 + $0x18] sm:$0xff] }
 0x128   :  { %v95_v37 = vadd.f32 1e-12, %v91_v35 }
 0x129   :  { %v84_v38 = vpop.xlane.xlu1 %83  ;;  %v87_v39 = vpop.xlane.xlu0 %86 }
 0x12a   :  { %5875 = vrsqrt.f32 %v95_v37  ;;  %v92_v40 = vmul.f32 0.03125, %v84_v38  ;;  %v93_v41 = vmul.f32 0.03125, %v87_v39  ;;  %v6255_v39 = vld [vmem:[%s7837_s1 + $0x10] sm:$0xff] }
 0x12c   :  { %v96_v43 = vadd.f32 1e-12, %v92_v40  ;;  %v97_v44 = vadd.f32 1e-12, %v93_v41 }
 0x12d   :  { %v90_v45 = vpop.xlane.xlu1 %89 }
 0x12e   :  { %5877 = vrsqrt.f32 %v96_v43  ;;  %v94_v46 = vmul.f32 0.03125, %v90_v45 }
 0x12f   :  { %5879 = vrsqrt.f32 %v97_v44 }
 0x130   :  { %v98_v48 = vadd.f32 1e-12, %v94_v46 }
 0x132   :  { %5881 = vrsqrt.f32 %v98_v48 }
 0x134   :  { %v5876_v52 = vpop.eup %5875 }
 0x135   :  { %v103_v53 = vmul.f32 %v5876_v52, %v71_v12 }
 0x137   :  { %v111_v55 = vmul.f32 %v110_v51, %v103_v53 }
 0x138   :  { %v5878_v56 = vpop.eup %5877 }
 0x139   :  { %v5880_v57 = vpop.eup %5879  ;;  %v6173_v58 = vadd.f32 %v118_v54, %v111_v55  ;;  %v104_v59 = vmul.f32 %v5878_v56, %v72_v20 }
 0x13a   :  { %v105_v60 = vmul.f32 %v5880_v57, %v73_v13 }
 0x13b   :  { %5306 = vmatprep.mubr.msk.f32.mxu0 %vm53_vm0, %v6173_v58  ;;  %v112_v61 = vmul.f32 %v110_v51, %v104_v59 }
 0x13c   :  { %v5882_v62 = vpop.eup %5881  ;;  %v113_v63 = vmul.f32 %v110_v51, %v105_v60 }
 0x13d   :  { %v6177_v0 = vadd.f32 %v118_v54, %v112_v61  ;;  %v106_v1 = vmul.f32 %v5882_v62, %v74_v21 }
 0x13e   :  { %v6179_v2 = vadd.f32 %v118_v54, %v113_v63 }
 0x13f   :  { %5307 = vmatmul.mubr.msk.f32.vlgmr.msra.gmra.mrb[0].mxu0 %vm53_vm0, %v6177_v0  ;;  %v114_v3 = vmul.f32 %v110_v51, %v106_v1 }
 0x140   :  { %5309 = vmatprep.mubr.msk.f32.mxu0 %vm53_vm0, %v6179_v2 }
 0x141   :  { %v6185_v4 = vadd.f32 %v118_v54, %v114_v3 }
 0x143   :  { %5310 = vmatmul.mubr.msk.f32.gmra.mrb[2].mxu0 %vm53_vm0, %v6185_v4 }
 0x212   :  { %v5308_v6 = vpop.f32.mrb[0].mxu0 }
 0x213   :  { %v6192_v7 = vadd.f32 %v5308_v6, %v5027_v5  ;;  %v217_v8 = vpop.f32.mrb[1].mxu0 }
 0x214   :  { %v6194_v9 = vadd.f32 %v5027_v5, %v217_v8 }
 0x216   :  { %v5311_v10 = vpop.f32.mrb[2].mxu0  ;;  %5320 = vmatprep.mubr.msk.f32.mxu1 %vm252_vm1, %v6194_v9  ;;  %v6200_v11 = vpack.i.bf16 %v6192_v7, %v6194_v9 }
 0x217   :  { %v6202_v12 = vadd.f32 %v5311_v10, %v5027_v5  ;;  %v227_v13 = vpop.f32.mrb[3].mxu0 }
 0x218   :  { %v6204_v14 = vadd.f32 %v5027_v5, %v227_v13  ;;  %5765 = vrot.lane.b32.xlu0 %v6200_v11, %s6028_s15 }
 0x21a   :  { %v6210_v15 = vpack.i.bf16 %v6202_v12, %v6204_v14 }
 0x21c   :  { %5770 = vrot.lane.b32.xlu1 %v6210_v15, %s6028_s15 }
 0x28a   :  { %v5766_v16 = vpop.permute.xlu0 %5765 }
 0x28b   :  { %v5768_v17 = vunpack.i.h.bf16 %v5766_v16  ;;  %v5767_v18 = vunpack.i.l.bf16 %v5766_v16 }
 0x28d   :  { %v5572_v20 = vpack.c.bf16 %v5768_v17, %v5767_v18 }
 0x28e   :  { %v5771_v21 = vpop.permute.xlu1 %5770 }
 0x28f   :  { %v5773_v22 = vunpack.i.h.bf16 %v5771_v21  ;;  %v5772_v23 = vunpack.i.l.bf16 %v5771_v21  ;;  %5574 = vmatprep.subr.msk.bf16.mxu1 %vm6216_vm2, %v5572_v20 }
 0x290   :  { %5577 = vmatpush3.bf16.xpose.msk.msra.mxu1 %vm6216_vm2, %v5572_v20 }
 0x291   :  { %v5578_v24 = vpack.c.bf16 %v5773_v22, %v5772_v23 }
 0x293   :  { %5580 = vmatprep.subr.msk.bf16.mxu1 %vm6216_vm2, %v5578_v24 }
 0x298   :  { %5583 = vmatpush3.bf16.xpose.msk.msra.mxu1 %vm6216_vm2, %v5578_v24 }
 0x29f   :  { %5321 = vmatmul.mubr.msk.f32.vlgmr.msra.gmra.mrb[0].mxu1 %vm252_vm1, %v6192_v7 }
 0x2a0   :  { %5323 = vmatprep.mubr.msk.f32.mxu1 %vm252_vm1, %v6204_v14 }
 0x2a3   :  { %5324 = vmatmul.mubr.msk.f32.gmra.mrb[2].mxu1 %vm252_vm1, %v6202_v12 }
 0x372   :  { %v5322_v25 = vpop.f32.mrb[0].mxu1 }
 0x373   :  { %v355_v27 = vmul.f32 0.25, %v5322_v25  ;;  %v335_v28 = vpop.f32.mrb[1].mxu1 }
 0x374   :  { %v354_v30 = vmul.f32 0.25, %v335_v28 }
 0x375   :  { %v359_v31 = vadd.f32 %v355_v27, %v6237_v26 }
 0x376   :  { %v5325_v32 = vpop.f32.mrb[2].mxu1  ;;  %v358_v33 = vadd.f32 %v354_v30, %v6242_v29 }
 0x377   :  { %v357_v35 = vmul.f32 0.25, %v5325_v32  ;;  %v345_v37 = vpop.f32.mrb[3].mxu1  ;;  %v365_v38 = vsel %vm53_vm0, %v359_v31, -inf }
 0x378   :  { %v356_v40 = vmul.f32 0.25, %v345_v37  ;;  %366 = vmax.xlane.f32.xlu0 %v365_v38  ;;  %v362_v41 = vsel %vm53_vm0, %v358_v33, -inf }
 0x379   :  { %363 = vmax.xlane.f32.xlu1 %v362_v41  ;;  %v361_v43 = vadd.f32 %v357_v35, %v6249_v34 }
 0x37a   :  { %v360_v44 = vadd.f32 %v356_v40, %v6255_v39 }
 0x37b   :  { %v371_v45 = vsel %vm53_vm0, %v361_v43, -inf }
 0x37c   :  { %v368_v46 = vsel %vm53_vm0, %v360_v44, -inf }
 0x37d   :  { %372 = vmax.xlane.f32.xlu1 %v371_v45  ;;  %369 = vmax.xlane.f32.xlu0 %v368_v46 }
 0x405   :  { %v367_v48 = vpop.xlane.xlu0 %366 }
 0x406   :  { %v375_v49 = vsub.f32 %v359_v31, %v367_v48  ;;  %v364_v51 = vpop.xlane.xlu1 %363 }
 0x407   :  { %v374_v52 = vsub.f32 %v358_v33, %v364_v51 }
 0x408   :  { %v380_v53 = vmul.f32 1.442695, %v375_v49 }
 0x409   :  { %v378_v54 = vmul.f32 1.442695, %v374_v52 }
 0x40a   :  { %5883 = vpow2.f32 %v380_v53  ;;  %v370_v60 = vpop.xlane.xlu0 %369  ;;  %v373_v62 = vpop.xlane.xlu1 %372 }
 0x40b   :  { %5885 = vpow2.f32 %v378_v54  ;;  %v376_v61 = vsub.f32 %v360_v44, %v370_v60  ;;  %v377_v1 = vsub.f32 %v361_v43, %v373_v62 }
 0x40d   :  { %v382_v63 = vmul.f32 1.442695, %v376_v61  ;;  %v384_v3 = vmul.f32 1.442695, %v377_v1 }
 0x40f   :  { %5887 = vpow2.f32 %v382_v63 }
 0x410   :  { %5889 = vpow2.f32 %v384_v3 }
 0x414   :  { %v5884_v55 = vpop.eup %5883 }
 0x415   :  { %v5886_v56 = vpop.eup %5885  ;;  %v389_v57 = vsel %vm53_vm0, %v5884_v55, 0.0 }
 0x416   :  { %390 = vadd.xlane.f32.xlu1 %v389_v57  ;;  %v386_v59 = vsel %vm53_vm0, %v5886_v56, 0.0 }
 0x417   :  { %387 = vadd.xlane.f32.xlu0 %v386_v59 }
 0x419   :  { %v5888_v5 = vpop.eup %5887 }
 0x41a   :  { %v392_v6 = vsel %vm53_vm0, %v5888_v5, 0.0  ;;  %v5890_v8 = vpop.eup %5889 }
 0x41b   :  { %v395_v10 = vsel %vm53_vm0, %v5890_v8, 0.0 }
 0x427   :  { %5780 = vrot.lane.b32.xlu1 %v6210_v15, %s6029_s23 }
 0x42b   :  { %5785 = vrot.lane.b32.xlu1 %v6200_v11, %s6030_s24 }
 0x42d   :  { %5775 = vrot.lane.b32.xlu0 %v6200_v11, %s6029_s23 }
 0x42f   :  { %5790 = vrot.lane.b32.xlu1 %v6210_v15, %s6030_s24 }
 0x44c   :  { %393 = vadd.xlane.f32.xlu0 %v392_v6 }
 0x453   :  { %396 = vadd.xlane.f32.xlu1 %v395_v10 }
 0x462   :  { %515 = vrot.lane.b32.xlu0 %v6194_v9, %s6031_s25 }
 0x464   :  { %517 = vrot.lane.b32.xlu1 %v6192_v7, %s6031_s25 }
 0x466   :  { %519 = vrot.lane.b32.xlu0 %v6204_v14, %s6031_s25 }
 0x468   :  { %521 = vrot.lane.b32.xlu1 %v6202_v12, %s6031_s25 }
 0x4a3   :  { %v391_v13 = vpop.xlane.xlu1 %390 }
 0x4a4   :  { %v388_v16 = vpop.xlane.xlu0 %387 }
 0x4a5   :  { %5891 = vrcp.f32 %v388_v16 }
 0x4a6   :  { %5893 = vrcp.f32 %v391_v13 }
 0x4a7   :  { %v5781_v17 = vpop.permute.xlu1 %5780 }
 0x4a8   :  { %v5776_v18 = vpop.permute.xlu0 %5775  ;;  %v5783_v20 = vunpack.i.h.bf16 %v5781_v17  ;;  %v5782_v21 = vunpack.i.l.bf16 %v5781_v17 }
 0x4a9   :  { %v5778_v22 = vunpack.i.h.bf16 %v5776_v18  ;;  %v5777_v23 = vunpack.i.l.bf16 %v5776_v18 }
 0x4aa   :  { %v5588_v27 = vpack.c.bf16 %v5783_v20, %v5782_v21 }
 0x4ab   :  { %v5786_v9 = vpop.permute.xlu1 %5785  ;;  %v5584_v24 = vpack.c.bf16 %v5778_v22, %v5777_v23 }
 0x4ac   :  { %v5788_v25 = vunpack.i.h.bf16 %v5786_v9  ;;  %v5787_v7 = vunpack.i.l.bf16 %v5786_v9 }
 0x4ad   :  { %5585 = vmatprep.subr.bf16.mxu0 %v5584_v24 }
 0x4ae   :  { %5587 = vmatpush3.bf16.msra.mxu0 %v5584_v24  ;;  %v5592_v30 = vpack.c.bf16 %v5788_v25, %v5787_v7 }
 0x4af   :  { %v5892_v14 = vpop.eup %5891  ;;  %5589 = vmatprep.subr.bf16.mxu0 %v5588_v27  ;;  %v5791_v32 = vpop.permute.xlu1 %5790 }
 0x4b0   :  { %v5894_v12 = vpop.eup %5893  ;;  %v402_v28 = vmul.f32 %v5892_v14, %v5886_v56  ;;  %v5793_v33 = vunpack.i.h.bf16 %v5791_v32  ;;  %v5792_v35 = vunpack.i.l.bf16 %v5791_v32 }
 0x4b1   :  { %v403_v31 = vmul.f32 %v5894_v12, %v5884_v55 }
 0x4b2   :  { %5591 = vmatpush3.bf16.msra.mxu0 %v5588_v27  ;;  %5334 = vmatprep.mubr.msk.f32.mxu0 %vm53_vm0, %v402_v28  ;;  %v5598_v37 = vpack.c.bf16 %v5793_v33, %v5792_v35 }
 0x4b3   :  { %5594 = vmatprep.subr.msk.bf16.mxu0 %vm6216_vm2, %v5592_v30 }
 0x4b5   :  { %5335 = vmatmul.mubr.msk.f32.vlgmr.msra.gmra.mrb[4].mxu0 %vm53_vm0, %v403_v31 }
 0x4bb   :  { %5597 = vmatpush3.bf16.xpose.msk.msra.mxu0 %vm6216_vm2, %v5592_v30 }
 0x4bc   :  { %5600 = vmatprep.subr.msk.bf16.mxu0 %vm6216_vm2, %v5598_v37 }
 0x4c3   :  { %5603 = vmatpush3.bf16.xpose.msk.msra.mxu0 %vm6216_vm2, %v5598_v37 }
 0x4d9   :  { %v394_v38 = vpop.xlane.xlu0 %393 }
 0x4da   :  { %5895 = vrcp.f32 %v394_v38 }
 0x4dd   :  { %v516_v45 = vpop.permute.xlu0 %515 }
 0x4e0   :  { %v397_v40 = vpop.xlane.xlu1 %396 }
 0x4e1   :  { %5897 = vrcp.f32 %v397_v40  ;;  %v520_v49 = vpop.permute.xlu0 %519 }
 0x4e4   :  { %v5896_v41 = vpop.eup %5895  ;;  %v518_v48 = vpop.permute.xlu1 %517 }
 0x4e5   :  { %v404_v43 = vmul.f32 %v5896_v41, %v5888_v5 }
 0x4e7   :  { %5337 = vmatprep.mubr.msk.f32.mxu0 %vm53_vm0, %v404_v43 }
 0x4e8   :  { %v522_v51 = vpop.permute.xlu1 %521 }
 0x4eb   :  { %v5898_v44 = vpop.eup %5897 }
 0x4ec   :  { %v405_v46 = vmul.f32 %v5898_v44, %v5890_v8 }
 0x4ee   :  { %5338 = vmatmul.mubr.msk.f32.gmra.mrb[6].mxu0 %vm53_vm0, %v405_v46 }
 0x4ef   :  { %5348 = vmatprep.mubr.msk.f32.mxu0 %vm252_vm1, %v516_v45 }
 0x4f2   :  { %5349 = vmatmul.mubr.msk.f32.vlgmr.msra.gmra.mrb[8].mxu0 %vm252_vm1, %v518_v48 }
 0x4f3   :  { %5351 = vmatprep.mubr.msk.f32.mxu0 %vm252_vm1, %v520_v49 }
 0x4f6   :  { %5352 = vmatmul.mubr.msk.f32.gmra.mrb[10].mxu0 %vm252_vm1, %v522_v51 }
 0x588   :  { %v6298_v52 = vpop.f32.mrb[4].mxu0 }
 0x589   :  { %v6300_v53 = vpop.f32.mrb[5].mxu0 }
 0x5c1   :  { %v6302_v54 = vpop.f32.mrb[6].mxu0 }
 0x5c2   :  { %v6304_v55 = vpop.f32.mrb[7].mxu0 }
 0x5c5   :  { %v5350_v56 = vpop.f32.mrb[8].mxu0 }
 0x5c6   :  { %v633_v57 = vmul.f32 0.25, %v5350_v56  ;;  %v613_v59 = vpop.f32.mrb[9].mxu0 }
 0x5c7   :  { %v632_v60 = vmul.f32 0.25, %v613_v59 }
 0x5c8   :  { %v637_v61 = vadd.f32 %v633_v57, %v6237_v26 }
 0x5c9   :  { %v5353_v62 = vpop.f32.mrb[10].mxu0  ;;  %v636_v63 = vadd.f32 %v632_v60, %v6242_v29 }
 0x5ca   :  { %v623_v1 = vpop.f32.mrb[11].mxu0  ;;  %v643_v3 = vsel %vm53_vm0, %v637_v61, -inf  ;;  %v635_v5 = vmul.f32 0.25, %v5353_v62 }
 0x5cb   :  { %v634_v6 = vmul.f32 0.25, %v623_v1  ;;  %644 = vmax.xlane.f32.xlu1 %v643_v3  ;;  %v640_v8 = vsel %vm53_vm0, %v636_v63, -inf  ;;  %v236_v3 = vld [vmem:[%s7842_s6] sm:$0xff] }
 0x5cc   :  { %641 = vmax.xlane.f32.xlu0 %v640_v8  ;;  %v639_v16 = vadd.f32 %v635_v5, %v6249_v34  ;;  %v237_v5 = vld [vmem:[%s7842_s6 + $0x8] sm:$0xff] }
 0x5cd   :  { %v638_v10 = vadd.f32 %v634_v6, %v6255_v39  ;;  %v5616_v6 = vpack.c.bf16 %v237_v5, %v236_v3 }
 0x5ce   :  { %v649_v26 = vsel %vm53_vm0, %v639_v16, -inf }
 0x5cf   :  { %v646_v13 = vsel %vm53_vm0, %v638_v10, -inf }
 0x5d0   :  { %647 = vmax.xlane.f32.xlu0 %v646_v13 }
 0x5d4   :  { %650 = vmax.xlane.f32.xlu0 %v649_v26  ;;  %v6353_v26 = vld [vmem:[%s7843_s7] sm:$0x3f] }
 0x658   :  { %v645_v29 = vpop.xlane.xlu1 %644 }
 0x659   :  { %v653_v17 = vsub.f32 %v637_v61, %v645_v29  ;;  %v642_v18 = vpop.xlane.xlu0 %641  ;;  %v990_v29 = vrot.slane %v6353_v26, %v6163_v47 }
 0x65a   :  { %v652_v20 = vsub.f32 %v636_v63, %v642_v18 }
 0x65b   :  { %v658_v21 = vmul.f32 1.442695, %v653_v17 }
 0x65c   :  { %v656_v22 = vmul.f32 1.442695, %v652_v20 }
 0x65d   :  { %5899 = vpow2.f32 %v658_v21  ;;  %v648_v23 = vpop.xlane.xlu0 %647 }
 0x65e   :  { %5901 = vpow2.f32 %v656_v22  ;;  %v654_v9 = vsub.f32 %v638_v10, %v648_v23 }
 0x660   :  { %v660_v24 = vmul.f32 1.442695, %v654_v9 }
 0x661   :  { %v651_v39 = vpop.xlane.xlu0 %650 }
 0x662   :  { %5903 = vpow2.f32 %v660_v24  ;;  %v655_v25 = vsub.f32 %v639_v16, %v651_v39 }
 0x664   :  { %v662_v7 = vmul.f32 1.442695, %v655_v25 }
 0x666   :  { %5905 = vpow2.f32 %v662_v7 }
 0x667   :  { %v5900_v34 = vpop.eup %5899 }
 0x668   :  { %v5902_v27 = vpop.eup %5901  ;;  %v667_v14 = vsel %vm53_vm0, %v5900_v34, 0.0 }
 0x669   :  { %668 = vadd.xlane.f32.xlu1 %v667_v14  ;;  %v664_v12 = vsel %vm53_vm0, %v5902_v27, 0.0 }
 0x66a   :  { %665 = vadd.xlane.f32.xlu0 %v664_v12 }
 0x66c   :  { %v5904_v28 = vpop.eup %5903 }
 0x66d   :  { %v670_v30 = vsel %vm53_vm0, %v5904_v28, 0.0 }
 0x66e   :  { %671 = vadd.xlane.f32.xlu0 %v670_v30 }
 0x670   :  { %v5906_v31 = vpop.eup %5905 }
 0x671   :  { %v673_v32 = vsel %vm53_vm0, %v5906_v31, 0.0 }
 0x672   :  { %674 = vadd.xlane.f32.xlu1 %v673_v32 }
 0x683   :  { %5800 = vrot.lane.b32.xlu1 %v6210_v15, %s6032_s26  ;;  %v238_v15 = vld [vmem:[%s7842_s6 + $0x10] sm:$0xff] }
 0x684   :  { %5795 = vrot.lane.b32.xlu0 %v6200_v11, %s6032_s26  ;;  %v239_v11 = vld [vmem:[%s7842_s6 + $0x18] sm:$0xff] }
 0x685   :  { %v5612_v57 = vpack.c.bf16 %v239_v11, %v238_v15  ;;  %v1069_v11 = vld [vmem:[%s7844_s8 + $0x10] sm:$0xff] }
 0x6f6   :  { %v669_v35 = vpop.xlane.xlu1 %668 }
 0x6f7   :  { %v666_v33 = vpop.xlane.xlu0 %665 }
 0x6f8   :  { %5907 = vrcp.f32 %v666_v33 }
 0x6f9   :  { %5909 = vrcp.f32 %v669_v35 }
 0x6fb   :  { %v672_v37 = vpop.xlane.xlu0 %671 }
 0x6fc   :  { %5911 = vrcp.f32 %v672_v37 }
 0x6ff   :  { %v675_v38 = vpop.xlane.xlu1 %674  ;;  %v5796_v40 = vpop.permute.xlu0 %5795 }
 0x700   :  { %v5798_v41 = vunpack.i.h.bf16 %v5796_v40  ;;  %v5797_v43 = vunpack.i.l.bf16 %v5796_v40  ;;  %5913 = vrcp.f32 %v675_v38 }
 0x702   :  { %v5908_v44 = vpop.eup %5907  ;;  %v5604_v45 = vpack.c.bf16 %v5798_v41, %v5797_v43 }
 0x703   :  { %v5801_v46 = vpop.permute.xlu1 %5800  ;;  %v680_v48 = vmul.f32 %v5908_v44, %v5902_v27  ;;  %v5910_v59 = vpop.eup %5909 }
 0x704   :  { %v5803_v49 = vunpack.i.h.bf16 %v5801_v46  ;;  %v5802_v51 = vunpack.i.l.bf16 %v5801_v46  ;;  %5605 = vmatprep.subr.bf16.mxu1 %v5604_v45  ;;  %v681_v61 = vmul.f32 %v5910_v59, %v5900_v34  ;;  %v1067_v46 = vld [vmem:[%s7844_s8] sm:$0xff] }
 0x705   :  { %5607 = vmatpush3.bf16.msra.mxu1 %v5604_v45  ;;  %5362 = vmatprep.mubr.msk.f32.mxu1 %vm53_vm0, %v680_v48  ;;  %v1068_v48 = vld [vmem:[%s7844_s8 + $0x8] sm:$0xff] }
 0x706   :  { %v5608_v56 = vpack.c.bf16 %v5803_v49, %v5802_v51  ;;  %v5912_v60 = vpop.eup %5911  ;;  %v5620_v15 = vpack.c.bf16 %v1068_v48, %v1067_v46  ;;  %v1070_v49 = vld [vmem:[%s7844_s8 + $0x18] sm:$0xff] }
 0x707   :  { %v682_v63 = vmul.f32 %v5912_v60, %v5904_v28  ;;  %v5624_v51 = vpack.c.bf16 %v1070_v49, %v1069_v11 }
 0x708   :  { %5609 = vmatprep.subr.bf16.mxu1 %v5608_v56  ;;  %5621 = vmatprep.subr.bf16.mxu0 %v5620_v15 }
 0x709   :  { %5611 = vmatpush3.bf16.msra.mxu1 %v5608_v56  ;;  %5623 = vmatpush3.bf16.msra.mxu0 %v5620_v15 }
 0x70a   :  { %5613 = vmatprep.subr.bf16.mxu1 %v5612_v57  ;;  %v5914_v62 = vpop.eup %5913  ;;  %5625 = vmatprep.subr.bf16.mxu0 %v5624_v51 }
 0x70b   :  { %v683_v1 = vmul.f32 %v5914_v62, %v5906_v31 }
 0x70c   :  { %5363 = vmatmul.mubr.msk.f32.vlgmr.msra.gmra.mrb[4].mxu1 %vm53_vm0, %v681_v61 }
 0x70d   :  { %5365 = vmatprep.mubr.msk.f32.mxu1 %vm53_vm0, %v682_v63  ;;  %5615 = vmatpush3.bf16.msra.mxu1 %v5612_v57 }
 0x70e   :  { %5617 = vmatprep.subr.bf16.mxu1 %v5616_v6  ;;  %5627 = vmatpush3.bf16.msra.mxu0 %v5624_v51 }
 0x710   :  { %5366 = vmatmul.mubr.msk.f32.gmra.mrb[6].mxu1 %vm53_vm0, %v683_v1 }
 0x7df   :  { %v5364_v8 = vpop.f32.mrb[4].mxu1 }
 0x7e0   :  { %v774_v10 = vpop.f32.mrb[5].mxu1 }
 0x7e1   :  { %5372 = vmatprep.mubr.msk.f32.mxu1 %vm252_vm1, %v774_v10  ;;  %v6382_v10 = vsub.s32 2, %v6160_v42 }
 0x7e2   :  { %5373 = vmatmul.mubr.msk.f32.vlgmr.msra.gmra.mrb[8].mxu1 %vm252_vm1, %v5364_v8 }
 0x7e3   :  { %v5367_v13 = vpop.f32.mrb[6].mxu1  ;;  %5619 = vmatpush3.bf16.msra.mxu1 %v5616_v6 }
 0x7e4   :  { %v784_v16 = vpop.f32.mrb[7].mxu1 }
 0x7e5   :  { %5375 = vmatprep.mubr.msk.f32.mxu1 %vm252_vm1, %v784_v16 }
 0x7e6   :  { %5376 = vmatmul.mubr.msk.f32.gmra.mrb[10].mxu1 %vm252_vm1, %v5367_v13  ;;  %v1054_v13 = vrot.slane %v6353_v26, %v6169_v50 }
 0x7e7   :  { %5382 = vmatprep.mubr.msk.f32.mxu1 %vm252_vm1, %v6300_v53 }
 0x7ea   :  { %5383 = vmatmul.mubr.msk.f32.vlgmr.msra.gmra.mrb[8].mxu1 %vm252_vm1, %v6298_v52 }
 0x7eb   :  { %5385 = vmatprep.mubr.msk.f32.mxu1 %vm252_vm1, %v6304_v55 }
 0x7ee   :  { %5386 = vmatmul.mubr.msk.f32.gmra.mrb[10].mxu1 %vm252_vm1, %v6302_v54 }
 0x8bd   :  { %v5384_v17 = vpop.f32.mrb[8].mxu1 }
 0x8be   :  { %v992_v18 = vadd.f32 %v5384_v17, %v990_v29  ;;  %v968_v53 = vpop.f32.mrb[9].mxu1 }
 0x8bf   :  { %v991_v20 = vadd.f32 %v990_v29, %v968_v53  ;;  %v1062_v53 = vrot.slane %v6353_v26, %v6382_v10 }
 0x8c0   :  { %v996_v52 = vadd.f32 %v992_v18, %v6177_v0 }
 0x8c1   :  { %v5387_v21 = vpop.f32.mrb[10].mxu1  ;;  %v995_v55 = vadd.f32 %v991_v20, %v6173_v58 }
 0x8c2   :  { %v994_v22 = vadd.f32 %v5387_v21, %v990_v29  ;;  %v978_v23 = vpop.f32.mrb[11].mxu1  ;;  %v1002_v54 = vsel %vm53_vm0, %v996_v52, 0.0 }
 0x8c3   :  { %v993_v9 = vadd.f32 %v990_v29, %v978_v23  ;;  %1003 = vadd.xlane.f32.xlu0 %v1002_v54  ;;  %v999_v24 = vsel %vm53_vm0, %v995_v55, 0.0 }
 0x8c4   :  { %1000 = vadd.xlane.f32.xlu1 %v999_v24  ;;  %v998_v39 = vadd.f32 %v994_v22, %v6185_v4 }
 0x8c5   :  { %v997_v25 = vadd.f32 %v993_v9, %v6179_v2 }
 0x8c6   :  { %v1008_v7 = vsel %vm53_vm0, %v998_v39, 0.0 }
 0x8c7   :  { %v1005_v0 = vsel %vm53_vm0, %v997_v25, 0.0 }
 0x8c8   :  { %1009 = vadd.xlane.f32.xlu1 %v1008_v7  ;;  %1006 = vadd.xlane.f32.xlu0 %v1005_v0  ;;  %v1211_v0 = vld [vmem:[%s7846_s10] sm:$0xff] }
 0x950   :  { %v1004_v58 = vpop.xlane.xlu0 %1003 }
 0x951   :  { %v1012_v34 = vmul.f32 0.03125, %v1004_v58  ;;  %v1001_v27 = vpop.xlane.xlu1 %1000  ;;  %v1212_v58 = vld [vmem:[%s7846_s10 + $0x8] sm:$0xff] }
 0x952   :  { %v1011_v14 = vmul.f32 0.03125, %v1001_v27  ;;  %v1213_v27 = vld [vmem:[%s7846_s10 + $0x10] sm:$0xff] }
 0x953   :  { %v1016_v12 = vsub.f32 %v996_v52, %v1012_v34  ;;  %v5628_v34 = vpack.c.bf16 %v1212_v58, %v1211_v0 }
 0x954   :  { %v1015_v28 = vsub.f32 %v995_v55, %v1011_v14  ;;  %v1214_v14 = vld [vmem:[%s7846_s10 + $0x18] sm:$0xff] }
 0x955   :  { %v1010_v30 = vpop.xlane.xlu1 %1009  ;;  %v1007_v31 = vpop.xlane.xlu0 %1006  ;;  %v1020_v32 = vmul.f32 %v1016_v12, %v1016_v12  ;;  %5629 = vmatprep.subr.bf16.mxu0 %v5628_v34 }
 0x956   :  { %v1014_v33 = vmul.f32 0.03125, %v1010_v30  ;;  %v1013_v35 = vmul.f32 0.03125, %v1007_v31  ;;  %v1019_v4 = vmul.f32 %v1015_v28, %v1015_v28  ;;  %v1216_v30 = vld [vmem:[%s7846_s10 + $0x28] sm:$0xff] }
 0x957   :  { %v1026_v2 = vsel %vm53_vm0, %v1020_v32, 0.0  ;;  %v1217_v32 = vld [vmem:[%s7846_s10 + $0x30] sm:$0xff] }
 0x958   :  { %v1018_v37 = vsub.f32 %v998_v39, %v1014_v33  ;;  %v1017_v38 = vsub.f32 %v997_v25, %v1013_v35  ;;  %1027 = vadd.xlane.f32.xlu1 %v1026_v2  ;;  %v1023_v40 = vsel %vm53_vm0, %v1019_v4, 0.0  ;;  %v1218_v33 = vld [vmem:[%s7846_s10 + $0x38] sm:$0xff]  ;;  %v5064_v4 = vld [vmem:[%s7845_s9] ss:$0 sm:$0xff] }
 0x959   :  { %1024 = vadd.xlane.f32.xlu0 %v1023_v40  ;;  %v5640_v35 = vpack.c.bf16 %v1218_v33, %v1217_v32 }
 0x95a   :  { %v1022_v41 = vmul.f32 %v1018_v37, %v1018_v37  ;;  %v1021_v43 = vmul.f32 %v1017_v38, %v1017_v38 }
 0x95c   :  { %v1032_v44 = vsel %vm53_vm0, %v1022_v41, 0.0  ;;  %v1029_v45 = vsel %vm53_vm0, %v1021_v43, 0.0 }
 0x95d   :  { %1033 = vadd.xlane.f32.xlu1 %v1032_v44  ;;  %1030 = vadd.xlane.f32.xlu0 %v1029_v45 }
 0x9e5   :  { %v1028_v56 = vpop.xlane.xlu1 %1027 }
 0x9e6   :  { %v1036_v57 = vmul.f32 0.03125, %v1028_v56  ;;  %v1025_v59 = vpop.xlane.xlu0 %1024 }
 0x9e7   :  { %v1035_v60 = vmul.f32 0.03125, %v1025_v59 }
 0x9e8   :  { %v1040_v61 = vadd.f32 1e-12, %v1036_v57 }
 0x9e9   :  { %v1039_v62 = vadd.f32 1e-12, %v1035_v60 }
 0x9ea   :  { %5915 = vrsqrt.f32 %v1040_v61  ;;  %v1034_v63 = vpop.xlane.xlu1 %1033  ;;  %v1031_v1 = vpop.xlane.xlu0 %1030 }
 0x9eb   :  { %5917 = vrsqrt.f32 %v1039_v62  ;;  %v1038_v3 = vmul.f32 0.03125, %v1034_v63  ;;  %v1037_v5 = vmul.f32 0.03125, %v1031_v1 }
 0x9ed   :  { %v1042_v6 = vadd.f32 1e-12, %v1038_v3  ;;  %v1041_v8 = vadd.f32 1e-12, %v1037_v5 }
 0x9ef   :  { %5919 = vrsqrt.f32 %v1042_v6 }
 0x9f0   :  { %5921 = vrsqrt.f32 %v1041_v8 }
 0x9f4   :  { %v5916_v16 = vpop.eup %5915 }
 0x9f5   :  { %v5918_v29 = vpop.eup %5917  ;;  %v1048_v17 = vmul.f32 %v5916_v16, %v1016_v12  ;;  %v5632_v12 = vpack.c.bf16 %v1214_v14, %v1213_v27  ;;  %v1221_v14 = vsub.s32 3, %v6160_v42 }
 0x9f6   :  { %v1047_v18 = vmul.f32 %v5918_v29, %v1015_v28  ;;  %v1215_v28 = vld [vmem:[%s7846_s10 + $0x20] sm:$0xff] }
 0x9f7   :  { %v1056_v20 = vmul.f32 %v1054_v13, %v1048_v17  ;;  %v5636_v31 = vpack.c.bf16 %v1216_v30, %v1215_v28 }
 0x9f8   :  { %v1055_v52 = vmul.f32 %v1054_v13, %v1047_v18 }
 0x9f9   :  { %v5920_v21 = vpop.eup %5919  ;;  %v6390_v54 = vadd.f32 %v1062_v53, %v1056_v20 }
 0x9fa   :  { %v5922_v55 = vpop.eup %5921  ;;  %v6388_v22 = vadd.f32 %v1062_v53, %v1055_v52  ;;  %v1050_v23 = vmul.f32 %v5920_v21, %v1018_v37 }
 0x9fb   :  { %v1049_v9 = vmul.f32 %v5922_v55, %v1017_v38 }
 0x9fc   :  { %5396 = vmatprep.mubr.msk.f32.mxu0 %vm53_vm0, %v6388_v22  ;;  %v1058_v24 = vmul.f32 %v1054_v13, %v1050_v23 }
 0x9fd   :  { %5397 = vmatmul.mubr.msk.f32.vlgmr.msra.gmra.mrb[12].mxu0 %vm53_vm0, %v6390_v54  ;;  %v1057_v39 = vmul.f32 %v1054_v13, %v1049_v9 }
 0x9fe   :  { %v6396_v25 = vadd.f32 %v1062_v53, %v1058_v24  ;;  %5631 = vmatpush3.bf16.msra.mxu0 %v5628_v34 }
 0x9ff   :  { %v6398_v7 = vadd.f32 %v1062_v53, %v1057_v39  ;;  %5633 = vmatprep.subr.bf16.mxu0 %v5632_v12 }
 0xa01   :  { %5399 = vmatprep.mubr.msk.f32.mxu0 %vm53_vm0, %v6398_v7 }
 0xa02   :  { %5400 = vmatmul.mubr.msk.f32.gmra.mrb[14].mxu0 %vm53_vm0, %v6396_v25 }
 0xa03   :  { %5635 = vmatpush3.bf16.msra.mxu0 %v5632_v12  ;;  %v1222_v12 = vrot.slane %v6353_v26, %v1221_v14 }
 0xa04   :  { %5637 = vmatprep.subr.bf16.mxu0 %v5636_v31 }
 0xa07   :  { %5639 = vmatpush3.bf16.msra.mxu0 %v5636_v31 }
 0xa08   :  { %5641 = vmatprep.subr.bf16.mxu0 %v5640_v35 }
 0xa0b   :  { %5643 = vmatpush3.bf16.msra.mxu0 %v5640_v35 }
 0xad0   :  { %v5398_v2 = vpop.f32.mrb[12].mxu0 }
 0xad1   :  { %v1162_v37 = vadd.f32 %v5398_v2, %v5064_v4  ;;  %v1156_v38 = vpop.f32.mrb[13].mxu0 }
 0xad2   :  { %v1157_v40 = vadd.f32 %v5064_v4, %v1156_v38 }
 0xad3   :  { %v1176_v41 = vmul.f32 %v1162_v37, %v1162_v37 }
 0xad4   :  { %v1175_v43 = vmul.f32 %v1157_v40, %v1157_v40 }
 0xad5   :  { %v1180_v44 = vmul.f32 %v1176_v41, %v1162_v37  ;;  %v5401_v45 = vpop.f32.mrb[14].mxu0 }
 0xad6   :  { %v1179_v46 = vmul.f32 %v1175_v43, %v1157_v40  ;;  %v1172_v48 = vadd.f32 %v5401_v45, %v5064_v4  ;;  %v1166_v15 = vpop.f32.mrb[15].mxu0 }
 0xad7   :  { %v1184_v11 = vmul.f32 0.044715, %v1180_v44  ;;  %v1167_v49 = vadd.f32 %v5064_v4, %v1166_v15 }
 0xad8   :  { %v1183_v51 = vmul.f32 0.044715, %v1179_v46  ;;  %v1178_v56 = vmul.f32 %v1172_v48, %v1172_v48 }
 0xad9   :  { %v1188_v57 = vadd.f32 %v1184_v11, %v1162_v37  ;;  %v1177_v59 = vmul.f32 %v1167_v49, %v1167_v49 }
 0xada   :  { %v1187_v60 = vadd.f32 %v1183_v51, %v1157_v40  ;;  %v1182_v61 = vmul.f32 %v1178_v56, %v1172_v48 }
 0xadb   :  { %v1192_v62 = vmul.f32 0.7978846, %v1188_v57  ;;  %v1181_v63 = vmul.f32 %v1177_v59, %v1167_v49 }
 0xadc   :  { %v1191_v1 = vmul.f32 0.7978846, %v1187_v60  ;;  %v1186_v3 = vmul.f32 0.044715, %v1182_v61 }
 0xadd   :  { %5923 = vtanh.f32 %v1192_v62  ;;  %v1185_v5 = vmul.f32 0.044715, %v1181_v63 }
 0xade   :  { %5925 = vtanh.f32 %v1191_v1  ;;  %v1190_v6 = vadd.f32 %v1186_v3, %v1172_v48 }
 0xadf   :  { %v1189_v8 = vadd.f32 %v1185_v5, %v1167_v49 }
 0xae0   :  { %v1194_v13 = vmul.f32 0.7978846, %v1190_v6 }
 0xae1   :  { %v1193_v16 = vmul.f32 0.7978846, %v1189_v8  ;;  %v5074_v8 = vld [vmem:[%s7840_s4 + $0x20] sm:$0xff] }
 0xae2   :  { %5927 = vtanh.f32 %v1194_v13  ;;  %v5075_v13 = vld [vmem:[%s7840_s4 + $0x28] sm:$0xff] }
 0xae3   :  { %5929 = vtanh.f32 %v1193_v16  ;;  %v5644_v16 = vpack.c.bf16 %v5075_v13, %v5074_v8 }
 0xae5   :  { %5645 = vmatprep.subr.bf16.mxu1 %v5644_v16 }
 0xae6   :  { %5647 = vmatpush3.bf16.msra.mxu1 %v5644_v16 }
 0xae7   :  { %v5924_v29 = vpop.eup %5923 }
 0xae8   :  { %v5926_v17 = vpop.eup %5925  ;;  %v1200_v18 = vadd.f32 1.0, %v5924_v29  ;;  %v5076_v29 = vld [vmem:[%s7840_s4 + $0x30] sm:$0xff] }
 0xae9   :  { %v1199_v53 = vadd.f32 1.0, %v5926_v17  ;;  %v5077_v17 = vld [vmem:[%s7840_s4 + $0x38] sm:$0xff] }
 0xaea   :  { %v1204_v20 = vmul.f32 0.5, %v1200_v18  ;;  %v5648_v18 = vpack.c.bf16 %v5077_v17, %v5076_v29  ;;  %v6529_v17 = vld [vmem:[%s7837_s1 + $0x8] sm:$0xff] }
 0xaeb   :  { %v1203_v52 = vmul.f32 0.5, %v1199_v53 }
 0xaec   :  { %v5928_v21 = vpop.eup %5927  ;;  %v1208_v24 = vmul.f32 %v1204_v20, %v1162_v37  ;;  %5649 = vmatprep.subr.bf16.mxu1 %v5648_v18 }
 0xaed   :  { %v5930_v55 = vpop.eup %5929  ;;  %v1207_v23 = vmul.f32 %v1203_v52, %v1157_v40  ;;  %v1202_v9 = vadd.f32 1.0, %v5928_v21  ;;  %5651 = vmatpush3.bf16.msra.mxu1 %v5648_v18 }
 0xaee   :  { %v1201_v39 = vadd.f32 1.0, %v5930_v55 }
 0xaef   :  { %5418 = vmatprep.mubr.msk.f32.mxu0 %vm1223_vm3, %v1207_v23  ;;  %v1206_v0 = vmul.f32 0.5, %v1202_v9 }
 0xaf0   :  { %5419 = vmatmul.mubr.msk.f32.vlgmr.msra.gmra.mrb[16].mxu0 %vm1223_vm3, %v1208_v24  ;;  %v1205_v58 = vmul.f32 0.5, %v1201_v39 }
 0xaf1   :  { %v1210_v27 = vmul.f32 %v1206_v0, %v1172_v48 }
 0xaf2   :  { %v1209_v34 = vmul.f32 %v1205_v58, %v1167_v49 }
 0xaf4   :  { %5421 = vmatprep.mubr.msk.f32.mxu0 %vm1223_vm3, %v1209_v34 }
 0xaf5   :  { %5422 = vmatmul.mubr.msk.f32.gmra.mrb[18].mxu0 %vm1223_vm3, %v1210_v27  ;;  %v1379_v27 = vsub.s32 4, %v6160_v42 }
 0xbc3   :  { %v5420_v28 = vpop.f32.mrb[16].mxu0 }
 0xbc4   :  { %v1308_v30 = vadd.f32 %v5420_v28, %v1222_v12  ;;  %v1302_v31 = vpop.f32.mrb[17].mxu0  ;;  %v1380_v28 = vrot.slane %v6353_v26, %v1379_v27 }
 0xbc5   :  { %v1303_v32 = vadd.f32 %v1302_v31, %v1222_v12 }
 0xbc6   :  { %v1322_v33 = vadd.f32 %v1308_v30, %v6390_v54 }
 0xbc7   :  { %v1321_v35 = vadd.f32 %v1303_v32, %v6388_v22 }
 0xbc8   :  { %v5423_v4 = vpop.f32.mrb[18].mxu0  ;;  %v1328_v2 = vsel %vm53_vm0, %v1322_v33, 0.0 }
 0xbc9   :  { %v1318_v37 = vadd.f32 %v5423_v4, %v1222_v12  ;;  %v1312_v38 = vpop.f32.mrb[19].mxu0  ;;  %1329 = vadd.xlane.f32.xlu1 %v1328_v2  ;;  %v1325_v40 = vsel %vm53_vm0, %v1321_v35, 0.0 }
 0xbca   :  { %v1313_v41 = vadd.f32 %v1312_v38, %v1222_v12  ;;  %1326 = vadd.xlane.f32.xlu0 %v1325_v40  ;;  %v1387_v12 = vsub.s32 5, %v6160_v42 }
 0xbcb   :  { %v1324_v43 = vadd.f32 %v1318_v37, %v6396_v25 }
 0xbcc   :  { %v1323_v44 = vadd.f32 %v1313_v41, %v6398_v7 }
 0xbcd   :  { %v1334_v45 = vsel %vm53_vm0, %v1324_v43, 0.0 }
 0xbce   :  { %1335 = vadd.xlane.f32.xlu1 %v1334_v45  ;;  %v1331_v54 = vsel %vm53_vm0, %v1323_v44, 0.0 }
 0xbcf   :  { %1332 = vadd.xlane.f32.xlu0 %v1331_v54 }
 0xc56   :  { %v1330_v22 = vpop.xlane.xlu1 %1329 }
 0xc57   :  { %v1338_v46 = vmul.f32 0.03125, %v1330_v22  ;;  %v1327_v48 = vpop.xlane.xlu0 %1326 }
 0xc58   :  { %v1337_v15 = vmul.f32 0.03125, %v1327_v48 }
 0xc59   :  { %v1342_v11 = vsub.f32 %v1322_v33, %v1338_v46  ;;  %v5079_v46 = vld [vmem:[%s7841_s5 + $0x1] ss:$0 sm:$0xff] }
 0xc5a   :  { %v1341_v49 = vsub.f32 %v1321_v35, %v1337_v15  ;;  %v1388_v35 = vrot.slane %v6353_v26, %v1387_v12 }
 0xc5b   :  { %v1336_v51 = vpop.xlane.xlu1 %1335  ;;  %v1346_v56 = vmul.f32 %v1342_v11, %v1342_v11 }
 0xc5c   :  { %v1340_v57 = vmul.f32 0.03125, %v1336_v51  ;;  %v1333_v59 = vpop.xlane.xlu0 %1332  ;;  %v1345_v60 = vmul.f32 %v1341_v49, %v1341_v49 }
 0xc5d   :  { %v1339_v25 = vmul.f32 0.03125, %v1333_v59  ;;  %v1352_v7 = vsel %vm53_vm0, %v1346_v56, 0.0 }
 0xc5e   :  { %v1344_v61 = vsub.f32 %v1324_v43, %v1340_v57  ;;  %1353 = vadd.xlane.f32.xlu1 %v1352_v7  ;;  %v1349_v62 = vsel %vm53_vm0, %v1345_v60, 0.0 }
 0xc5f   :  { %v1343_v63 = vsub.f32 %v1323_v44, %v1339_v25  ;;  %1350 = vadd.xlane.f32.xlu0 %v1349_v62 }
 0xc60   :  { %v1348_v1 = vmul.f32 %v1344_v61, %v1344_v61 }
 0xc61   :  { %v1347_v3 = vmul.f32 %v1343_v63, %v1343_v63 }
 0xc62   :  { %v1358_v5 = vsel %vm53_vm0, %v1348_v1, 0.0 }
 0xc63   :  { %1359 = vadd.xlane.f32.xlu1 %v1358_v5  ;;  %v1355_v6 = vsel %vm53_vm0, %v1347_v3, 0.0 }
 0xc64   :  { %1356 = vadd.xlane.f32.xlu0 %v1355_v6 }
 0xceb   :  { %v1354_v53 = vpop.xlane.xlu1 %1353 }
 0xcec   :  { %v1362_v20 = vmul.f32 0.03125, %v1354_v53  ;;  %v1351_v52 = vpop.xlane.xlu0 %1350 }
 0xced   :  { %v1361_v21 = vmul.f32 0.03125, %v1351_v52 }
 0xcee   :  { %v1366_v55 = vadd.f32 1e-12, %v1362_v20  ;;  %v6535_v20 = vld [vmem:[%s7837_s1] sm:$0xff] }
 0xcef   :  { %v1365_v23 = vadd.f32 1e-12, %v1361_v21 }
 0xcf0   :  { %5931 = vrsqrt.f32 %v1366_v55  ;;  %v1360_v9 = vpop.xlane.xlu1 %1359 }
 0xcf1   :  { %5933 = vrsqrt.f32 %v1365_v23  ;;  %v1364_v24 = vmul.f32 0.03125, %v1360_v9  ;;  %v1357_v39 = vpop.xlane.xlu0 %1356 }
 0xcf2   :  { %v1363_v0 = vmul.f32 0.03125, %v1357_v39  ;;  %v6543_v39 = vld [vmem:[%s7837_s1 + $0x18] sm:$0xff] }
 0xcf3   :  { %v1368_v58 = vadd.f32 1e-12, %v1364_v24 }
 0xcf4   :  { %v1367_v34 = vadd.f32 1e-12, %v1363_v0 }
 0xcf5   :  { %5935 = vrsqrt.f32 %v1368_v58  ;;  %v6549_v58 = vld [vmem:[%s7837_s1 + $0x10] sm:$0xff] }
 0xcf6   :  { %5937 = vrsqrt.f32 %v1367_v34 }
 0xcfa   :  { %v5932_v30 = vpop.eup %5931 }
 0xcfb   :  { %v5934_v31 = vpop.eup %5933  ;;  %v1374_v32 = vmul.f32 %v5932_v30, %v1342_v11 }
 0xcfc   :  { %v1373_v33 = vmul.f32 %v5934_v31, %v1341_v49 }
 0xcfd   :  { %v1382_v4 = vmul.f32 %v1380_v28, %v1374_v32 }
 0xcfe   :  { %v1381_v2 = vmul.f32 %v1380_v28, %v1373_v33 }
 0xcff   :  { %v5936_v37 = vpop.eup %5935  ;;  %v6473_v43 = vadd.f32 %v1388_v35, %v1382_v4 }
 0xd00   :  { %v5938_v38 = vpop.eup %5937  ;;  %v6471_v40 = vadd.f32 %v1388_v35, %v1381_v2  ;;  %v1376_v41 = vmul.f32 %v5936_v37, %v1344_v61 }
 0xd01   :  { %v1375_v44 = vmul.f32 %v5938_v38, %v1343_v63 }
 0xd02   :  { %5432 = vmatprep.mubr.msk.f32.mxu1 %vm53_vm0, %v6471_v40  ;;  %v1384_v45 = vmul.f32 %v1380_v28, %v1376_v41 }
 0xd03   :  { %5433 = vmatmul.mubr.msk.f32.vlgmr.msra.gmra.mrb[12].mxu1 %vm53_vm0, %v6473_v43  ;;  %v1383_v54 = vmul.f32 %v1380_v28, %v1375_v44 }
 0xd04   :  { %v6481_v26 = vadd.f32 %v1388_v35, %v1384_v45 }
 0xd05   :  { %v6479_v22 = vadd.f32 %v1388_v35, %v1383_v54 }
 0xd07   :  { %5435 = vmatprep.mubr.msk.f32.mxu1 %vm53_vm0, %v6479_v22 }
 0xd08   :  { %5436 = vmatmul.mubr.msk.f32.gmra.mrb[14].mxu1 %vm53_vm0, %v6481_v26 }
 0xdd6   :  { %v5434_v48 = vpop.f32.mrb[12].mxu1 }
 0xdd7   :  { %v6490_v15 = vadd.f32 %v5434_v48, %v5079_v46  ;;  %v1486_v11 = vpop.f32.mrb[13].mxu1 }
 0xdd8   :  { %v6492_v49 = vadd.f32 %v5079_v46, %v1486_v11 }
 0xdda   :  { %5446 = vmatprep.mubr.msk.f32.mxu1 %vm252_vm1, %v6492_v49  ;;  %v6498_v51 = vpack.i.bf16 %v6490_v15, %v6492_v49 }
 0xddb   :  { %v5437_v56 = vpop.f32.mrb[14].mxu1 }
 0xddc   :  { %v6500_v57 = vadd.f32 %v5437_v56, %v5079_v46  ;;  %v1496_v59 = vpop.f32.mrb[15].mxu1  ;;  %5805 = vrot.lane.b32.xlu0 %v6498_v51, %s6028_s15 }
 0xddd   :  { %v6504_v60 = vadd.f32 %v5079_v46, %v1496_v59 }
 0xddf   :  { %v6508_v25 = vpack.i.bf16 %v6500_v57, %v6504_v60 }
 0xde1   :  { %5810 = vrot.lane.b32.xlu1 %v6508_v25, %s6028_s15 }
 0xe4e   :  { %v5806_v7 = vpop.permute.xlu0 %5805 }
 0xe4f   :  { %v5808_v61 = vunpack.i.h.bf16 %v5806_v7  ;;  %v5807_v62 = vunpack.i.l.bf16 %v5806_v7 }
 0xe51   :  { %v5652_v63 = vpack.c.bf16 %v5808_v61, %v5807_v62 }
 0xe53   :  { %v5811_v1 = vpop.permute.xlu1 %5810  ;;  %5654 = vmatprep.subr.msk.bf16.mxu1 %vm6216_vm2, %v5652_v63 }
 0xe54   :  { %v5813_v3 = vunpack.i.h.bf16 %v5811_v1  ;;  %v5812_v5 = vunpack.i.l.bf16 %v5811_v1  ;;  %5657 = vmatpush3.bf16.xpose.msk.msra.mxu1 %vm6216_vm2, %v5652_v63 }
 0xe56   :  { %v5658_v6 = vpack.c.bf16 %v5813_v3, %v5812_v5 }
 0xe58   :  { %5660 = vmatprep.subr.msk.bf16.mxu1 %vm6216_vm2, %v5658_v6 }
 0xe5c   :  { %5663 = vmatpush3.bf16.xpose.msk.msra.mxu1 %vm6216_vm2, %v5658_v6 }
 0xe63   :  { %5447 = vmatmul.mubr.msk.f32.vlgmr.msra.gmra.mrb[16].mxu1 %vm252_vm1, %v6490_v15 }
 0xe64   :  { %5449 = vmatprep.mubr.msk.f32.mxu1 %vm252_vm1, %v6504_v60 }
 0xe67   :  { %5450 = vmatmul.mubr.msk.f32.gmra.mrb[18].mxu1 %vm252_vm1, %v6500_v57 }
 0xf36   :  { %v5448_v8 = vpop.f32.mrb[16].mxu1 }
 0xf37   :  { %v1624_v13 = vmul.f32 0.25, %v5448_v8  ;;  %v1604_v16 = vpop.f32.mrb[17].mxu1 }
 0xf38   :  { %v1623_v29 = vmul.f32 0.25, %v1604_v16 }
 0xf39   :  { %v1628_v18 = vadd.f32 %v6529_v17, %v1624_v13 }
 0xf3a   :  { %v5451_v53 = vpop.f32.mrb[18].mxu1  ;;  %v1627_v52 = vadd.f32 %v6535_v20, %v1623_v29 }
 0xf3b   :  { %v1626_v21 = vmul.f32 0.25, %v5451_v53  ;;  %v1614_v55 = vpop.f32.mrb[19].mxu1  ;;  %v1634_v23 = vsel %vm53_vm0, %v1628_v18, -inf }
 0xf3c   :  { %v1625_v9 = vmul.f32 0.25, %v1614_v55  ;;  %1635 = vmax.xlane.f32.xlu0 %v1634_v23  ;;  %v1631_v24 = vsel %vm53_vm0, %v1627_v52, -inf }
 0xf3d   :  { %1632 = vmax.xlane.f32.xlu1 %v1631_v24  ;;  %v1630_v0 = vadd.f32 %v6543_v39, %v1626_v21 }
 0xf3e   :  { %v1629_v34 = vadd.f32 %v6549_v58, %v1625_v9 }
 0xf3f   :  { %v1640_v28 = vsel %vm53_vm0, %v1630_v0, -inf }
 0xf40   :  { %v1637_v30 = vsel %vm53_vm0, %v1629_v34, -inf }
 0xf41   :  { %1641 = vmax.xlane.f32.xlu1 %v1640_v28  ;;  %1638 = vmax.xlane.f32.xlu0 %v1637_v30 }
 0xfc9   :  { %v1636_v31 = vpop.xlane.xlu0 %1635 }
 0xfca   :  { %v1644_v32 = vsub.f32 %v1628_v18, %v1636_v31  ;;  %v1633_v33 = vpop.xlane.xlu1 %1632 }
 0xfcb   :  { %v1643_v35 = vsub.f32 %v1627_v52, %v1633_v33 }
 0xfcc   :  { %v1649_v4 = vmul.f32 1.442695, %v1644_v32 }
 0xfcd   :  { %v1647_v2 = vmul.f32 1.442695, %v1643_v35 }
 0xfce   :  { %5939 = vpow2.f32 %v1649_v4  ;;  %v1639_v45 = vpop.xlane.xlu0 %1638  ;;  %v1642_v46 = vpop.xlane.xlu1 %1641 }
 0xfcf   :  { %5941 = vpow2.f32 %v1647_v2  ;;  %v1645_v54 = vsub.f32 %v1629_v34, %v1639_v45  ;;  %v1646_v11 = vsub.f32 %v1630_v0, %v1642_v46 }
 0xfd1   :  { %v1651_v48 = vmul.f32 1.442695, %v1645_v54  ;;  %v1653_v56 = vmul.f32 1.442695, %v1646_v11 }
 0xfd3   :  { %5943 = vpow2.f32 %v1651_v48 }
 0xfd4   :  { %5945 = vpow2.f32 %v1653_v56 }
 0xfd8   :  { %v5940_v37 = vpop.eup %5939 }
 0xfd9   :  { %v5942_v38 = vpop.eup %5941  ;;  %v1658_v41 = vsel %vm53_vm0, %v5940_v37, 0.0 }
 0xfda   :  { %1659 = vadd.xlane.f32.xlu1 %v1658_v41  ;;  %v1655_v44 = vsel %vm53_vm0, %v5942_v38, 0.0 }
 0xfdb   :  { %1656 = vadd.xlane.f32.xlu0 %v1655_v44 }
 0xfdd   :  { %v5944_v59 = vpop.eup %5943 }
 0xfde   :  { %v1661_v7 = vsel %vm53_vm0, %v5944_v59, 0.0  ;;  %v5946_v61 = vpop.eup %5945 }
 0xfdf   :  { %v1664_v62 = vsel %vm53_vm0, %v5946_v61, 0.0 }
 0xfeb   :  { %5820 = vrot.lane.b32.xlu1 %v6508_v25, %s6029_s23 }
 0xfef   :  { %5825 = vrot.lane.b32.xlu1 %v6498_v51, %s6030_s24 }
 0xff1   :  { %5815 = vrot.lane.b32.xlu0 %v6498_v51, %s6029_s23 }
 0xff3   :  { %5830 = vrot.lane.b32.xlu1 %v6508_v25, %s6030_s24 }
0x1010   :  { %1662 = vadd.xlane.f32.xlu0 %v1661_v7 }
0x1017   :  { %1665 = vadd.xlane.f32.xlu1 %v1664_v62 }
0x1026   :  { %1784 = vrot.lane.b32.xlu0 %v6492_v49, %s6031_s25 }
0x1028   :  { %1786 = vrot.lane.b32.xlu1 %v6490_v15, %s6031_s25 }
0x102a   :  { %1788 = vrot.lane.b32.xlu0 %v6504_v60, %s6031_s25 }
0x102c   :  { %1790 = vrot.lane.b32.xlu1 %v6500_v57, %s6031_s25 }
0x1067   :  { %v1660_v63 = vpop.xlane.xlu1 %1659 }
0x1068   :  { %v1657_v1 = vpop.xlane.xlu0 %1656 }
0x1069   :  { %5947 = vrcp.f32 %v1657_v1 }
0x106a   :  { %5949 = vrcp.f32 %v1660_v63 }
0x106b   :  { %v5821_v3 = vpop.permute.xlu1 %5820 }
0x106c   :  { %v5816_v5 = vpop.permute.xlu0 %5815  ;;  %v5823_v6 = vunpack.i.h.bf16 %v5821_v3  ;;  %v5822_v8 = vunpack.i.l.bf16 %v5821_v3 }
0x106d   :  { %v5818_v13 = vunpack.i.h.bf16 %v5816_v5  ;;  %v5817_v16 = vunpack.i.l.bf16 %v5816_v5 }
0x106e   :  { %v5668_v53 = vpack.c.bf16 %v5823_v6, %v5822_v8 }
0x106f   :  { %v5826_v49 = vpop.permute.xlu1 %5825  ;;  %v5664_v29 = vpack.c.bf16 %v5818_v13, %v5817_v16 }
0x1070   :  { %v5828_v18 = vunpack.i.h.bf16 %v5826_v49  ;;  %v5827_v15 = vunpack.i.l.bf16 %v5826_v49 }
0x1071   :  { %5665 = vmatprep.subr.bf16.mxu0 %v5664_v29 }
0x1072   :  { %5667 = vmatpush3.bf16.msra.mxu0 %v5664_v29  ;;  %v5672_v21 = vpack.c.bf16 %v5828_v18, %v5827_v15 }
0x1073   :  { %v5948_v60 = vpop.eup %5947  ;;  %5669 = vmatprep.subr.bf16.mxu0 %v5668_v53  ;;  %v5831_v23 = vpop.permute.xlu1 %5830 }
0x1074   :  { %v5950_v57 = vpop.eup %5949  ;;  %v1671_v52 = vmul.f32 %v5948_v60, %v5942_v38  ;;  %v5833_v9 = vunpack.i.h.bf16 %v5831_v23  ;;  %v5832_v24 = vunpack.i.l.bf16 %v5831_v23 }
0x1075   :  { %v1672_v55 = vmul.f32 %v5950_v57, %v5940_v37 }
0x1076   :  { %5671 = vmatpush3.bf16.msra.mxu0 %v5668_v53  ;;  %5460 = vmatprep.mubr.msk.f32.mxu0 %vm53_vm0, %v1671_v52  ;;  %v5678_v0 = vpack.c.bf16 %v5833_v9, %v5832_v24 }
0x1077   :  { %5674 = vmatprep.subr.msk.bf16.mxu0 %vm6216_vm2, %v5672_v21 }
0x1079   :  { %5461 = vmatmul.mubr.msk.f32.vlgmr.msra.gmra.mrb[20].mxu0 %vm53_vm0, %v1672_v55 }
0x107f   :  { %5677 = vmatpush3.bf16.xpose.msk.msra.mxu0 %vm6216_vm2, %v5672_v21 }
0x1080   :  { %5680 = vmatprep.subr.msk.bf16.mxu0 %vm6216_vm2, %v5678_v0 }
0x1087   :  { %5683 = vmatpush3.bf16.xpose.msk.msra.mxu0 %vm6216_vm2, %v5678_v0 }
0x109d   :  { %v1663_v34 = vpop.xlane.xlu0 %1662 }
0x109e   :  { %5951 = vrcp.f32 %v1663_v34 }
0x10a1   :  { %v1785_v33 = vpop.permute.xlu0 %1784 }
0x10a4   :  { %v1666_v28 = vpop.xlane.xlu1 %1665 }
0x10a5   :  { %5953 = vrcp.f32 %v1666_v28  ;;  %v1789_v2 = vpop.permute.xlu0 %1788 }
0x10a8   :  { %v5952_v30 = vpop.eup %5951  ;;  %v1787_v4 = vpop.permute.xlu1 %1786 }
0x10a9   :  { %v1673_v31 = vmul.f32 %v5952_v30, %v5944_v59 }
0x10ab   :  { %5463 = vmatprep.mubr.msk.f32.mxu0 %vm53_vm0, %v1673_v31 }
0x10ac   :  { %v1791_v19 = vpop.permute.xlu1 %1790 }
0x10af   :  { %v5954_v32 = vpop.eup %5953 }
0x10b0   :  { %v1674_v35 = vmul.f32 %v5954_v32, %v5946_v61 }
0x10b2   :  { %5464 = vmatmul.mubr.msk.f32.gmra.mrb[22].mxu0 %vm53_vm0, %v1674_v35 }
0x10b3   :  { %5474 = vmatprep.mubr.msk.f32.mxu0 %vm252_vm1, %v1785_v33 }
0x10b6   :  { %5475 = vmatmul.mubr.msk.f32.vlgmr.msra.gmra.mrb[24].mxu0 %vm252_vm1, %v1787_v4 }
0x10b7   :  { %5477 = vmatprep.mubr.msk.f32.mxu0 %vm252_vm1, %v1789_v2 }
0x10ba   :  { %5478 = vmatmul.mubr.msk.f32.gmra.mrb[26].mxu0 %vm252_vm1, %v1791_v19 }
0x114c   :  { %v6590_v37 = vpop.f32.mrb[20].mxu0 }
0x114d   :  { %v6592_v38 = vpop.f32.mrb[21].mxu0 }
0x1185   :  { %v6594_v41 = vpop.f32.mrb[22].mxu0 }
0x1186   :  { %v6596_v44 = vpop.f32.mrb[23].mxu0 }
0x1189   :  { %v5476_v45 = vpop.f32.mrb[24].mxu0 }
0x118a   :  { %v1902_v54 = vmul.f32 0.25, %v5476_v45  ;;  %v1882_v46 = vpop.f32.mrb[25].mxu0 }
0x118b   :  { %v1901_v48 = vmul.f32 0.25, %v1882_v46 }
0x118c   :  { %v1906_v11 = vadd.f32 %v6529_v17, %v1902_v54 }
0x118d   :  { %v5479_v56 = vpop.f32.mrb[26].mxu0  ;;  %v1905_v59 = vadd.f32 %v6535_v20, %v1901_v48 }
0x118e   :  { %v1892_v7 = vpop.f32.mrb[27].mxu0  ;;  %v1912_v61 = vsel %vm53_vm0, %v1906_v11, -inf  ;;  %v1904_v62 = vmul.f32 0.25, %v5479_v56 }
0x118f   :  { %v1903_v63 = vmul.f32 0.25, %v1892_v7  ;;  %1913 = vmax.xlane.f32.xlu1 %v1912_v61  ;;  %v1909_v1 = vsel %vm53_vm0, %v1905_v59, -inf }
0x1190   :  { %1910 = vmax.xlane.f32.xlu0 %v1909_v1  ;;  %v1908_v6 = vadd.f32 %v6543_v39, %v1904_v62  ;;  %v5084_v1 = vld [vmem:[%s7842_s6 + $0x20] sm:$0xff] }
0x1191   :  { %v1907_v3 = vadd.f32 %v6549_v58, %v1903_v63 }
0x1192   :  { %v1918_v17 = vsel %vm53_vm0, %v1908_v6, -inf }
0x1193   :  { %v1915_v5 = vsel %vm53_vm0, %v1907_v3, -inf }
0x1194   :  { %1916 = vmax.xlane.f32.xlu0 %v1915_v5 }
0x1198   :  { %1919 = vmax.xlane.f32.xlu0 %v1918_v17 }
0x121c   :  { %v1914_v20 = vpop.xlane.xlu1 %1913 }
0x121d   :  { %v1922_v8 = vsub.f32 %v1906_v11, %v1914_v20  ;;  %v1911_v13 = vpop.xlane.xlu0 %1910 }
0x121e   :  { %v1921_v16 = vsub.f32 %v1905_v59, %v1911_v13  ;;  %v6645_v13 = vld [vmem:[%s7843_s7 + $0x8] sm:$0x3f] }
0x121f   :  { %v1927_v49 = vmul.f32 1.442695, %v1922_v8 }
0x1220   :  { %v1925_v29 = vmul.f32 1.442695, %v1921_v16  ;;  %v2259_v16 = vrot.slane %v6645_v13, %v6163_v47 }
0x1221   :  { %5955 = vpow2.f32 %v1927_v49  ;;  %v1917_v18 = vpop.xlane.xlu0 %1916 }
0x1222   :  { %5957 = vpow2.f32 %v1925_v29  ;;  %v1923_v15 = vsub.f32 %v1907_v3, %v1917_v18  ;;  %v5085_v3 = vld [vmem:[%s7842_s6 + $0x28] sm:$0xff] }
0x1223   :  { %v5696_v5 = vpack.c.bf16 %v5085_v3, %v5084_v1  ;;  %v2323_v3 = vrot.slane %v6645_v13, %v6169_v50 }
0x1224   :  { %v1929_v53 = vmul.f32 1.442695, %v1923_v15 }
0x1225   :  { %v1920_v58 = vpop.xlane.xlu0 %1919 }
0x1226   :  { %5959 = vpow2.f32 %v1929_v53  ;;  %v1924_v60 = vsub.f32 %v1908_v6, %v1920_v58 }
0x1228   :  { %v1931_v57 = vmul.f32 1.442695, %v1924_v60 }
0x122a   :  { %5961 = vpow2.f32 %v1931_v57 }
0x122b   :  { %v5956_v39 = vpop.eup %5955 }
0x122c   :  { %v5958_v52 = vpop.eup %5957  ;;  %v1936_v21 = vsel %vm53_vm0, %v5956_v39, 0.0 }
0x122d   :  { %1937 = vadd.xlane.f32.xlu1 %v1936_v21  ;;  %v1933_v55 = vsel %vm53_vm0, %v5958_v52, 0.0 }
0x122e   :  { %1934 = vadd.xlane.f32.xlu0 %v1933_v55 }
0x1230   :  { %v5960_v23 = vpop.eup %5959 }
0x1231   :  { %v1939_v9 = vsel %vm53_vm0, %v5960_v23, 0.0 }
0x1232   :  { %1940 = vadd.xlane.f32.xlu0 %v1939_v9 }
0x1234   :  { %v5962_v24 = vpop.eup %5961 }
0x1235   :  { %v1942_v0 = vsel %vm53_vm0, %v5962_v24, 0.0 }
0x1236   :  { %1943 = vadd.xlane.f32.xlu1 %v1942_v0 }
0x1247   :  { %5840 = vrot.lane.b32.xlu1 %v6508_v25, %s6032_s26  ;;  %v5086_v25 = vld [vmem:[%s7842_s6 + $0x30] sm:$0xff] }
0x1248   :  { %5835 = vrot.lane.b32.xlu0 %v6498_v51, %s6032_s26  ;;  %v5087_v51 = vld [vmem:[%s7842_s6 + $0x38] sm:$0xff] }
0x1249   :  { %v5692_v11 = vpack.c.bf16 %v5087_v51, %v5086_v25 }
0x12ba   :  { %v1938_v28 = vpop.xlane.xlu1 %1937 }
0x12bb   :  { %v1935_v34 = vpop.xlane.xlu0 %1934 }
0x12bc   :  { %5963 = vrcp.f32 %v1935_v34 }
0x12bd   :  { %5965 = vrcp.f32 %v1938_v28 }
0x12bf   :  { %v1941_v30 = vpop.xlane.xlu0 %1940 }
0x12c0   :  { %5967 = vrcp.f32 %v1941_v30 }
0x12c3   :  { %v1944_v31 = vpop.xlane.xlu1 %1943  ;;  %v5836_v32 = vpop.permute.xlu0 %5835 }
0x12c4   :  { %v5838_v33 = vunpack.i.h.bf16 %v5836_v32  ;;  %v5837_v35 = vunpack.i.l.bf16 %v5836_v32  ;;  %5969 = vrcp.f32 %v1944_v31  ;;  %v5120_v32 = vld [vmem:[%s7844_s8 + $0x20] sm:$0xff] }
0x12c6   :  { %v5964_v4 = vpop.eup %5963  ;;  %v5684_v2 = vpack.c.bf16 %v5838_v33, %v5837_v35  ;;  %v5123_v35 = vld [vmem:[%s7844_s8 + $0x38] sm:$0xff] }
0x12c7   :  { %v5841_v19 = vpop.permute.xlu1 %5840  ;;  %v1949_v45 = vmul.f32 %v5964_v4, %v5958_v52  ;;  %v5966_v56 = vpop.eup %5965 }
0x12c8   :  { %v5843_v54 = vunpack.i.h.bf16 %v5841_v19  ;;  %v5842_v46 = vunpack.i.l.bf16 %v5841_v19  ;;  %5685 = vmatprep.subr.bf16.mxu1 %v5684_v2  ;;  %v1950_v7 = vmul.f32 %v5966_v56, %v5956_v39 }
0x12c9   :  { %5687 = vmatpush3.bf16.msra.mxu1 %v5684_v2  ;;  %5488 = vmatprep.mubr.msk.f32.mxu1 %vm53_vm0, %v1949_v45 }
0x12ca   :  { %v5688_v48 = vpack.c.bf16 %v5843_v54, %v5842_v46  ;;  %v5968_v59 = vpop.eup %5967 }
0x12cb   :  { %v1951_v62 = vmul.f32 %v5968_v59, %v5960_v23 }
0x12cc   :  { %5689 = vmatprep.subr.bf16.mxu1 %v5688_v48 }
0x12cd   :  { %5691 = vmatpush3.bf16.msra.mxu1 %v5688_v48 }
0x12ce   :  { %5693 = vmatprep.subr.bf16.mxu1 %v5692_v11  ;;  %v5970_v61 = vpop.eup %5969 }
0x12cf   :  { %v1952_v63 = vmul.f32 %v5970_v61, %v5962_v24 }
0x12d0   :  { %5489 = vmatmul.mubr.msk.f32.vlgmr.msra.gmra.mrb[20].mxu1 %vm53_vm0, %v1950_v7 }
0x12d1   :  { %5491 = vmatprep.mubr.msk.f32.mxu1 %vm53_vm0, %v1951_v62  ;;  %5695 = vmatpush3.bf16.msra.mxu1 %v5692_v11 }
0x12d2   :  { %5697 = vmatprep.subr.bf16.mxu1 %v5696_v5 }
0x12d4   :  { %5492 = vmatmul.mubr.msk.f32.gmra.mrb[22].mxu1 %vm53_vm0, %v1952_v63 }
0x13a3   :  { %v5490_v6 = vpop.f32.mrb[20].mxu1 }
0x13a4   :  { %v2043_v17 = vpop.f32.mrb[21].mxu1 }
0x13a5   :  { %5498 = vmatprep.mubr.msk.f32.mxu1 %vm252_vm1, %v2043_v17 }
0x13a6   :  { %5499 = vmatmul.mubr.msk.f32.vlgmr.msra.gmra.mrb[24].mxu1 %vm252_vm1, %v5490_v6 }
0x13a7   :  { %v5493_v20 = vpop.f32.mrb[22].mxu1  ;;  %5699 = vmatpush3.bf16.msra.mxu1 %v5696_v5 }
0x13a8   :  { %v2053_v8 = vpop.f32.mrb[23].mxu1 }
0x13a9   :  { %5501 = vmatprep.mubr.msk.f32.mxu1 %vm252_vm1, %v2053_v8  ;;  %v2331_v8 = vrot.slane %v6645_v13, %v6382_v10 }
0x13aa   :  { %5502 = vmatmul.mubr.msk.f32.gmra.mrb[26].mxu1 %vm252_vm1, %v5493_v20 }
0x13ab   :  { %5508 = vmatprep.mubr.msk.f32.mxu1 %vm252_vm1, %v6592_v38 }
0x13ae   :  { %5509 = vmatmul.mubr.msk.f32.vlgmr.msra.gmra.mrb[24].mxu1 %vm252_vm1, %v6590_v37 }
0x13af   :  { %5511 = vmatprep.mubr.msk.f32.mxu1 %vm252_vm1, %v6596_v44 }
0x13b2   :  { %5512 = vmatmul.mubr.msk.f32.gmra.mrb[26].mxu1 %vm252_vm1, %v6594_v41 }
0x1481   :  { %v5510_v49 = vpop.f32.mrb[24].mxu1 }
0x1482   :  { %v2261_v29 = vadd.f32 %v5510_v49, %v2259_v16  ;;  %v2237_v38 = vpop.f32.mrb[25].mxu1 }
0x1483   :  { %v2260_v18 = vadd.f32 %v2259_v16, %v2237_v38 }
0x1484   :  { %v2265_v37 = vadd.f32 %v2261_v29, %v6473_v43 }
0x1485   :  { %v5513_v15 = vpop.f32.mrb[26].mxu1  ;;  %v2264_v44 = vadd.f32 %v2260_v18, %v6471_v40  ;;  %v5130_v18 = vld [vmem:[%s7846_s10 + $0x40] sm:$0xff] }
0x1486   :  { %v2263_v53 = vadd.f32 %v5513_v15, %v2259_v16  ;;  %v2247_v58 = vpop.f32.mrb[27].mxu1  ;;  %v2271_v41 = vsel %vm53_vm0, %v2265_v37, 0.0 }
0x1487   :  { %v2262_v60 = vadd.f32 %v2259_v16, %v2247_v58  ;;  %2272 = vadd.xlane.f32.xlu0 %v2271_v41  ;;  %v2268_v57 = vsel %vm53_vm0, %v2264_v44, 0.0  ;;  %v5134_v41 = vld [vmem:[%s7846_s10 + $0x60] sm:$0xff] }
0x1488   :  { %2269 = vadd.xlane.f32.xlu1 %v2268_v57  ;;  %v2267_v40 = vadd.f32 %v2263_v53, %v6481_v26  ;;  %v5121_v26 = vld [vmem:[%s7844_s8 + $0x28] sm:$0xff]  ;;  %v5133_v53 = vld [vmem:[%s7846_s10 + $0x58] sm:$0xff] }
0x1489   :  { %v2266_v28 = vadd.f32 %v2262_v60, %v6479_v22  ;;  %v5700_v33 = vpack.c.bf16 %v5121_v26, %v5120_v32  ;;  %v5122_v22 = vld [vmem:[%s7844_s8 + $0x30] sm:$0xff]  ;;  %v5135_v60 = vld [vmem:[%s7846_s10 + $0x68] sm:$0xff] }
0x148a   :  { %v2277_v30 = vsel %vm53_vm0, %v2267_v40, 0.0  ;;  %v5704_v4 = vpack.c.bf16 %v5123_v35, %v5122_v22  ;;  %v5716_v57 = vpack.c.bf16 %v5135_v60, %v5134_v41  ;;  %v5125_v22 = vld [vmem:[%s7845_s9 + $0x1] ss:$0 sm:$0xff] }
0x148b   :  { %v2274_v31 = vsel %vm53_vm0, %v2266_v28, 0.0  ;;  %5701 = vmatprep.subr.bf16.mxu0 %v5700_v33 }
0x148c   :  { %5703 = vmatpush3.bf16.msra.mxu0 %v5700_v33 }
0x148d   :  { %5705 = vmatprep.subr.bf16.mxu0 %v5704_v4 }
0x1490   :  { %5707 = vmatpush3.bf16.msra.mxu0 %v5704_v4 }
0x1514   :  { %v2273_v39 = vpop.xlane.xlu0 %2272 }
0x1515   :  { %v2281_v52 = vmul.f32 0.03125, %v2273_v39  ;;  %v2270_v21 = vpop.xlane.xlu1 %2269  ;;  %v5136_v39 = vld [vmem:[%s7846_s10 + $0x70] sm:$0xff] }
0x1516   :  { %v2280_v55 = vmul.f32 0.03125, %v2270_v21 }
0x1517   :  { %v2285_v23 = vsub.f32 %v2265_v37, %v2281_v52  ;;  %v5131_v37 = vld [vmem:[%s7846_s10 + $0x48] sm:$0xff]  ;;  %v5137_v52 = vld [vmem:[%s7846_s10 + $0x78] sm:$0xff] }
0x1518   :  { %v2284_v9 = vsub.f32 %v2264_v44, %v2280_v55  ;;  %v5708_v15 = vpack.c.bf16 %v5131_v37, %v5130_v18  ;;  %v5132_v44 = vld [vmem:[%s7846_s10 + $0x50] sm:$0xff]  ;;  %v5720_v21 = vpack.c.bf16 %v5137_v52, %v5136_v39  ;;  %s5019_s10 = sshll.u32 %s6051_s29, 4  ;;  %s5020_s10 = int_to_ptr.vmem [resolvable:$true] %s5019_s10 }
0x1519   :  { %v2289_v24 = vmul.f32 %v2285_v23, %v2285_v23  ;;  %v5712_v58 = vpack.c.bf16 %v5133_v53, %v5132_v44  ;;  %s6004_s7 = scalar_lea.vmem %s5020_s10, 32  ;;  %p6009_p1 = scmp.lt.s32.totalorder %s5020_s10, %s5020_s10 }
0x151a   :  { %v2288_v43 = vmul.f32 %v2284_v9, %v2284_v9  ;;  %5709 = vmatprep.subr.bf16.mxu0 %v5708_v15  ;;  %p6005_p0 = scmp.ne.s32.totalorder %s5020_s10, %s6004_s7  ;;  %p6010_p2 = scmp.lt.s32.totalorder %s6004_s7, %s6004_s7 }
0x151b   :  { %v2295_v0 = vsel %vm53_vm0, %v2289_v24, 0.0 }
0x151c   :  { %2296 = vadd.xlane.f32.xlu1 %v2295_v0  ;;  %v2292_v34 = vsel %vm53_vm0, %v2288_v43, 0.0  ;;  %p6011_p3 = por %p6010_p2, %p6009_p1 }
0x151d   :  { %2293 = vadd.xlane.f32.xlu0 %v2292_v34 }
0x151e   :  { %p6012_p4 = pnand %p6011_p3, %p6005_p0 }
0x1520   :  { %2278 = vadd.xlane.f32.xlu1 %v2277_v30 }
0x1521   :  { %2275 = vadd.xlane.f32.xlu0 %v2274_v31 }
0x15a9   :  { %v2297_v2 = vpop.xlane.xlu1 %2296 }
0x15aa   :  { %v2305_v19 = vmul.f32 0.03125, %v2297_v2  ;;  %v2294_v45 = vpop.xlane.xlu0 %2293 }
0x15ab   :  { %v2304_v25 = vmul.f32 0.03125, %v2294_v45 }
0x15ac   :  { %v2309_v51 = vadd.f32 1e-12, %v2305_v19 }
0x15ad   :  { %v2308_v54 = vadd.f32 1e-12, %v2304_v25  ;;  %v2279_v46 = vpop.xlane.xlu1 %2278 }
0x15ae   :  { %5971 = vrsqrt.f32 %v2309_v51  ;;  %v2283_v48 = vmul.f32 0.03125, %v2279_v46  ;;  %v2276_v11 = vpop.xlane.xlu0 %2275 }
0x15af   :  { %5973 = vrsqrt.f32 %v2308_v54  ;;  %v2282_v56 = vmul.f32 0.03125, %v2276_v11 }
0x15b0   :  { %v2287_v59 = vsub.f32 %v2267_v40, %v2283_v48 }
0x15b1   :  { %v2286_v7 = vsub.f32 %v2266_v28, %v2282_v56 }
0x15b2   :  { %v2291_v61 = vmul.f32 %v2287_v59, %v2287_v59 }
0x15b3   :  { %v2290_v62 = vmul.f32 %v2286_v7, %v2286_v7 }
0x15b4   :  { %v2301_v63 = vsel %vm53_vm0, %v2291_v61, 0.0 }
0x15b5   :  { %2302 = vadd.xlane.f32.xlu1 %v2301_v63  ;;  %v2298_v1 = vsel %vm53_vm0, %v2290_v62, 0.0 }
0x15b6   :  { %2299 = vadd.xlane.f32.xlu0 %v2298_v1 }
0x15b8   :  { %v5972_v5 = vpop.eup %5971 }
0x15b9   :  { %v5974_v6 = vpop.eup %5973  ;;  %v2317_v17 = vmul.f32 %v5972_v5, %v2285_v23 }
0x15ba   :  { %v2316_v20 = vmul.f32 %v5974_v6, %v2284_v9 }
0x15bb   :  { %v2325_v16 = vmul.f32 %v2323_v3, %v2317_v17 }
0x15bc   :  { %v2324_v49 = vmul.f32 %v2323_v3, %v2316_v20 }
0x15bd   :  { %v6679_v38 = vadd.f32 %v2331_v8, %v2325_v16 }
0x15be   :  { %v6677_v29 = vadd.f32 %v2331_v8, %v2324_v49 }
0x15c0   :  { %5522 = vmatprep.mubr.msk.f32.mxu0 %vm53_vm0, %v6677_v29 }
0x15c1   :  { %5523 = vmatmul.mubr.msk.f32.vlgmr.msra.gmra.mrb[28].mxu0 %vm53_vm0, %v6679_v38 }
0x15c2   :  { %5711 = vmatpush3.bf16.msra.mxu0 %v5708_v15 }
0x15c3   :  { %5713 = vmatprep.subr.bf16.mxu0 %v5712_v58 }
0x15c6   :  { %5715 = vmatpush3.bf16.msra.mxu0 %v5712_v58 }
0x15c7   :  { %5717 = vmatprep.subr.bf16.mxu0 %v5716_v57 }
0x15ca   :  { %5719 = vmatpush3.bf16.msra.mxu0 %v5716_v57 }
0x15cb   :  { %5721 = vmatprep.subr.bf16.mxu0 %v5720_v21 }
0x15ce   :  { %5723 = vmatpush3.bf16.msra.mxu0 %v5720_v21 }
0x1642   :  { %v2303_v55 = vpop.xlane.xlu1 %2302 }
0x1643   :  { %v2307_v23 = vmul.f32 0.03125, %v2303_v55  ;;  %v2300_v9 = vpop.xlane.xlu0 %2299 }
0x1644   :  { %v2306_v24 = vmul.f32 0.03125, %v2300_v9 }
0x1645   :  { %v2311_v43 = vadd.f32 1e-12, %v2307_v23 }
0x1646   :  { %v2310_v0 = vadd.f32 1e-12, %v2306_v24 }
0x1647   :  { %5975 = vrsqrt.f32 %v2311_v43 }
0x1648   :  { %5977 = vrsqrt.f32 %v2310_v0 }
0x1651   :  { %v5976_v40 = vpop.eup %5975 }
0x1652   :  { %v5978_v34 = vpop.eup %5977  ;;  %v2319_v28 = vmul.f32 %v5976_v40, %v2287_v59  ;;  %v6727_v40 = vrot.slane %v6645_v13, %v1221_v14 }
0x1653   :  { %v2318_v30 = vmul.f32 %v5978_v34, %v2286_v7 }
0x1654   :  { %v2327_v31 = vmul.f32 %v2323_v3, %v2319_v28 }
0x1655   :  { %v2326_v32 = vmul.f32 %v2323_v3, %v2318_v30 }
0x1656   :  { %v6711_v33 = vadd.f32 %v2331_v8, %v2327_v31 }
0x1657   :  { %v6709_v26 = vadd.f32 %v2331_v8, %v2326_v32 }
0x1659   :  { %5525 = vmatprep.mubr.msk.f32.mxu0 %vm53_vm0, %v6709_v26 }
0x165a   :  { %5526 = vmatmul.mubr.msk.f32.gmra.mrb[30].mxu0 %vm53_vm0, %v6711_v33 }
0x1694   :  { %v5524_v35 = vpop.f32.mrb[28].mxu0 }
0x1695   :  { %v2433_v4 = vadd.f32 %v5524_v35, %v5125_v22  ;;  %v2427_v2 = vpop.f32.mrb[29].mxu0 }
0x1696   :  { %v2428_v19 = vadd.f32 %v5125_v22, %v2427_v2 }
0x1697   :  { %v2447_v45 = vmul.f32 %v2433_v4, %v2433_v4 }
0x1698   :  { %v2446_v25 = vmul.f32 %v2428_v19, %v2428_v19 }
0x1699   :  { %v2451_v51 = vmul.f32 %v2447_v45, %v2433_v4 }
0x169a   :  { %v2450_v54 = vmul.f32 %v2446_v25, %v2428_v19 }
0x169b   :  { %v2455_v46 = vmul.f32 0.044715, %v2451_v51 }
0x169c   :  { %v2454_v48 = vmul.f32 0.044715, %v2450_v54 }
0x169d   :  { %v2459_v11 = vadd.f32 %v2455_v46, %v2433_v4 }
0x169e   :  { %v2458_v56 = vadd.f32 %v2454_v48, %v2428_v19 }
0x169f   :  { %v2463_v59 = vmul.f32 0.7978846, %v2459_v11 }
0x16a0   :  { %v2462_v7 = vmul.f32 0.7978846, %v2458_v56  ;;  %v2665_v56 = vld [vmem:[%s7847_s11] sm:$0xff] }
0x16a1   :  { %5979 = vtanh.f32 %v2463_v59  ;;  %v2666_v59 = vld [vmem:[%s7847_s11 + $0x8] sm:$0xff] }
0x16a2   :  { %5981 = vtanh.f32 %v2462_v7  ;;  %v5724_v7 = vpack.c.bf16 %v2666_v59, %v2665_v56  ;;  %v6839_v59 = vld [vmem:[%s7849_s13 + $0x8] sm:$0x1] }
0x16a4   :  { %5725 = vmatprep.subr.bf16.mxu1 %v5724_v7 }
0x16a5   :  { %5727 = vmatpush3.bf16.msra.mxu1 %v5724_v7  ;;  %v6844_v7 = vld [vmem:[%s7849_s13] sm:$0xff] }
0x16ab   :  { %v5980_v61 = vpop.eup %5979 }
0x16ac   :  { %v5982_v62 = vpop.eup %5981  ;;  %v2471_v63 = vadd.f32 1.0, %v5980_v61  ;;  %v2667_v61 = vld [vmem:[%s7847_s11 + $0x10] sm:$0xff] }
0x16ad   :  { %v2470_v1 = vadd.f32 1.0, %v5982_v62  ;;  %v2668_v62 = vld [vmem:[%s7847_s11 + $0x18] sm:$0xff] }
0x16ae   :  { %v2475_v3 = vmul.f32 0.5, %v2471_v63  ;;  %v5728_v63 = vpack.c.bf16 %v2668_v62, %v2667_v61 }
0x16af   :  { %v2474_v5 = vmul.f32 0.5, %v2470_v1 }
0x16b0   :  { %v2479_v17 = vmul.f32 %v2475_v3, %v2433_v4  ;;  %5729 = vmatprep.subr.bf16.mxu1 %v5728_v63 }
0x16b1   :  { %v2478_v6 = vmul.f32 %v2474_v5, %v2428_v19  ;;  %5731 = vmatpush3.bf16.msra.mxu1 %v5728_v63 }
0x16b3   :  { %5544 = vmatprep.mubr.msk.f32.mxu0 %vm1223_vm3, %v2478_v6 }
0x16b4   :  { %5545 = vmatmul.mubr.msk.f32.vlgmr.msra.gmra.mrb[32].mxu0 %vm1223_vm3, %v2479_v17 }
0x172d   :  { %v5527_v20 = vpop.f32.mrb[30].mxu0 }
0x172e   :  { %v2443_v8 = vadd.f32 %v5527_v20, %v5125_v22  ;;  %v2437_v16 = vpop.f32.mrb[31].mxu0 }
0x172f   :  { %v2438_v49 = vadd.f32 %v5125_v22, %v2437_v16 }
0x1730   :  { %v2449_v18 = vmul.f32 %v2443_v8, %v2443_v8 }
0x1731   :  { %v2448_v37 = vmul.f32 %v2438_v49, %v2438_v49 }
0x1732   :  { %v2453_v15 = vmul.f32 %v2449_v18, %v2443_v8 }
0x1733   :  { %v2452_v44 = vmul.f32 %v2448_v37, %v2438_v49 }
0x1734   :  { %v2457_v53 = vmul.f32 0.044715, %v2453_v15  ;;  %v6761_v15 = vrot.slane %v6645_v13, %v1387_v12  ;;  %v2664_v12 = vld [vmem:[%s7848_s12] sm:$0x7] }
0x1735   :  { %v2456_v58 = vmul.f32 0.044715, %v2452_v44 }
0x1736   :  { %v2461_v41 = vadd.f32 %v2457_v53, %v2443_v8 }
0x1737   :  { %v2460_v60 = vadd.f32 %v2456_v58, %v2438_v49 }
0x1738   :  { %v2465_v57 = vmul.f32 0.7978846, %v2461_v41 }
0x1739   :  { %v2464_v39 = vmul.f32 0.7978846, %v2460_v60  ;;  %v6034_v60 = vmov 1966171168  }
0x173a   :  { %5983 = vtanh.f32 %v2465_v57  ;;  %v2787_v57 = vunpack.c.l.s4 %v6034_v60 }
0x173b   :  { %5985 = vtanh.f32 %v2464_v39 }
0x173c   :  { %v2788_v39 = vunpack.c.0.s8 %v2787_v57 }
0x1744   :  { %v5984_v52 = vpop.eup %5983 }
0x1745   :  { %v5986_v21 = vpop.eup %5985  ;;  %v2473_v55 = vadd.f32 1.0, %v5984_v52 }
0x1746   :  { %v2472_v23 = vadd.f32 1.0, %v5986_v21  ;;  %v2783_v21 = vrot.slane %v2664_v12, %v6169_v50 }
0x1747   :  { %v2477_v9 = vmul.f32 0.5, %v2473_v55 }
0x1748   :  { %v2476_v24 = vmul.f32 0.5, %v2472_v23 }
0x1749   :  { %v2481_v0 = vmul.f32 %v2477_v9, %v2443_v8  ;;  %v6756_v8 = vrot.slane %v6645_v13, %v1379_v27  ;;  %v6033_v27 = vmov 1   ;;  %v6774_v13 = vrot.slane %v2664_v12, %v6163_v47 }
0x174a   :  { %v2480_v43 = vmul.f32 %v2476_v24, %v2438_v49  ;;  %5844 = vset.pattern.permute.xlu0 %v6033_v27  ;;  %v6783_v9 = vsub.s32 %v2788_v39, %v6160_v42 }
0x174c   :  { %5547 = vmatprep.mubr.msk.f32.mxu0 %vm1223_vm3, %v2480_v43  ;;  %v6789_v43 = vand.u32 127, %v107_v36 }
0x174d   :  { %5548 = vmatmul.mubr.msk.f32.gmra.mrb[34].mxu0 %vm1223_vm3, %v2481_v0 }
0x174e   :  { %vm6796_vm4 = vcmp.eq.s32.totalorder %v6160_v42, %v6789_v43 }
0x1787   :  { %v5546_v34 = vpop.f32.mrb[32].mxu0 }
0x1788   :  { %v2579_v28 = vadd.f32 %v5546_v34, %v6727_v40  ;;  %v2573_v30 = vpop.f32.mrb[33].mxu0 }
0x1789   :  { %v2574_v31 = vadd.f32 %v2573_v30, %v6727_v40  ;;  %v6801_v30 = vadd.s32 8, %v6160_v42 }
0x178a   :  { %v2593_v32 = vadd.f32 %v2579_v28, %v6679_v38 }
0x178b   :  { %v2592_v22 = vadd.f32 %v2574_v31, %v6677_v29  ;;  %vm6811_vm6 = vcmp.eq.s32.totalorder %v6801_v30, %v6789_v43 }
0x178c   :  { %v2599_v35 = vsel %vm53_vm0, %v2593_v32, 0.0 }
0x178d   :  { %2600 = vadd.xlane.f32.xlu1 %v2599_v35  ;;  %v2596_v4 = vsel %vm53_vm0, %v2592_v22, 0.0 }
0x178e   :  { %2597 = vadd.xlane.f32.xlu0 %v2596_v4 }
0x181a   :  { %v2601_v2 = vpop.xlane.xlu1 %2600 }
0x181b   :  { %v2609_v19 = vmul.f32 0.03125, %v2601_v2  ;;  %v2598_v14 = vpop.xlane.xlu0 %2597 }
0x181c   :  { %v2608_v45 = vmul.f32 0.03125, %v2598_v14 }
0x181d   :  { %v2613_v25 = vsub.f32 %v2593_v32, %v2609_v19 }
0x181e   :  { %v2612_v51 = vsub.f32 %v2592_v22, %v2608_v45 }
0x181f   :  { %v2617_v54 = vmul.f32 %v2613_v25, %v2613_v25 }
0x1820   :  { %v6735_v46 = vpop.f32.mrb[34].mxu0  ;;  %v2616_v48 = vmul.f32 %v2612_v51, %v2612_v51 }
0x1821   :  { %v6737_v11 = vpop.f32.mrb[35].mxu0  ;;  %v2623_v29 = vsel %vm53_vm0, %v2617_v54, 0.0  ;;  %v6827_v54 = vld [vmem:[%s7838_s2] sm:$0x3] }
0x1822   :  { %2624 = vadd.xlane.f32.xlu1 %v2623_v29  ;;  %v2620_v38 = vsel %vm53_vm0, %v2616_v48, 0.0  ;;  %vm2896_vm8 = vcmp.ne.s32.totalorder %v6827_v54, 0  ;;  %v6035_v48 = vmov 0  }
0x1823   :  { %2621 = vadd.xlane.f32.xlu0 %v2620_v38  ;;  %v6832_v29 = vsel %vm2896_vm8, 1, %v6035_v48  ;;  %v7855_v38 = vmov 2  }
0x1824   :  { %5845 = vset.pattern.permute.xlu1 %v7855_v38 }
0x18af   :  { %v2625_v1 = vpop.xlane.xlu1 %2624 }
0x18b0   :  { %v2633_v3 = vmul.f32 0.03125, %v2625_v1  ;;  %v2622_v5 = vpop.xlane.xlu0 %2621 }
0x18b1   :  { %v2632_v6 = vmul.f32 0.03125, %v2622_v5 }
0x18b2   :  { %v2637_v17 = vadd.f32 1e-12, %v2633_v3 }
0x18b3   :  { %v2636_v20 = vadd.f32 1e-12, %v2632_v6 }
0x18b4   :  { %5987 = vrsqrt.f32 %v2637_v17 }
0x18b5   :  { %5989 = vrsqrt.f32 %v2636_v20 }
0x18be   :  { %v5988_v16 = vpop.eup %5987 }
0x18bf   :  { %v5990_v49 = vpop.eup %5989  ;;  %v2645_v18 = vmul.f32 %v5988_v16, %v2613_v25 }
0x18c0   :  { %v2644_v37 = vmul.f32 %v5990_v49, %v2612_v51 }
0x18c1   :  { %v2653_v44 = vmul.f32 %v6756_v8, %v2645_v18 }
0x18c2   :  { %v2652_v53 = vmul.f32 %v6756_v8, %v2644_v37 }
0x18c3   :  { %v2661_v41 = vadd.f32 %v6761_v15, %v2653_v44 }
0x18c4   :  { %v2660_v58 = vadd.f32 %v6761_v15, %v2652_v53 }
0x18c6   :  { %5558 = vmatprep.mubr.msk.f32.mxu1 %vm53_vm0, %v2660_v58 }
0x18c7   :  { %5559 = vmatmul.mubr.msk.f32.vlgmr.msra.gmra.mrb[28].mxu1 %vm53_vm0, %v2661_v41 }
0x199a   :  { %v6776_v52 = vpop.f32.mrb[28].mxu1 }
0x199b   :  { %v2751_v55 = vpop.f32.mrb[29].mxu1 }
0x199c   :  { %v6780_v23 = vadd.f32 %v2751_v55, %v6774_v13 }
0x199e   :  { %v6786_v24 = vadd.f32 %v2783_v21, %v6780_v23 }
0x19a0   :  { %v2792_v0 = vrot.slane %v6786_v24, %v6783_v9 }
0x19a2   :  { %v2800_v34 = vrot.slane %v2792_v0, %v6783_v9  ;;  %v2793_v28 = vcombine.high %v2792_v0, %v2792_v0 }
0x19a4   :  { %v2815_v31 = vrot.slane %v2800_v34, %v6163_v47  ;;  %v2807_v36 = vrot.slane %v2793_v28, %v6783_v9  ;;  %v2899_v34 = vrot.slane %v6780_v23, 3 }
0x19a6   :  { %v2822_v32 = vsel %vm6796_vm4, %v2815_v31, 0.0  ;;  %v2819_v22 = vrot.slane %v2807_v36, %v6163_v47  ;;  %v2823_v45 = vsel %vm6811_vm6, %v2815_v31, 0.0  ;;  %v2898_v31 = vrot.slane %v6780_v23, 2 }
0x19a7   :  { %v2827_v35 = vsel %vm2826_vm5, %v2822_v32, 0.0  ;;  %v2831_v51 = vsel %vm2830_vm7, %v2823_v45, 0.0 }
0x19a8   :  { %2828 = vadd.xlane.f32.xlu0 %v2827_v35  ;;  %v2825_v2 = vsel %vm6811_vm6, %v2819_v22, 0.0  ;;  %v2824_v19 = vsel %vm6796_vm4, %v2819_v22, 0.0 }
0x19a9   :  { %v2837_v14 = vsel %vm2830_vm7, %v2825_v2, 0.0  ;;  %v2834_v25 = vsel %vm2826_vm5, %v2824_v19, 0.0 }
0x19aa   :  { %2838 = vadd.xlane.f32.xlu1 %v2837_v14 }
0x19ac   :  { %2835 = vadd.xlane.f32.xlu0 %v2834_v25 }
0x19ae   :  { %2832 = vadd.xlane.f32.xlu1 %v2831_v51 }
0x19c2   :  { %2906 = vperm.xlu0 %5844, %v6832_v29  }
0x1a35   :  { %v2829_v56 = vpop.xlane.xlu0 %2828 }
0x1a36   :  { %v2840_v1 = vadd.f32 %v2829_v56, %v6844_v7 }
0x1a37   :  { %v2839_v61 = vpop.xlane.xlu1 %2838 }
0x1a38   :  { %v2843_v62 = vadd.f32 %v2839_v61, %v6839_v59  ;;  %v2844_v49 = vsel %vm2826_vm5, %v2840_v1, -inf }
0x1a39   :  { %v2836_v63 = vpop.xlane.xlu0 %2835 }
0x1a3a   :  { %v2842_v3 = vadd.f32 %v2836_v63, %v6844_v7  ;;  %v2854_v6 = vsel %vm2830_vm7, %v2843_v62, -inf }
0x1a3b   :  { %v2833_v5 = vpop.xlane.xlu1 %2832 }
0x1a3c   :  { %v2853_v17 = vsel %vm2826_vm5, %v2842_v3, -inf  ;;  %v2841_v20 = vadd.f32 %v2833_v5, %v6839_v59 }
0x1a3d   :  { %v2855_v16 = vmax.f32 %v2853_v17, %v2854_v6 }
0x1a3e   :  { %v2845_v18 = vsel %vm2830_vm7, %v2841_v20, -inf }
0x1a3f   :  { %v2856_v37 = vrot.slane %v2855_v16, 4  ;;  %v2846_v44 = vmax.f32 %v2844_v49, %v2845_v18 }
0x1a41   :  { %v2857_v53 = vmax.f32 %v2855_v16, %v2856_v37  ;;  %v2847_v58 = vrot.slane %v2846_v44, 4  ;;  %v6855_v28 = vpop.permute.xlu0 %2906 }
0x1a42   :  { %vm7851_vm12 = vcmp.eq.s32.totalorder %v6855_v28, 1 }
0x1a43   :  { %v2858_v41 = vrot.slane %v2857_v53, 2  ;;  %v2848_v60 = vmax.f32 %v2846_v44, %v2847_v58 }
0x1a45   :  { %v2859_v57 = vmax.f32 %v2857_v53, %v2858_v41  ;;  %v2849_v12 = vrot.slane %v2848_v60, 2 }
0x1a47   :  { %v2860_v39 = vrot.slane %v2859_v57, 1  ;;  %v2850_v21 = vmax.f32 %v2848_v60, %v2849_v12 }
0x1a49   :  { %v2861_v55 = vmax.f32 %v2859_v57, %v2860_v39  ;;  %v2851_v0 = vrot.slane %v2850_v21, 1 }
0x1a4b   :  { %vm2864_vm9 = vcmp.eq.f32.partialorder %v2842_v3, %v2861_v55  ;;  %vm2865_vm10 = vcmp.eq.f32.partialorder %v2843_v62, %v2861_v55  ;;  %v2852_v36 = vmax.f32 %v2850_v21, %v2851_v0  ;;  %v2903_v32 = vadd.f32 %v2899_v34, %v2861_v55 }
0x1a4c   :  { %v2868_v22 = vsel %vm2864_vm9, %v6160_v42, 9  ;;  %v2869_v35 = vsel %vm2865_vm10, %v6801_v30, 9 }
0x1a4d   :  { %v2883_v2 = vsel %vm2826_vm5, %v2868_v22, 2147483647  ;;  %v2884_v19 = vsel %vm2830_vm7, %v2869_v35, 2147483647  ;;  %vm2862_vm13 = vcmp.eq.f32.partialorder %v2840_v1, %v2852_v36  ;;  %vm2863_vm14 = vcmp.eq.f32.partialorder %v2841_v20, %v2852_v36 }
0x1a4e   :  { %vm2885_vm15 = vcmp.lt.s32.totalorder %v2883_v2, %v2884_v19  ;;  %v2866_v14 = vsel %vm2862_vm13, %v6160_v42, 9  ;;  %v2867_v45 = vsel %vm2863_vm14, %v6801_v30, 9  ;;  %v2902_v25 = vadd.f32 %v2898_v31, %v2852_v36 }
0x1a4f   :  { %v2886_v51 = vsel %vm2885_vm15, %v2883_v2, %v2884_v19  ;;  %v2870_v48 = vsel %vm2826_vm5, %v2866_v14, 2147483647  ;;  %v2871_v56 = vsel %vm2830_vm7, %v2867_v45, 2147483647  ;;  %v2911_v61 = vrot.slane %v2903_v32, 7 }
0x1a50   :  { %v2887_v62 = vrot.slane %v2886_v51, 4  ;;  %vm2872_vm1 = vcmp.lt.s32.totalorder %v2870_v48, %v2871_v56  ;;  %v7856_v2 = vmov 3  }
0x1a51   :  { %v2873_v63 = vsel %vm2872_vm1, %v2870_v48, %v2871_v56  ;;  %v2913_v3 = vsel %vm2912_vm11, %v2911_v61, %v2902_v25  ;;  %5846 = vset.pattern.permute.xlu0 %v7856_v2 }
0x1a52   :  { %vm2888_vm2 = vcmp.lt.s32.totalorder %v2886_v51, %v2887_v62  ;;  %v2874_v1 = vrot.slane %v2873_v63, 4  ;;  %v6871_v5 = vsel %vm7851_vm12, %v2913_v3, %v6786_v24 }
0x1a53   :  { %v2889_v6 = vsel %vm2888_vm2, %v2886_v51, %v2887_v62  ;;  %v2923_v17 = vrot.slane %v6871_v5, %v6783_v9 }
0x1a54   :  { %vm2875_vm3 = vcmp.lt.s32.totalorder %v2873_v63, %v2874_v1  ;;  %v2890_v20 = vrot.slane %v2889_v6, 2 }
0x1a55   :  { %v2876_v16 = vsel %vm2875_vm3, %v2873_v63, %v2874_v1  ;;  %v2924_v49 = vcombine.high %v2923_v17, %v2923_v17  ;;  %v2931_v18 = vrot.slane %v2923_v17, %v6783_v9 }
0x1a56   :  { %v2877_v37 = vrot.slane %v2876_v16, 2  ;;  %vm2891_vm9 = vcmp.lt.s32.totalorder %v2889_v6, %v2890_v20 }
0x1a57   :  { %v2942_v44 = vrot.slane %v2931_v18, %v6163_v47  ;;  %v2938_v53 = vrot.slane %v2924_v49, %v6783_v9  ;;  %v2892_v58 = vsel %vm2891_vm9, %v2889_v6, %v2890_v20 }
0x1a58   :  { %vm2878_vm10 = vcmp.lt.s32.totalorder %v2876_v16, %v2877_v37  ;;  %v2893_v24 = vrot.slane %v2892_v58, 1 }
0x1a59   :  { %v2949_v41 = vsel %vm6796_vm4, %v2942_v44, 0.0  ;;  %v2879_v60 = vsel %vm2878_vm10, %v2876_v16, %v2877_v37  ;;  %v2950_v39 = vsel %vm6811_vm6, %v2942_v44, 0.0  ;;  %v2946_v21 = vrot.slane %v2938_v53, %v6163_v47 }
0x1a5a   :  { %v2953_v57 = vsel %vm2826_vm5, %v2949_v41, 0.0  ;;  %v2880_v12 = vrot.slane %v2879_v60, 1  ;;  %vm2894_vm13 = vcmp.lt.s32.totalorder %v2892_v58, %v2893_v24  ;;  %v2956_v34 = vsel %vm2830_vm7, %v2950_v39, 0.0 }
0x1a5b   :  { %2954 = vadd.xlane.f32.xlu1 %v2953_v57  ;;  %v2895_v0 = vsel %vm2894_vm13, %v2892_v58, %v2893_v24  ;;  %v2951_v36 = vsel %vm6796_vm4, %v2946_v21, 0.0  ;;  %v2952_v22 = vsel %vm6811_vm6, %v2946_v21, 0.0 }
0x1a5c   :  { %vm2881_vm14 = vcmp.lt.s32.totalorder %v2879_v60, %v2880_v12  ;;  %v2959_v32 = vsel %vm2826_vm5, %v2951_v36, 0.0  ;;  %v2962_v35 = vsel %vm2830_vm7, %v2952_v22, 0.0  ;;  %v3022_v36 = vrot.slane %v6780_v23, 5 }
0x1a5d   :  { %v2882_v55 = vsel %vm2881_vm14, %v2879_v60, %v2880_v12  ;;  %v3021_v22 = vrot.slane %v6780_v23, 4 }
0x1a5e   :  { %v6886_v31 = vsel %vm2912_vm11, %v2895_v0, %v2882_v55 }
0x1a5f   :  { %2957 = vadd.xlane.f32.xlu1 %v2956_v34 }
0x1a63   :  { %2960 = vadd.xlane.f32.xlu1 %v2959_v32 }
0x1a67   :  { %2963 = vadd.xlane.f32.xlu1 %v2962_v35 }
0x1a78   :  { %3028 = vperm.xlu1 %5845, %v6832_v29  }
0x1ae8   :  { %v2955_v19 = vpop.xlane.xlu1 %2954 }
0x1ae9   :  { %v2965_v14 = vadd.f32 %v2955_v19, %v6844_v7 }
0x1aeb   :  { %v2969_v51 = vsel %vm2826_vm5, %v2965_v14, -inf }
0x1aec   :  { %v2958_v45 = vpop.xlane.xlu1 %2957 }
0x1aed   :  { %v2966_v25 = vadd.f32 %v2958_v45, %v6839_v59 }
0x1aef   :  { %v2970_v48 = vsel %vm2830_vm7, %v2966_v25, -inf }
0x1af0   :  { %v2971_v56 = vmax.f32 %v2969_v51, %v2970_v48  ;;  %v2961_v61 = vpop.xlane.xlu1 %2960 }
0x1af1   :  { %v2967_v63 = vadd.f32 %v2961_v61, %v6844_v7 }
0x1af2   :  { %v2972_v62 = vrot.slane %v2971_v56, 4 }
0x1af3   :  { %v2978_v20 = vsel %vm2826_vm5, %v2967_v63, -inf }
0x1af4   :  { %v2973_v3 = vmax.f32 %v2971_v56, %v2972_v62  ;;  %v2964_v1 = vpop.xlane.xlu1 %2963 }
0x1af5   :  { %v2968_v6 = vadd.f32 %v2964_v1, %v6839_v59 }
0x1af6   :  { %v2974_v17 = vrot.slane %v2973_v3, 2 }
0x1af7   :  { %v2979_v16 = vsel %vm2830_vm7, %v2968_v6, -inf }
0x1af8   :  { %v2975_v49 = vmax.f32 %v2973_v3, %v2974_v17  ;;  %v2980_v18 = vmax.f32 %v2978_v20, %v2979_v16  ;;  %v6909_v32 = vpop.permute.xlu1 %3028 }
0x1af9   :  { %vm7852_vm13 = vcmp.eq.s32.totalorder %v6909_v32, 1 }
0x1afa   :  { %v2976_v37 = vrot.slane %v2975_v49, 1  ;;  %v2981_v44 = vrot.slane %v2980_v18, 4 }
0x1afc   :  { %v2977_v53 = vmax.f32 %v2975_v49, %v2976_v37  ;;  %v2982_v58 = vmax.f32 %v2980_v18, %v2981_v44 }
0x1afe   :  { %vm2987_vm15 = vcmp.eq.f32.partialorder %v2965_v14, %v2977_v53  ;;  %vm2988_vm1 = vcmp.eq.f32.partialorder %v2966_v25, %v2977_v53  ;;  %v2983_v24 = vrot.slane %v2982_v58, 2  ;;  %v3025_v56 = vadd.f32 %v3021_v22, %v2977_v53 }
0x1aff   :  { %v2991_v41 = vsel %vm2987_vm15, %v6160_v42, 9  ;;  %v2992_v60 = vsel %vm2988_vm1, %v6801_v30, 9 }
0x1b00   :  { %v2995_v57 = vsel %vm2826_vm5, %v2991_v41, 2147483647  ;;  %v2996_v12 = vsel %vm2830_vm7, %v2992_v60, 2147483647  ;;  %v2984_v39 = vmax.f32 %v2982_v58, %v2983_v24 }
0x1b01   :  { %vm2997_vm2 = vcmp.lt.s32.totalorder %v2995_v57, %v2996_v12 }
0x1b02   :  { %v2998_v21 = vsel %vm2997_vm2, %v2995_v57, %v2996_v12  ;;  %v2985_v55 = vrot.slane %v2984_v39, 1 }
0x1b03   :  { %v2999_v0 = vrot.slane %v2998_v21, 4 }
0x1b04   :  { %v2986_v34 = vmax.f32 %v2984_v39, %v2985_v55 }
0x1b05   :  { %vm3000_vm3 = vcmp.lt.s32.totalorder %v2998_v21, %v2999_v0 }
0x1b06   :  { %v3001_v35 = vsel %vm3000_vm3, %v2998_v21, %v2999_v0  ;;  %vm2989_vm9 = vcmp.eq.f32.partialorder %v2967_v63, %v2986_v34  ;;  %vm2990_vm10 = vcmp.eq.f32.partialorder %v2968_v6, %v2986_v34  ;;  %v3026_v19 = vadd.f32 %v3022_v36, %v2986_v34 }
0x1b07   :  { %v2993_v14 = vsel %vm2989_vm9, %v6160_v42, 9  ;;  %v2994_v45 = vsel %vm2990_vm10, %v6801_v30, 9  ;;  %v3002_v25 = vrot.slane %v3001_v35, 2 }
0x1b08   :  { %v3008_v51 = vsel %vm2826_vm5, %v2993_v14, 2147483647  ;;  %v3009_v48 = vsel %vm2830_vm7, %v2994_v45, 2147483647  ;;  %v3033_v61 = vrot.slane %v3026_v19, 7 }
0x1b09   :  { %vm3010_vm14 = vcmp.lt.s32.totalorder %v3008_v51, %v3009_v48  ;;  %vm3003_vm15 = vcmp.lt.s32.totalorder %v3001_v35, %v3002_v25 }
0x1b0a   :  { %v3011_v62 = vsel %vm3010_vm14, %v3008_v51, %v3009_v48  ;;  %v3034_v63 = vsel %vm2912_vm11, %v3033_v61, %v3025_v56  ;;  %v3004_v17 = vsel %vm3003_vm15, %v3001_v35, %v3002_v25  ;;  %v7858_v35 = vmov 4  }
0x1b0b   :  { %v3012_v3 = vrot.slane %v3011_v62, 4  ;;  %v6921_v1 = vsel %vm7852_vm13, %v3034_v63, %v6871_v5  ;;  %v3005_v18 = vrot.slane %v3004_v17, 1  ;;  %5847 = vset.pattern.permute.xlu1 %v7858_v35 }
0x1b0c   :  { %v3044_v6 = vrot.slane %v6921_v1, %v6783_v9 }
0x1b0d   :  { %vm3013_vm1 = vcmp.lt.s32.totalorder %v3011_v62, %v3012_v3  ;;  %vm3006_vm3 = vcmp.lt.s32.totalorder %v3004_v17, %v3005_v18 }
0x1b0e   :  { %v3014_v20 = vsel %vm3013_vm1, %v3011_v62, %v3012_v3  ;;  %v3045_v16 = vcombine.high %v3044_v6, %v3044_v6  ;;  %v3052_v49 = vrot.slane %v3044_v6, %v6783_v9  ;;  %v3007_v21 = vsel %vm3006_vm3, %v3004_v17, %v3005_v18 }
0x1b0f   :  { %v3015_v37 = vrot.slane %v3014_v20, 2 }
0x1b10   :  { %v3063_v44 = vrot.slane %v3052_v49, %v6163_v47  ;;  %v3059_v53 = vrot.slane %v3045_v16, %v6783_v9 }
0x1b11   :  { %vm3016_vm2 = vcmp.lt.s32.totalorder %v3014_v20, %v3015_v37 }
0x1b12   :  { %v3070_v5 = vsel %vm6796_vm4, %v3063_v44, 0.0  ;;  %v3067_v58 = vrot.slane %v3059_v53, %v6163_v47  ;;  %v3017_v24 = vsel %vm3016_vm2, %v3014_v20, %v3015_v37  ;;  %v3071_v36 = vsel %vm6811_vm6, %v3063_v44, 0.0 }
0x1b13   :  { %v3074_v41 = vsel %vm2826_vm5, %v3070_v5, 0.0  ;;  %v3018_v60 = vrot.slane %v3017_v24, 1  ;;  %v3077_v22 = vsel %vm2830_vm7, %v3071_v36, 0.0 }
0x1b14   :  { %3075 = vadd.xlane.f32.xlu1 %v3074_v41  ;;  %v3073_v57 = vsel %vm6811_vm6, %v3067_v58, 0.0  ;;  %v3072_v12 = vsel %vm6796_vm4, %v3067_v58, 0.0 }
0x1b15   :  { %v3083_v39 = vsel %vm2830_vm7, %v3073_v57, 0.0  ;;  %vm3019_vm9 = vcmp.lt.s32.totalorder %v3017_v24, %v3018_v60  ;;  %v3080_v0 = vsel %vm2826_vm5, %v3072_v12, 0.0 }
0x1b16   :  { %3084 = vadd.xlane.f32.xlu0 %v3083_v39  ;;  %v3020_v55 = vsel %vm3019_vm9, %v3017_v24, %v3018_v60  ;;  %v3143_v60 = vrot.slane %v6780_v23, 7 }
0x1b17   :  { %v6939_v34 = vsel %vm2912_vm11, %v3020_v55, %v3007_v21 }
0x1b18   :  { %3081 = vadd.xlane.f32.xlu1 %v3080_v0 }
0x1b1c   :  { %3078 = vadd.xlane.f32.xlu1 %v3077_v22 }
0x1b2c   :  { %3149 = vperm.xlu0 %5846, %v6832_v29  }
0x1ba1   :  { %v3076_v19 = vpop.xlane.xlu1 %3075 }
0x1ba2   :  { %v3086_v48 = vadd.f32 %v3076_v19, %v6844_v7  ;;  %v3142_v19 = vrot.slane %v6780_v23, 6 }
0x1ba3   :  { %v3085_v14 = vpop.xlane.xlu0 %3084 }
0x1ba4   :  { %v3089_v45 = vadd.f32 %v3085_v14, %v6839_v59  ;;  %v3090_v17 = vsel %vm2826_vm5, %v3086_v48, -inf }
0x1ba5   :  { %v3082_v25 = vpop.xlane.xlu1 %3081 }
0x1ba6   :  { %v3088_v51 = vadd.f32 %v3082_v25, %v6844_v7  ;;  %v3100_v56 = vsel %vm2830_vm7, %v3089_v45, -inf }
0x1ba8   :  { %v3099_v61 = vsel %vm2826_vm5, %v3088_v51, -inf }
0x1ba9   :  { %v3101_v62 = vmax.f32 %v3099_v61, %v3100_v56  ;;  %v3079_v63 = vpop.xlane.xlu1 %3078 }
0x1baa   :  { %v3087_v3 = vadd.f32 %v3079_v63, %v6839_v59 }
0x1bab   :  { %v3102_v6 = vrot.slane %v3101_v62, 4  ;;  %v6955_v12 = vpop.permute.xlu0 %3149 }
0x1bac   :  { %v3091_v20 = vsel %vm2830_vm7, %v3087_v3, -inf  ;;  %vm7853_vm1 = vcmp.eq.s32.totalorder %v6955_v12, 1 }
0x1bad   :  { %v3103_v16 = vmax.f32 %v3101_v62, %v3102_v6  ;;  %v3092_v49 = vmax.f32 %v3090_v17, %v3091_v20 }
0x1baf   :  { %v3104_v18 = vrot.slane %v3103_v16, 2  ;;  %v3093_v37 = vrot.slane %v3092_v49, 4 }
0x1bb1   :  { %v3105_v44 = vmax.f32 %v3103_v16, %v3104_v18  ;;  %v3094_v53 = vmax.f32 %v3092_v49, %v3093_v37 }
0x1bb3   :  { %v3106_v5 = vrot.slane %v3105_v44, 1  ;;  %v3095_v58 = vrot.slane %v3094_v53, 2 }
0x1bb5   :  { %v3107_v24 = vmax.f32 %v3105_v44, %v3106_v5  ;;  %v3096_v41 = vmax.f32 %v3094_v53, %v3095_v58 }
0x1bb7   :  { %vm3110_vm10 = vcmp.eq.f32.partialorder %v3088_v51, %v3107_v24  ;;  %vm3111_vm14 = vcmp.eq.f32.partialorder %v3089_v45, %v3107_v24  ;;  %v3097_v57 = vrot.slane %v3096_v41, 1  ;;  %v3147_v39 = vadd.f32 %v3143_v60, %v3107_v24 }
0x1bb8   :  { %v3114_v21 = vsel %vm3110_vm10, %v6160_v42, 9  ;;  %v3115_v55 = vsel %vm3111_vm14, %v6801_v30, 9 }
0x1bb9   :  { %v3129_v0 = vsel %vm2826_vm5, %v3114_v21, 2147483647  ;;  %v3130_v36 = vsel %vm2830_vm7, %v3115_v55, 2147483647  ;;  %v3098_v22 = vmax.f32 %v3096_v41, %v3097_v57  ;;  %v3154_v14 = vrot.slane %v3147_v39, 7 }
0x1bba   :  { %vm3131_vm15 = vcmp.lt.s32.totalorder %v3129_v0, %v3130_v36 }
0x1bbb   :  { %v3132_v45 = vsel %vm3131_vm15, %v3129_v0, %v3130_v36  ;;  %vm3108_vm2 = vcmp.eq.f32.partialorder %v3086_v48, %v3098_v22  ;;  %vm3109_vm3 = vcmp.eq.f32.partialorder %v3087_v3, %v3098_v22  ;;  %v3146_v25 = vadd.f32 %v3142_v19, %v3098_v22 }
0x1bbc   :  { %v3133_v51 = vrot.slane %v3132_v45, 4  ;;  %v3112_v56 = vsel %vm3108_vm2, %v6160_v42, 9  ;;  %v3113_v61 = vsel %vm3109_vm3, %v6801_v30, 9 }
0x1bbd   :  { %v3116_v62 = vsel %vm2826_vm5, %v3112_v56, 2147483647  ;;  %v3117_v63 = vsel %vm2830_vm7, %v3113_v61, 2147483647  ;;  %v3155_v6 = vsel %vm2912_vm11, %v3154_v14, %v3146_v25 }
0x1bbe   :  { %vm3134_vm9 = vcmp.lt.s32.totalorder %v3132_v45, %v3133_v51  ;;  %vm3118_vm10 = vcmp.lt.s32.totalorder %v3116_v62, %v3117_v63  ;;  %v6971_v23 = vsel %vm7853_vm1, %v3155_v6, %v6921_v1 }
0x1bbf   :  { %v3135_v48 = vsel %vm3134_vm9, %v3132_v45, %v3133_v51  ;;  %v3119_v3 = vsel %vm3118_vm10, %v3116_v62, %v3117_v63  ;;  %v3165_v17 = vrot.slane %v6971_v23, %v6783_v9  ;;  %v7859_v51 = vmov 5  }
0x1bc0   :  { %v3120_v20 = vrot.slane %v3119_v3, 4  ;;  %v3136_v16 = vrot.slane %v3135_v48, 2 }
0x1bc1   :  { %v3166_v49 = vcombine.high %v3165_v17, %v3165_v17  ;;  %v3173_v18 = vrot.slane %v3165_v17, %v6783_v9 }
0x1bc2   :  { %vm3121_vm14 = vcmp.lt.s32.totalorder %v3119_v3, %v3120_v20  ;;  %vm3137_vm15 = vcmp.lt.s32.totalorder %v3135_v48, %v3136_v16 }
0x1bc3   :  { %v3122_v37 = vsel %vm3121_vm14, %v3119_v3, %v3120_v20  ;;  %v3184_v44 = vrot.slane %v3173_v18, %v6163_v47  ;;  %v3180_v53 = vrot.slane %v3166_v49, %v6783_v9  ;;  %v3138_v5 = vsel %vm3137_vm15, %v3135_v48, %v3136_v16 }
0x1bc4   :  { %v3123_v1 = vrot.slane %v3122_v37, 2  ;;  %v3139_v58 = vrot.slane %v3138_v5, 1 }
0x1bc5   :  { %v3191_v24 = vsel %vm6796_vm4, %v3184_v44, 0.0  ;;  %v3192_v60 = vsel %vm6811_vm6, %v3184_v44, 0.0  ;;  %v3188_v57 = vrot.slane %v3180_v53, %v6163_v47 }
0x1bc6   :  { %v3195_v41 = vsel %vm2826_vm5, %v3191_v24, 0.0  ;;  %vm3124_vm2 = vcmp.lt.s32.totalorder %v3122_v37, %v3123_v1  ;;  %vm3140_vm3 = vcmp.lt.s32.totalorder %v3138_v5, %v3139_v58  ;;  %v3198_v55 = vsel %vm2830_vm7, %v3192_v60, 0.0 }
0x1bc7   :  { %3196 = vadd.xlane.f32.xlu1 %v3195_v41  ;;  %v3125_v39 = vsel %vm3124_vm2, %v3122_v37, %v3123_v1  ;;  %v3193_v0 = vsel %vm6796_vm4, %v3188_v57, 0.0  ;;  %v3141_v22 = vsel %vm3140_vm3, %v3138_v5, %v3139_v58  ;;  %v3194_v45 = vsel %vm6811_vm6, %v3188_v57, 0.0 }
0x1bc8   :  { %v3126_v21 = vrot.slane %v3125_v39, 1  ;;  %v3201_v14 = vsel %vm2826_vm5, %v3193_v0, 0.0  ;;  %v3204_v25 = vsel %vm2830_vm7, %v3194_v45, 0.0  ;;  %v7008_v0 = vadd.f32 %v6776_v52, %v6774_v13 }
0x1bca   :  { %vm3127_vm9 = vcmp.lt.s32.totalorder %v3125_v39, %v3126_v21 }
0x1bcb   :  { %3199 = vadd.xlane.f32.xlu1 %v3198_v55  ;;  %v3128_v36 = vsel %vm3127_vm9, %v3125_v39, %v3126_v21 }
0x1bcc   :  { %v6988_v19 = vsel %vm2912_vm11, %v3141_v22, %v3128_v36 }
0x1bcf   :  { %3202 = vadd.xlane.f32.xlu1 %v3201_v14 }
0x1bd3   :  { %3205 = vadd.xlane.f32.xlu1 %v3204_v25 }
0x1be4   :  { %3270 = vperm.xlu1 %5847, %v6832_v29  }
0x1be8   :  { %5848 = vset.pattern.permute.xlu1 %v7859_v51 }
0x1c54   :  { %v3197_v56 = vpop.xlane.xlu1 %3196 }
0x1c55   :  { %v3207_v61 = vadd.f32 %v3197_v56, %v6844_v7 }
0x1c57   :  { %v3211_v6 = vsel %vm2826_vm5, %v3207_v61, -inf }
0x1c58   :  { %v3200_v62 = vpop.xlane.xlu1 %3199 }
0x1c59   :  { %v3208_v63 = vadd.f32 %v3200_v62, %v6839_v59  ;;  %v3264_v62 = vrot.slane %v7008_v0, 1 }
0x1c5b   :  { %v3212_v48 = vsel %vm2830_vm7, %v3208_v63, -inf }
0x1c5c   :  { %v3213_v3 = vmax.f32 %v3211_v6, %v3212_v48  ;;  %v3203_v17 = vpop.xlane.xlu1 %3202 }
0x1c5d   :  { %v3209_v16 = vadd.f32 %v3203_v17, %v6844_v7 }
0x1c5e   :  { %v3214_v20 = vrot.slane %v3213_v3, 4 }
0x1c5f   :  { %v3220_v53 = vsel %vm2826_vm5, %v3209_v16, -inf }
0x1c60   :  { %v3215_v49 = vmax.f32 %v3213_v3, %v3214_v20  ;;  %v3206_v18 = vpop.xlane.xlu1 %3205 }
0x1c61   :  { %v3210_v37 = vadd.f32 %v3206_v18, %v6839_v59 }
0x1c62   :  { %v3216_v44 = vrot.slane %v3215_v49, 2 }
0x1c63   :  { %v3221_v5 = vsel %vm2830_vm7, %v3210_v37, -inf }
0x1c64   :  { %v3217_v1 = vmax.f32 %v3215_v49, %v3216_v44  ;;  %v3222_v58 = vmax.f32 %v3220_v53, %v3221_v5 }
0x1c66   :  { %v3218_v24 = vrot.slane %v3217_v1, 1  ;;  %v3223_v41 = vrot.slane %v3222_v58, 4 }
0x1c68   :  { %v3219_v60 = vmax.f32 %v3217_v1, %v3218_v24  ;;  %v3224_v57 = vmax.f32 %v3222_v58, %v3223_v41 }
0x1c6a   :  { %vm3229_vm10 = vcmp.eq.f32.partialorder %v3207_v61, %v3219_v60  ;;  %vm3230_vm14 = vcmp.eq.f32.partialorder %v3208_v63, %v3219_v60  ;;  %v3225_v39 = vrot.slane %v3224_v57, 2  ;;  %v7013_v63 = vpop.permute.xlu1 %3270  ;;  %v3267_v18 = vadd.f32 %v3219_v60, %v7008_v0 }
0x1c6b   :  { %v3233_v21 = vsel %vm3229_vm10, %v6160_v42, 9  ;;  %v3234_v55 = vsel %vm3230_vm14, %v6801_v30, 9  ;;  %vm7854_vm10 = vcmp.eq.s32.totalorder %v7013_v63, 1 }
0x1c6c   :  { %v3237_v36 = vsel %vm2826_vm5, %v3233_v21, 2147483647  ;;  %v3238_v22 = vsel %vm2830_vm7, %v3234_v55, 2147483647  ;;  %v3226_v14 = vmax.f32 %v3224_v57, %v3225_v39 }
0x1c6d   :  { %vm3239_vm15 = vcmp.lt.s32.totalorder %v3237_v36, %v3238_v22 }
0x1c6e   :  { %v3240_v45 = vsel %vm3239_vm15, %v3237_v36, %v3238_v22  ;;  %v3227_v25 = vrot.slane %v3226_v14, 1 }
0x1c6f   :  { %v3241_v56 = vrot.slane %v3240_v45, 4 }
0x1c70   :  { %v3228_v61 = vmax.f32 %v3226_v14, %v3227_v25  ;;  %v2584_v14 = vadd.f32 %v6737_v11, %v6727_v40 }
0x1c71   :  { %vm3242_vm2 = vcmp.lt.s32.totalorder %v3240_v45, %v3241_v56 }
0x1c72   :  { %v3243_v6 = vsel %vm3242_vm2, %v3240_v45, %v3241_v56  ;;  %vm3231_vm3 = vcmp.eq.f32.partialorder %v3209_v16, %v3228_v61  ;;  %vm3232_vm9 = vcmp.eq.f32.partialorder %v3210_v37, %v3228_v61  ;;  %v3268_v52 = vadd.f32 %v3264_v62, %v3228_v61 }
0x1c73   :  { %v3235_v48 = vsel %vm3231_vm3, %v6160_v42, 9  ;;  %v3236_v3 = vsel %vm3232_vm9, %v6801_v30, 9  ;;  %v3244_v17 = vrot.slane %v3243_v6, 2  ;;  %v2589_v62 = vadd.f32 %v6735_v46, %v6727_v40 }
0x1c74   :  { %v3250_v20 = vsel %vm2826_vm5, %v3235_v48, 2147483647  ;;  %v3251_v49 = vsel %vm2830_vm7, %v3236_v3, 2147483647  ;;  %v3275_v44 = vrot.slane %v3268_v52, 7  ;;  %v2594_v3 = vadd.f32 %v2584_v14, %v6709_v26 }
0x1c75   :  { %vm3252_vm14 = vcmp.lt.s32.totalorder %v3250_v20, %v3251_v49  ;;  %vm3245_vm15 = vcmp.lt.s32.totalorder %v3243_v6, %v3244_v17  ;;  %v7860_v26 = vmov 6  }
0x1c76   :  { %v3253_v53 = vsel %vm3252_vm14, %v3250_v20, %v3251_v49  ;;  %v3276_v16 = vsel %vm2912_vm11, %v3275_v44, %v3267_v18  ;;  %v3246_v58 = vsel %vm3245_vm15, %v3243_v6, %v3244_v17  ;;  %v2595_v49 = vadd.f32 %v2589_v62, %v6711_v33  ;;  %5849 = vset.pattern.permute.xlu0 %v7860_v26 }
0x1c77   :  { %v3254_v37 = vrot.slane %v3253_v53, 4  ;;  %v7025_v5 = vsel %vm7854_vm10, %v3276_v16, %v6971_v23  ;;  %v3247_v57 = vrot.slane %v3246_v58, 1  ;;  %v2602_v46 = vsel %vm53_vm0, %v2594_v3, 0.0 }
0x1c78   :  { %v3286_v1 = vrot.slane %v7025_v5, %v6783_v9  ;;  %v2605_v18 = vsel %vm53_vm0, %v2595_v49, 0.0 }
0x1c79   :  { %vm3255_vm2 = vcmp.lt.s32.totalorder %v3253_v53, %v3254_v37  ;;  %vm3248_vm9 = vcmp.lt.s32.totalorder %v3246_v58, %v3247_v57 }
0x1c7a   :  { %v3256_v24 = vsel %vm3255_vm2, %v3253_v53, %v3254_v37  ;;  %v3287_v41 = vcombine.high %v3286_v1, %v3286_v1  ;;  %v3294_v60 = vrot.slane %v3286_v1, %v6783_v9  ;;  %v3249_v52 = vsel %vm3248_vm9, %v3246_v58, %v3247_v57 }
0x1c7b   :  { %v3257_v39 = vrot.slane %v3256_v24, 2 }
0x1c7c   :  { %v3305_v21 = vrot.slane %v3294_v60, %v6163_v47  ;;  %v3301_v55 = vrot.slane %v3287_v41, %v6783_v9 }
0x1c7d   :  { %vm3258_vm3 = vcmp.lt.s32.totalorder %v3256_v24, %v3257_v39 }
0x1c7e   :  { %v3312_v23 = vsel %vm6796_vm4, %v3305_v21, 0.0  ;;  %v3309_v36 = vrot.slane %v3301_v55, %v6163_v47  ;;  %v3259_v22 = vsel %vm3258_vm3, %v3256_v24, %v3257_v39  ;;  %v3313_v11 = vsel %vm6811_vm6, %v3305_v21, 0.0 }
0x1c7f   :  { %v3316_v45 = vsel %vm2826_vm5, %v3312_v23, 0.0  ;;  %v3260_v25 = vrot.slane %v3259_v22, 1  ;;  %v3319_v40 = vsel %vm2830_vm7, %v3313_v11, 0.0 }
0x1c80   :  { %3317 = vadd.xlane.f32.xlu1 %v3316_v45  ;;  %v3315_v56 = vsel %vm6811_vm6, %v3309_v36, 0.0  ;;  %v3314_v61 = vsel %vm6796_vm4, %v3309_v36, 0.0 }
0x1c81   :  { %v3325_v6 = vsel %vm2830_vm7, %v3315_v56, 0.0  ;;  %vm3261_vm14 = vcmp.lt.s32.totalorder %v3259_v22, %v3260_v25  ;;  %v3322_v17 = vsel %vm2826_vm5, %v3314_v61, 0.0 }
0x1c82   :  { %3326 = vadd.xlane.f32.xlu0 %v3325_v6  ;;  %v3262_v48 = vsel %vm3261_vm14, %v3259_v22, %v3260_v25 }
0x1c83   :  { %v7050_v20 = vsel %vm2912_vm11, %v3262_v48, %v3249_v52 }
0x1c84   :  { %3323 = vadd.xlane.f32.xlu1 %v3322_v17 }
0x1c86   :  { %3320 = vadd.xlane.f32.xlu0 %v3319_v40 }
0x1c88   :  { %2603 = vadd.xlane.f32.xlu1 %v2602_v46 }
0x1c8a   :  { %2606 = vadd.xlane.f32.xlu0 %v2605_v18 }
0x1c99   :  { %3391 = vperm.xlu1 %5848, %v6832_v29  }
0x1d0d   :  { %v3318_v44 = vpop.xlane.xlu1 %3317 }
0x1d0e   :  { %v3328_v33 = vadd.f32 %v3318_v44, %v6844_v7 }
0x1d0f   :  { %v3327_v53 = vpop.xlane.xlu0 %3326 }
0x1d10   :  { %v3331_v16 = vadd.f32 %v3327_v53, %v6839_v59  ;;  %v3332_v21 = vsel %vm2826_vm5, %v3328_v33, -inf }
0x1d11   :  { %v3324_v37 = vpop.xlane.xlu1 %3323 }
0x1d12   :  { %v3330_v1 = vadd.f32 %v3324_v37, %v6844_v7  ;;  %v3342_v24 = vsel %vm2830_vm7, %v3331_v16, -inf  ;;  %v3385_v37 = vrot.slane %v7008_v0, 3 }
0x1d13   :  { %v3321_v58 = vpop.xlane.xlu0 %3320 }
0x1d14   :  { %v3341_v41 = vsel %vm2826_vm5, %v3330_v1, -inf  ;;  %v3329_v60 = vadd.f32 %v3321_v58, %v6839_v59 }
0x1d15   :  { %v3343_v57 = vmax.f32 %v3341_v41, %v3342_v24  ;;  %v2604_v39 = vpop.xlane.xlu1 %2603 }
0x1d16   :  { %v3333_v55 = vsel %vm2830_vm7, %v3329_v60, -inf  ;;  %v2610_v23 = vmul.f32 0.03125, %v2604_v39 }
0x1d17   :  { %v3344_v36 = vrot.slane %v3343_v57, 4  ;;  %v3334_v22 = vmax.f32 %v3332_v21, %v3333_v55  ;;  %v2607_v14 = vpop.xlane.xlu0 %2606  ;;  %v3384_v21 = vrot.slane %v7008_v0, 2 }
0x1d18   :  { %v7066_v45 = vsub.f32 %v2594_v3, %v2610_v23  ;;  %v2611_v25 = vmul.f32 0.03125, %v2607_v14 }
0x1d19   :  { %v3345_v56 = vmax.f32 %v3343_v57, %v3344_v36  ;;  %v3335_v61 = vrot.slane %v3334_v22, 4  ;;  %v7077_v58 = vpop.permute.xlu1 %3391 }
0x1d1a   :  { %v7068_v62 = vsub.f32 %v2595_v49, %v2611_v25  ;;  %v2618_v6 = vmul.f32 %v7066_v45, %v7066_v45  ;;  %vm7857_vm3 = vcmp.eq.s32.totalorder %v7077_v58, 1 }
0x1d1b   :  { %v3346_v11 = vrot.slane %v3345_v56, 2  ;;  %v3336_v52 = vmax.f32 %v3334_v22, %v3335_v61 }
0x1d1c   :  { %v2626_v48 = vsel %vm53_vm0, %v2618_v6, 0.0  ;;  %v2619_v17 = vmul.f32 %v7068_v62, %v7068_v62 }
0x1d1d   :  { %v3347_v40 = vmax.f32 %v3345_v56, %v3346_v11  ;;  %v3337_v46 = vrot.slane %v3336_v52, 2  ;;  %2627 = vadd.xlane.f32.xlu0 %v2626_v48 }
0x1d1e   :  { %v2629_v44 = vsel %vm53_vm0, %v2619_v17, 0.0 }
0x1d1f   :  { %v3348_v3 = vrot.slane %v3347_v40, 1  ;;  %v3338_v18 = vmax.f32 %v3336_v52, %v3337_v46 }
0x1d21   :  { %v3349_v53 = vmax.f32 %v3347_v40, %v3348_v3  ;;  %v3339_v49 = vrot.slane %v3338_v18, 1  ;;  %2630 = vadd.xlane.f32.xlu0 %v2629_v44 }
0x1d23   :  { %vm3352_vm15 = vcmp.eq.f32.partialorder %v3330_v1, %v3349_v53  ;;  %vm3353_vm2 = vcmp.eq.f32.partialorder %v3331_v16, %v3349_v53  ;;  %v3340_v24 = vmax.f32 %v3338_v18, %v3339_v49  ;;  %v3389_v41 = vadd.f32 %v3385_v37, %v3349_v53 }
0x1d24   :  { %v3356_v57 = vsel %vm3352_vm15, %v6160_v42, 9  ;;  %v3357_v39 = vsel %vm3353_vm2, %v6801_v30, 9 }
0x1d25   :  { %v3371_v55 = vsel %vm2826_vm5, %v3356_v57, 2147483647  ;;  %v3372_v23 = vsel %vm2830_vm7, %v3357_v39, 2147483647  ;;  %vm3350_vm9 = vcmp.eq.f32.partialorder %v3328_v33, %v3340_v24  ;;  %vm3351_vm14 = vcmp.eq.f32.partialorder %v3329_v60, %v3340_v24 }
0x1d26   :  { %vm3373_vm12 = vcmp.lt.s32.totalorder %v3371_v55, %v3372_v23  ;;  %v3354_v1 = vsel %vm3350_vm9, %v6160_v42, 9  ;;  %v3355_v16 = vsel %vm3351_vm14, %v6801_v30, 9  ;;  %v3388_v36 = vadd.f32 %v3384_v21, %v3340_v24 }
0x1d27   :  { %v3374_v22 = vsel %vm3373_vm12, %v3371_v55, %v3372_v23  ;;  %v3358_v14 = vsel %vm2826_vm5, %v3354_v1, 2147483647  ;;  %v3359_v25 = vsel %vm2830_vm7, %v3355_v16, 2147483647  ;;  %v3396_v56 = vrot.slane %v3389_v41, 7 }
0x1d28   :  { %v3375_v61 = vrot.slane %v3374_v22, 4  ;;  %vm3360_vm15 = vcmp.lt.s32.totalorder %v3358_v14, %v3359_v25 }
0x1d29   :  { %v3361_v6 = vsel %vm3360_vm15, %v3358_v14, %v3359_v25  ;;  %v3397_v11 = vsel %vm2912_vm11, %v3396_v56, %v3388_v36  ;;  %v7861_v56 = vmov 7  }
0x1d2a   :  { %vm3376_vm2 = vcmp.lt.s32.totalorder %v3374_v22, %v3375_v61  ;;  %v3362_v33 = vrot.slane %v3361_v6, 4  ;;  %v7093_v60 = vsel %vm7857_vm3, %v3397_v11, %v7025_v5 }
0x1d2b   :  { %v3377_v52 = vsel %vm3376_vm2, %v3374_v22, %v3375_v61  ;;  %v3407_v48 = vrot.slane %v7093_v60, %v6783_v9 }
0x1d2c   :  { %vm3363_vm12 = vcmp.lt.s32.totalorder %v3361_v6, %v3362_v33  ;;  %v3378_v17 = vrot.slane %v3377_v52, 2 }
0x1d2d   :  { %v3364_v40 = vsel %vm3363_vm12, %v3361_v6, %v3362_v33  ;;  %v3408_v46 = vcombine.high %v3407_v48, %v3407_v48  ;;  %v3415_v3 = vrot.slane %v3407_v48, %v6783_v9 }
0x1d2e   :  { %v3365_v18 = vrot.slane %v3364_v40, 2  ;;  %vm3379_vm9 = vcmp.lt.s32.totalorder %v3377_v52, %v3378_v17 }
0x1d2f   :  { %v3426_v44 = vrot.slane %v3415_v3, %v6163_v47  ;;  %v3422_v53 = vrot.slane %v3408_v46, %v6783_v9  ;;  %v3380_v49 = vsel %vm3379_vm9, %v3377_v52, %v3378_v17 }
0x1d30   :  { %vm3366_vm14 = vcmp.lt.s32.totalorder %v3364_v40, %v3365_v18  ;;  %v3381_v5 = vrot.slane %v3380_v49, 1 }
0x1d31   :  { %v3434_v37 = vsel %vm6811_vm6, %v3426_v44, 0.0  ;;  %v3433_v24 = vsel %vm6796_vm4, %v3426_v44, 0.0  ;;  %v3430_v41 = vrot.slane %v3422_v53, %v6163_v47  ;;  %v3367_v57 = vsel %vm3366_vm14, %v3364_v40, %v3365_v18 }
0x1d32   :  { %v3440_v39 = vsel %vm2830_vm7, %v3434_v37, 0.0  ;;  %v3437_v21 = vsel %vm2826_vm5, %v3433_v24, 0.0  ;;  %v3368_v55 = vrot.slane %v3367_v57, 1  ;;  %vm3382_vm15 = vcmp.lt.s32.totalorder %v3380_v49, %v3381_v5 }
0x1d33   :  { %3441 = vadd.xlane.f32.xlu0 %v3440_v39  ;;  %3438 = vadd.xlane.f32.xlu1 %v3437_v21  ;;  %v3435_v23 = vsel %vm6796_vm4, %v3430_v41, 0.0  ;;  %v3383_v16 = vsel %vm3382_vm15, %v3380_v49, %v3381_v5  ;;  %v3436_v14 = vsel %vm6811_vm6, %v3430_v41, 0.0 }
0x1d34   :  { %vm3369_vm2 = vcmp.lt.s32.totalorder %v3367_v57, %v3368_v55  ;;  %v3443_v36 = vsel %vm2826_vm5, %v3435_v23, 0.0  ;;  %v3446_v25 = vsel %vm2830_vm7, %v3436_v14, 0.0 }
0x1d35   :  { %v3370_v1 = vsel %vm3369_vm2, %v3367_v57, %v3368_v55 }
0x1d36   :  { %v7111_v22 = vsel %vm2912_vm11, %v3383_v16, %v3370_v1 }
0x1d37   :  { %3444 = vadd.xlane.f32.xlu0 %v3443_v36 }
0x1d3b   :  { %3447 = vadd.xlane.f32.xlu0 %v3446_v25 }
0x1d51   :  { %3512 = vperm.xlu0 %5849, %v6832_v29  }
0x1d55   :  { %5850 = vset.pattern.permute.xlu0 %v7861_v56 }
0x1d56   :  { %3633 = vperm.xlu0 %5850, %v6832_v29  }
0x1daa   :  { %v2628_v61 = vpop.xlane.xlu0 %2627 }
0x1dab   :  { %v2634_v6 = vmul.f32 0.03125, %v2628_v61 }
0x1dad   :  { %v2638_v11 = vadd.f32 1e-12, %v2634_v6 }
0x1dae   :  { %v2631_v33 = vpop.xlane.xlu0 %2630 }
0x1daf   :  { %5991 = vrsqrt.f32 %v2638_v11  ;;  %v2635_v52 = vmul.f32 0.03125, %v2631_v33 }
0x1db1   :  { %v2639_v48 = vadd.f32 1e-12, %v2635_v52 }
0x1db3   :  { %5993 = vrsqrt.f32 %v2639_v48 }
0x1db9   :  { %v5992_v17 = vpop.eup %5991 }
0x1dba   :  { %v2646_v40 = vmul.f32 %v5992_v17, %v7066_v45 }
0x1dbc   :  { %v2654_v46 = vmul.f32 %v6756_v8, %v2646_v40 }
0x1dbd   :  { %v5994_v3 = vpop.eup %5993 }
0x1dbe   :  { %v2662_v18 = vadd.f32 %v6761_v15, %v2654_v46  ;;  %v2647_v44 = vmul.f32 %v5994_v3, %v7068_v62 }
0x1dc0   :  { %v3442_v53 = vpop.xlane.xlu0 %3441  ;;  %v3439_v49 = vpop.xlane.xlu1 %3438  ;;  %5561 = vmatprep.mubr.msk.f32.mxu1 %vm53_vm0, %v2662_v18  ;;  %v2655_v5 = vmul.f32 %v6756_v8, %v2647_v44 }
0x1dc1   :  { %v3450_v37 = vadd.f32 %v3442_v53, %v6839_v59  ;;  %v3449_v24 = vadd.f32 %v3439_v49, %v6844_v7  ;;  %v3506_v53 = vrot.slane %v7008_v0, 5 }
0x1dc2   :  { %v2663_v41 = vadd.f32 %v6761_v15, %v2655_v5  ;;  %v3505_v5 = vrot.slane %v7008_v0, 4 }
0x1dc3   :  { %v3454_v45 = vsel %vm2830_vm7, %v3450_v37, -inf  ;;  %v3453_v57 = vsel %vm2826_vm5, %v3449_v24, -inf }
0x1dc4   :  { %v3455_v39 = vmax.f32 %v3453_v57, %v3454_v45  ;;  %v3445_v21 = vpop.xlane.xlu0 %3444  ;;  %5562 = vmatmul.mubr.msk.f32.gmra.mrb[30].mxu1 %vm53_vm0, %v2663_v41 }
0x1dc5   :  { %v3451_v55 = vadd.f32 %v3445_v21, %v6844_v7 }
0x1dc6   :  { %v3456_v62 = vrot.slane %v3455_v39, 4 }
0x1dc7   :  { %v3462_v36 = vsel %vm2826_vm5, %v3451_v55, -inf }
0x1dc8   :  { %v3457_v23 = vmax.f32 %v3455_v39, %v3456_v62  ;;  %v3448_v1 = vpop.xlane.xlu0 %3447 }
0x1dc9   :  { %v3452_v8 = vadd.f32 %v3448_v1, %v6839_v59 }
0x1dca   :  { %v3458_v16 = vrot.slane %v3457_v23, 2 }
0x1dcb   :  { %v3463_v15 = vsel %vm2830_vm7, %v3452_v8, -inf }
0x1dcc   :  { %v3459_v14 = vmax.f32 %v3457_v23, %v3458_v16  ;;  %v3464_v25 = vmax.f32 %v3462_v36, %v3463_v15 }
0x1dce   :  { %v3460_v61 = vrot.slane %v3459_v14, 1  ;;  %v3465_v6 = vrot.slane %v3464_v25, 4 }
0x1dd0   :  { %v3461_v11 = vmax.f32 %v3459_v14, %v3460_v61  ;;  %v3466_v33 = vmax.f32 %v3464_v25, %v3465_v6  ;;  %v7140_v49 = vpop.permute.xlu0 %3512 }
0x1dd2   :  { %vm3471_vm12 = vcmp.eq.f32.partialorder %v3449_v24, %v3461_v11  ;;  %vm3472_vm0 = vcmp.eq.f32.partialorder %v3450_v37, %v3461_v11  ;;  %v3467_v52 = vrot.slane %v3466_v33, 2  ;;  %v3509_v62 = vadd.f32 %v3505_v5, %v3461_v11 }
0x1dd3   :  { %v3475_v7 = vsel %vm3471_vm12, %v6160_v42, 9  ;;  %v3476_v48 = vsel %vm3472_vm0, %v6801_v30, 9  ;;  %vm7862_vm12 = vcmp.eq.s32.totalorder %v7140_v49, 1 }
0x1dd4   :  { %v3479_v59 = vsel %vm2826_vm5, %v3475_v7, 2147483647  ;;  %v3480_v17 = vsel %vm2830_vm7, %v3476_v48, 2147483647  ;;  %v3468_v40 = vmax.f32 %v3466_v33, %v3467_v52 }
0x1dd5   :  { %vm3481_vm9 = vcmp.lt.s32.totalorder %v3479_v59, %v3480_v17 }
0x1dd6   :  { %v3482_v46 = vsel %vm3481_vm9, %v3479_v59, %v3480_v17  ;;  %v3469_v3 = vrot.slane %v3468_v40, 1 }
0x1dd7   :  { %v3483_v18 = vrot.slane %v3482_v46, 4 }
0x1dd8   :  { %v3470_v44 = vmax.f32 %v3468_v40, %v3469_v3 }
0x1dd9   :  { %vm3484_vm14 = vcmp.lt.s32.totalorder %v3482_v46, %v3483_v18 }
0x1dda   :  { %v3485_v37 = vsel %vm3484_vm14, %v3482_v46, %v3483_v18  ;;  %vm3473_vm15 = vcmp.eq.f32.partialorder %v3451_v55, %v3470_v44  ;;  %vm3474_vm2 = vcmp.eq.f32.partialorder %v3452_v8, %v3470_v44  ;;  %v3510_v24 = vadd.f32 %v3506_v53, %v3470_v44 }
0x1ddb   :  { %v3477_v41 = vsel %vm3473_vm15, %v6160_v42, 9  ;;  %v3478_v45 = vsel %vm3474_vm2, %v6801_v30, 9  ;;  %v3486_v57 = vrot.slane %v3485_v37, 2 }
0x1ddc   :  { %v3492_v39 = vsel %vm2826_vm5, %v3477_v41, 2147483647  ;;  %v3493_v21 = vsel %vm2830_vm7, %v3478_v45, 2147483647  ;;  %v3517_v23 = vrot.slane %v3510_v24, 7  ;;  %v7864_v41 = vmov 8  }
0x1ddd   :  { %vm3494_vm0 = vcmp.lt.s32.totalorder %v3492_v39, %v3493_v21  ;;  %vm3487_vm9 = vcmp.lt.s32.totalorder %v3485_v37, %v3486_v57  ;;  %5851 = vset.pattern.permute.xlu1 %v7864_v41 }
0x1dde   :  { %v3495_v1 = vsel %vm3494_vm0, %v3492_v39, %v3493_v21  ;;  %v3518_v55 = vsel %vm2912_vm11, %v3517_v23, %v3509_v62  ;;  %v3488_v15 = vsel %vm3487_vm9, %v3485_v37, %v3486_v57  ;;  %v7179_v39 = vld [vmem:[%s7849_s13] sm:$0xff]  ;;  %v7185_v23 = vld [vmem:[%s7849_s13 + $0x8] sm:$0x1] }
0x1ddf   :  { %v3496_v8 = vrot.slane %v3495_v1, 4  ;;  %v7152_v16 = vsel %vm7862_vm12, %v3518_v55, %v7093_v60  ;;  %v3489_v11 = vrot.slane %v3488_v15, 1 }
0x1de0   :  { %v3528_v36 = vrot.slane %v7152_v16, %v6783_v9 }
0x1de1   :  { %vm3497_vm14 = vcmp.lt.s32.totalorder %v3495_v1, %v3496_v8  ;;  %vm3490_vm2 = vcmp.lt.s32.totalorder %v3488_v15, %v3489_v11 }
0x1de2   :  { %v3498_v14 = vsel %vm3497_vm14, %v3495_v1, %v3496_v8  ;;  %v3529_v25 = vcombine.high %v3528_v36, %v3528_v36  ;;  %v3536_v61 = vrot.slane %v3528_v36, %v6783_v9  ;;  %v3491_v46 = vsel %vm3490_vm2, %v3488_v15, %v3489_v11 }
0x1de3   :  { %v3499_v6 = vrot.slane %v3498_v14, 2 }
0x1de4   :  { %v3547_v33 = vrot.slane %v3536_v61, %v6163_v47  ;;  %v3543_v52 = vrot.slane %v3529_v25, %v6783_v9 }
0x1de5   :  { %vm3500_vm15 = vcmp.lt.s32.totalorder %v3498_v14, %v3499_v6 }
0x1de6   :  { %v3554_v60 = vsel %vm6796_vm4, %v3547_v33, 0.0  ;;  %v3551_v7 = vrot.slane %v3543_v52, %v6163_v47  ;;  %v3501_v48 = vsel %vm3500_vm15, %v3498_v14, %v3499_v6  ;;  %v3555_v37 = vsel %vm6811_vm6, %v3547_v33, 0.0 }
0x1de7   :  { %v3558_v59 = vsel %vm2826_vm5, %v3554_v60, 0.0  ;;  %v3502_v17 = vrot.slane %v3501_v48, 1  ;;  %v3561_v24 = vsel %vm2830_vm7, %v3555_v37, 0.0  ;;  %v7195_v37 = vpop.permute.xlu0 %3633 }
0x1de8   :  { %3559 = vadd.xlane.f32.xlu1 %v3558_v59  ;;  %v3556_v40 = vsel %vm6796_vm4, %v3551_v7, 0.0  ;;  %v3557_v53 = vsel %vm6811_vm6, %v3551_v7, 0.0  ;;  %vm7863_vm2 = vcmp.eq.s32.totalorder %v7195_v37, 1 }
0x1de9   :  { %vm3503_vm0 = vcmp.lt.s32.totalorder %v3501_v48, %v3502_v17  ;;  %v3564_v18 = vsel %vm2826_vm5, %v3556_v40, 0.0  ;;  %v3567_v5 = vsel %vm2830_vm7, %v3557_v53, 0.0 }
0x1dea   :  { %v3504_v3 = vsel %vm3503_vm0, %v3501_v48, %v3502_v17 }
0x1deb   :  { %v7167_v44 = vsel %vm2912_vm11, %v3504_v3, %v3491_v46 }
0x1dec   :  { %3565 = vadd.xlane.f32.xlu1 %v3564_v18  ;;  %v3627_v18 = vrot.slane %v7008_v0, 7 }
0x1df0   :  { %3568 = vadd.xlane.f32.xlu1 %v3567_v5 }
0x1df4   :  { %3562 = vadd.xlane.f32.xlu1 %v3561_v24 }
0x1e75   :  { %v3560_v45 = vpop.xlane.xlu1 %3559 }
0x1e76   :  { %v3570_v55 = vadd.f32 %v7179_v39, %v3560_v45 }
0x1e78   :  { %v3574_v6 = vsel %vm2826_vm5, %v3570_v55, -inf }
0x1e79   :  { %v3566_v57 = vpop.xlane.xlu1 %3565 }
0x1e7a   :  { %v3572_v21 = vadd.f32 %v7179_v39, %v3566_v57 }
0x1e7c   :  { %v3583_v8 = vsel %vm2826_vm5, %v3572_v21, -inf }
0x1e7d   :  { %v3569_v62 = vpop.xlane.xlu1 %3568 }
0x1e7e   :  { %v3573_v1 = vadd.f32 %v7185_v23, %v3569_v62 }
0x1e80   :  { %v3584_v36 = vsel %vm2830_vm7, %v3573_v1, -inf }
0x1e81   :  { %v3585_v15 = vmax.f32 %v3583_v8, %v3584_v36  ;;  %v3563_v14 = vpop.xlane.xlu1 %3562  ;;  %v3626_v36 = vrot.slane %v7008_v0, 6 }
0x1e82   :  { %v3571_v25 = vadd.f32 %v7185_v23, %v3563_v14 }
0x1e83   :  { %v3586_v61 = vrot.slane %v3585_v15, 4 }
0x1e84   :  { %v3575_v11 = vsel %vm2830_vm7, %v3571_v25, -inf }
0x1e85   :  { %v3587_v33 = vmax.f32 %v3585_v15, %v3586_v61  ;;  %v3576_v52 = vmax.f32 %v3574_v6, %v3575_v11 }
0x1e87   :  { %v3588_v60 = vrot.slane %v3587_v33, 2  ;;  %v3577_v7 = vrot.slane %v3576_v52, 4 }
0x1e89   :  { %v3589_v48 = vmax.f32 %v3587_v33, %v3588_v60  ;;  %v3578_v59 = vmax.f32 %v3576_v52, %v3577_v7 }
0x1e8b   :  { %v3590_v17 = vrot.slane %v3589_v48, 1  ;;  %v3579_v40 = vrot.slane %v3578_v59, 2 }
0x1e8d   :  { %v3591_v46 = vmax.f32 %v3589_v48, %v3590_v17  ;;  %v3580_v3 = vmax.f32 %v3578_v59, %v3579_v40 }
0x1e8f   :  { %vm3594_vm9 = vcmp.eq.f32.partialorder %v3572_v21, %v3591_v46  ;;  %vm3595_vm14 = vcmp.eq.f32.partialorder %v3573_v1, %v3591_v46  ;;  %v3581_v53 = vrot.slane %v3580_v3, 1  ;;  %v3631_v5 = vadd.f32 %v3627_v18, %v3591_v46 }
0x1e90   :  { %v3598_v24 = vsel %vm3594_vm9, %v6160_v42, 9  ;;  %v3599_v45 = vsel %vm3595_vm14, %v6801_v30, 9 }
0x1e91   :  { %v3613_v57 = vsel %vm2826_vm5, %v3598_v24, 2147483647  ;;  %v3614_v62 = vsel %vm2830_vm7, %v3599_v45, 2147483647  ;;  %v3582_v8 = vmax.f32 %v3580_v3, %v3581_v53  ;;  %v3638_v15 = vrot.slane %v3631_v5, 7 }
0x1e92   :  { %vm3615_vm15 = vcmp.lt.s32.totalorder %v3613_v57, %v3614_v62 }
0x1e93   :  { %v3616_v21 = vsel %vm3615_vm15, %v3613_v57, %v3614_v62  ;;  %vm3592_vm0 = vcmp.eq.f32.partialorder %v3570_v55, %v3582_v8  ;;  %vm3593_vm13 = vcmp.eq.f32.partialorder %v3571_v25, %v3582_v8  ;;  %v3630_v1 = vadd.f32 %v3626_v36, %v3582_v8 }
0x1e94   :  { %v3617_v14 = vrot.slane %v3616_v21, 4  ;;  %v3596_v61 = vsel %vm3592_vm0, %v6160_v42, 9  ;;  %v3597_v6 = vsel %vm3593_vm13, %v6801_v30, 9 }
0x1e95   :  { %v3600_v11 = vsel %vm2826_vm5, %v3596_v61, 2147483647  ;;  %v3601_v33 = vsel %vm2830_vm7, %v3597_v6, 2147483647  ;;  %v3639_v52 = vsel %vm2912_vm11, %v3638_v15, %v3630_v1 }
0x1e96   :  { %vm3618_vm9 = vcmp.lt.s32.totalorder %v3616_v21, %v3617_v14  ;;  %vm3602_vm14 = vcmp.lt.s32.totalorder %v3600_v11, %v3601_v33  ;;  %v7211_v0 = vsel %vm7863_vm2, %v3639_v52, %v7152_v16 }
0x1e97   :  { %v3603_v55 = vsel %vm3602_vm14, %v3600_v11, %v3601_v33  ;;  %v3649_v25 = vrot.slane %v7211_v0, %v6783_v9  ;;  %v7215_v60 = vpop.f32.mrb[30].mxu1  ;;  %v3619_v59 = vsel %vm3618_vm9, %v3616_v21, %v3617_v14 }
0x1e98   :  { %v3604_v7 = vrot.slane %v3603_v55, 4  ;;  %v7217_v48 = vpop.f32.mrb[31].mxu1  ;;  %v3620_v16 = vrot.slane %v3619_v59, 2 }
0x1e99   :  { %v3650_v17 = vcombine.high %v3649_v25, %v3649_v25  ;;  %v3657_v40 = vrot.slane %v3649_v25, %v6783_v9 }
0x1e9a   :  { %vm3605_vm13 = vcmp.lt.s32.totalorder %v3603_v55, %v3604_v7  ;;  %vm3621_vm15 = vcmp.lt.s32.totalorder %v3619_v59, %v3620_v16 }
0x1e9b   :  { %v3668_v46 = vrot.slane %v3657_v40, %v6163_v47  ;;  %v3664_v3 = vrot.slane %v3650_v17, %v6783_v9  ;;  %v3606_v18 = vsel %vm3605_vm13, %v3603_v55, %v3604_v7  ;;  %v3622_v15 = vsel %vm3621_vm15, %v3619_v59, %v3620_v16 }
0x1e9c   :  { %v3607_v8 = vrot.slane %v3606_v18, 2  ;;  %v3623_v14 = vrot.slane %v3622_v15, 1  ;;  %v7865_v55 = vmov 9  }
0x1e9d   :  { %v3676_v53 = vsel %vm6811_vm6, %v3668_v46, 0.0  ;;  %v3675_v5 = vsel %vm6796_vm4, %v3668_v46, 0.0  ;;  %v3672_v24 = vrot.slane %v3664_v3, %v6163_v47  ;;  %5852 = vset.pattern.permute.xlu0 %v7865_v55 }
0x1e9e   :  { %v3682_v45 = vsel %vm2830_vm7, %v3676_v53, 0.0  ;;  %v3679_v57 = vsel %vm2826_vm5, %v3675_v5, 0.0  ;;  %vm3608_vm0 = vcmp.lt.s32.totalorder %v3606_v18, %v3607_v8  ;;  %vm3624_vm9 = vcmp.lt.s32.totalorder %v3622_v15, %v3623_v14 }
0x1e9f   :  { %3683 = vadd.xlane.f32.xlu1 %v3682_v45  ;;  %3680 = vadd.xlane.f32.xlu0 %v3679_v57  ;;  %v3677_v62 = vsel %vm6796_vm4, %v3672_v24, 0.0  ;;  %v3678_v21 = vsel %vm6811_vm6, %v3672_v24, 0.0  ;;  %v3609_v1 = vsel %vm3608_vm0, %v3606_v18, %v3607_v8  ;;  %v3625_v33 = vsel %vm3624_vm9, %v3622_v15, %v3623_v14 }
0x1ea0   :  { %v3685_v36 = vsel %vm2826_vm5, %v3677_v62, 0.0  ;;  %v3610_v61 = vrot.slane %v3609_v1, 1  ;;  %v3688_v6 = vsel %vm2830_vm7, %v3678_v21, 0.0 }
0x1ea2   :  { %vm3611_vm14 = vcmp.lt.s32.totalorder %v3609_v1, %v3610_v61 }
0x1ea3   :  { %3686 = vadd.xlane.f32.xlu1 %v3685_v36  ;;  %v3612_v11 = vsel %vm3611_vm14, %v3609_v1, %v3610_v61 }
0x1ea4   :  { %v7236_v52 = vsel %vm2912_vm11, %v3625_v33, %v3612_v11 }
0x1ea7   :  { %3689 = vadd.xlane.f32.xlu1 %v3688_v6 }
0x1eb8   :  { %3754 = vperm.xlu1 %5851, %v6832_v29  }
0x1f2c   :  { %v3684_v25 = vpop.xlane.xlu1 %3683  ;;  %v3681_v7 = vpop.xlane.xlu0 %3680 }
0x1f2d   :  { %v3692_v59 = vadd.f32 %v7185_v23, %v3684_v25  ;;  %v3691_v17 = vadd.f32 %v7179_v39, %v3681_v7  ;;  %v7252_v25 = vadd.f32 %v7217_v48, %v6774_v13 }
0x1f2f   :  { %v3696_v40 = vsel %vm2830_vm7, %v3692_v59, -inf  ;;  %v3695_v46 = vsel %vm2826_vm5, %v3691_v17, -inf }
0x1f30   :  { %v3697_v3 = vmax.f32 %v3695_v46, %v3696_v40  ;;  %v3687_v16 = vpop.xlane.xlu1 %3686 }
0x1f31   :  { %v3693_v53 = vadd.f32 %v7179_v39, %v3687_v16 }
0x1f32   :  { %v3698_v18 = vrot.slane %v3697_v3, 4 }
0x1f33   :  { %v3704_v62 = vsel %vm2826_vm5, %v3693_v53, -inf }
0x1f34   :  { %v3699_v5 = vmax.f32 %v3697_v3, %v3698_v18  ;;  %v3690_v24 = vpop.xlane.xlu1 %3689 }
0x1f35   :  { %v3694_v45 = vadd.f32 %v7185_v23, %v3690_v24 }
0x1f36   :  { %v3700_v57 = vrot.slane %v3699_v5, 2 }
0x1f37   :  { %v3705_v8 = vsel %vm2830_vm7, %v3694_v45, -inf }
0x1f38   :  { %v3701_v36 = vmax.f32 %v3699_v5, %v3700_v57  ;;  %v3706_v15 = vmax.f32 %v3704_v62, %v3705_v8  ;;  %v7257_v5 = vpop.permute.xlu1 %3754 }
0x1f3a   :  { %v3702_v21 = vrot.slane %v3701_v36, 1  ;;  %v3707_v1 = vrot.slane %v3706_v15, 4 }
0x1f3c   :  { %v3703_v14 = vmax.f32 %v3701_v36, %v3702_v21  ;;  %v3708_v61 = vmax.f32 %v3706_v15, %v3707_v1 }
0x1f3e   :  { %vm3713_vm13 = vcmp.eq.f32.partialorder %v3691_v17, %v3703_v14  ;;  %vm3714_vm15 = vcmp.eq.f32.partialorder %v3692_v59, %v3703_v14  ;;  %v3709_v6 = vrot.slane %v3708_v61, 2  ;;  %v3748_v59 = vrot.slane %v7252_v25, 1 }
0x1f3f   :  { %v3717_v11 = vsel %vm3713_vm13, %v6160_v42, 9  ;;  %v3718_v33 = vsel %vm3714_vm15, %v6801_v30, 9  ;;  %vm7869_vm15 = vcmp.eq.s32.totalorder %v7257_v5, 1  ;;  %v3751_v21 = vadd.f32 %v3703_v14, %v7252_v25 }
0x1f40   :  { %v3721_v7 = vsel %vm2826_vm5, %v3717_v11, 2147483647  ;;  %v3722_v40 = vsel %vm2830_vm7, %v3718_v33, 2147483647  ;;  %v3710_v46 = vmax.f32 %v3708_v61, %v3709_v6 }
0x1f41   :  { %vm3723_vm0 = vcmp.lt.s32.totalorder %v3721_v7, %v3722_v40 }
0x1f42   :  { %v3724_v3 = vsel %vm3723_vm0, %v3721_v7, %v3722_v40  ;;  %v3711_v16 = vrot.slane %v3710_v46, 1 }
0x1f43   :  { %v3725_v18 = vrot.slane %v3724_v3, 4 }
0x1f44   :  { %v3712_v17 = vmax.f32 %v3710_v46, %v3711_v16 }
0x1f45   :  { %vm3726_vm9 = vcmp.lt.s32.totalorder %v3724_v3, %v3725_v18 }
0x1f46   :  { %v3727_v24 = vsel %vm3726_vm9, %v3724_v3, %v3725_v18  ;;  %vm3715_vm14 = vcmp.eq.f32.partialorder %v3693_v53, %v3712_v17  ;;  %vm3716_vm13 = vcmp.eq.f32.partialorder %v3694_v45, %v3712_v17  ;;  %v3752_v48 = vadd.f32 %v3748_v59, %v3712_v17 }
0x1f47   :  { %v3728_v57 = vrot.slane %v3727_v24, 2  ;;  %v3719_v62 = vsel %vm3715_vm14, %v6160_v42, 9  ;;  %v3720_v8 = vsel %vm3716_vm13, %v6801_v30, 9 }
0x1f48   :  { %v3734_v36 = vsel %vm2826_vm5, %v3719_v62, 2147483647  ;;  %v3735_v15 = vsel %vm2830_vm7, %v3720_v8, 2147483647  ;;  %v3759_v1 = vrot.slane %v3752_v48, 7 }
0x1f49   :  { %vm3736_vm0 = vcmp.lt.s32.totalorder %v3734_v36, %v3735_v15  ;;  %vm3729_vm1 = vcmp.lt.s32.totalorder %v3727_v24, %v3728_v57 }
0x1f4a   :  { %v3737_v61 = vsel %vm3736_vm0, %v3734_v36, %v3735_v15  ;;  %v3760_v53 = vsel %vm2912_vm11, %v3759_v1, %v3751_v21  ;;  %v3730_v33 = vsel %vm3729_vm1, %v3727_v24, %v3728_v57 }
0x1f4b   :  { %v3738_v45 = vrot.slane %v3737_v61, 4  ;;  %v7269_v6 = vsel %vm7869_vm15, %v3760_v53, %v7211_v0  ;;  %v3731_v46 = vrot.slane %v3730_v33, 1 }
0x1f4c   :  { %v3770_v11 = vrot.slane %v7269_v6, %v6783_v9 }
0x1f4d   :  { %vm3739_vm9 = vcmp.lt.s32.totalorder %v3737_v61, %v3738_v45  ;;  %vm3732_vm1 = vcmp.lt.s32.totalorder %v3730_v33, %v3731_v46 }
0x1f4e   :  { %v3740_v7 = vsel %vm3739_vm9, %v3737_v61, %v3738_v45  ;;  %v3771_v40 = vcombine.high %v3770_v11, %v3770_v11  ;;  %v3778_v14 = vrot.slane %v3770_v11, %v6783_v9  ;;  %v3733_v36 = vsel %vm3732_vm1, %v3730_v33, %v3731_v46 }
0x1f4f   :  { %v3741_v3 = vrot.slane %v3740_v7, 2  ;;  %v7866_v45 = vmov 10  }
0x1f50   :  { %v3789_v16 = vrot.slane %v3778_v14, %v6163_v47  ;;  %v3785_v18 = vrot.slane %v3771_v40, %v6783_v9  ;;  %5853 = vset.pattern.permute.xlu1 %v7866_v45 }
0x1f51   :  { %vm3742_vm14 = vcmp.lt.s32.totalorder %v3740_v7, %v3741_v3 }
0x1f52   :  { %v3796_v0 = vsel %vm6796_vm4, %v3789_v16, 0.0  ;;  %v3793_v17 = vrot.slane %v3785_v18, %v6163_v47  ;;  %v3743_v59 = vsel %vm3742_vm14, %v3740_v7, %v3741_v3  ;;  %v3797_v62 = vsel %vm6811_vm6, %v3789_v16, 0.0 }
0x1f53   :  { %v3800_v24 = vsel %vm2826_vm5, %v3796_v0, 0.0  ;;  %v3744_v48 = vrot.slane %v3743_v59, 1  ;;  %v3803_v21 = vsel %vm2830_vm7, %v3797_v62, 0.0 }
0x1f54   :  { %3801 = vadd.xlane.f32.xlu0 %v3800_v24  ;;  %v3798_v57 = vsel %vm6796_vm4, %v3793_v17, 0.0  ;;  %v3799_v61 = vsel %vm6811_vm6, %v3793_v17, 0.0 }
0x1f55   :  { %v3806_v8 = vsel %vm2826_vm5, %v3798_v57, 0.0  ;;  %vm3745_vm13 = vcmp.lt.s32.totalorder %v3743_v59, %v3744_v48  ;;  %v3809_v53 = vsel %vm2830_vm7, %v3799_v61, 0.0 }
0x1f56   :  { %3807 = vadd.xlane.f32.xlu1 %v3806_v8  ;;  %v3746_v15 = vsel %vm3745_vm13, %v3743_v59, %v3744_v48 }
0x1f57   :  { %v7287_v1 = vsel %vm2912_vm11, %v3746_v15, %v3733_v36 }
0x1f58   :  { %3804 = vadd.xlane.f32.xlu0 %v3803_v21 }
0x1f5c   :  { %3810 = vadd.xlane.f32.xlu0 %v3809_v53 }
0x1f72   :  { %3875 = vperm.xlu0 %5852, %v6832_v29  }
0x1fe1   :  { %v3802_v11 = vpop.xlane.xlu0 %3801 }
0x1fe2   :  { %v3812_v33 = vadd.f32 %v7179_v39, %v3802_v11 }
0x1fe3   :  { %v3808_v7 = vpop.xlane.xlu1 %3807 }
0x1fe4   :  { %v3816_v46 = vsel %vm2826_vm5, %v3812_v33, -inf  ;;  %v3814_v3 = vadd.f32 %v7179_v39, %v3808_v7 }
0x1fe5   :  { %v3805_v40 = vpop.xlane.xlu0 %3804 }
0x1fe6   :  { %v3813_v14 = vadd.f32 %v7185_v23, %v3805_v40  ;;  %v3825_v24 = vsel %vm2826_vm5, %v3814_v3, -inf }
0x1fe8   :  { %v3817_v16 = vsel %vm2830_vm7, %v3813_v14, -inf }
0x1fe9   :  { %v3818_v18 = vmax.f32 %v3816_v46, %v3817_v16  ;;  %v3811_v0 = vpop.xlane.xlu0 %3810 }
0x1fea   :  { %v3815_v17 = vadd.f32 %v7185_v23, %v3811_v0 }
0x1feb   :  { %v3819_v59 = vrot.slane %v3818_v18, 4 }
0x1fec   :  { %v3826_v48 = vsel %vm2830_vm7, %v3815_v17, -inf }
0x1fed   :  { %v3820_v57 = vmax.f32 %v3818_v18, %v3819_v59  ;;  %v3827_v62 = vmax.f32 %v3825_v24, %v3826_v48  ;;  %v3869_v24 = vrot.slane %v7252_v25, 3 }
0x1fef   :  { %v3821_v8 = vrot.slane %v3820_v57, 2  ;;  %v3828_v36 = vrot.slane %v3827_v62, 4 }
0x1ff1   :  { %v3822_v15 = vmax.f32 %v3820_v57, %v3821_v8  ;;  %v3829_v21 = vmax.f32 %v3827_v62, %v3828_v36  ;;  %v7307_v48 = vpop.permute.xlu0 %3875  ;;  %v3868_v57 = vrot.slane %v7252_v25, 2 }
0x1ff3   :  { %v3823_v61 = vrot.slane %v3822_v15, 1  ;;  %v3830_v53 = vrot.slane %v3829_v21, 2 }
0x1ff5   :  { %v3824_v11 = vmax.f32 %v3822_v15, %v3823_v61  ;;  %v3831_v7 = vmax.f32 %v3829_v21, %v3830_v53 }
0x1ff7   :  { %vm3834_vm0 = vcmp.eq.f32.partialorder %v3812_v33, %v3824_v11  ;;  %vm3835_vm9 = vcmp.eq.f32.partialorder %v3813_v14, %v3824_v11  ;;  %v3832_v40 = vrot.slane %v3831_v7, 1  ;;  %v3872_v61 = vadd.f32 %v3868_v57, %v3824_v11 }
0x1ff8   :  { %v3838_v46 = vsel %vm3834_vm0, %v6160_v42, 9  ;;  %v3839_v16 = vsel %vm3835_vm9, %v6801_v30, 9  ;;  %vm7870_vm0 = vcmp.eq.s32.totalorder %v7307_v48, 1 }
0x1ff9   :  { %v3842_v0 = vsel %vm2826_vm5, %v3838_v46, 2147483647  ;;  %v3843_v18 = vsel %vm2830_vm7, %v3839_v16, 2147483647  ;;  %v3833_v59 = vmax.f32 %v3831_v7, %v3832_v40 }
0x1ffa   :  { %vm3844_vm14 = vcmp.lt.s32.totalorder %v3842_v0, %v3843_v18 }
0x1ffb   :  { %v3845_v62 = vsel %vm3844_vm14, %v3842_v0, %v3843_v18  ;;  %vm3836_vm1 = vcmp.eq.f32.partialorder %v3814_v3, %v3833_v59  ;;  %vm3837_vm13 = vcmp.eq.f32.partialorder %v3815_v17, %v3833_v59  ;;  %v3873_v33 = vadd.f32 %v3869_v24, %v3833_v59 }
0x1ffc   :  { %v3846_v14 = vrot.slane %v3845_v62, 4  ;;  %v3840_v8 = vsel %vm3836_vm1, %v6160_v42, 9  ;;  %v3841_v36 = vsel %vm3837_vm13, %v6801_v30, 9 }
0x1ffd   :  { %v3855_v15 = vsel %vm2826_vm5, %v3840_v8, 2147483647  ;;  %v3856_v21 = vsel %vm2830_vm7, %v3841_v36, 2147483647  ;;  %v3880_v53 = vrot.slane %v3873_v33, 7 }
0x1ffe   :  { %vm3847_vm9 = vcmp.lt.s32.totalorder %v3845_v62, %v3846_v14  ;;  %vm3857_vm10 = vcmp.lt.s32.totalorder %v3855_v15, %v3856_v21 }
0x1fff   :  { %v3848_v7 = vsel %vm3847_vm9, %v3845_v62, %v3846_v14  ;;  %v3858_v40 = vsel %vm3857_vm10, %v3855_v15, %v3856_v21  ;;  %v3881_v3 = vsel %vm2912_vm11, %v3880_v53, %v3872_v61 }
0x2000   :  { %v3849_v17 = vrot.slane %v3848_v7, 2  ;;  %v3859_v46 = vrot.slane %v3858_v40, 4  ;;  %v7319_v16 = vsel %vm7870_vm0, %v3881_v3, %v7269_v6 }
0x2001   :  { %v3891_v0 = vrot.slane %v7319_v16, %v6783_v9 }
0x2002   :  { %vm3860_vm14 = vcmp.lt.s32.totalorder %v3858_v40, %v3859_v46  ;;  %vm3850_vm1 = vcmp.lt.s32.totalorder %v3848_v7, %v3849_v17 }
0x2003   :  { %v3861_v11 = vsel %vm3860_vm14, %v3858_v40, %v3859_v46  ;;  %v3892_v18 = vcombine.high %v3891_v0, %v3891_v0  ;;  %v3899_v59 = vrot.slane %v3891_v0, %v6783_v9  ;;  %v3851_v24 = vsel %vm3850_vm1, %v3848_v7, %v3849_v17 }
0x2004   :  { %v3862_v57 = vrot.slane %v3861_v11, 2  ;;  %v3852_v14 = vrot.slane %v3851_v24, 1 }
0x2005   :  { %v3910_v62 = vrot.slane %v3899_v59, %v6163_v47  ;;  %v3906_v33 = vrot.slane %v3892_v18, %v6783_v9  ;;  %v7867_v18 = vmov 11  }
0x2006   :  { %vm3863_vm10 = vcmp.lt.s32.totalorder %v3861_v11, %v3862_v57  ;;  %vm3853_vm13 = vcmp.lt.s32.totalorder %v3851_v24, %v3852_v14  ;;  %5854 = vset.pattern.permute.xlu0 %v7867_v18 }
0x2007   :  { %v3917_v6 = vsel %vm6796_vm4, %v3910_v62, 0.0  ;;  %v3864_v36 = vsel %vm3863_vm10, %v3861_v11, %v3862_v57  ;;  %v3918_v15 = vsel %vm6811_vm6, %v3910_v62, 0.0  ;;  %v3914_v21 = vrot.slane %v3906_v33, %v6163_v47 }
0x2008   :  { %v3921_v8 = vsel %vm2826_vm5, %v3917_v6, 0.0  ;;  %v3865_v61 = vrot.slane %v3864_v36, 1  ;;  %v3924_v53 = vsel %vm2830_vm7, %v3918_v15, 0.0  ;;  %v3854_v7 = vsel %vm3853_vm13, %v3851_v24, %v3852_v14 }
0x2009   :  { %3922 = vadd.xlane.f32.xlu1 %v3921_v8  ;;  %v3919_v3 = vsel %vm6796_vm4, %v3914_v21, 0.0  ;;  %v3920_v0 = vsel %vm6811_vm6, %v3914_v21, 0.0 }
0x200a   :  { %vm3866_vm9 = vcmp.lt.s32.totalorder %v3864_v36, %v3865_v61  ;;  %v3927_v46 = vsel %vm2826_vm5, %v3919_v3, 0.0  ;;  %v3930_v11 = vsel %vm2830_vm7, %v3920_v0, 0.0 }
0x200b   :  { %v3867_v40 = vsel %vm3866_vm9, %v3864_v36, %v3865_v61 }
0x200c   :  { %v7336_v17 = vsel %vm2912_vm11, %v3867_v40, %v3854_v7 }
0x200d   :  { %3925 = vadd.xlane.f32.xlu1 %v3924_v53 }
0x2011   :  { %3928 = vadd.xlane.f32.xlu1 %v3927_v46 }
0x2015   :  { %3931 = vadd.xlane.f32.xlu1 %v3930_v11 }
0x2026   :  { %3996 = vperm.xlu1 %5853, %v6832_v29  }
0x2096   :  { %v3923_v59 = vpop.xlane.xlu1 %3922 }
0x2097   :  { %v3933_v24 = vadd.f32 %v7179_v39, %v3923_v59 }
0x2099   :  { %v3937_v33 = vsel %vm2826_vm5, %v3933_v24, -inf }
0x209a   :  { %v3926_v57 = vpop.xlane.xlu1 %3925 }
0x209b   :  { %v3934_v62 = vadd.f32 %v7185_v23, %v3926_v57 }
0x209d   :  { %v3938_v14 = vsel %vm2830_vm7, %v3934_v62, -inf }
0x209e   :  { %v3939_v6 = vmax.f32 %v3937_v33, %v3938_v14  ;;  %v3929_v8 = vpop.xlane.xlu1 %3928 }
0x209f   :  { %v3935_v15 = vadd.f32 %v7179_v39, %v3929_v8 }
0x20a0   :  { %v3940_v36 = vrot.slane %v3939_v6, 4 }
0x20a1   :  { %v3946_v40 = vsel %vm2826_vm5, %v3935_v15, -inf }
0x20a2   :  { %v3941_v21 = vmax.f32 %v3939_v6, %v3940_v36  ;;  %v3932_v61 = vpop.xlane.xlu1 %3931 }
0x20a3   :  { %v3936_v53 = vadd.f32 %v7185_v23, %v3932_v61 }
0x20a4   :  { %v3942_v7 = vrot.slane %v3941_v21, 2 }
0x20a5   :  { %v3947_v3 = vsel %vm2830_vm7, %v3936_v53, -inf }
0x20a6   :  { %v3943_v46 = vmax.f32 %v3941_v21, %v3942_v7  ;;  %v3948_v0 = vmax.f32 %v3946_v40, %v3947_v3  ;;  %v3990_v3 = vrot.slane %v7252_v25, 5 }
0x20a8   :  { %v3944_v11 = vrot.slane %v3943_v46, 1  ;;  %v3949_v59 = vrot.slane %v3948_v0, 4 }
0x20aa   :  { %v3945_v57 = vmax.f32 %v3943_v46, %v3944_v11  ;;  %v3950_v38 = vmax.f32 %v3948_v0, %v3949_v59  ;;  %v7357_v46 = vpop.permute.xlu1 %3996 }
0x20ac   :  { %vm3955_vm14 = vcmp.eq.f32.partialorder %v3933_v24, %v3945_v57  ;;  %vm3956_vm1 = vcmp.eq.f32.partialorder %v3934_v62, %v3945_v57  ;;  %v3951_v33 = vrot.slane %v3950_v38, 2  ;;  %v3989_v24 = vrot.slane %v7252_v25, 4 }
0x20ad   :  { %v3959_v14 = vsel %vm3955_vm14, %v6160_v42, 9  ;;  %v3960_v6 = vsel %vm3956_vm1, %v6801_v30, 9  ;;  %vm3998_vm1 = vcmp.eq.s32.totalorder %v7357_v46, 1 }
0x20ae   :  { %v3963_v8 = vsel %vm2826_vm5, %v3959_v14, 2147483647  ;;  %v3964_v36 = vsel %vm2830_vm7, %v3960_v6, 2147483647  ;;  %v3952_v61 = vmax.f32 %v3950_v38, %v3951_v33  ;;  %v3993_v6 = vadd.f32 %v3989_v24, %v3945_v57 }
0x20af   :  { %vm3965_vm10 = vcmp.lt.s32.totalorder %v3963_v8, %v3964_v36 }
0x20b0   :  { %v3966_v2 = vsel %vm3965_vm10, %v3963_v8, %v3964_v36  ;;  %v3953_v21 = vrot.slane %v3952_v61, 1 }
0x20b1   :  { %v3967_v7 = vrot.slane %v3966_v2, 4 }
0x20b2   :  { %v3954_v40 = vmax.f32 %v3952_v61, %v3953_v21 }
0x20b3   :  { %vm3968_vm13 = vcmp.lt.s32.totalorder %v3966_v2, %v3967_v7 }
0x20b4   :  { %v3969_v62 = vsel %vm3968_vm13, %v3966_v2, %v3967_v7  ;;  %vm3957_vm9 = vcmp.eq.f32.partialorder %v3935_v15, %v3954_v40  ;;  %vm3958_vm14 = vcmp.eq.f32.partialorder %v3936_v53, %v3954_v40  ;;  %v3994_v0 = vadd.f32 %v3990_v3, %v3954_v40 }
0x20b5   :  { %v3961_v11 = vsel %vm3957_vm9, %v6160_v42, 9  ;;  %v3962_v38 = vsel %vm3958_vm14, %v6801_v30, 9  ;;  %v3970_v59 = vrot.slane %v3969_v62, 2 }
0x20b6   :  { %v3976_v33 = vsel %vm2826_vm5, %v3961_v11, 2147483647  ;;  %v3977_v14 = vsel %vm2830_vm7, %v3962_v38, 2147483647  ;;  %v4001_v8 = vrot.slane %v3994_v0, 7 }
0x20b7   :  { %vm3978_vm10 = vcmp.lt.s32.totalorder %v3976_v33, %v3977_v14  ;;  %vm3971_vm3 = vcmp.lt.s32.totalorder %v3969_v62, %v3970_v59 }
0x20b8   :  { %v3979_v36 = vsel %vm3978_vm10, %v3976_v33, %v3977_v14  ;;  %v4002_v2 = vsel %vm2912_vm11, %v4001_v8, %v3993_v6  ;;  %v3972_v21 = vsel %vm3971_vm3, %v3969_v62, %v3970_v59 }
0x20b9   :  { %v3980_v15 = vrot.slane %v3979_v36, 4  ;;  %v7369_v53 = vsel %vm3998_vm1, %v4002_v2, %v7319_v16  ;;  %v3973_v24 = vrot.slane %v3972_v21, 1 }
0x20ba   :  { %v4012_v61 = vrot.slane %v7369_v53, %v6783_v9 }
0x20bb   :  { %vm3981_vm13 = vcmp.lt.s32.totalorder %v3979_v36, %v3980_v15  ;;  %vm3974_vm14 = vcmp.lt.s32.totalorder %v3972_v21, %v3973_v24 }
0x20bc   :  { %v3982_v7 = vsel %vm3981_vm13, %v3979_v36, %v3980_v15  ;;  %v4013_v40 = vcombine.high %v4012_v61, %v4012_v61  ;;  %v4020_v57 = vrot.slane %v4012_v61, %v6783_v9  ;;  %v3975_v36 = vsel %vm3974_vm14, %v3972_v21, %v3973_v24 }
0x20bd   :  { %v3983_v3 = vrot.slane %v3982_v7, 2 }
0x20be   :  { %v4027_v0 = vrot.slane %v4013_v40, %v6783_v9  ;;  %v4031_v38 = vrot.slane %v4020_v57, %v6163_v47  ;;  %v7868_v57 = vmov 12  }
0x20bf   :  { %vm3984_vm9 = vcmp.lt.s32.totalorder %v3982_v7, %v3983_v3  ;;  %5855 = vset.pattern.permute.xlu1 %v7868_v57 }
0x20c0   :  { %v4035_v11 = vrot.slane %v4027_v0, %v6163_v47  ;;  %v3985_v16 = vsel %vm3984_vm9, %v3982_v7, %v3983_v3  ;;  %v4038_v8 = vsel %vm6796_vm4, %v4031_v38, 0.0  ;;  %v4039_v7 = vsel %vm6811_vm6, %v4031_v38, 0.0 }
0x20c1   :  { %v3986_v33 = vrot.slane %v3985_v16, 1  ;;  %v4042_v61 = vsel %vm2826_vm5, %v4038_v8, 0.0  ;;  %v4045_v40 = vsel %vm2830_vm7, %v4039_v7, 0.0 }
0x20c2   :  { %v4041_v62 = vsel %vm6811_vm6, %v4035_v11, 0.0  ;;  %v4040_v59 = vsel %vm6796_vm4, %v4035_v11, 0.0 }
0x20c3   :  { %v4051_v14 = vsel %vm2830_vm7, %v4041_v62, 0.0  ;;  %v4048_v6 = vsel %vm2826_vm5, %v4040_v59, 0.0  ;;  %vm3987_vm3 = vcmp.lt.s32.totalorder %v3985_v16, %v3986_v33 }
0x20c4   :  { %4052 = vadd.xlane.f32.xlu1 %v4051_v14  ;;  %4049 = vadd.xlane.f32.xlu0 %v4048_v6  ;;  %v3988_v2 = vsel %vm3987_vm3, %v3985_v16, %v3986_v33 }
0x20c5   :  { %v7386_v15 = vsel %vm2912_vm11, %v3988_v2, %v3975_v36 }
0x20c8   :  { %4043 = vadd.xlane.f32.xlu0 %v4042_v61 }
0x20cc   :  { %4046 = vadd.xlane.f32.xlu0 %v4045_v40 }
0x20e2   :  { %4117 = vperm.xlu0 %5854, %v6832_v29  }
0x2151   :  { %v4053_v3 = vpop.xlane.xlu1 %4052  ;;  %v4050_v21 = vpop.xlane.xlu0 %4049 }
0x2152   :  { %v4057_v24 = vadd.f32 %v7185_v23, %v4053_v3  ;;  %v4056_v0 = vadd.f32 %v7179_v39, %v4050_v21 }
0x2154   :  { %v4068_v11 = vsel %vm2830_vm7, %v4057_v24, -inf  ;;  %v4067_v16 = vsel %vm2826_vm5, %v4056_v0, -inf }
0x2155   :  { %v4069_v33 = vmax.f32 %v4067_v16, %v4068_v11  ;;  %v4044_v38 = vpop.xlane.xlu0 %4043 }
0x2156   :  { %v4054_v59 = vadd.f32 %v7179_v39, %v4044_v38  ;;  %v4111_v38 = vrot.slane %v7252_v25, 7 }
0x2157   :  { %v4070_v62 = vrot.slane %v4069_v33, 4 }
0x2158   :  { %v4058_v2 = vsel %vm2826_vm5, %v4054_v59, -inf }
0x2159   :  { %v4071_v14 = vmax.f32 %v4069_v33, %v4070_v62  ;;  %v4047_v6 = vpop.xlane.xlu0 %4046 }
0x215a   :  { %v4055_v8 = vadd.f32 %v7185_v23, %v4047_v6 }
0x215b   :  { %v4072_v36 = vrot.slane %v4071_v14, 2 }
0x215c   :  { %v4059_v61 = vsel %vm2830_vm7, %v4055_v8, -inf }
0x215d   :  { %v4073_v7 = vmax.f32 %v4071_v14, %v4072_v36  ;;  %v4060_v40 = vmax.f32 %v4058_v2, %v4059_v61 }
0x215f   :  { %v4074_v3 = vrot.slane %v4073_v7, 1  ;;  %v4061_v21 = vrot.slane %v4060_v40, 4 }
0x2161   :  { %v4075_v35 = vmax.f32 %v4073_v7, %v4074_v3  ;;  %v4062_v51 = vmax.f32 %v4060_v40, %v4061_v21  ;;  %v7407_v61 = vpop.permute.xlu0 %4117  ;;  %v4110_v7 = vrot.slane %v7252_v25, 6 }
0x2162   :  { %vm4119_vm3 = vcmp.eq.s32.totalorder %v7407_v61, 1 }
0x2163   :  { %vm4078_vm10 = vcmp.eq.f32.partialorder %v4056_v0, %v4075_v35  ;;  %vm4079_vm13 = vcmp.eq.f32.partialorder %v4057_v24, %v4075_v35  ;;  %v4063_v11 = vrot.slane %v4062_v51, 2  ;;  %v4115_v14 = vadd.f32 %v4111_v38, %v4075_v35 }
0x2164   :  { %v4082_v16 = vsel %vm4078_vm10, %v6160_v42, 9  ;;  %v4083_v33 = vsel %vm4079_vm13, %v6801_v30, 9 }
0x2165   :  { %v4097_v62 = vsel %vm2826_vm5, %v4082_v16, 2147483647  ;;  %v4098_v6 = vsel %vm2830_vm7, %v4083_v33, 2147483647  ;;  %v4064_v26 = vmax.f32 %v4062_v51, %v4063_v11  ;;  %v4122_v40 = vrot.slane %v4115_v14, 7 }
0x2166   :  { %vm4099_vm9 = vcmp.lt.s32.totalorder %v4097_v62, %v4098_v6 }
0x2167   :  { %v4100_v36 = vsel %vm4099_vm9, %v4097_v62, %v4098_v6  ;;  %v4065_v2 = vrot.slane %v4064_v26, 1 }
0x2168   :  { %v4101_v0 = vrot.slane %v4100_v36, 4 }
0x2169   :  { %v4066_v24 = vmax.f32 %v4064_v26, %v4065_v2 }
0x216a   :  { %vm4102_vm14 = vcmp.lt.s32.totalorder %v4100_v36, %v4101_v0 }
0x216b   :  { %v4103_v3 = vsel %vm4102_vm14, %v4100_v36, %v4101_v0  ;;  %vm4076_vm10 = vcmp.eq.f32.partialorder %v4054_v59, %v4066_v24  ;;  %vm4077_vm13 = vcmp.eq.f32.partialorder %v4055_v8, %v4066_v24  ;;  %v4114_v21 = vadd.f32 %v4110_v7, %v4066_v24 }
0x216c   :  { %v4104_v16 = vrot.slane %v4103_v3, 2  ;;  %v4080_v51 = vsel %vm4076_vm10, %v6160_v42, 9  ;;  %v4081_v35 = vsel %vm4077_vm13, %v6801_v30, 9 }
0x216d   :  { %v4084_v11 = vsel %vm2826_vm5, %v4080_v51, 2147483647  ;;  %v4085_v33 = vsel %vm2830_vm7, %v4081_v35, 2147483647  ;;  %v4123_v26 = vsel %vm2912_vm11, %v4122_v40, %v4114_v21 }
0x216e   :  { %vm4086_vm9 = vcmp.lt.s32.totalorder %v4084_v11, %v4085_v33  ;;  %v7419_v25 = vsel %vm4119_vm3, %v4123_v26, %v7369_v53  ;;  %vm4105_vm14 = vcmp.lt.s32.totalorder %v4103_v3, %v4104_v16 }
0x216f   :  { %v4087_v59 = vsel %vm4086_vm9, %v4084_v11, %v4085_v33  ;;  %v4133_v8 = vrot.slane %v7419_v25, %v6783_v9  ;;  %v4106_v14 = vsel %vm4105_vm14, %v4103_v3, %v4104_v16 }
0x2170   :  { %v4088_v38 = vrot.slane %v4087_v59, 4  ;;  %v4107_v7 = vrot.slane %v4106_v14, 1 }
0x2171   :  { %v4134_v62 = vcombine.high %v4133_v8, %v4133_v8  ;;  %v4141_v6 = vrot.slane %v4133_v8, %v6783_v9 }
0x2172   :  { %vm4089_vm10 = vcmp.lt.s32.totalorder %v4087_v59, %v4088_v38  ;;  %vm4108_vm9 = vcmp.lt.s32.totalorder %v4106_v14, %v4107_v7 }
0x2173   :  { %v4090_v36 = vsel %vm4089_vm10, %v4087_v59, %v4088_v38  ;;  %v4152_v2 = vrot.slane %v4141_v6, %v6163_v47  ;;  %v4148_v0 = vrot.slane %v4134_v62, %v6783_v9  ;;  %v4109_v26 = vsel %vm4108_vm9, %v4106_v14, %v4107_v7 }
0x2174   :  { %v4091_v24 = vrot.slane %v4090_v36, 2  ;;  %v6047_v6 = vmov 13  }
0x2175   :  { %v4159_v53 = vsel %vm6796_vm4, %v4152_v2, 0.0  ;;  %v4160_v21 = vsel %vm6811_vm6, %v4152_v2, 0.0  ;;  %v4156_v3 = vrot.slane %v4148_v0, %v6163_v47  ;;  %5856 = vset.pattern.permute.xlu0 %v6047_v6 }
0x2176   :  { %v4163_v40 = vsel %vm2826_vm5, %v4159_v53, 0.0  ;;  %vm4092_vm13 = vcmp.lt.s32.totalorder %v4090_v36, %v4091_v24  ;;  %v4166_v35 = vsel %vm2830_vm7, %v4160_v21, 0.0 }
0x2177   :  { %4164 = vadd.xlane.f32.xlu1 %v4163_v40  ;;  %v4093_v16 = vsel %vm4092_vm13, %v4090_v36, %v4091_v24  ;;  %v4161_v11 = vsel %vm6796_vm4, %v4156_v3, 0.0  ;;  %v4162_v38 = vsel %vm6811_vm6, %v4156_v3, 0.0 }
0x2178   :  { %v4094_v51 = vrot.slane %v4093_v16, 1  ;;  %v4169_v8 = vsel %vm2826_vm5, %v4161_v11, 0.0  ;;  %v4172_v62 = vsel %vm2830_vm7, %v4162_v38, 0.0 }
0x217a   :  { %vm4095_vm14 = vcmp.lt.s32.totalorder %v4093_v16, %v4094_v51 }
0x217b   :  { %4167 = vadd.xlane.f32.xlu1 %v4166_v35  ;;  %v4096_v33 = vsel %vm4095_vm14, %v4093_v16, %v4094_v51 }
0x217c   :  { %v7436_v59 = vsel %vm2912_vm11, %v4109_v26, %v4096_v33 }
0x217f   :  { %4170 = vadd.xlane.f32.xlu1 %v4169_v8 }
0x2183   :  { %4173 = vadd.xlane.f32.xlu1 %v4172_v62 }
0x2194   :  { %4238 = vperm.xlu1 %5855, %v6832_v29  }
0x2204   :  { %v4165_v36 = vpop.xlane.xlu1 %4164 }
0x2205   :  { %v4175_v14 = vadd.f32 %v7179_v39, %v4165_v36 }
0x2207   :  { %v4179_v24 = vsel %vm2826_vm5, %v4175_v14, -inf }
0x2208   :  { %v4168_v2 = vpop.xlane.xlu1 %4167 }
0x2209   :  { %v4176_v0 = vadd.f32 %v7185_v23, %v4168_v2 }
0x220b   :  { %v4180_v7 = vsel %vm2830_vm7, %v4176_v0, -inf }
0x220c   :  { %v4181_v53 = vmax.f32 %v4179_v24, %v4180_v7  ;;  %v4171_v40 = vpop.xlane.xlu1 %4170 }
0x220d   :  { %v4177_v3 = vadd.f32 %v7179_v39, %v4171_v40 }
0x220e   :  { %v4182_v21 = vrot.slane %v4181_v53, 4 }
0x220f   :  { %v4188_v33 = vsel %vm2826_vm5, %v4177_v3, -inf }
0x2210   :  { %v4183_v16 = vmax.f32 %v4181_v53, %v4182_v21  ;;  %v4174_v51 = vpop.xlane.xlu1 %4173 }
0x2211   :  { %v4178_v35 = vadd.f32 %v7185_v23, %v4174_v51  ;;  %v7456_v23 = vadd.f32 %v7215_v60, %v6774_v13 }
0x2212   :  { %v4184_v11 = vrot.slane %v4183_v16, 2 }
0x2213   :  { %v4189_v26 = vsel %vm2830_vm7, %v4178_v35, -inf }
0x2214   :  { %v4185_v8 = vmax.f32 %v4183_v16, %v4184_v11  ;;  %v4190_v38 = vmax.f32 %v4188_v33, %v4189_v26  ;;  %v7461_v33 = vpop.permute.xlu1 %4238 }
0x2215   :  { %vm4240_vm12 = vcmp.eq.s32.totalorder %v7461_v33, 1 }
0x2216   :  { %v4186_v62 = vrot.slane %v4185_v8, 1  ;;  %v4191_v36 = vrot.slane %v4190_v38, 4 }
0x2218   :  { %v4187_v2 = vmax.f32 %v4185_v8, %v4186_v62  ;;  %v4192_v56 = vmax.f32 %v4190_v38, %v4191_v36 }
0x221a   :  { %vm4197_vm10 = vcmp.eq.f32.partialorder %v4175_v14, %v4187_v2  ;;  %vm4198_vm13 = vcmp.eq.f32.partialorder %v4176_v0, %v4187_v2  ;;  %v4193_v24 = vrot.slane %v4192_v56, 2  ;;  %v4232_v0 = vrot.slane %v7456_v23, 1 }
0x221b   :  { %v4201_v39 = vsel %vm4197_vm10, %v6160_v42, 9  ;;  %v4202_v7 = vsel %vm4198_vm13, %v6801_v30, 9  ;;  %v4235_v36 = vadd.f32 %v4187_v2, %v7456_v23 }
0x221c   :  { %v4205_v53 = vsel %vm2826_vm5, %v4201_v39, 2147483647  ;;  %v4206_v40 = vsel %vm2830_vm7, %v4202_v7, 2147483647  ;;  %v4194_v21 = vmax.f32 %v4192_v56, %v4193_v24 }
0x221d   :  { %vm4207_vm9 = vcmp.lt.s32.totalorder %v4205_v53, %v4206_v40 }
0x221e   :  { %v4208_v16 = vsel %vm4207_vm9, %v4205_v53, %v4206_v40  ;;  %v4195_v51 = vrot.slane %v4194_v21, 1 }
0x221f   :  { %v4209_v11 = vrot.slane %v4208_v16, 4 }
0x2220   :  { %v4196_v14 = vmax.f32 %v4194_v21, %v4195_v51 }
0x2221   :  { %vm4210_vm14 = vcmp.lt.s32.totalorder %v4208_v16, %v4209_v11 }
0x2222   :  { %v4211_v26 = vsel %vm4210_vm14, %v4208_v16, %v4209_v11  ;;  %vm4199_vm10 = vcmp.eq.f32.partialorder %v4177_v3, %v4196_v14  ;;  %vm4200_vm13 = vcmp.eq.f32.partialorder %v4178_v35, %v4196_v14  ;;  %v4236_v13 = vadd.f32 %v4232_v0, %v4196_v14 }
0x2223   :  { %v4212_v60 = vrot.slane %v4211_v26, 2  ;;  %v4203_v8 = vsel %vm4199_vm10, %v6160_v42, 9  ;;  %v4204_v38 = vsel %vm4200_vm13, %v6801_v30, 9 }
0x2224   :  { %v4218_v56 = vsel %vm2826_vm5, %v4203_v8, 2147483647  ;;  %v4219_v62 = vsel %vm2830_vm7, %v4204_v38, 2147483647  ;;  %v4243_v24 = vrot.slane %v4236_v13, 7 }
0x2225   :  { %vm4220_vm9 = vcmp.lt.s32.totalorder %v4218_v56, %v4219_v62  ;;  %vm4213_vm2 = vcmp.lt.s32.totalorder %v4211_v26, %v4212_v60 }
0x2226   :  { %v4221_v39 = vsel %vm4220_vm9, %v4218_v56, %v4219_v62  ;;  %v4244_v3 = vsel %vm2912_vm11, %v4243_v24, %v4235_v36  ;;  %v4214_v40 = vsel %vm4213_vm2, %v4211_v26, %v4212_v60 }
0x2227   :  { %v4222_v35 = vrot.slane %v4221_v39, 4  ;;  %v7473_v7 = vsel %vm4240_vm12, %v4244_v3, %v7419_v25  ;;  %v4215_v11 = vrot.slane %v4214_v40, 1 }
0x2228   :  { %v4254_v53 = vrot.slane %v7473_v7, %v6783_v9 }
0x2229   :  { %vm4223_vm14 = vcmp.lt.s32.totalorder %v4221_v39, %v4222_v35  ;;  %vm4216_vm2 = vcmp.lt.s32.totalorder %v4214_v40, %v4215_v11 }
0x222a   :  { %v4224_v21 = vsel %vm4223_vm14, %v4221_v39, %v4222_v35  ;;  %v4255_v16 = vcombine.high %v4254_v53, %v4254_v53  ;;  %v4262_v2 = vrot.slane %v4254_v53, %v6783_v9  ;;  %v4217_v36 = vsel %vm4216_vm2, %v4214_v40, %v4215_v11 }
0x222b   :  { %v4225_v51 = vrot.slane %v4224_v21, 2 }
0x222c   :  { %v4273_v14 = vrot.slane %v4262_v2, %v6163_v47  ;;  %v4269_v0 = vrot.slane %v4255_v16, %v6783_v9  ;;  %v7501_v2 = vld [vmem:[%s7849_s13 + $0x8] sm:$0x1] }
0x222d   :  { %vm4226_vm10 = vcmp.lt.s32.totalorder %v4224_v21, %v4225_v51 }
0x222e   :  { %v4280_v25 = vsel %vm6796_vm4, %v4273_v14, 0.0  ;;  %v4277_v13 = vrot.slane %v4269_v0, %v6163_v47  ;;  %v4227_v8 = vsel %vm4226_vm10, %v4224_v21, %v4225_v51  ;;  %v4281_v35 = vsel %vm6811_vm6, %v4273_v14, 0.0  ;;  %v7507_v14 = vld [vmem:[%s7849_s13] sm:$0xff] }
0x222f   :  { %v4284_v26 = vsel %vm2826_vm5, %v4280_v25, 0.0  ;;  %v4228_v60 = vrot.slane %v4227_v8, 1  ;;  %v4287_v53 = vsel %vm2830_vm7, %v4281_v35, 0.0  ;;  %v6048_v21 = vmov 14  }
0x2230   :  { %4285 = vadd.xlane.f32.xlu1 %v4284_v26  ;;  %v4283_v38 = vsel %vm6811_vm6, %v4277_v13, 0.0  ;;  %v4282_v56 = vsel %vm6796_vm4, %v4277_v13, 0.0 }
0x2231   :  { %v4293_v62 = vsel %vm2830_vm7, %v4283_v38, 0.0  ;;  %vm4229_vm13 = vcmp.lt.s32.totalorder %v4227_v8, %v4228_v60  ;;  %v4290_v39 = vsel %vm2826_vm5, %v4282_v56, 0.0  ;;  %5857 = vset.pattern.permute.xlu1 %v6048_v21 }
0x2232   :  { %4294 = vadd.xlane.f32.xlu0 %v4293_v62  ;;  %v4230_v24 = vsel %vm4229_vm13, %v4227_v8, %v4228_v60 }
0x2233   :  { %v7491_v3 = vsel %vm2912_vm11, %v4230_v24, %v4217_v36 }
0x2234   :  { %4291 = vadd.xlane.f32.xlu1 %v4290_v39 }
0x2238   :  { %4288 = vadd.xlane.f32.xlu1 %v4287_v53 }
0x2248   :  { %4359 = vperm.xlu0 %5856, %v6832_v29  }
0x22bd   :  { %v4286_v16 = vpop.xlane.xlu1 %4285 }
0x22be   :  { %v4296_v25 = vadd.f32 %v7507_v14, %v4286_v16 }
0x22bf   :  { %v4295_v40 = vpop.xlane.xlu0 %4294 }
0x22c0   :  { %v4299_v51 = vadd.f32 %v7501_v2, %v4295_v40  ;;  %v4300_v62 = vsel %vm2826_vm5, %v4296_v25, -inf }
0x22c1   :  { %v4292_v11 = vpop.xlane.xlu1 %4291 }
0x22c2   :  { %v4298_v0 = vadd.f32 %v7507_v14, %v4292_v11  ;;  %v4310_v13 = vsel %vm2830_vm7, %v4299_v51, -inf }
0x22c4   :  { %v4309_v8 = vsel %vm2826_vm5, %v4298_v0, -inf }
0x22c5   :  { %v4311_v26 = vmax.f32 %v4309_v8, %v4310_v13  ;;  %v4289_v60 = vpop.xlane.xlu1 %4288  ;;  %v4353_v13 = vrot.slane %v7456_v23, 3 }
0x22c6   :  { %v4297_v38 = vadd.f32 %v7501_v2, %v4289_v60 }
0x22c7   :  { %v4312_v56 = vrot.slane %v4311_v26, 4  ;;  %v7517_v60 = vpop.permute.xlu0 %4359 }
0x22c8   :  { %v4301_v36 = vsel %vm2830_vm7, %v4297_v38, -inf  ;;  %vm4361_vm2 = vcmp.eq.s32.totalorder %v7517_v60, 1 }
0x22c9   :  { %v4313_v24 = vmax.f32 %v4311_v26, %v4312_v56  ;;  %v4302_v39 = vmax.f32 %v4300_v62, %v4301_v36 }
0x22cb   :  { %v4314_v35 = vrot.slane %v4313_v24, 2  ;;  %v4303_v53 = vrot.slane %v4302_v39, 4 }
0x22cd   :  { %v4315_v40 = vmax.f32 %v4313_v24, %v4314_v35  ;;  %v4304_v11 = vmax.f32 %v4302_v39, %v4303_v53  ;;  %v4352_v24 = vrot.slane %v7456_v23, 2 }
0x22cf   :  { %v4316_v16 = vrot.slane %v4315_v40, 1  ;;  %v4305_v41 = vrot.slane %v4304_v11, 2 }
0x22d1   :  { %v4317_v55 = vmax.f32 %v4315_v40, %v4316_v16  ;;  %v4306_v45 = vmax.f32 %v4304_v11, %v4305_v41 }
0x22d3   :  { %vm4320_vm9 = vcmp.eq.f32.partialorder %v4298_v0, %v4317_v55  ;;  %vm4321_vm14 = vcmp.eq.f32.partialorder %v4299_v51, %v4317_v55  ;;  %v4307_v8 = vrot.slane %v4306_v45, 1  ;;  %v4357_v18 = vadd.f32 %v4353_v13, %v4317_v55 }
0x22d4   :  { %v4324_v57 = vsel %vm4320_vm9, %v6160_v42, 9  ;;  %v4325_v26 = vsel %vm4321_vm14, %v6801_v30, 9 }
0x22d5   :  { %v4339_v56 = vsel %vm2826_vm5, %v4324_v57, 2147483647  ;;  %v4340_v62 = vsel %vm2830_vm7, %v4325_v26, 2147483647  ;;  %v4308_v36 = vmax.f32 %v4306_v45, %v4307_v8  ;;  %v4364_v41 = vrot.slane %v4357_v18, 7 }
0x22d6   :  { %vm4341_vm10 = vcmp.lt.s32.totalorder %v4339_v56, %v4340_v62 }
0x22d7   :  { %v4342_v51 = vsel %vm4341_vm10, %v4339_v56, %v4340_v62  ;;  %vm4318_vm13 = vcmp.eq.f32.partialorder %v4296_v25, %v4308_v36  ;;  %vm4319_vm15 = vcmp.eq.f32.partialorder %v4297_v38, %v4308_v36  ;;  %v4356_v0 = vadd.f32 %v4352_v24, %v4308_v36 }
0x22d8   :  { %v4343_v55 = vrot.slane %v4342_v51, 4  ;;  %v4322_v39 = vsel %vm4318_vm13, %v6160_v42, 9  ;;  %v4323_v35 = vsel %vm4319_vm15, %v6801_v30, 9 }
0x22d9   :  { %v4326_v57 = vsel %vm2826_vm5, %v4322_v39, 2147483647  ;;  %v4327_v53 = vsel %vm2830_vm7, %v4323_v35, 2147483647  ;;  %v4365_v45 = vsel %vm2912_vm11, %v4364_v41, %v4356_v0 }
0x22da   :  { %vm4344_vm9 = vcmp.lt.s32.totalorder %v4342_v51, %v4343_v55  ;;  %vm4328_vm14 = vcmp.lt.s32.totalorder %v4326_v57, %v4327_v53  ;;  %v7533_v18 = vsel %vm4361_vm2, %v4365_v45, %v7473_v7 }
0x22db   :  { %v4345_v25 = vsel %vm4344_vm9, %v4342_v51, %v4343_v55  ;;  %v4329_v38 = vsel %vm4328_vm14, %v4326_v57, %v4327_v53  ;;  %v4375_v40 = vrot.slane %v7533_v18, %v6783_v9 }
0x22dc   :  { %v4346_v11 = vrot.slane %v4345_v25, 2  ;;  %v4330_v16 = vrot.slane %v4329_v38, 4 }
0x22dd   :  { %v4376_v13 = vcombine.high %v4375_v40, %v4375_v40  ;;  %v4383_v8 = vrot.slane %v4375_v40, %v6783_v9 }
0x22de   :  { %vm4331_vm15 = vcmp.lt.s32.totalorder %v4329_v38, %v4330_v16  ;;  %vm4347_vm10 = vcmp.lt.s32.totalorder %v4345_v25, %v4346_v11 }
0x22df   :  { %v4332_v26 = vsel %vm4331_vm15, %v4329_v38, %v4330_v16  ;;  %v4394_v56 = vrot.slane %v4383_v8, %v6163_v47  ;;  %v4390_v62 = vrot.slane %v4376_v13, %v6783_v9  ;;  %v4348_v36 = vsel %vm4347_vm10, %v4345_v25, %v4346_v11 }
0x22e0   :  { %v4333_v7 = vrot.slane %v4332_v26, 2  ;;  %v4349_v24 = vrot.slane %v4348_v36, 1  ;;  %v6049_v13 = vmov 15  }
0x22e1   :  { %v4401_v41 = vsel %vm6796_vm4, %v4394_v56, 0.0  ;;  %v4402_v0 = vsel %vm6811_vm6, %v4394_v56, 0.0  ;;  %v4398_v55 = vrot.slane %v4390_v62, %v6163_v47  ;;  %5859 = vset.pattern.permute.xlu0 %v6049_v13 }
0x22e2   :  { %v4405_v51 = vsel %vm2826_vm5, %v4401_v41, 0.0  ;;  %vm4334_vm13 = vcmp.lt.s32.totalorder %v4332_v26, %v4333_v7  ;;  %vm4350_vm9 = vcmp.lt.s32.totalorder %v4348_v36, %v4349_v24  ;;  %v4408_v57 = vsel %vm2830_vm7, %v4402_v0, 0.0 }
0x22e3   :  { %4406 = vadd.xlane.f32.xlu1 %v4405_v51  ;;  %v4335_v39 = vsel %vm4334_vm13, %v4332_v26, %v4333_v7  ;;  %v4403_v53 = vsel %vm6796_vm4, %v4398_v55, 0.0  ;;  %v4351_v45 = vsel %vm4350_vm9, %v4348_v36, %v4349_v24  ;;  %v4404_v11 = vsel %vm6811_vm6, %v4398_v55, 0.0 }
0x22e4   :  { %v4336_v35 = vrot.slane %v4335_v39, 1  ;;  %v4411_v40 = vsel %vm2826_vm5, %v4403_v53, 0.0  ;;  %v4414_v16 = vsel %vm2830_vm7, %v4404_v11, 0.0 }
0x22e6   :  { %vm4337_vm14 = vcmp.lt.s32.totalorder %v4335_v39, %v4336_v35 }
0x22e7   :  { %4409 = vadd.xlane.f32.xlu1 %v4408_v57  ;;  %v4338_v25 = vsel %vm4337_vm14, %v4335_v39, %v4336_v35 }
0x22e8   :  { %v7550_v38 = vsel %vm2912_vm11, %v4351_v45, %v4338_v25 }
0x22eb   :  { %4412 = vadd.xlane.f32.xlu1 %v4411_v40 }
0x22ef   :  { %4415 = vadd.xlane.f32.xlu1 %v4414_v16 }
0x2300   :  { %4480 = vperm.xlu1 %5857, %v6832_v29  }
0x2304   :  { %5858 = vset.pattern.permute.xlu1 %v6049_v13 }
0x2370   :  { %v4407_v8 = vpop.xlane.xlu1 %4406 }
0x2371   :  { %v4417_v26 = vadd.f32 %v7507_v14, %v4407_v8 }
0x2373   :  { %v4421_v36 = vsel %vm2826_vm5, %v4417_v26, -inf }
0x2374   :  { %v4410_v56 = vpop.xlane.xlu1 %4409 }
0x2375   :  { %v4418_v62 = vadd.f32 %v7501_v2, %v4410_v56 }
0x2377   :  { %v4422_v7 = vsel %vm2830_vm7, %v4418_v62, -inf }
0x2378   :  { %v4423_v24 = vmax.f32 %v4421_v36, %v4422_v7  ;;  %v4413_v41 = vpop.xlane.xlu1 %4412 }
0x2379   :  { %v4419_v0 = vadd.f32 %v7507_v14, %v4413_v41 }
0x237a   :  { %v4424_v51 = vrot.slane %v4423_v24, 4 }
0x237b   :  { %v4430_v53 = vsel %vm2826_vm5, %v4419_v0, -inf }
0x237c   :  { %v4425_v55 = vmax.f32 %v4423_v24, %v4424_v51  ;;  %v4416_v39 = vpop.xlane.xlu1 %4415 }
0x237d   :  { %v4420_v35 = vadd.f32 %v7501_v2, %v4416_v39 }
0x237e   :  { %v4426_v57 = vrot.slane %v4425_v55, 2 }
0x237f   :  { %v4431_v45 = vsel %vm2830_vm7, %v4420_v35, -inf }
0x2380   :  { %v4427_v25 = vmax.f32 %v4425_v55, %v4426_v57  ;;  %v4432_v40 = vmax.f32 %v4430_v53, %v4431_v45  ;;  %v4474_v45 = vrot.slane %v7456_v23, 5 }
0x2382   :  { %v4428_v11 = vrot.slane %v4427_v25, 1  ;;  %v4433_v16 = vrot.slane %v4432_v40, 4 }
0x2384   :  { %v4429_v13 = vmax.f32 %v4427_v25, %v4428_v11  ;;  %v4434_v8 = vmax.f32 %v4432_v40, %v4433_v16  ;;  %v7570_v25 = vpop.permute.xlu1 %4480 }
0x2386   :  { %vm4439_vm15 = vcmp.eq.f32.partialorder %v4417_v26, %v4429_v13  ;;  %vm4440_vm10 = vcmp.eq.f32.partialorder %v4418_v62, %v4429_v13  ;;  %v4435_v56 = vrot.slane %v4434_v8, 2  ;;  %v4473_v26 = vrot.slane %v7456_v23, 4 }
0x2387   :  { %v4443_v36 = vsel %vm4439_vm15, %v6160_v42, 9  ;;  %v4444_v7 = vsel %vm4440_vm10, %v6801_v30, 9  ;;  %vm4482_vm10 = vcmp.eq.s32.totalorder %v7570_v25, 1 }
0x2388   :  { %v4447_v24 = vsel %vm2826_vm5, %v4443_v36, 2147483647  ;;  %v4448_v41 = vsel %vm2830_vm7, %v4444_v7, 2147483647  ;;  %v4436_v51 = vmax.f32 %v4434_v8, %v4435_v56  ;;  %v4477_v7 = vadd.f32 %v4473_v26, %v4429_v13 }
0x2389   :  { %vm4449_vm13 = vcmp.lt.s32.totalorder %v4447_v24, %v4448_v41 }
0x238a   :  { %v4450_v39 = vsel %vm4449_vm13, %v4447_v24, %v4448_v41  ;;  %v4437_v55 = vrot.slane %v4436_v51, 1 }
0x238b   :  { %v4451_v57 = vrot.slane %v4450_v39, 4 }
0x238c   :  { %v4438_v53 = vmax.f32 %v4436_v51, %v4437_v55 }
0x238d   :  { %vm4452_vm9 = vcmp.lt.s32.totalorder %v4450_v39, %v4451_v57 }
0x238e   :  { %v4453_v62 = vsel %vm4452_vm9, %v4450_v39, %v4451_v57  ;;  %vm4441_vm14 = vcmp.eq.f32.partialorder %v4419_v0, %v4438_v53  ;;  %vm4442_vm15 = vcmp.eq.f32.partialorder %v4420_v35, %v4438_v53  ;;  %v4478_v40 = vadd.f32 %v4474_v45, %v4438_v53 }
0x238f   :  { %v4454_v11 = vrot.slane %v4453_v62, 2  ;;  %v4445_v16 = vsel %vm4441_vm14, %v6160_v42, 9  ;;  %v4446_v8 = vsel %vm4442_vm15, %v6801_v30, 9 }
0x2390   :  { %v4460_v56 = vsel %vm2826_vm5, %v4445_v16, 2147483647  ;;  %v4461_v36 = vsel %vm2830_vm7, %v4446_v8, 2147483647  ;;  %v4485_v24 = vrot.slane %v4478_v40, 7 }
0x2391   :  { %vm4462_vm13 = vcmp.lt.s32.totalorder %v4460_v56, %v4461_v36  ;;  %vm4455_vm0 = vcmp.lt.s32.totalorder %v4453_v62, %v4454_v11 }
0x2392   :  { %v4463_v41 = vsel %vm4462_vm13, %v4460_v56, %v4461_v36  ;;  %v4486_v0 = vsel %vm2912_vm11, %v4485_v24, %v4477_v7  ;;  %v4456_v55 = vsel %vm4455_vm0, %v4453_v62, %v4454_v11 }
0x2393   :  { %v4464_v35 = vrot.slane %v4463_v41, 4  ;;  %v7582_v51 = vsel %vm4482_vm10, %v4486_v0, %v7533_v18  ;;  %v4457_v26 = vrot.slane %v4456_v55, 1 }
0x2394   :  { %v4496_v39 = vrot.slane %v7582_v51, %v6783_v9 }
0x2395   :  { %vm4465_vm9 = vcmp.lt.s32.totalorder %v4463_v41, %v4464_v35  ;;  %vm4458_vm0 = vcmp.lt.s32.totalorder %v4456_v55, %v4457_v26 }
0x2396   :  { %v4466_v57 = vsel %vm4465_vm9, %v4463_v41, %v4464_v35  ;;  %v4497_v53 = vcombine.high %v4496_v39, %v4496_v39  ;;  %v4504_v13 = vrot.slane %v4496_v39, %v6783_v9 }
0x2397   :  { %v4467_v45 = vrot.slane %v4466_v57, 2 }
0x2398   :  { %v4515_v40 = vrot.slane %v4504_v13, %v6163_v47  ;;  %v4511_v16 = vrot.slane %v4497_v53, %v6783_v9 }
0x2399   :  { %vm4468_vm14 = vcmp.lt.s32.totalorder %v4466_v57, %v4467_v45 }
0x239a   :  { %v4522_v18 = vsel %vm6796_vm4, %v4515_v40, 0.0  ;;  %v4519_v8 = vrot.slane %v4511_v16, %v6163_v47  ;;  %v4469_v56 = vsel %vm4468_vm14, %v4466_v57, %v4467_v45  ;;  %v4523_v24 = vsel %vm6811_vm6, %v4515_v40, 0.0 }
0x239b   :  { %v4526_v62 = vsel %vm2826_vm5, %v4522_v18, 0.0  ;;  %v4470_v11 = vrot.slane %v4469_v56, 1  ;;  %v4459_v47 = vsel %vm4458_vm0, %v4456_v55, %v4457_v26  ;;  %v4529_v39 = vsel %vm2830_vm7, %v4523_v24, 0.0 }
0x239c   :  { %4527 = vadd.xlane.f32.xlu1 %v4526_v62  ;;  %v4525_v36 = vsel %vm6811_vm6, %v4519_v8, 0.0  ;;  %v4524_v7 = vsel %vm6796_vm4, %v4519_v8, 0.0 }
0x239d   :  { %v4535_v9 = vsel %vm2830_vm7, %v4525_v36, 0.0  ;;  %vm4471_vm15 = vcmp.lt.s32.totalorder %v4469_v56, %v4470_v11  ;;  %v4532_v0 = vsel %vm2826_vm5, %v4524_v7, 0.0 }
0x239e   :  { %4536 = vadd.xlane.f32.xlu0 %v4535_v9  ;;  %v4472_v41 = vsel %vm4471_vm15, %v4469_v56, %v4470_v11 }
0x239f   :  { %v7602_v35 = vsel %vm2912_vm11, %v4472_v41, %v4459_v47 }
0x23a0   :  { %4533 = vadd.xlane.f32.xlu1 %v4532_v0 }
0x23a2   :  { %4530 = vadd.xlane.f32.xlu0 %v4529_v39  ;;  %v4595_v39 = vrot.slane %v7456_v23, 7 }
0x23b1   :  { %4601 = vperm.xlu1 %5858, %v6832_v29  }
0x23b5   :  { %5861 = vset.pattern.permute.xlu1 %v6047_v6 }
0x2429   :  { %v4528_v50 = vpop.xlane.xlu1 %4527 }
0x242a   :  { %v4538_v55 = vadd.f32 %v7507_v14, %v4528_v50  ;;  %v4594_v50 = vrot.slane %v7456_v23, 6 }
0x242b   :  { %v4537_v57 = vpop.xlane.xlu0 %4536 }
0x242c   :  { %v4541_v4 = vadd.f32 %v7501_v2, %v4537_v57  ;;  %v4542_v29 = vsel %vm2826_vm5, %v4538_v55, -inf }
0x242d   :  { %v4534_v53 = vpop.xlane.xlu1 %4533 }
0x242e   :  { %v4540_v13 = vadd.f32 %v7507_v14, %v4534_v53  ;;  %v4552_v26 = vsel %vm2830_vm7, %v4541_v4, -inf }
0x242f   :  { %v4531_v45 = vpop.xlane.xlu0 %4530 }
0x2430   :  { %v4551_v40 = vsel %vm2826_vm5, %v4540_v13, -inf  ;;  %v4539_v16 = vadd.f32 %v7501_v2, %v4531_v45 }
0x2431   :  { %v4553_v18 = vmax.f32 %v4551_v40, %v4552_v26  ;;  %v7616_v2 = vpop.permute.xlu1 %4601  ;;  %v6003_v40 = vld [vmem:[%s7848_s12] sm:$0x7]  ;;  %s6050_s12 = smov 127  }
0x2432   :  { %v4543_v6 = vsel %vm2830_vm7, %v4539_v16, -inf  ;;  %vm4603_vm13 = vcmp.eq.s32.totalorder %v7616_v2, 1 }
0x2433   :  { %v4554_v8 = vrot.slane %v4553_v18, 4  ;;  %v4544_v56 = vmax.f32 %v4542_v29, %v4543_v6 }
0x2435   :  { %v4555_v62 = vmax.f32 %v4553_v18, %v4554_v8  ;;  %v4545_v11 = vrot.slane %v4544_v56, 4  ;;  %v4613_v18 = vrot.slane %v6003_v40, %v6382_v10 }
0x2437   :  { %v4556_v36 = vrot.slane %v4555_v62, 2  ;;  %v4546_v7 = vmax.f32 %v4544_v56, %v4545_v11 }
0x2439   :  { %v4557_v9 = vmax.f32 %v4555_v62, %v4556_v36  ;;  %v4547_v14 = vrot.slane %v4546_v7, 2 }
0x243b   :  { %v4558_v24 = vrot.slane %v4557_v9, 1  ;;  %v4548_v47 = vmax.f32 %v4546_v7, %v4547_v14 }
0x243d   :  { %v4559_v41 = vmax.f32 %v4557_v9, %v4558_v24  ;;  %v4549_v0 = vrot.slane %v4548_v47, 1 }
0x243f   :  { %vm4562_vm4 = vcmp.eq.f32.partialorder %v4540_v13, %v4559_v41  ;;  %vm4563_vm6 = vcmp.eq.f32.partialorder %v4541_v4, %v4559_v41  ;;  %v4550_v57 = vmax.f32 %v4548_v47, %v4549_v0  ;;  %v4599_v53 = vadd.f32 %v4595_v39, %v4559_v41 }
0x2440   :  { %v4566_v45 = vsel %vm4562_vm4, %v6160_v42, 9  ;;  %v4567_v26 = vsel %vm4563_vm6, %v6801_v30, 9  ;;  %vm4615_vm6 = vcmask 66560  }
0x2441   :  { %v4581_v29 = vsel %vm2826_vm5, %v4566_v45, 2147483647  ;;  %v4582_v23 = vsel %vm2830_vm7, %v4567_v26, 2147483647  ;;  %vm4560_vm9 = vcmp.eq.f32.partialorder %v4538_v55, %v4550_v57  ;;  %vm4561_vm14 = vcmp.eq.f32.partialorder %v4539_v16, %v4550_v57 }
0x2442   :  { %vm4583_vm0 = vcmp.lt.s32.totalorder %v4581_v29, %v4582_v23  ;;  %v4564_v4 = vsel %vm4560_vm9, %v6160_v42, 9  ;;  %v4565_v13 = vsel %vm4561_vm14, %v6801_v30, 9  ;;  %v4598_v6 = vadd.f32 %v4594_v50, %v4550_v57 }
0x2443   :  { %v4584_v8 = vsel %vm4583_vm0, %v4581_v29, %v4582_v23  ;;  %v4568_v56 = vsel %vm2826_vm5, %v4564_v4, 2147483647  ;;  %v4569_v62 = vsel %vm2830_vm7, %v4565_v13, 2147483647  ;;  %v4606_v11 = vrot.slane %v4599_v53, 7 }
0x2444   :  { %v4585_v36 = vrot.slane %v4584_v8, 4  ;;  %vm4570_vm15 = vcmp.lt.s32.totalorder %v4568_v56, %v4569_v62 }
0x2445   :  { %v4571_v10 = vsel %vm4570_vm15, %v4568_v56, %v4569_v62  ;;  %v4607_v7 = vsel %vm2912_vm11, %v4606_v11, %v4598_v6 }
0x2446   :  { %vm4586_vm4 = vcmp.lt.s32.totalorder %v4584_v8, %v4585_v36  ;;  %v4572_v55 = vrot.slane %v4571_v10, 4  ;;  %v4609_v42 = vsel %vm4603_vm13, %v4607_v7, %v7582_v51 }
0x2447   :  { %v4587_v30 = vsel %vm4586_vm4, %v4584_v8, %v4585_v36  ;;  %v4614_v16 = vadd.f32 %v4613_v18, %v4609_v42 }
0x2448   :  { %v4588_v9 = vrot.slane %v4587_v30, 2  ;;  %vm4573_vm9 = vcmp.lt.s32.totalorder %v4571_v10, %v4572_v55 }
0x2449   :  { %v4574_v14 = vsel %vm4573_vm9, %v4571_v10, %v4572_v55  ;;  %v4616_v24 = vsel %vm4615_vm6, %v4614_v16, -inf  ;;  %vm4636_vm9 = vcmp.eq.s32.totalorder %v6789_v43, 15 }
0x244a   :  { %vm4589_vm5 = vcmp.lt.s32.totalorder %v4587_v30, %v4588_v9  ;;  %v4575_v47 = vrot.slane %v4574_v14, 2  ;;  %4617 = vmax.xlane.f32.xlu0 %v4616_v24 }
0x244b   :  { %v4590_v41 = vsel %vm4589_vm5, %v4587_v30, %v4588_v9  ;;  %vm4656_vm5 = vcmp.eq.s32.totalorder %v6789_v43, 14 }
0x244c   :  { %v4591_v0 = vrot.slane %v4590_v41, 1  ;;  %vm4576_vm7 = vcmp.lt.s32.totalorder %v4574_v14, %v4575_v47 }
0x244d   :  { %v4577_v39 = vsel %vm4576_vm7, %v4574_v14, %v4575_v47  ;;  %vm4637_vm7 = vmand %vm4636_vm9, %vm4603_vm13 }
0x244e   :  { %v4578_v50 = vrot.slane %v4577_v39, 1  ;;  %vm4592_vm14 = vcmp.lt.s32.totalorder %v4590_v41, %v4591_v0 }
0x244f   :  { %v4593_v51 = vsel %vm4592_vm14, %v4590_v41, %v4591_v0  ;;  %vm4657_vm14 = vmand %vm4656_vm5, %vm4482_vm10  ;;  %vm4681_vm10 = vcmp.eq.s32.totalorder %v6789_v43, 13 }
0x2450   :  { %vm4579_vm0 = vcmp.lt.s32.totalorder %v4577_v39, %v4578_v50  ;;  %vm7661_vm13 = vmand %vm4681_vm10, %vm4361_vm2  ;;  %vm4706_vm2 = vcmp.eq.s32.totalorder %v6789_v43, 12 }
0x2451   :  { %v4580_v57 = vsel %vm4579_vm0, %v4577_v39, %v4578_v50 }
0x2452   :  { %v4640_v53 = vsel %vm2912_vm11, %v4593_v51, %v4580_v57 }
0x24d7   :  { %v4618_v45 = vpop.xlane.xlu0 %4617 }
0x24d8   :  { %vm4619_vm15 = vcmp.eq.f32.partialorder %v4614_v16, %v4618_v45 }
0x24d9   :  { %v4620_v26 = vsel %vm4619_vm15, %v6789_v43, 9 }
0x24da   :  { %v4621_v40 = vsel %vm4615_vm6, %v4620_v26, 2147483647 }
0x24db   :  { %v4623_v18 = vshra.s32 %v4621_v40, 16  ;;  %v4622_v23 = vand.u32 65535, %v4621_v40 }
0x24dd   :  { %v4625_v29 = vcvt.s32.f32 %v4623_v18  ;;  %v4624_v13 = vcvt.s32.f32 %v4622_v23 }
0x24df   :  { %4626 = vmin.xlane.f32.xlu0 %v4625_v29 }
0x256c   :  { %v4627_v4 = vpop.xlane.xlu0 %4626 }
0x256d   :  { %vm4628_vm4 = vcmp.eq.f32.partialorder %v4625_v29, %v4627_v4  ;;  %v4633_v8 = vcvt.f32.s32 %v4627_v4 }
0x256e   :  { %v4629_v6 = vsel %vm4628_vm4, %v4624_v13, inf  ;;  %vm4707_vm4 = vmand %vm4706_vm2, %vm4240_vm12  ;;  %vm4731_vm12 = vcmp.eq.s32.totalorder %v6789_v43, 11  ;;  %vm7889_vm2 = vcmp.eq.s32.totalorder %v7257_v5, 1 }
0x256f   :  { %4630 = vmin.xlane.f32.xlu0 %v4629_v6  ;;  %v4634_v62 = vshll.u32 %v4633_v8, 16  ;;  %vm7687_vm9 = vmand %vm4731_vm12, %vm4119_vm3  ;;  %vm4756_vm3 = vcmp.eq.s32.totalorder %v6789_v43, 10 }
0x25fc   :  { %v4631_v56 = vpop.xlane.xlu0 %4630 }
0x25fd   :  { %v4632_v11 = vcvt.f32.s32 %v4631_v56 }
0x25ff   :  { %v4635_v36 = vadd.s32 %v4634_v62, %v4632_v11 }
0x2601   :  { %vm4639_vm11 = vcmp.eq.s32.totalorder %v6789_v43, %v4635_v36  ;;  %v4638_v57 = vsel %vm4637_vm7, %v4635_v36, 0  ;;  %vm4757_vm7 = vmand %vm4756_vm3, %vm3998_vm1  ;;  %vm4781_vm1 = vcmp.eq.s32.totalorder %v6789_v43, 9  ;;  %vm7892_vm3 = vcmp.eq.s32.totalorder %v7195_v37, 1 }
0x2602   :  { %v4641_v10 = vsel %vm4639_vm11, %v4640_v53, 0 }
0x2603   :  { %v4642_v7 = vsel %vm4615_vm6, %v4641_v10, 0 }
0x2604   :  { %v4644_v55 = vshrl.u32 %v4642_v7, 16  ;;  %v4643_v42 = vand.u32 65535, %v4642_v7 }
0x2606   :  { %v4646_v30 = vcvt.s32.f32 %v4644_v55  ;;  %v4645_v16 = vcvt.s32.f32 %v4643_v42 }
0x2608   :  { %4649 = vadd.xlane.f32.xlu0 %v4646_v30  ;;  %4647 = vadd.xlane.f32.xlu1 %v4645_v16 }
0x2695   :  { %v4650_v9 = vpop.xlane.xlu0 %4649  ;;  %v4648_v14 = vpop.xlane.xlu1 %4647 }
0x2696   :  { %v4652_v24 = vcvt.f32.s32 %v4650_v9  ;;  %v4651_v41 = vcvt.f32.s32 %v4648_v14 }
0x2698   :  { %v4653_v47 = vshll.u32 %v4652_v24, 16 }
0x269a   :  { %v4654_v0 = vadd.s32 %v4653_v47, %v4651_v41  ;;  %v7879_v41 = vmov 12  }
0x269c   :  { %v4655_v39 = vsel %vm2896_vm8, %v4654_v0, %v4635_v36 }
0x269d   :  { %4659 = vperm.xlu0 %5859, %v4655_v39  }
0x26a1   :  { %5860 = vset.pattern.permute.xlu0 %v6048_v21 }
0x271c   :  { %v4660_v50 = vpop.permute.xlu0 %4659 }
0x271d   :  { %v4661_v51 = vsel %vm4657_vm14, %v4660_v50, %v4638_v57  ;;  %vm4662_vm0 = vcmp.eq.s32.totalorder %v6789_v43, %v4660_v50 }
0x271e   :  { %v4664_v53 = vsel %vm4662_vm0, %v7602_v35, 0  ;;  %vm7885_vm0 = vcmp.eq.s32.totalorder %v7307_v48, 1 }
0x271f   :  { %v4665_v45 = vsel %vm4615_vm6, %v4664_v53, 0  ;;  %vm7713_vm10 = vmand %vm4781_vm1, %vm7885_vm0 }
0x2720   :  { %v4667_v21 = vshrl.u32 %v4665_v45, 16  ;;  %v4666_v40 = vand.u32 65535, %v4665_v45 }
0x2722   :  { %v4669_v26 = vcvt.s32.f32 %v4667_v21  ;;  %v4668_v18 = vcvt.s32.f32 %v4666_v40 }
0x2724   :  { %4672 = vadd.xlane.f32.xlu1 %v4669_v26 }
0x2728   :  { %4670 = vadd.xlane.f32.xlu1 %v4668_v18 }
0x2739   :  { %4678 = vrot.lane.b32.xlu1 %v4655_v39, %s6050_s12 }
0x27b1   :  { %v4673_v25 = vpop.xlane.xlu1 %4672 }
0x27b2   :  { %v4675_v2 = vcvt.f32.s32 %v4673_v25 }
0x27b4   :  { %v4676_v23 = vshll.u32 %v4675_v2, 16 }
0x27b5   :  { %v4671_v29 = vpop.xlane.xlu1 %4670 }
0x27b6   :  { %v4674_v4 = vcvt.f32.s32 %v4671_v29 }
0x27b8   :  { %v4677_v13 = vadd.s32 %v4676_v23, %v4674_v4  ;;  %v7880_v23 = vmov 11  }
0x27b9   :  { %v4679_v6 = vpop.permute.xlu1 %4678 }
0x27ba   :  { %v4680_v35 = vsel %vm2896_vm8, %v4677_v13, %v4679_v6 }
0x27bb   :  { %4684 = vperm.xlu0 %5860, %v4680_v35  }
0x27bf   :  { %5874 = vset.pattern.permute.xlu0 %v6033_v27 }
0x283a   :  { %v4685_v56 = vpop.permute.xlu0 %4684 }
0x283b   :  { %v4686_v62 = vsel %vm7661_vm13, %v4685_v56, %v4661_v51  ;;  %vm4687_vm15 = vcmp.eq.s32.totalorder %v6789_v43, %v4685_v56 }
0x283c   :  { %v4689_v11 = vsel %vm4687_vm15, %v7550_v38, 0  ;;  %vm4806_vm15 = vcmp.eq.s32.totalorder %v6789_v43, 8 }
0x283d   :  { %v4690_v36 = vsel %vm4615_vm6, %v4689_v11, 0 }
0x283e   :  { %v4692_v10 = vshrl.u32 %v4690_v36, 16  ;;  %v4691_v7 = vand.u32 65535, %v4690_v36 }
0x2840   :  { %v4694_v55 = vcvt.s32.f32 %v4692_v10  ;;  %v4693_v42 = vcvt.s32.f32 %v4691_v7 }
0x2842   :  { %4697 = vadd.xlane.f32.xlu0 %v4694_v55  ;;  %4695 = vadd.xlane.f32.xlu1 %v4693_v42 }
0x2858   :  { %4703 = vrot.lane.b32.xlu0 %v4680_v35, %s6050_s12 }
0x28cf   :  { %v4698_v60 = vpop.xlane.xlu0 %4697  ;;  %v4696_v30 = vpop.xlane.xlu1 %4695 }
0x28d0   :  { %v4700_v16 = vcvt.f32.s32 %v4698_v60  ;;  %v4699_v14 = vcvt.f32.s32 %v4696_v30 }
0x28d2   :  { %v4701_v9 = vshll.u32 %v4700_v16, 16  ;;  %v7883_v16 = vmov 10  }
0x28d3   :  { %v4704_v47 = vpop.permute.xlu0 %4703 }
0x28d4   :  { %v4702_v24 = vadd.s32 %v4701_v9, %v4699_v14 }
0x28d6   :  { %v4705_v38 = vsel %vm2896_vm8, %v4702_v24, %v4704_v47 }
0x28d7   :  { %4709 = vperm.xlu1 %5861, %v4705_v38  }
0x28db   :  { %5862 = vset.pattern.permute.xlu1 %v7879_v41 }
0x2956   :  { %v4710_v0 = vpop.permute.xlu1 %4709 }
0x2957   :  { %v4711_v39 = vsel %vm4707_vm4, %v4710_v0, %v4686_v62  ;;  %vm4712_vm11 = vcmp.eq.s32.totalorder %v6789_v43, %v4710_v0  ;;  %vm4807_vm4 = vmand %vm4806_vm15, %vm7889_vm2 }
0x2958   :  { %v4714_v50 = vsel %vm4712_vm11, %v7491_v3, 0 }
0x2959   :  { %v4715_v57 = vsel %vm4615_vm6, %v4714_v50, 0 }
0x295a   :  { %v4717_v51 = vshrl.u32 %v4715_v57, 16  ;;  %v4716_v53 = vand.u32 65535, %v4715_v57 }
0x295c   :  { %v4719_v45 = vcvt.s32.f32 %v4717_v51  ;;  %v4718_v21 = vcvt.s32.f32 %v4716_v53 }
0x295e   :  { %4722 = vadd.xlane.f32.xlu0 %v4719_v45  ;;  %4720 = vadd.xlane.f32.xlu1 %v4718_v21 }
0x2974   :  { %4728 = vrot.lane.b32.xlu0 %v4705_v38, %s6050_s12 }
0x29eb   :  { %v4723_v26 = vpop.xlane.xlu0 %4722  ;;  %v4721_v40 = vpop.xlane.xlu1 %4720 }
0x29ec   :  { %v4725_v33 = vcvt.f32.s32 %v4723_v26  ;;  %v4724_v25 = vcvt.f32.s32 %v4721_v40  ;;  %v7884_v26 = vmov 9  }
0x29ee   :  { %v4726_v18 = vshll.u32 %v4725_v33, 16 }
0x29ef   :  { %v4729_v29 = vpop.permute.xlu0 %4728 }
0x29f0   :  { %v4727_v2 = vadd.s32 %v4726_v18, %v4724_v25 }
0x29f2   :  { %v4730_v3 = vsel %vm2896_vm8, %v4727_v2, %v4729_v29 }
0x29f3   :  { %4734 = vperm.xlu1 %5862, %v4730_v3  }
0x29f7   :  { %5863 = vset.pattern.permute.xlu1 %v7880_v23 }
0x2a72   :  { %v4735_v13 = vpop.permute.xlu1 %4734 }
0x2a73   :  { %v4736_v6 = vsel %vm7687_vm9, %v4735_v13, %v4711_v39  ;;  %vm4737_vm5 = vcmp.eq.s32.totalorder %v6789_v43, %v4735_v13  ;;  %vm4831_vm9 = vcmp.eq.s32.totalorder %v6789_v43, 7 }
0x2a74   :  { %v4739_v35 = vsel %vm4737_vm5, %v7436_v59, 0  ;;  %vm4856_vm5 = vcmp.eq.s32.totalorder %v6789_v43, 6 }
0x2a75   :  { %v4740_v8 = vsel %vm4615_vm6, %v4739_v35, 0 }
0x2a76   :  { %v4742_v56 = vshrl.u32 %v4740_v8, 16  ;;  %v4741_v62 = vand.u32 65535, %v4740_v8 }
0x2a78   :  { %v4744_v11 = vcvt.s32.f32 %v4742_v56  ;;  %v4743_v36 = vcvt.s32.f32 %v4741_v62 }
0x2a7a   :  { %4747 = vadd.xlane.f32.xlu0 %v4744_v11  ;;  %4745 = vadd.xlane.f32.xlu1 %v4743_v36  ;;  %v7888_v11 = vmov 8  }
0x2a90   :  { %4753 = vrot.lane.b32.xlu0 %v4730_v3, %s6050_s12 }
0x2b07   :  { %v4748_v61 = vpop.xlane.xlu0 %4747  ;;  %v4746_v10 = vpop.xlane.xlu1 %4745 }
0x2b08   :  { %v4750_v7 = vcvt.f32.s32 %v4748_v61  ;;  %v4749_v42 = vcvt.f32.s32 %v4746_v10 }
0x2b0a   :  { %v4751_v55 = vshll.u32 %v4750_v7, 16 }
0x2b0b   :  { %v4754_v30 = vpop.permute.xlu0 %4753 }
0x2b0c   :  { %v4752_v60 = vadd.s32 %v4751_v55, %v4749_v42 }
0x2b0e   :  { %v4755_v59 = vsel %vm2896_vm8, %v4752_v60, %v4754_v30 }
0x2b0f   :  { %4759 = vperm.xlu1 %5863, %v4755_v59  }
0x2b13   :  { %5864 = vset.pattern.permute.xlu1 %v7883_v16 }
0x2b8e   :  { %v4760_v9 = vpop.permute.xlu1 %4759 }
0x2b8f   :  { %v4761_v14 = vsel %vm4757_vm7, %v4760_v9, %v4736_v6  ;;  %vm4762_vm14 = vcmp.eq.s32.totalorder %v6789_v43, %v4760_v9  ;;  %vm4832_vm7 = vmand %vm4831_vm9, %vm7892_vm3  ;;  %vm7901_vm3 = vcmp.eq.s32.totalorder %v6955_v12, 1 }
0x2b90   :  { %v4764_v24 = vsel %vm4762_vm14, %v7386_v15, 0  ;;  %vm7893_vm14 = vcmp.eq.s32.totalorder %v7140_v49, 1 }
0x2b91   :  { %v4765_v47 = vsel %vm4615_vm6, %v4764_v24, 0  ;;  %vm4857_vm1 = vmand %vm4856_vm5, %vm7893_vm14  ;;  %vm4931_vm5 = vcmp.eq.s32.totalorder %v6789_v43, 3 }
0x2b92   :  { %v4767_v38 = vshrl.u32 %v4765_v47, 16  ;;  %v4766_v41 = vand.u32 65535, %v4765_v47 }
0x2b94   :  { %v4769_v0 = vcvt.s32.f32 %v4767_v38  ;;  %v4768_v39 = vcvt.s32.f32 %v4766_v41  ;;  %v7890_v38 = vmov 7  }
0x2b96   :  { %4772 = vadd.xlane.f32.xlu0 %v4769_v0  ;;  %4770 = vadd.xlane.f32.xlu1 %v4768_v39 }
0x2bac   :  { %4778 = vrot.lane.b32.xlu0 %v4755_v59, %s6050_s12 }
0x2c23   :  { %v4773_v50 = vpop.xlane.xlu0 %4772  ;;  %v4771_v57 = vpop.xlane.xlu1 %4770 }
0x2c24   :  { %v4775_v46 = vcvt.f32.s32 %v4773_v50  ;;  %v4774_v53 = vcvt.f32.s32 %v4771_v57 }
0x2c26   :  { %v4776_v51 = vshll.u32 %v4775_v46, 16 }
0x2c27   :  { %v4779_v21 = vpop.permute.xlu0 %4778 }
0x2c28   :  { %v4777_v45 = vadd.s32 %v4776_v51, %v4774_v53 }
0x2c2a   :  { %v4780_v15 = vsel %vm2896_vm8, %v4777_v45, %v4779_v21 }
0x2c2b   :  { %4784 = vperm.xlu1 %5864, %v4780_v15  }
0x2c2f   :  { %5865 = vset.pattern.permute.xlu1 %v7884_v26 }
0x2caa   :  { %v4785_v33 = vpop.permute.xlu1 %4784 }
0x2cab   :  { %v4786_v18 = vsel %vm7713_vm10, %v4785_v33, %v4761_v14  ;;  %vm4787_vm13 = vcmp.eq.s32.totalorder %v6789_v43, %v4785_v33  ;;  %vm4881_vm10 = vcmp.eq.s32.totalorder %v6789_v43, 5 }
0x2cac   :  { %v4789_v25 = vsel %vm4787_vm13, %v7336_v17, 0  ;;  %vm7895_vm13 = vcmp.eq.s32.totalorder %v7077_v58, 1 }
0x2cad   :  { %v4790_v2 = vsel %vm4615_vm6, %v4789_v25, 0  ;;  %vm7759_vm15 = vmand %vm4881_vm10, %vm7895_vm13 }
0x2cae   :  { %v4792_v29 = vshrl.u32 %v4790_v2, 16  ;;  %v4791_v3 = vand.u32 65535, %v4790_v2 }
0x2cb0   :  { %v4794_v23 = vcvt.s32.f32 %v4792_v29  ;;  %v4793_v4 = vcvt.s32.f32 %v4791_v3 }
0x2cb2   :  { %4797 = vadd.xlane.f32.xlu0 %v4794_v23  ;;  %4795 = vadd.xlane.f32.xlu1 %v4793_v4 }
0x2cc8   :  { %4803 = vrot.lane.b32.xlu0 %v4780_v15, %s6050_s12 }
0x2d3f   :  { %v4798_v48 = vpop.xlane.xlu0 %4797  ;;  %v4796_v13 = vpop.xlane.xlu1 %4795 }
0x2d40   :  { %v4800_v6 = vcvt.f32.s32 %v4798_v48  ;;  %v4799_v8 = vcvt.f32.s32 %v4796_v13 }
0x2d42   :  { %v4801_v35 = vshll.u32 %v4800_v6, 16 }
0x2d43   :  { %v4804_v62 = vpop.permute.xlu0 %4803 }
0x2d44   :  { %v4802_v56 = vadd.s32 %v4801_v35, %v4799_v8 }
0x2d46   :  { %v4805_v17 = vsel %vm2896_vm8, %v4802_v56, %v4804_v62 }
0x2d47   :  { %4809 = vperm.xlu1 %5865, %v4805_v17  }
0x2d4b   :  { %5866 = vset.pattern.permute.xlu1 %v7888_v11  ;;  %v7894_v11 = vmov 5  }
0x2dc6   :  { %v4810_v36 = vpop.permute.xlu1 %4809 }
0x2dc7   :  { %v4811_v61 = vsel %vm4807_vm4, %v4810_v36, %v4786_v18  ;;  %vm4812_vm11 = vcmp.eq.s32.totalorder %v6789_v43, %v4810_v36  ;;  %v7891_v18 = vmov 6   ;;  %vm4906_vm4 = vcmp.eq.s32.totalorder %v6789_v43, 4 }
0x2dc8   :  { %v4814_v10 = vsel %vm4812_vm11, %v7287_v1, 0  ;;  %vm7899_vm11 = vcmp.eq.s32.totalorder %v7013_v63, 1 }
0x2dc9   :  { %v4815_v7 = vsel %vm4615_vm6, %v4814_v10, 0 }
0x2dca   :  { %v4817_v55 = vshrl.u32 %v4815_v7, 16  ;;  %v4816_v42 = vand.u32 65535, %v4815_v7 }
0x2dcc   :  { %v4819_v60 = vcvt.s32.f32 %v4817_v55  ;;  %v4818_v30 = vcvt.s32.f32 %v4816_v42 }
0x2dce   :  { %4822 = vadd.xlane.f32.xlu0 %v4819_v60  ;;  %4820 = vadd.xlane.f32.xlu1 %v4818_v30 }
0x2de4   :  { %4828 = vrot.lane.b32.xlu0 %v4805_v17, %s6050_s12 }
0x2e5b   :  { %v4823_v59 = vpop.xlane.xlu0 %4822  ;;  %v4821_v16 = vpop.xlane.xlu1 %4820 }
0x2e5c   :  { %v4825_v5 = vcvt.f32.s32 %v4823_v59  ;;  %v4824_v14 = vcvt.f32.s32 %v4821_v16 }
0x2e5e   :  { %v4826_v9 = vshll.u32 %v4825_v5, 16 }
0x2e5f   :  { %v4829_v47 = vpop.permute.xlu0 %4828 }
0x2e60   :  { %v4827_v24 = vadd.s32 %v4826_v9, %v4824_v14 }
0x2e62   :  { %v4830_v1 = vsel %vm2896_vm8, %v4827_v24, %v4829_v47 }
0x2e63   :  { %4834 = vperm.xlu1 %5866, %v4830_v1  }
0x2e67   :  { %5867 = vset.pattern.permute.xlu1 %v7890_v38 }
0x2ee2   :  { %v4835_v41 = vpop.permute.xlu1 %4834 }
0x2ee3   :  { %vm4837_vm12 = vcmp.eq.s32.totalorder %v6789_v43, %v4835_v41  ;;  %v4836_v25 = vsel %vm4832_vm7, %v4835_v41, %v4811_v61  ;;  %vm7785_vm7 = vmand %vm4931_vm5, %vm7901_vm3 }
0x2ee4   :  { %v4839_v0 = vsel %vm4837_vm12, %v7236_v52, 0  ;;  %vm4907_vm12 = vmand %vm4906_vm4, %vm7899_vm11 }
0x2ee5   :  { %v4840_v39 = vsel %vm4615_vm6, %v4839_v0, 0 }
0x2ee6   :  { %v4842_v50 = vshrl.u32 %v4840_v39, 16  ;;  %v4841_v57 = vand.u32 65535, %v4840_v39 }
0x2ee8   :  { %v4844_v46 = vcvt.s32.f32 %v4842_v50  ;;  %v4843_v51 = vcvt.s32.f32 %v4841_v57 }
0x2eea   :  { %4847 = vadd.xlane.f32.xlu0 %v4844_v46  ;;  %4845 = vadd.xlane.f32.xlu1 %v4843_v51 }
0x2f00   :  { %4853 = vrot.lane.b32.xlu0 %v4830_v1, %s6050_s12  ;;  %v7898_v1 = vmov 4  }
0x2f77   :  { %v4848_v53 = vpop.xlane.xlu0 %4847  ;;  %v4846_v45 = vpop.xlane.xlu1 %4845 }
0x2f78   :  { %v4850_v21 = vcvt.f32.s32 %v4848_v53  ;;  %v4849_v26 = vcvt.f32.s32 %v4846_v45 }
0x2f7a   :  { %v4851_v15 = vshll.u32 %v4850_v21, 16 }
0x2f7b   :  { %v4854_v33 = vpop.permute.xlu0 %4853 }
0x2f7c   :  { %v4852_v40 = vadd.s32 %v4851_v15, %v4849_v26 }
0x2f7e   :  { %v4855_v52 = vsel %vm2896_vm8, %v4852_v40, %v4854_v33  ;;  %v7900_v33 = vmov 3  }
0x2f7f   :  { %4859 = vperm.xlu1 %5867, %v4855_v52  }
0x2f83   :  { %5868 = vset.pattern.permute.xlu1 %v7891_v18 }
0x2ffe   :  { %v4860_v2 = vpop.permute.xlu1 %4859 }
0x2fff   :  { %v4861_v29 = vsel %vm4857_vm1, %v4860_v2, %v4836_v25  ;;  %vm4862_vm0 = vcmp.eq.s32.totalorder %v6789_v43, %v4860_v2  ;;  %vm4956_vm1 = vcmp.eq.s32.totalorder %v6789_v43, 2 }
0x3000   :  { %v4864_v3 = vsel %vm4862_vm0, %v7167_v44, 0  ;;  %vm7905_vm0 = vcmp.eq.s32.totalorder %v6909_v32, 1 }
0x3001   :  { %v4865_v23 = vsel %vm4615_vm6, %v4864_v3, 0  ;;  %vm4957_vm10 = vmand %vm4956_vm1, %vm7905_vm0 }
0x3002   :  { %v4867_v4 = vshrl.u32 %v4865_v23, 16  ;;  %v4866_v48 = vand.u32 65535, %v4865_v23 }
0x3004   :  { %v4869_v13 = vcvt.s32.f32 %v4867_v4  ;;  %v4868_v6 = vcvt.s32.f32 %v4866_v48 }
0x3006   :  { %4872 = vadd.xlane.f32.xlu0 %v4869_v13  ;;  %4870 = vadd.xlane.f32.xlu1 %v4868_v6 }
0x301c   :  { %4878 = vrot.lane.b32.xlu0 %v4855_v52, %s6050_s12 }
0x3093   :  { %v4873_v37 = vpop.xlane.xlu0 %4872  ;;  %v4871_v49 = vpop.xlane.xlu1 %4870 }
0x3094   :  { %v4875_v35 = vcvt.f32.s32 %v4873_v37  ;;  %v4874_v56 = vcvt.f32.s32 %v4871_v49 }
0x3096   :  { %v4876_v8 = vshll.u32 %v4875_v35, 16 }
0x3097   :  { %v4879_v17 = vpop.permute.xlu0 %4878 }
0x3098   :  { %v4877_v62 = vadd.s32 %v4876_v8, %v4874_v56  ;;  %v7904_v56 = vmov 2  }
0x309a   :  { %v4880_v44 = vsel %vm2896_vm8, %v4877_v62, %v4879_v17 }
0x309b   :  { %4884 = vperm.xlu1 %5868, %v4880_v44  }
0x309f   :  { %5869 = vset.pattern.permute.xlu1 %v7894_v11 }
0x311a   :  { %v4885_v61 = vpop.permute.xlu1 %4884 }
0x311b   :  { %v4886_v10 = vsel %vm7759_vm15, %v4885_v61, %v4861_v29  ;;  %vm4887_vm2 = vcmp.eq.s32.totalorder %v6789_v43, %v4885_v61  ;;  %vm4981_vm15 = vcmp.eq.s32.totalorder %v6789_v43, 1 }
0x311c   :  { %v4889_v7 = vsel %vm4887_vm2, %v7111_v22, 0  ;;  %vm7906_vm2 = vcmp.eq.s32.totalorder %v6855_v28, 1 }
0x311d   :  { %v4890_v55 = vsel %vm4615_vm6, %v4889_v7, 0  ;;  %vm7811_vm4 = vmand %vm4981_vm15, %vm7906_vm2 }
0x311e   :  { %v4892_v42 = vshrl.u32 %v4890_v55, 16  ;;  %v4891_v60 = vand.u32 65535, %v4890_v55 }
0x3120   :  { %v4894_v30 = vcvt.s32.f32 %v4892_v42  ;;  %v4893_v59 = vcvt.s32.f32 %v4891_v60 }
0x3122   :  { %4897 = vadd.xlane.f32.xlu0 %v4894_v30  ;;  %4895 = vadd.xlane.f32.xlu1 %v4893_v59 }
0x3138   :  { %4903 = vrot.lane.b32.xlu0 %v4880_v44, %s6050_s12 }
0x31af   :  { %v4898_v58 = vpop.xlane.xlu0 %4897  ;;  %v4896_v16 = vpop.xlane.xlu1 %4895 }
0x31b0   :  { %v4900_v5 = vcvt.f32.s32 %v4898_v58  ;;  %v4899_v14 = vcvt.f32.s32 %v4896_v16 }
0x31b2   :  { %v4901_v9 = vshll.u32 %v4900_v5, 16 }
0x31b3   :  { %v4904_v47 = vpop.permute.xlu0 %4903 }
0x31b4   :  { %v4902_v24 = vadd.s32 %v4901_v9, %v4899_v14 }
0x31b6   :  { %v4905_v22 = vsel %vm2896_vm8, %v4902_v24, %v4904_v47 }
0x31b7   :  { %4909 = vperm.xlu1 %5869, %v4905_v22  }
0x31bb   :  { %5870 = vset.pattern.permute.xlu1 %v7898_v1 }
0x3236   :  { %v4910_v38 = vpop.permute.xlu1 %4909 }
0x3237   :  { %v4911_v41 = vsel %vm4907_vm12, %v4910_v38, %v4886_v10  ;;  %vm4912_vm9 = vcmp.eq.s32.totalorder %v6789_v43, %v4910_v38  ;;  %vm5011_vm12 = vcmask 123904  }
0x3238   :  { %v4914_v0 = vsel %vm4912_vm9, %v7050_v20, 0 }
0x3239   :  { %v4915_v39 = vsel %vm4615_vm6, %v4914_v0, 0 }
0x323a   :  { %v4917_v50 = vshrl.u32 %v4915_v39, 16  ;;  %v4916_v57 = vand.u32 65535, %v4915_v39 }
0x323c   :  { %v4919_v46 = vcvt.s32.f32 %v4917_v50  ;;  %v4918_v51 = vcvt.s32.f32 %v4916_v57 }
0x323e   :  { %4922 = vadd.xlane.f32.xlu0 %v4919_v46  ;;  %4920 = vadd.xlane.f32.xlu1 %v4918_v51 }
0x3254   :  { %4928 = vrot.lane.b32.xlu0 %v4905_v22, %s6050_s12 }
0x32cb   :  { %v4923_v53 = vpop.xlane.xlu0 %4922  ;;  %v4921_v45 = vpop.xlane.xlu1 %4920 }
0x32cc   :  { %v4925_v63 = vcvt.f32.s32 %v4923_v53  ;;  %v4924_v15 = vcvt.f32.s32 %v4921_v45 }
0x32ce   :  { %v4926_v21 = vshll.u32 %v4925_v63, 16 }
0x32cf   :  { %v4929_v40 = vpop.permute.xlu0 %4928 }
0x32d0   :  { %v4927_v26 = vadd.s32 %v4926_v21, %v4924_v15 }
0x32d2   :  { %v4930_v20 = vsel %vm2896_vm8, %v4927_v26, %v4929_v40 }
0x32d3   :  { %4934 = vperm.xlu1 %5870, %v4930_v20  }
0x32d7   :  { %5871 = vset.pattern.permute.xlu1 %v7900_v33 }
0x3352   :  { %v4935_v18 = vpop.permute.xlu1 %4934 }
0x3353   :  { %v4936_v25 = vsel %vm7785_vm7, %v4935_v18, %v4911_v41  ;;  %vm4937_vm14 = vcmp.eq.s32.totalorder %v6789_v43, %v4935_v18 }
0x3354   :  { %v4939_v2 = vsel %vm4937_vm14, %v6988_v19, 0 }
0x3355   :  { %v4940_v29 = vsel %vm4615_vm6, %v4939_v2, 0 }
0x3356   :  { %v4942_v3 = vshrl.u32 %v4940_v29, 16  ;;  %v4941_v23 = vand.u32 65535, %v4940_v29 }
0x3358   :  { %v4944_v4 = vcvt.s32.f32 %v4942_v3  ;;  %v4943_v48 = vcvt.s32.f32 %v4941_v23 }
0x335a   :  { %4947 = vadd.xlane.f32.xlu0 %v4944_v4  ;;  %4945 = vadd.xlane.f32.xlu1 %v4943_v48 }
0x3370   :  { %4953 = vrot.lane.b32.xlu0 %v4930_v20, %s6050_s12 }
0x33e7   :  { %v4948_v12 = vpop.xlane.xlu0 %4947  ;;  %v4946_v13 = vpop.xlane.xlu1 %4945 }
0x33e8   :  { %v4950_v6 = vcvt.f32.s32 %v4948_v12  ;;  %v4949_v49 = vcvt.f32.s32 %v4946_v13 }
0x33ea   :  { %v4951_v37 = vshll.u32 %v4950_v6, 16 }
0x33eb   :  { %v4954_v8 = vpop.permute.xlu0 %4953 }
0x33ec   :  { %v4952_v35 = vadd.s32 %v4951_v37, %v4949_v49 }
0x33ee   :  { %v4955_v19 = vsel %vm2896_vm8, %v4952_v35, %v4954_v8 }
0x33ef   :  { %4959 = vperm.xlu1 %5871, %v4955_v19  }
0x33f3   :  { %5872 = vset.pattern.permute.xlu1 %v7904_v56 }
0x346e   :  { %v4960_v62 = vpop.permute.xlu1 %4959 }
0x346f   :  { %v4961_v17 = vsel %vm4957_vm10, %v4960_v62, %v4936_v25  ;;  %vm4962_vm13 = vcmp.eq.s32.totalorder %v6789_v43, %v4960_v62 }
0x3470   :  { %v4964_v44 = vsel %vm4962_vm13, %v6939_v34, 0 }
0x3471   :  { %v4965_v11 = vsel %vm4615_vm6, %v4964_v44, 0 }
0x3472   :  { %v4967_v36 = vshrl.u32 %v4965_v11, 16  ;;  %v4966_v61 = vand.u32 65535, %v4965_v11 }
0x3474   :  { %v4969_v10 = vcvt.s32.f32 %v4967_v36  ;;  %v4968_v7 = vcvt.s32.f32 %v4966_v61 }
0x3476   :  { %4972 = vadd.xlane.f32.xlu0 %v4969_v10  ;;  %4970 = vadd.xlane.f32.xlu1 %v4968_v7 }
0x348c   :  { %4978 = vrot.lane.b32.xlu0 %v4955_v19, %s6050_s12 }
0x3503   :  { %v4973_v55 = vpop.xlane.xlu0 %4972  ;;  %v4971_v42 = vpop.xlane.xlu1 %4970 }
0x3504   :  { %v4975_v32 = vcvt.f32.s32 %v4973_v55  ;;  %v4974_v30 = vcvt.f32.s32 %v4971_v42 }
0x3506   :  { %v4976_v60 = vshll.u32 %v4975_v32, 16 }
0x3507   :  { %v4979_v58 = vpop.permute.xlu0 %4978 }
0x3508   :  { %v4977_v59 = vadd.s32 %v4976_v60, %v4974_v30 }
0x350a   :  { %v4980_v34 = vsel %vm2896_vm8, %v4977_v59, %v4979_v58 }
0x350b   :  { %4984 = vperm.xlu1 %5872, %v4980_v34  }
0x350f   :  { %5873 = vset.pattern.permute.xlu1 %v6033_v27 }
0x358a   :  { %v4985_v5 = vpop.permute.xlu1 %4984 }
0x358b   :  { %v4986_v9 = vsel %vm7811_vm4, %v4985_v5, %v4961_v17  ;;  %vm4987_vm11 = vcmp.eq.s32.totalorder %v6789_v43, %v4985_v5 }
0x358c   :  { %v4989_v14 = vsel %vm4987_vm11, %v6886_v31, 0 }
0x358d   :  { %v4990_v24 = vsel %vm4615_vm6, %v4989_v14, 0  ;;  %vm5006_vm6 = vcmp.eq.s32.totalorder %v6789_v43, 0 }
0x358e   :  { %v4992_v47 = vshrl.u32 %v4990_v24, 16  ;;  %v4991_v27 = vand.u32 65535, %v4990_v24 }
0x3590   :  { %v4994_v22 = vcvt.s32.f32 %v4992_v47  ;;  %v4993_v1 = vcvt.s32.f32 %v4991_v27 }
0x3592   :  { %4997 = vadd.xlane.f32.xlu0 %v4994_v22  ;;  %4995 = vadd.xlane.f32.xlu1 %v4993_v1 }
0x35a8   :  { %5003 = vrot.lane.b32.xlu0 %v4980_v34, %s6050_s12 }
0x361f   :  { %v4998_v28 = vpop.xlane.xlu0 %4997  ;;  %v4996_v38 = vpop.xlane.xlu1 %4995 }
0x3620   :  { %v5000_v41 = vcvt.f32.s32 %v4998_v28  ;;  %v4999_v39 = vcvt.f32.s32 %v4996_v38 }
0x3622   :  { %v5001_v0 = vshll.u32 %v5000_v41, 16 }
0x3623   :  { %v5004_v57 = vpop.permute.xlu0 %5003 }
0x3624   :  { %v5002_v50 = vadd.s32 %v5001_v0, %v4999_v39 }
0x3626   :  { %v5005_v31 = vsel %vm2896_vm8, %v5002_v50, %v5004_v57 }
0x3627   :  { %5008 = vperm.xlu1 %5873, %v5005_v31  }
0x36a6   :  { %v5009_v46 = vpop.permute.xlu1 %5008 }
0x36a7   :  { %v5010_v51 = vsel %vm5006_vm6, %v5009_v46, %v4986_v9 }
0x36a8   :  { %5012 = vst.msk [vmem:[#allocation2] sm:$0x3] %vm5011_vm12, %v5010_v51 }
0x36a9   :  { %6015 = shalt.err (!%p6012_p4)
}
0x36aa   :  { %s6016_s30 = scalar_lea.hbm %s7850_s14, 32 }
0x36ab   :  { %p6017_p5 = scmp.ne.s32.totalorder %s7850_s14, %s6016_s30  ;;  %p6020_p6 = scmp.lt.u32.totalorder %s6016_s30, %s7850_s14 }
0x36ad   :  { %p6022_p7 = pnand %p6020_p6, %p6017_p5 }
0x36af   :  { %6025 = shalt.err (!%p6022_p7)
}
0x36b0   :  { %5022 = dma.vmem_to_hbm [thread:$0]  %s5020_s10, 32, %s7850_s14, [#allocation3]  }
0x36b1   :  { %6026 = dma.done.wait [#allocation3], 32  }
0x36b2   :  { %6027 = vsyncadd [#allocation3], 4294967264 }
0x36b3   :  { %5026 = vsyncpa [#allocation3], 1 }

</bundles_post_ra>
